<compile_context>
chip_gen: v7x
topology: tpu7x:2x2x1
jax: 0.10.0
libtpu: 0.0.40
codegen_flags: <defaults>
</compile_context>

<pallas_src>
import functools

import jax
import jax.numpy as jnp
from jax.experimental import pallas as pl
from jax.experimental.pallas import tpu as pltpu


def _round_up(x, m):
    return (x + m - 1) // m * m


def _derive_vmem_limit():
    # Per-generation scoped-VMEM budget (review item): ~3/4 of physical VMEM,
    # clamped to [32 MiB, 96 MiB]; conservative 32 MiB if the query fails.
    try:
        info = pltpu.get_tpu_info()
        cap = 0
        for name in ("vmem_capacity_bytes", "vmem_size_bytes", "vmem_bytes"):
            v = getattr(info, name, None)
            if v:
                cap = int(v)
                break
        if cap > 0:
            return max(32 * 1024 * 1024, min(cap * 3 // 4, 96 * 1024 * 1024))
    except Exception:
        pass
    return 32 * 1024 * 1024


VMEM_LIMIT = _derive_vmem_limit()

ALIGN = 16   # bf16 sublane-tile alignment (a packed bf16 vreg tile is [16, 128])


# ---------------------------------------------------------------------------
# Padded row-flattened conv activation layout
#   pixel (h, w) lives at flat row  PAD_TOP + h*wp + w ; every other row/column
#   position is zero (top/bottom halos + junk columns w in [W, wp)).
# ---------------------------------------------------------------------------
def pad_geom(H, W):
    wp = _round_up(W + 2, ALIGN)          # >= W+2, sublane-tile aligned
    pad_top = wp + ALIGN                  # aligned, >= wp+1 (covers (-1,-1) tap)
    rows = H * wp
    R = pad_top + rows + wp + ALIGN       # == (H+2)*wp + 2*ALIGN
    return wp, pad_top, rows, R


def to_padded(x):
    """(N, H, W, C) -> (N, R, C) padded row-flattened layout (all pads zero)."""
    N, H, W, C = x.shape
    wp, pad_top, rows, R = pad_geom(H, W)
    xp = jnp.pad(x, ((0, 0), (0, 0), (0, wp - W), (0, 0)))
    xp = xp.reshape(N, rows, C)
    return jnp.pad(xp, ((0, 0), (pad_top, R - pad_top - rows), (0, 0)))


def from_padded(y, H, W):
    """(N, R, C) padded layout -> (N, H, W, C)."""
    N, _, C = y.shape
    wp, pad_top, rows, _ = pad_geom(H, W)
    core = y[:, pad_top:pad_top + rows, :].reshape(N, H, wp, C)
    return core[:, :, :W, :]


# ---------------------------------------------------------------------------
# Conv kernels (3x3, stride 1, pad 1, fused bias + ReLU)
# ---------------------------------------------------------------------------
def _mask_junk_cols(r, rows, wp, W):
    # Zero the junk columns (ow >= W) so the output keeps the next conv's
    # pad-column invariant.
    col = jax.lax.broadcasted_iota(jnp.int32, (rows, 1), 0) % wp
    return jnp.where(col < W, r, 0.0)


def _zero_pad_and_store(o_ref, result, pad_top, rows):
    # Three tile-aligned stores: top halo (zeros), real rows, bottom halo (zeros).
    ct = o_ref.shape[1]
    total = o_ref.shape[0]
    o_ref[0:pad_top, :] = jnp.zeros((pad_top, ct), o_ref.dtype)
    o_ref[pad_top:pad_top + rows, :] = result.astype(o_ref.dtype)
    o_ref[pad_top + rows:total, :] = jnp.zeros((total - pad_top - rows, ct), o_ref.dtype)


def _conv3x3_kernel(x_ref, w_ref, b_ref, o_ref, acc_ref, *, H, W, wp):
    # x_ref  : (R, Cin)      bf16  padded row-flattened input (pad_geom layout)
    # w_ref  : (9, Cin, Ct)  bf16  tap-major weights (tap = dh*3 + dw)
    # b_ref  : (1, Ct)       f32
    # o_ref  : (R, Ct)       bf16  next layer's padded layout (same H, W, wp)
    # acc_ref: (H*wp, Ct)    f32   VMEM scratch accumulator (review item)
    rows = H * wp
    span = (H + 2) * wp
    pad_top = wp + ALIGN

    def tap(dh, dw, lhs):
        return jnp.dot(lhs, w_ref[dh * 3 + dw], preferred_element_type=jnp.float32)

    # dw == 1 (centre column): all three dh offsets are tile-aligned ref slices.
    acc_ref[...] = tap(0, 1, x_ref[ALIGN:ALIGN + rows, :])
    for dh in (1, 2):
        s = ALIGN + dh * wp
        acc_ref[...] += tap(dh, 1, x_ref[s:s + rows, :])

    # dw == 0 / dw == 2: one unaligned whole-span load each (2 relayouts instead
    # of 9), then tile-aligned value slices per dh.
    x0 = x_ref[ALIGN - 1:ALIGN - 1 + span, :]
    for dh in range(3):
        acc_ref[...] += tap(dh, 0, x0[dh * wp:dh * wp + rows, :])
    x2 = x_ref[ALIGN + 1:ALIGN + 1 + span, :]
    for dh in range(3):
        acc_ref[...] += tap(dh, 2, x2[dh * wp:dh * wp + rows, :])

    r = jnp.maximum(acc_ref[...] + b_ref[...], 0.0)
    r = _mask_junk_cols(r, rows, wp, W)
    _zero_pad_and_store(o_ref, r, pad_top, rows)


def conv3x3_relu_padded(xp, conv, H, W):
    """3x3 same-conv + bias + ReLU, padded-layout in -> padded-layout out."""
    # TODO(synk): at real VGG resolutions (224x224) add an output-row grid axis
    # with a 2-row halo so the per-step working set fits v7x's 64 MiB VMEM.
    N, R_in, cin = xp.shape
    wp, pad_top, rows, R = pad_geom(H, W)
    assert R_in == R, (R_in, R)
    cout = conv['cout']
    ct = cout if cout <= 256 else 256
    grid = (N, cout // ct)

    return pl.pallas_call(
        functools.partial(_conv3x3_kernel, H=H, W=W, wp=wp),
        out_shape=jax.ShapeDtypeStruct((N, R, cout), jnp.bfloat16),
        grid_spec=pltpu.PrefetchScalarGridSpec(
            num_scalar_prefetch=0,
            grid=grid,
            in_specs=[
                pl.BlockSpec((None, R, cin), lambda n, j: (n, 0, 0)),
                pl.BlockSpec((9, cin, ct), lambda n, j: (0, 0, j)),
                pl.BlockSpec((1, ct), lambda n, j: (0, j)),
            ],
            out_specs=pl.BlockSpec((None, R, ct), lambda n, j: (n, 0, j)),
            scratch_shapes=[pltpu.VMEM((rows, ct), jnp.float32)],
        ),
        compiler_params=pltpu.CompilerParams(
            dimension_semantics=("parallel", "parallel"),
            vmem_limit_bytes=VMEM_LIMIT),
    )(xp, conv['w'], conv['b'])


def _conv_first_kernel(p_ref, w_ref, b_ref, o_ref, *, H, W, wp):
    # p_ref: (H*wp, 9*Cin) bf16 im2col patches (junk-column rows are zero)
    # w_ref: (9*Cin, Cout) bf16,  b_ref: (1, Cout) f32
    # o_ref: (R, Cout) bf16 padded layout for the next conv
    rows = H * wp
    pad_top = wp + ALIGN
    r = jnp.dot(p_ref[...], w_ref[...], preferred_element_type=jnp.float32)
    r = jnp.maximum(r + b_ref[...], 0.0)
    r = _mask_junk_cols(r, rows, wp, W)
    _zero_pad_and_store(o_ref, r, pad_top, rows)


def conv3x3_relu_first(x, conv, H, W):
    """First conv (Cin=3): build a K=27 im2col in the wrapper so the MXU sees a
    single K=27 matmul instead of nine K=3 matmuls (review item)."""
    N, _, _, cin = x.shape
    wp, pad_top, rows, R = pad_geom(H, W)
    cout = conv['cout']

    xb = x.astype(jnp.bfloat16)
    xpad = jnp.pad(xb, ((0, 0), (1, 1), (1, 1), (0, 0)))
    taps = [xpad[:, dh:dh + H, dw:dw + W, :] for dh in range(3) for dw in range(3)]
    pat = jnp.concatenate(taps, axis=-1)                        # (N, H, W, 9*Cin)
    pat = jnp.pad(pat, ((0, 0), (0, 0), (0, wp - W), (0, 0)))   # zero junk columns
    pat = pat.reshape(N, rows, 9 * cin)

    return pl.pallas_call(
        functools.partial(_conv_first_kernel, H=H, W=W, wp=wp),
        out_shape=jax.ShapeDtypeStruct((N, R, cout), jnp.bfloat16),
        grid_spec=pltpu.PrefetchScalarGridSpec(
            num_scalar_prefetch=0,
            grid=(N,),
            in_specs=[
                pl.BlockSpec((None, rows, 9 * cin), lambda n: (n, 0, 0)),
                pl.BlockSpec((9 * cin, cout), lambda n: (0, 0)),
                pl.BlockSpec((1, cout), lambda n: (0, 0)),
            ],
            out_specs=pl.BlockSpec((None, R, cout), lambda n: (n, 0, 0)),
        ),
        compiler_params=pltpu.CompilerParams(
            dimension_semantics=("parallel",),
            vmem_limit_bytes=VMEM_LIMIT),
    )(pat, conv['w27'], conv['b'])


# ---------------------------------------------------------------------------
# Pallas kernels: tiled  Y = X @ W + b  (optional fused ReLU), bf16 MXU inputs.
# ---------------------------------------------------------------------------
def _mm_acc_kernel(x_ref, w_ref, b_ref, o_ref, acc_ref, *, relu):
    k = pl.program_id(2)

    @pl.when(k == 0)
    def _():
        acc_ref[...] = jnp.zeros_like(acc_ref)

    acc_ref[...] += jnp.dot(x_ref[...], w_ref[...],
                            preferred_element_type=jnp.float32)

    @pl.when(k == pl.num_programs(2) - 1)
    def _():
        r = acc_ref[...] + b_ref[...]
        if relu:
            r = jnp.maximum(r, 0.0)
        o_ref[...] = r.astype(o_ref.dtype)


def _mm_single_kernel(x_ref, w_ref, b_ref, o_ref, *, relu):
    # Single K-step specialization: no accumulator scratch / zero-init pass.
    r = jnp.dot(x_ref[...], w_ref[...],
                preferred_element_type=jnp.float32) + b_ref[...]
    if relu:
        r = jnp.maximum(r, 0.0)
    o_ref[...] = r.astype(o_ref.dtype)


def _fc_tile_plan(K, N):
    # M is tiny (batch) -> weight-streaming tiles.  tk is chosen as the largest
    # multiple of 128 that divides K exactly (review item: no zero-padded weight
    # streaming for FC1's K=25088), capped by a per-generation VMEM-derived
    # weight-tile budget.
    Np = _round_up(N, 128)
    tn = min(2048, Np)
    Kp = _round_up(K, 128)
    cap_bytes = max(8 * 1024 * 1024, VMEM_LIMIT // 4)
    cap_k = min(4096, max(128, cap_bytes // (tn * 2)))
    tk = 128
    d = 256
    while d <= min(Kp, cap_k):
        if Kp % d == 0:
            tk = d
        d += 128
    if Kp % tk != 0:         # cannot happen (Kp is a multiple of 128); be safe
        tk = 128
    return tk, tn, Kp, Np


def prep_linear(w, b):
    """Pad / cast a linear layer once at init (no per-forward weight copies)."""
    # TODO(synk): optional FC weight quantization (int8 on v5e/v6e, fp8 on v7x)
    # for the HBM-bound FC1/FC2 is not implemented; bf16 weights kept.
    K, N = w.shape
    tk, tn, kp, np_ = _fc_tile_plan(K, N)
    wb = w.astype(jnp.bfloat16)
    if (kp, np_) != (K, N):
        wb = jnp.zeros((kp, np_), jnp.bfloat16).at[:K, :N].set(wb)
    bp = b.astype(jnp.float32).reshape(1, N)
    if np_ != N:
        bp = jnp.zeros((1, np_), jnp.float32).at[:, :N].set(bp)
    return dict(w=wb, b=bp, K=K, N=N, Kp=kp, Np=np_, tk=tk, tn=tn)


def linear_pallas(x, lin, *, relu, out_dtype=jnp.bfloat16):
    """y = x @ w + b (+ReLU) with pre-padded bf16 weights."""
    M, K = x.shape
    assert K == lin['K']
    kp, np_, tk, tn = lin['Kp'], lin['Np'], lin['tk'], lin['tn']

    mp = _round_up(M, 16)                      # bf16 min sublane tile is 16
    tm = mp if mp <= 128 else 128
    mp = _round_up(M, tm)

    xb = x.astype(jnp.bfloat16)
    if (mp, kp) != (M, K):
        xb = jnp.zeros((mp, kp), jnp.bfloat16).at[:M, :K].set(xb)

    ksteps = kp // tk
    grid = (mp // tm, np_ // tn, ksteps)
    if ksteps == 1:
        kernel = functools.partial(_mm_single_kernel, relu=relu)
        scratch = []
    else:
        kernel = functools.partial(_mm_acc_kernel, relu=relu)
        scratch = [pltpu.VMEM((tm, tn), jnp.float32)]

    out = pl.pallas_call(
        kernel,
        out_shape=jax.ShapeDtypeStruct((mp, np_), out_dtype),
        grid_spec=pltpu.PrefetchScalarGridSpec(
            num_scalar_prefetch=0,
            grid=grid,
            in_specs=[
                pl.BlockSpec((tm, tk), lambda i, j, k: (i, k)),
                pl.BlockSpec((tk, tn), lambda i, j, k: (k, j)),
                pl.BlockSpec((1, tn), lambda i, j, k: (0, j)),
            ],
            out_specs=pl.BlockSpec((tm, tn), lambda i, j, k: (i, j)),
            scratch_shapes=scratch,
        ),
        compiler_params=pltpu.CompilerParams(
            dimension_semantics=("parallel", "parallel", "arbitrary"),
            vmem_limit_bytes=VMEM_LIMIT),
    )(xb, lin['w'], lin['b'])

    if (mp, np_) != (M, lin['N']):
        out = out[:M, :lin['N']]
    return out


# ---------------------------------------------------------------------------
# Pooling glue (only at the 5 maxpool boundaries; conv->conv stays fused)
# ---------------------------------------------------------------------------
def maxpool2x2(x):
    # TODO(synk): fuse into the preceding conv kernel's epilogue (write pooled
    # rows directly) to drop one activation HBM round trip per pooled layer.
    N, H, W, C = x.shape
    x = x.reshape(N, H // 2, 2, W // 2, 2, C)
    return jnp.max(x, axis=(2, 4))


def adaptive_avg_pool(x, out_size=7):
    # PyTorch AdaptiveAvgPool2d semantics (floor/ceil window indices).
    N, H, W, C = x.shape
    rows = []
    for i in range(out_size):
        h0, h1 = (i * H) // out_size, -(-((i + 1) * H) // out_size)
        cols = []
        for j in range(out_size):
            w0, w1 = (j * W) // out_size, -(-((j + 1) * W) // out_size)
            cols.append(jnp.mean(x[:, h0:h1, w0:w1, :], axis=(1, 2)))
        rows.append(jnp.stack(cols, axis=1))
    return jnp.stack(rows, axis=1)             # (N, out_size, out_size, C)


# ---------------------------------------------------------------------------
# Parameters (deterministic synthetic init; prepared for the kernels at init)
# ---------------------------------------------------------------------------
VGG_CFG = [64, 64, 'M', 128, 128, 'M', 256, 256, 256, 'M',
           512, 512, 512, 'M', 512, 512, 512, 'M']


def _linear_init(key, k_in, k_out):
    kw, kb = jax.random.split(key)
    w = jax.random.normal(kw, (k_in, k_out), jnp.float32) * (2.0 / k_in) ** 0.5
    b = jax.random.normal(kb, (k_out,), jnp.float32) * 0.01
    return w, b


def init_params(key, num_classes):
    # TODO(synk): pretrained torchvision weights are not loaded (synthetic init);
    # loading them needs a (Cout,Cin,kh,kw) -> (kh,kw,Cin,Cout) transpose.
    convs = []
    cin = 3
    idx = 0
    for blk in VGG_CFG:
        if blk == 'M':
            continue
        key, sub = jax.random.split(key)
        kw, kb = jax.random.split(sub)
        scale = (2.0 / (9 * cin)) ** 0.5
        w = jax.random.normal(kw, (3, 3, cin, blk), jnp.float32) * scale
        b = jax.random.normal(kb, (blk,), jnp.float32) * 0.01
        entry = dict(b=b.reshape(1, blk), cout=blk)
        if idx == 0:
            entry['w27'] = w.reshape(9 * cin, blk).astype(jnp.bfloat16)
        else:
            entry['w'] = w.reshape(9, cin, blk).astype(jnp.bfloat16)
        convs.append(entry)
        cin = blk
        idx += 1

    key, k1 = jax.random.split(key)
    w1, b1 = _linear_init(k1, 512 * 7 * 7, 4096)
    key, k2 = jax.random.split(key)
    w2, b2 = _linear_init(k2, 4096, 4096)
    key, k3 = jax.random.split(key)
    w3, b3 = _linear_init(k3, 4096, 1000)

    # fc1..fc4 heads (1000->512->128->32->num_classes) have no nonlinearity
    # between them nor after the 4096->1000 linear, so the whole tail folds into
    # one (4096 x num_classes) matmul.  The fold is done in f32 and cast once,
    # so results differ only at bf16 rounding level from five separate matmuls.
    wt, bt = w3, b3
    for k_in, k_out in [(1000, 512), (512, 128), (128, 32), (32, num_classes)]:
        key, kk = jax.random.split(key)
        w, b = _linear_init(kk, k_in, k_out)
        bt = bt @ w + b
        wt = wt @ w

    return dict(convs=convs,
                fc1=prep_linear(w1, b1),
                fc2=prep_linear(w2, b2),
                tail=prep_linear(wt, bt))


# ---------------------------------------------------------------------------
# Forward pass (matches Vgg16.forward: vgg16(x) -> fc1 -> fc2 -> fc3 -> fc4)
# ---------------------------------------------------------------------------
def vgg16_forward(params, x_nchw):
    x = jnp.transpose(x_nchw, (0, 2, 3, 1))            # NCHW -> NHWC
    N, H, W, _ = x.shape

    act = None        # activation in padded row-flattened layout (N, R, C) bf16
    plain = None      # activation in plain NHWC (only right after a pool)
    ci = 0
    for blk in VGG_CFG:
        if blk == 'M':
            plain = maxpool2x2(from_padded(act, H, W))
            H //= 2
            W //= 2
            act = None
        else:
            c = params['convs'][ci]
            if ci == 0:
                act = conv3x3_relu_first(x, c, H, W)
            else:
                if act is None:                        # first conv after a pool
                    act = to_padded(plain)
                act = conv3x3_relu_padded(act, c, H, W)
            ci += 1

    feat = adaptive_avg_pool(plain.astype(jnp.float32), 7)      # (N,7,7,512)
    feat = jnp.transpose(feat, (0, 3, 1, 2)).reshape(N, -1)     # torch flatten order

    # torchvision classifier: Linear-ReLU-[Dropout]-Linear-ReLU-[Dropout]-Linear
    # TODO(synk): Dropout treated as eval-mode identity (inference semantics).
    h = linear_pallas(feat, params['fc1'], relu=True)
    h = linear_pallas(h, params['fc2'], relu=True)
    # Folded tail: Linear(4096->1000) + fc1..fc4 as one matmul.
    return linear_pallas(h, params['tail'], relu=False, out_dtype=jnp.float32)


if __name__ == "__main__":
    num_classes = 10
    key = jax.random.PRNGKey(0)
    pkey, xkey = jax.random.split(key)

    params = init_params(pkey, num_classes)
    # Small input: batch=2, 3 channels, 32x32 spatial (survives the 5 maxpools).
    x = jax.random.normal(xkey, (2, 3, 32, 32), dtype=jnp.float32)

    out = vgg16_forward(params, x)
    out = jax.block_until_ready(out)

    assert out.shape == (2, num_classes), out.shape
    assert bool(jnp.all(jnp.isfinite(out)))
    print("KERNEL_OK")
</pallas_src>

<mosaic_0001>
module attributes {stable_mosaic.version = 11 : i64} {
  func.func @_conv_first_kernel(%arg0: i32, %arg1: memref<1x1536x27xbf16, #tpu.memory_space<vmem>>, %arg2: memref<27x64xbf16, #tpu.memory_space<vmem>>, %arg3: memref<1x64xf32, #tpu.memory_space<vmem>>, %arg4: memref<1x1664x64xbf16, #tpu.memory_space<vmem>>) attributes {dimension_semantics = [#tpu.dimension_semantics<parallel>], iteration_bounds = array<i64: 2>, scalar_prefetch = 0 : i64, scratch_operands = 0 : i64, tpu.core_type = #tpu.core_type<tc>, window_params = [{transform_indices = @transform_0, window_bounds = array<i64: 1, 1536, 27>}, {pipeline_mode = #tpu.pipeline_mode<synchronous>, transform_indices = @transform_1, window_bounds = array<i64: 27, 64>}, {pipeline_mode = #tpu.pipeline_mode<synchronous>, transform_indices = @transform_2, window_bounds = array<i64: 1, 64>}, {transform_indices = @transform_3, window_bounds = array<i64: 1, 1664, 64>}]} {
    %c0 = arith.constant 0 : index
    %c0_0 = arith.constant 0 : index
    %c0_1 = arith.constant 0 : index
    %0 = vector.load %arg1[%c0, %c0_0, %c0_1] : memref<1x1536x27xbf16, #tpu.memory_space<vmem>>, vector<1x1536x27xbf16>
    %1 = vector.shape_cast %0 : vector<1x1536x27xbf16> to vector<1536x27xbf16>
    %c0_2 = arith.constant 0 : index
    %c0_3 = arith.constant 0 : index
    %2 = vector.load %arg2[%c0_2, %c0_3] : memref<27x64xbf16, #tpu.memory_space<vmem>>, vector<27x64xbf16>
    %cst = arith.constant dense<0.000000e+00> : vector<1536x64xf32>
    %3 = tpu.matmul %1, %2, %cst {dimension_numbers = #tpu.dot_dimension_numbers<[1], [0], [0], [1], [0, 0, 1, 1], [], []>} : vector<1536x27xbf16>, vector<27x64xbf16>, vector<1536x64xf32> -> vector<1536x64xf32>
    %c0_4 = arith.constant 0 : index
    %c0_5 = arith.constant 0 : index
    %4 = vector.load %arg3[%c0_4, %c0_5] : memref<1x64xf32, #tpu.memory_space<vmem>>, vector<1x64xf32>
    %5 = vector.broadcast %4 : vector<1x64xf32> to vector<1536x64xf32>
    %6 = arith.addf %3, %5 : vector<1536x64xf32>
    %cst_6 = arith.constant 0.000000e+00 : f32
    %7 = vector.broadcast %cst_6 : f32 to vector<1536x64xf32>
    %8 = arith.maximumf %6, %7 : vector<1536x64xf32>
    %9 = tpu.iota {dimensions = array<i32: 0>} : vector<1536x1xi32>
    %c48_i32 = arith.constant 48 : i32
    %c0_i32 = arith.constant 0 : i32
    %10 = arith.cmpi eq, %c48_i32, %c0_i32 : i32
    %c1_i32 = arith.constant 1 : i32
    %11 = arith.select %10, %c1_i32, %c48_i32 : i32
    %12 = vector.broadcast %11 : i32 to vector<1536x1xi32>
    %13 = arith.remsi %9, %12 : vector<1536x1xi32>
    %c0_i32_7 = arith.constant 0 : i32
    %14 = vector.broadcast %c0_i32_7 : i32 to vector<1536x1xi32>
    %15 = arith.cmpi ne, %13, %14 : vector<1536x1xi32>
    %c0_i32_8 = arith.constant 0 : i32
    %16 = vector.broadcast %c0_i32_8 : i32 to vector<1536x1xi32>
    %17 = arith.cmpi slt, %13, %16 : vector<1536x1xi32>
    %c0_i32_9 = arith.constant 0 : i32
    %18 = arith.cmpi slt, %11, %c0_i32_9 : i32
    %19 = vector.broadcast %18 : i1 to vector<1536x1xi1>
    %20 = vector.broadcast %19 : vector<1536x1xi1> to vector<1536x1xi1>
    %21 = arith.xori %17, %20 : vector<1536x1xi1>
    %22 = arith.andi %21, %15 : vector<1536x1xi1>
    %23 = vector.broadcast %11 : i32 to vector<1536x1xi32>
    %24 = arith.addi %13, %23 : vector<1536x1xi32>
    %25 = arith.select %22, %24, %13 : vector<1536x1xi1>, vector<1536x1xi32>
    %c32_i32 = arith.constant 32 : i32
    %26 = vector.broadcast %c32_i32 : i32 to vector<1536x1xi32>
    %27 = arith.cmpi slt, %25, %26 : vector<1536x1xi32>
    %cst_10 = arith.constant 0.000000e+00 : f32
    %28 = vector.shape_cast %27 : vector<1536x1xi1> to vector<1536x1xi1>
    %29 = vector.broadcast %28 : vector<1536x1xi1> to vector<1536x64xi1>
    %30 = vector.broadcast %cst_10 : f32 to vector<1536x64xf32>
    %31 = arith.select %29, %8, %30 : vector<1536x64xi1>, vector<1536x64xf32>
    %cst_11 = arith.constant 0.000000e+00 : bf16
    %32 = vector.broadcast %cst_11 : bf16 to vector<64x64xbf16>
    %c0_12 = arith.constant 0 : index
    %c0_13 = arith.constant 0 : index
    %c0_14 = arith.constant 0 : index
    %33 = vector.load %arg4[%c0_12, %c0_13, %c0_14] : memref<1x1664x64xbf16, #tpu.memory_space<vmem>>, vector<1x64x64xbf16>
    %34 = vector.shape_cast %33 : vector<1x64x64xbf16> to vector<64x64xbf16>
    %35 = vector.shape_cast %32 : vector<64x64xbf16> to vector<1x64x64xbf16>
    tpu.vector_store %arg4[%c0_12, %c0_13, %c0_14], %35 {strides = array<i32>} : memref<1x1664x64xbf16, #tpu.memory_space<vmem>>, vector<1x64x64xbf16>,
    %36 = arith.truncf %31 : vector<1536x64xf32> to vector<1536x64xbf16>
    %c0_15 = arith.constant 0 : index
    %c64 = arith.constant 64 : index
    %c0_16 = arith.constant 0 : index
    %37 = vector.load %arg4[%c0_15, %c64, %c0_16] : memref<1x1664x64xbf16, #tpu.memory_space<vmem>>, vector<1x1536x64xbf16>
    %38 = vector.shape_cast %37 : vector<1x1536x64xbf16> to vector<1536x64xbf16>
    %39 = vector.shape_cast %36 : vector<1536x64xbf16> to vector<1x1536x64xbf16>
    tpu.vector_store %arg4[%c0_15, %c64, %c0_16], %39 {strides = array<i32>} : memref<1x1664x64xbf16, #tpu.memory_space<vmem>>, vector<1x1536x64xbf16>,
    %cst_17 = arith.constant 0.000000e+00 : bf16
    %40 = vector.broadcast %cst_17 : bf16 to vector<64x64xbf16>
    %c0_18 = arith.constant 0 : index
    %c1600 = arith.constant 1600 : index
    %c0_19 = arith.constant 0 : index
    %41 = vector.load %arg4[%c0_18, %c1600, %c0_19] : memref<1x1664x64xbf16, #tpu.memory_space<vmem>>, vector<1x64x64xbf16>
    %42 = vector.shape_cast %41 : vector<1x64x64xbf16> to vector<64x64xbf16>
    %43 = vector.shape_cast %40 : vector<64x64xbf16> to vector<1x64x64xbf16>
    tpu.vector_store %arg4[%c0_18, %c1600, %c0_19], %43 {strides = array<i32>} : memref<1x1664x64xbf16, #tpu.memory_space<vmem>>, vector<1x64x64xbf16>,
    return
  }
  func.func @transform_0(%arg0: i32) -> (i32, i32, i32) {
    %c0_i32 = arith.constant 0 : i32
    %c0_i32_0 = arith.constant 0 : i32
    %c0_i32_1 = arith.constant 0 : i32
    return %arg0, %c0_i32, %c0_i32_0 : i32, i32, i32
  }
  func.func @transform_1(%arg0: i32) -> (i32, i32) {
    %c0_i32 = arith.constant 0 : i32
    %c0_i32_0 = arith.constant 0 : i32
    %c0_i32_1 = arith.constant 0 : i32
    return %c0_i32, %c0_i32_0 : i32, i32
  }
  func.func @transform_2(%arg0: i32) -> (i32, i32) {
    %c0_i32 = arith.constant 0 : i32
    %c0_i32_0 = arith.constant 0 : i32
    %c0_i32_1 = arith.constant 0 : i32
    return %c0_i32, %c0_i32_0 : i32, i32
  }
  func.func @transform_3(%arg0: i32) -> (i32, i32, i32) {
    %c0_i32 = arith.constant 0 : i32
    %c0_i32_0 = arith.constant 0 : i32
    %c0_i32_1 = arith.constant 0 : i32
    return %arg0, %c0_i32, %c0_i32_0 : i32, i32, i32
  }
}

</mosaic_0001>

<bundles_post_ra>
// kernel: tpu_custom_call.1
= control target key start
LH: loop header
LB: loop body
LE: loop exit
PB: predicated region body
PF: predicated region fallthrough
CT: control target
= control target key end

     0   :  { %s8635_s12 = smov 0   ;;  %s12934_s0 = inlined_call_operand.vmem [shape: bf16[2,1536,27], index: 0, kind: input, shape index: {}]   ;;  %s12935_s1 = inlined_call_operand.vmem [shape: bf16[27,64], index: 1, kind: input, shape index: {}]   ;;  %s12936_s2 = inlined_call_operand.vmem [shape: f32[1,64], index: 2, kind: input, shape index: {}]   ;;  %s12937_s3 = inlined_call_operand.vmem [shape: bf16[2,1664,64], index: 3, kind: output, shape index: {}]  }
   0x1 LB: > { %s7220_s13 = sadd.s32 4294967295, %s8611_s12   ;;  %p7224_p0 = scmp.ge.s32.totalorder %s8611_s12, 1  ;;  %s8611_s12 = sphi %s8635_s12, %s13_s12  }
   0x2   : > { %p137_p1 = scmp.lt.s32.totalorder %s8611_s12, 3 }
   0x4   : > { %p138_p2 = pnand %p7224_p0, %p137_p1 }
   0x6   : > { %141 = sbr.rel (%p138_p2) target bundleno = 879 (0x36f), region = 32 }
   0xd   : > { %v8502_v0 = vld [vmem:[%s12935_s1] sm:$0xff]   ;;  %vm1155_vm0 = vcmask 1044480   ;;  %v8503_v1 = vld [vmem:[%s12935_s1 + $0x8] sm:$0x3f]   ;;  %vm1156_vm1 = vcmask 1045504   ;;  %p161_p3 = scmp.lt.s32.totalorder %s7220_s13, 1  ;;  %v2155_v52 = vlaneseq }
   0xe   : > { %7906 = vmatprep.subr.bf16.mxu0 %v8502_v0  ;;  %8102 = vmatprep.subr.bf16.mxu1 %v8502_v0  ;;  %v8613_v2 = vmov 65535   ;;  %vm12938_vm2 = vcmask 220160  }
   0xf   : > { %7907 = vmatpush3.bf16.msra.mxu0 %v8502_v0  ;;  %8104 = vmatpush3.bf16.msra.mxu1 %v8502_v0  ;;  %v1157_v3 = vsel %vm1155_vm0, 4294967295, %v8613_v2  ;;  %s13769_s13 = smov (!%p161_p3, %s7220_s13), 1  ;;  %v8751_v55 = vshrl.u32 %v2155_v52, 7 }
  0x10   : > { %v1158_v4 = vsel %vm1156_vm1, %v1157_v3, 0  ;;  %s8106_s18 = smul.u32 768, %s13769_s13 }
  0x11   : > { %v1160_v5 = vand.u32 %v8503_v1, %v1158_v4  ;;  %13072 = vst [vmem:[#allocation2_spill] sm:$0xff] %v8751_v55  ;;  %v2158_v58 = vadd.s32 16, %v8751_v55  ;;  %v2254_v59 = vadd.s32 784, %v8751_v55  ;;  %v8768_v1 = vadd.s32 768, %v8751_v55  ;;  %s8107_s24 = smul.u32 832, %s13769_s13 }
  0x12   : > { %s8655_s21 = scalar_lea.vmem %s12934_s0, %s8106_s18  ;;  %v8856_v52 = vadd.s32 800, %v8751_v55 }
  0x13   : > { %7908 = vmatprep.subr.bf16.mxu0 %v1160_v5  ;;  %8103 = vmatprep.subr.bf16.mxu1 %v1160_v5  ;;  %v8504_v6 = vld [vmem:[%s8655_s21] sm:$0xff]   ;;  %v8506_v8 = vld [vmem:[%s8655_s21 + $0x8] sm:$0xff]   ;;  %v8508_v10 = vld [vmem:[%s8655_s21 + $0x10] sm:$0xff]   ;;  %v8762_v61 = vmul.u32.u64.low 2863311531, %v2158_v58  ;;  %v8763_v62 = vmul.u32.u64.high 2863311531, %v2158_v58, %v8762_v61  ;;  %s10175_s27 = scalar_lea.vmem %s12937_s3, %s8107_s24 }
  0x14   : > { %7909 = vmatpush3.bf16.msra.mxu0 %v1160_v5  ;;  %8105 = vmatpush3.bf16.msra.mxu1 %v1160_v5  ;;  %v8505_v7 = vld [vmem:[%s8655_s21 + $0x180] sm:$0xff]   ;;  %v8507_v9 = vld [vmem:[%s8655_s21 + $0x188] sm:$0xff]   ;;  %v8509_v11 = vld [vmem:[%s8655_s21 + $0x190] sm:$0xff]   ;;  %v8771_v3 = vmul.u32.u64.low 2863311531, %v2254_v59  ;;  %v8772_v4 = vmul.u32.u64.high 2863311531, %v2254_v59, %v8771_v3  ;;  %v8775_v5 = vadd.s32 24, %v8751_v55 }
  0x15   : > { %7910 = vmatprep.mubr.msk.bf16.mxu0 %vm12938_vm2, %v8504_v6  ;;  %8006 = vmatprep.mubr.msk.bf16.mxu1 %vm12938_vm2, %v8505_v7  ;;  %v8510_v12 = vld [vmem:[%s8655_s21 + $0x18] sm:$0xff]   ;;  %v8512_v14 = vld [vmem:[%s8655_s21 + $0x20] sm:$0xff]   ;;  %v8514_v16 = vld [vmem:[%s8655_s21 + $0x28] sm:$0xff]   ;;  %v8778_v6 = vadd.s32 792, %v8751_v55 }
  0x16   : > { %v8511_v13 = vld [vmem:[%s8655_s21 + $0x198] sm:$0xff]   ;;  %v8513_v15 = vld [vmem:[%s8655_s21 + $0x1a0] sm:$0xff]   ;;  %v8515_v17 = vld [vmem:[%s8655_s21 + $0x1a8] sm:$0xff]  }
  0x17   : > { %7911 = vmatmul.mubr.msk.bf16.vlgmr.msra.gmra.mrb[0].mxu0 %vm12938_vm2, %v8506_v8  ;;  %8007 = vmatmul.mubr.msk.bf16.vlgmr.msra.gmra.mrb[0].mxu1 %vm12938_vm2, %v8507_v9  ;;  %v8516_v18 = vld [vmem:[%s8655_s21 + $0x30] sm:$0xff]   ;;  %v8518_v20 = vld [vmem:[%s8655_s21 + $0x38] sm:$0xff]   ;;  %v8520_v22 = vld [vmem:[%s8655_s21 + $0x40] sm:$0xff]   ;;  %v8782_v7 = vmul.u32.u64.low 2863311531, %v8751_v55  ;;  %v8783_v8 = vmul.u32.u64.high 2863311531, %v8751_v55, %v8782_v7 }
  0x18   : > { %7914 = vmatprep.mubr.msk.bf16.mxu0 %vm12938_vm2, %v8508_v10  ;;  %8010 = vmatprep.mubr.msk.bf16.mxu1 %vm12938_vm2, %v8509_v11  ;;  %v8517_v19 = vld [vmem:[%s8655_s21 + $0x1b0] sm:$0xff]   ;;  %v8519_v21 = vld [vmem:[%s8655_s21 + $0x1b8] sm:$0xff]   ;;  %v8521_v23 = vld [vmem:[%s8655_s21 + $0x1c0] sm:$0xff]   ;;  %v8788_v9 = vmul.u32.u64.low 2863311531, %v8768_v1  ;;  %v8789_v10 = vmul.u32.u64.high 2863311531, %v8768_v1, %v8788_v9  ;;  %v8792_v11 = vadd.s32 8, %v8751_v55 }
  0x19   : > { %v8522_v24 = vld [vmem:[%s8655_s21 + $0x48] sm:$0xff]   ;;  %v8524_v26 = vld [vmem:[%s8655_s21 + $0x50] sm:$0xff]   ;;  %v8526_v28 = vld [vmem:[%s8655_s21 + $0x58] sm:$0xff]  }
  0x1a   : > { %v8523_v25 = vld [vmem:[%s8655_s21 + $0x1c8] sm:$0xff]   ;;  %v8525_v27 = vld [vmem:[%s8655_s21 + $0x1d0] sm:$0xff]   ;;  %v8527_v29 = vld [vmem:[%s8655_s21 + $0x1d8] sm:$0xff]  }
  0x1b   : > { %v8528_v30 = vld [vmem:[%s8655_s21 + $0x60] sm:$0xff]   ;;  %v8530_v32 = vld [vmem:[%s8655_s21 + $0x68] sm:$0xff]   ;;  %v8532_v34 = vld [vmem:[%s8655_s21 + $0x70] sm:$0xff]  }
  0x1c   : > { %v8529_v31 = vld [vmem:[%s8655_s21 + $0x1e0] sm:$0xff]   ;;  %v8531_v33 = vld [vmem:[%s8655_s21 + $0x1e8] sm:$0xff]   ;;  %v8533_v35 = vld [vmem:[%s8655_s21 + $0x1f0] sm:$0xff]  }
  0x1d   : > { %v8534_v36 = vld [vmem:[%s8655_s21 + $0x78] sm:$0xff]   ;;  %v8536_v38 = vld [vmem:[%s8655_s21 + $0x80] sm:$0xff]   ;;  %v8538_v40 = vld [vmem:[%s8655_s21 + $0x88] sm:$0xff]  }
  0x1e   : > { %v8535_v37 = vld [vmem:[%s8655_s21 + $0x1f8] sm:$0xff]   ;;  %v8537_v39 = vld [vmem:[%s8655_s21 + $0x200] sm:$0xff]   ;;  %v8539_v41 = vld [vmem:[%s8655_s21 + $0x208] sm:$0xff]  }
  0x1f   : > { %7915 = vmatmul.mubr.msk.bf16.gmra.mrb[4].mxu0 %vm12938_vm2, %v8510_v12  ;;  %8011 = vmatmul.mubr.msk.bf16.gmra.mrb[4].mxu1 %vm12938_vm2, %v8511_v13  ;;  %v8540_v42 = vld [vmem:[%s8655_s21 + $0x90] sm:$0xff]   ;;  %v8542_v44 = vld [vmem:[%s8655_s21 + $0x98] sm:$0xff]   ;;  %v8544_v46 = vld [vmem:[%s8655_s21 + $0xa0] sm:$0xff]   ;;  %v8796_v12 = vadd.s32 776, %v8751_v55 }
  0x20   : > { %7918 = vmatprep.mubr.msk.bf16.mxu0 %vm12938_vm2, %v8512_v14  ;;  %8014 = vmatprep.mubr.msk.bf16.mxu1 %vm12938_vm2, %v8513_v15  ;;  %v8541_v43 = vld [vmem:[%s8655_s21 + $0x210] sm:$0xff]   ;;  %v8543_v45 = vld [vmem:[%s8655_s21 + $0x218] sm:$0xff]   ;;  %v8545_v47 = vld [vmem:[%s8655_s21 + $0x220] sm:$0xff]   ;;  %v8799_v13 = vmul.u32.u64.low 2863311531, %v8775_v5  ;;  %v8800_v14 = vmul.u32.u64.high 2863311531, %v8775_v5, %v8799_v13 }
  0x21   : > { %v8546_v48 = vld [vmem:[%s8655_s21 + $0xa8] sm:$0xff]   ;;  %v8548_v50 = vld [vmem:[%s8655_s21 + $0xb0] sm:$0xff]   ;;  %v8550_v53 = vld [vmem:[%s8655_s21 + $0xb8] sm:$0xff]  }
  0x22   : > { %v8547_v49 = vld [vmem:[%s8655_s21 + $0x228] sm:$0xff]   ;;  %v8549_v51 = vld [vmem:[%s8655_s21 + $0x230] sm:$0xff]   ;;  %v8551_v54 = vld [vmem:[%s8655_s21 + $0x238] sm:$0xff]  }
  0x23   : > { %v8552_v56 = vld [vmem:[%s8655_s21 + $0xc0] sm:$0xff]   ;;  %v8554_v60 = vld [vmem:[%s8655_s21 + $0xc8] sm:$0xff]   ;;  %v8556_v0 = vld [vmem:[%s8655_s21 + $0xd0] sm:$0xff]  }
  0x24   : > { %v8553_v57 = vld [vmem:[%s8655_s21 + $0x240] sm:$0xff]   ;;  %v8555_v63 = vld [vmem:[%s8655_s21 + $0x248] sm:$0xff]   ;;  %v8557_v2 = vld [vmem:[%s8655_s21 + $0x250] sm:$0xff]  }
  0x25   : > { %v8566_v3 = vld [vmem:[%s8655_s21 + $0xf8] sm:$0xff]  }
  0x26   : > { %v8567_v9 = vld [vmem:[%s8655_s21 + $0x278] sm:$0xff]  }
  0x27   : > { %7919 = vmatmul.mubr.msk.bf16.gmra.mrb[8].mxu0 %vm12938_vm2, %v8514_v16  ;;  %8015 = vmatmul.mubr.msk.bf16.gmra.mrb[8].mxu1 %vm12938_vm2, %v8515_v17  ;;  %v8803_v15 = vmul.u32.u64.low 2863311531, %v8778_v6  ;;  %v8804_v16 = vmul.u32.u64.high 2863311531, %v8778_v6, %v8803_v15  ;;  %v8558_v17 = vld [vmem:[%s8655_s21 + $0xd8] sm:$0xff]  }
  0x28   : > { %7922 = vmatprep.mubr.msk.bf16.mxu0 %vm12938_vm2, %v8516_v18  ;;  %8018 = vmatprep.mubr.msk.bf16.mxu1 %vm12938_vm2, %v8517_v19  ;;  %v2376_v18 = vshrl.u32 %v8763_v62, 5  ;;  %v8559_v19 = vld [vmem:[%s8655_s21 + $0x258] sm:$0xff]  }
  0x2f   : > { %7923 = vmatmul.mubr.msk.bf16.gmra.mrb[12].mxu0 %vm12938_vm2, %v8518_v20  ;;  %8019 = vmatmul.mubr.msk.bf16.gmra.mrb[12].mxu1 %vm12938_vm2, %v8519_v21  ;;  %v8560_v20 = vld [vmem:[%s8655_s21 + $0xe0] sm:$0xff]  }
  0x30   : > { %7926 = vmatprep.mubr.msk.bf16.mxu0 %vm12938_vm2, %v8520_v22  ;;  %8022 = vmatprep.mubr.msk.bf16.mxu1 %vm12938_vm2, %v8521_v23  ;;  %v8811_v21 = vmul.u32.u64.low 2863311531, %v8792_v11  ;;  %v8812_v22 = vmul.u32.u64.high 2863311531, %v8792_v11, %v8811_v21  ;;  %v8561_v23 = vld [vmem:[%s8655_s21 + $0x260] sm:$0xff]  }
  0x37   : > { %7927 = vmatmul.mubr.msk.bf16.gmra.mrb[16].mxu0 %vm12938_vm2, %v8522_v24  ;;  %8023 = vmatmul.mubr.msk.bf16.gmra.mrb[16].mxu1 %vm12938_vm2, %v8523_v25  ;;  %v3432_v24 = vshrl.u32 %v8772_v4, 5 }
  0x38   : > { %7930 = vmatprep.mubr.msk.bf16.mxu0 %vm12938_vm2, %v8524_v26  ;;  %8026 = vmatprep.mubr.msk.bf16.mxu1 %vm12938_vm2, %v8525_v27  ;;  %v8817_v25 = vmul.u32.u64.low 2863311531, %v8796_v12  ;;  %v8818_v26 = vmul.u32.u64.high 2863311531, %v8796_v12, %v8817_v25  ;;  %v2377_v27 = vmul.u32 48, %v2376_v18 }
  0x3f   : > { %7931 = vmatmul.mubr.msk.bf16.gmra.mrb[20].mxu0 %vm12938_vm2, %v8526_v28  ;;  %8027 = vmatmul.mubr.msk.bf16.gmra.mrb[20].mxu1 %vm12938_vm2, %v8527_v29  ;;  %v2354_v28 = vshrl.u32 %v8783_v8, 5  ;;  %v8823_v29 = vadd.s32 48, %v8751_v55 }
  0x40   : > { %7934 = vmatprep.mubr.msk.bf16.mxu0 %vm12938_vm2, %v8528_v30  ;;  %8030 = vmatprep.mubr.msk.bf16.mxu1 %vm12938_vm2, %v8529_v31  ;;  %v3410_v30 = vshrl.u32 %v8789_v10, 5  ;;  %v8829_v31 = vadd.s32 816, %v8751_v55  ;;  %v8568_v10 = vld [vmem:[%s8655_s21 + $0x100] sm:$0xff]  }
  0x47   : > { %7935 = vmatmul.mubr.msk.bf16.gmra.mrb[24].mxu0 %vm12938_vm2, %v8530_v32  ;;  %8031 = vmatmul.mubr.msk.bf16.gmra.mrb[24].mxu1 %vm12938_vm2, %v8531_v33  ;;  %v3433_v32 = vmul.u32 48, %v3432_v24  ;;  %v2387_v33 = vshrl.u32 %v8800_v14, 5 }
  0x48   : > { %7938 = vmatprep.mubr.msk.bf16.mxu0 %vm12938_vm2, %v8532_v34  ;;  %8034 = vmatprep.mubr.msk.bf16.mxu1 %vm12938_vm2, %v8533_v35  ;;  %v3443_v34 = vshrl.u32 %v8804_v16, 5  ;;  %v8562_v35 = vld [vmem:[%s8655_s21 + $0xe8] sm:$0xff]  }
  0x4f   : > { %7939 = vmatmul.mubr.msk.bf16.gmra.mrb[28].mxu0 %vm12938_vm2, %v8534_v36  ;;  %8035 = vmatmul.mubr.msk.bf16.gmra.mrb[28].mxu1 %vm12938_vm2, %v8535_v37  ;;  %v8835_v36 = vsub.s32 %v2158_v58, %v2377_v27  ;;  %v2355_v37 = vmul.u32 48, %v2354_v28  ;;  %v8876_v58 = vadd.s32 40, %v8751_v55  ;;  %v13081_v28 = vmov 0 }
  0x50   : > { %7942 = vmatprep.mubr.msk.bf16.mxu0 %vm12938_vm2, %v8536_v38  ;;  %8038 = vmatprep.mubr.msk.bf16.mxu1 %vm12938_vm2, %v8537_v39  ;;  %v8838_v38 = vmul.u32.u64.low 2863311531, %v8823_v29  ;;  %v8839_v39 = vmul.u32.u64.high 2863311531, %v8823_v29, %v8838_v38 }
  0x51   : > { %vm4462_vm3 = vcmp.ne.s32.totalorder %v8835_v36, 0  ;;  %vm4654_vm4 = vcmp.lt.s32.totalorder %v8835_v36, 0 }
  0x52   : > { %vm8890_vm6 = vmand %vm4654_vm4, %vm4462_vm3  ;;  %v2420_v4 = vshrl.u32 %v8839_v39, 5 }
  0x57   : > { %7943 = vmatmul.mubr.msk.bf16.gmra.mrb[32].mxu0 %vm12938_vm2, %v8538_v40  ;;  %8039 = vmatmul.mubr.msk.bf16.gmra.mrb[32].mxu1 %vm12938_vm2, %v8539_v41  ;;  %v8563_v40 = vld [vmem:[%s8655_s21 + $0x268] sm:$0xff]   ;;  %v8564_v41 = vld [vmem:[%s8655_s21 + $0xf0] sm:$0xff]  }
  0x58   : > { %7946 = vmatprep.mubr.msk.bf16.mxu0 %vm12938_vm2, %v8540_v42  ;;  %8042 = vmatprep.mubr.msk.bf16.mxu1 %vm12938_vm2, %v8541_v43  ;;  %v3411_v42 = vmul.u32 48, %v3410_v30 }
  0x5f   : > { %7947 = vmatmul.mubr.msk.bf16.gmra.mrb[36].mxu0 %vm12938_vm2, %v8542_v44  ;;  %8043 = vmatmul.mubr.msk.bf16.gmra.mrb[36].mxu1 %vm12938_vm2, %v8543_v45  ;;  %v8844_v43 = vmul.u32.u64.low 2863311531, %v8829_v31  ;;  %v8845_v44 = vmul.u32.u64.high 2863311531, %v8829_v31, %v8844_v43  ;;  %v8565_v45 = vld [vmem:[%s8655_s21 + $0x270] sm:$0xff]  }
  0x60   : > { %7950 = vmatprep.mubr.msk.bf16.mxu0 %vm12938_vm2, %v8544_v46  ;;  %8046 = vmatprep.mubr.msk.bf16.mxu1 %vm12938_vm2, %v8545_v47  ;;  %v8848_v46 = vsub.s32 %v2254_v59, %v3433_v32  ;;  %v2365_v47 = vshrl.u32 %v8812_v22, 5  ;;  %v8879_v59 = vadd.s32 808, %v8751_v55 }
  0x61   : > { %v3476_v13 = vshrl.u32 %v8845_v44, 5  ;;  %v8571_v44 = vld [vmem:[%s8655_s21 + $0x288] sm:$0xff]  }
  0x62   : > { %vm4558_vm5 = vcmp.ne.s32.totalorder %v8848_v46, 0  ;;  %v2366_v61 = vmul.u32 48, %v2365_v47  ;;  %vm4750_vm7 = vcmp.lt.s32.totalorder %v8848_v46, 0 }
  0x63   : > { %vm8933_vm12 = vmand %vm4750_vm7, %vm4558_vm5  ;;  %v3477_v25 = vmul.u32 48, %v3476_v13  ;;  %v9005_v38 = vmul.u32.u64.low 2863311531, %v8879_v59  ;;  %v9006_v39 = vmul.u32.u64.high 2863311531, %v8879_v59, %v9005_v38  ;;  %v13087_v13 = vmov 0 }
  0x64   : > { %v8964_v24 = vsub.s32 %v8792_v11, %v2366_v61 }
  0x65   : > { %v9026_v47 = vsub.s32 %v8829_v31, %v3477_v25  ;;  %v3465_v25 = vshrl.u32 %v9006_v39, 5  ;;  %v8575_v39 = vld [vmem:[%s8655_s21 + $0x298] sm:$0xff]  }
  0x66   : > { %vm4461_vm7 = vcmp.ne.s32.totalorder %v8964_v24, 0  ;;  %v9039_v61 = vadd.s32 48, %v8964_v24 }
  0x67   : > { %7951 = vmatmul.mubr.msk.bf16.gmra.mrb[40].mxu0 %vm12938_vm2, %v8546_v48  ;;  %8047 = vmatmul.mubr.msk.bf16.gmra.mrb[40].mxu1 %vm12938_vm2, %v8547_v49  ;;  %v3421_v48 = vshrl.u32 %v8818_v26, 5  ;;  %v2388_v49 = vmul.u32 48, %v2387_v33  ;;  %v8986_v32 = vmul.u32.u64.low 2863311531, %v8876_v58  ;;  %v8987_v33 = vmul.u32.u64.high 2863311531, %v8876_v58, %v8986_v32  ;;  %13086 = vst [vmem:[#allocation4_spill] sm:$0xff] %v9026_v47 }
  0x68   : > { %7954 = vmatprep.mubr.msk.bf16.mxu0 %vm12938_vm2, %v8548_v50  ;;  %8050 = vmatprep.mubr.msk.bf16.mxu1 %vm12938_vm2, %v8549_v51  ;;  %v3444_v50 = vmul.u32 48, %v3443_v34  ;;  %v8853_v51 = vadd.s32 32, %v8751_v55  ;;  %v13093_v32 = vmov 0 }
  0x69   : > { %v3422_v62 = vmul.u32 48, %v3421_v48 }
  0x6a   : > { %v8908_v7 = vmul.u32.u64.low 2863311531, %v8853_v51  ;;  %v8909_v8 = vmul.u32.u64.high 2863311531, %v8853_v51, %v8908_v7 }
  0x6f   : > { %7955 = vmatmul.mubr.msk.bf16.gmra.mrb[44].mxu0 %vm12938_vm2, %v8550_v53  ;;  %8051 = vmatmul.mubr.msk.bf16.gmra.mrb[44].mxu1 %vm12938_vm2, %v8551_v54  ;;  %v8862_v53 = vsub.s32 %v8751_v55, %v2355_v37  ;;  %v8865_v54 = vadd.s32 56, %v8751_v55  ;;  %v9002_v37 = vsub.s32 %v8796_v12, %v3422_v62  ;;  %v2398_v12 = vshrl.u32 %v8909_v8, 5 }
  0x70   : > { %7958 = vmatprep.mubr.msk.bf16.mxu0 %vm12938_vm2, %v8552_v56  ;;  %8054 = vmatprep.mubr.msk.bf16.mxu1 %vm12938_vm2, %v8553_v57  ;;  %v8870_v56 = vsub.s32 %v8768_v1, %v3411_v42  ;;  %v8873_v57 = vadd.s32 824, %v8751_v55  ;;  %v8899_v1 = vsub.s32 %v8775_v5, %v2388_v49  ;;  %v8573_v49 = vld [vmem:[%s8655_s21 + $0x290] sm:$0xff]   ;;  %v9042_v62 = vadd.s32 80, %v8751_v55 }
  0x71   : > { %vm4460_vm8 = vcmp.ne.s32.totalorder %v8862_v53, 0  ;;  %vm4652_vm9 = vcmp.lt.s32.totalorder %v8862_v53, 0  ;;  %v8916_v5 = vmul.u32.u64.low 2863311531, %v8856_v52  ;;  %v8917_v14 = vmul.u32.u64.high 2863311531, %v8856_v52, %v8916_v5 }
  0x72   : > { %v8925_v16 = vadd.s32 48, %v8862_v53  ;;  %vm4556_vm10 = vcmp.ne.s32.totalorder %v8870_v56, 0  ;;  %vm4748_vm11 = vcmp.lt.s32.totalorder %v8870_v56, 0  ;;  %v8938_v18 = vadd.s32 48, %v8870_v56  ;;  %vm8946_vm0 = vmand %vm4652_vm9, %vm4460_vm8 }
  0x73   : > { %vm4463_vm13 = vcmp.ne.s32.totalorder %v8899_v1, 0  ;;  %vm4655_vm14 = vcmp.lt.s32.totalorder %v8899_v1, 0  ;;  %v8952_v21 = vmul.u32.u64.low 2863311531, %v8865_v54  ;;  %v8953_v22 = vmul.u32.u64.high 2863311531, %v8865_v54, %v8952_v21  ;;  %vm8959_vm3 = vmand %vm4748_vm11, %vm4556_vm10 }
  0x74   : > { %v8967_v26 = vmul.u32.u64.low 2863311531, %v8873_v57  ;;  %v8968_v27 = vmul.u32.u64.high 2863311531, %v8873_v57, %v8967_v26  ;;  %vm8975_vm4 = vmand %vm4655_vm14, %vm4463_vm13  ;;  %v8980_v11 = vadd.s32 48, %v8899_v1  ;;  %vm4653_vm8 = vcmp.lt.s32.totalorder %v8964_v24, 0 }
  0x75   : > { %v13082_v28 = vsel %vm8975_vm4, 4294967295, %v13081_v28  ;;  %v3454_v48 = vshrl.u32 %v8917_v14, 5  ;;  %vm4557_vm9 = vcmp.ne.s32.totalorder %v9002_v37, 0  ;;  %vm4749_vm10 = vcmp.lt.s32.totalorder %v9002_v37, 0 }
  0x76   : > { %v9047_v31 = vadd.s32 48, %v9002_v37  ;;  %v2431_v7 = vshrl.u32 %v8953_v22, 5  ;;  %v9056_v8 = vadd.s32 64, %v8751_v55  ;;  %vm4562_vm14 = vcmp.ne.s32.totalorder %v9026_v47, 0 }
  0x77   : > { %7959 = vmatmul.mubr.msk.bf16.gmra.mrb[48].mxu0 %vm12938_vm2, %v8554_v60  ;;  %8055 = vmatmul.mubr.msk.bf16.gmra.mrb[48].mxu1 %vm12938_vm2, %v8555_v63  ;;  %v8883_v60 = vadd.s32 48, %v8835_v36  ;;  %v2409_v5 = vshrl.u32 %v8987_v33, 5  ;;  %v9090_v22 = vadd.s32 48, %v9026_v47  ;;  %v9094_v26 = vadd.s32 832, %v8751_v55 }
  0x78   : > { %7962 = vmatprep.mubr.msk.bf16.mxu0 %vm12938_vm2, %v8556_v0  ;;  %8058 = vmatprep.mubr.msk.bf16.mxu1 %vm12938_vm2, %v8557_v2  ;;  %v8896_v0 = vadd.s32 48, %v8848_v46  ;;  %v8902_v2 = vsub.s32 %v8778_v6, %v3444_v50  ;;  %v8569_v6 = vld [vmem:[%s8655_s21 + $0x280] sm:$0xff]   ;;  %v2432_v38 = vmul.u32 48, %v2431_v7 }
  0x79   : > { %13092 = vst [vmem:[#allocation6_spill] sm:$0xff] %v9090_v22  ;;  %v8577_v7 = vld [vmem:[%s8655_s21 + $0x2a0] sm:$0xff]   ;;  %v2410_v50 = vmul.u32 48, %v2409_v5  ;;  %v9245_v22 = vadd.s32 840, %v8751_v55 }
  0x7a   : > { %vm4559_vm15 = vcmp.ne.s32.totalorder %v8902_v2, 0  ;;  %vm4751_vm1 = vcmp.lt.s32.totalorder %v8902_v2, 0  ;;  %v8983_v30 = vadd.s32 48, %v8902_v2 }
  0x7b   : > { %vm8997_vm5 = vmand %vm4751_vm1, %vm4559_vm15  ;;  %vm4754_vm1 = vcmp.lt.s32.totalorder %v9026_v47, 0 }
  0x7c   : > { %vm9068_vm15 = vmand %vm4653_vm8, %vm4461_vm7 }
  0x7d   : > { %v13088_v13 = vsel %vm9068_vm15, 4294967295, %v13087_v13  ;;  %vm9118_vm8 = vmand %vm4754_vm1, %vm4562_vm14 }
  0x7f   : > { %7963 = vmatmul.mubr.msk.bf16.gmra.mrb[52].mxu0 %vm12938_vm2, %v8558_v17  ;;  %8059 = vmatmul.mubr.msk.bf16.gmra.mrb[52].mxu1 %vm12938_vm2, %v8559_v19  ;;  %v13291_v17 = vmov 0 }
  0x80   : > { %7966 = vmatprep.mubr.msk.bf16.mxu0 %vm12938_vm2, %v8560_v20  ;;  %8062 = vmatprep.mubr.msk.bf16.mxu1 %vm12938_vm2, %v8561_v23  ;;  %v2421_v20 = vmul.u32 48, %v2420_v4  ;;  %v2399_v4 = vmul.u32 48, %v2398_v12  ;;  %v13304_v23 = vmov 0 }
  0x82   : > { %v9018_v43 = vsub.s32 %v8823_v29, %v2421_v20  ;;  %v13089_v20 = vmov 0  ;;  %v9106_v33 = vsub.s32 %v8853_v51, %v2399_v4 }
  0x84   : > { %13085 = vst [vmem:[#allocation3_spill] sm:$0xff] %v9018_v43  ;;  %vm4466_vm11 = vcmp.ne.s32.totalorder %v9018_v43, 0  ;;  %vm4658_vm13 = vcmp.lt.s32.totalorder %v9018_v43, 0  ;;  %v9087_v21 = vadd.s32 48, %v9018_v43  ;;  %13096 = vst [vmem:[#allocation8_spill] sm:$0xff] %v9106_v33  ;;  %vm4656_vm14 = vcmp.lt.s32.totalorder %v9106_v33, 0 }
  0x85   : > { %vm9101_vm7 = vmand %vm4658_vm13, %vm4466_vm11  ;;  %v8585_v43 = vld [vmem:[%s8655_s21 + $0x2c0] sm:$0xff]  }
  0x86   : > { %13091 = vst [vmem:[#allocation5_spill] sm:$0xff] %v9087_v21  ;;  %v13094_v32 = vsel %vm9101_vm7, 4294967295, %v13093_v32 }
  0x87   : > { %7967 = vmatmul.mubr.msk.bf16.gmra.mrb[56].mxu0 %vm12938_vm2, %v8562_v35  ;;  %8063 = vmatmul.mubr.msk.bf16.gmra.mrb[56].mxu1 %vm12938_vm2, %v8563_v40  ;;  %v13083_v35 = vmov 0  ;;  %v8570_v40 = vld [vmem:[%s8655_s21 + $0x108] sm:$0xff]   ;;  %13095 = vst [vmem:[#allocation7_spill] sm:$0xff] %v13094_v32 }
  0x88   : > { %7970 = vmatprep.mubr.msk.bf16.mxu0 %vm12938_vm2, %v8564_v41  ;;  %8066 = vmatprep.mubr.msk.bf16.mxu1 %vm12938_vm2, %v8565_v45  ;;  %v13084_v35 = vsel %vm8997_vm5, 4294967295, %v13083_v35  ;;  %v8572_v45 = vld [vmem:[%s8655_s21 + $0x110] sm:$0xff]  }
  0x8f   : > { %7971 = vmatmul.mubr.msk.bf16.gmra.mrb[60].mxu0 %vm12938_vm2, %v8566_v3  ;;  %8067 = vmatmul.mubr.msk.bf16.gmra.mrb[60].mxu1 %vm12938_vm2, %v8567_v9  ;;  %v9050_v3 = vadd.s32 848, %v8751_v55  ;;  %v3455_v9 = vmul.u32 48, %v3454_v48 }
  0x90   : > { %7974 = vmatprep.mubr.msk.bf16.mxu0 %vm12938_vm2, %v8568_v10  ;;  %8070 = vmatprep.mubr.msk.bf16.mxu1 %vm12938_vm2, %v8569_v6  ;;  %v3487_v10 = vshrl.u32 %v8968_v27, 5  ;;  %v9075_v14 = vmul.u32.u64.low 2863311531, %v9042_v62  ;;  %v9076_v6 = vmul.u32.u64.high 2863311531, %v9042_v62, %v9075_v14  ;;  %v8574_v27 = vld [vmem:[%s8655_s21 + $0x118] sm:$0xff]  }
  0x91   : > { %v9123_v48 = vsub.s32 %v8856_v52, %v3455_v9  ;;  %v9139_v52 = vadd.s32 88, %v8751_v55  ;;  %v3466_v9 = vmul.u32 48, %v3465_v25  ;;  %v9159_v25 = vsub.s32 %v8865_v54, %v2432_v38  ;;  %v8580_v14 = vld [vmem:[%s8655_s21 + $0x130] sm:$0xff]  }
  0x92   : > { %v3488_v51 = vmul.u32 48, %v3487_v10  ;;  %v9142_v10 = vmul.u32.u64.low 2863311531, %v9094_v26  ;;  %v9143_v29 = vmul.u32.u64.high 2863311531, %v9094_v26, %v9142_v10  ;;  %v9173_v54 = vsub.s32 %v8876_v58, %v2410_v50 }
  0x93   : > { %13100 = vst [vmem:[#allocation10_spill] sm:$0xff] %v9123_v48  ;;  %13102 = vst [vmem:[#allocation11_spill] sm:$0xff] %v9159_v25  ;;  %v2464_v38 = vshrl.u32 %v9076_v6, 5  ;;  %v9182_v5 = vsub.s32 %v8879_v59, %v3466_v9  ;;  %v9190_v58 = vadd.s32 48, %v9123_v48  ;;  %v9195_v6 = vadd.s32 72, %v8751_v55 }
  0x94   : > { %v9169_v10 = vsub.s32 %v8873_v57, %v3488_v51  ;;  %13107 = vst [vmem:[#allocation14_spill] sm:$0xff] %v9173_v54  ;;  %v9201_v59 = vadd.s32 48, %v9159_v25  ;;  %v3498_v41 = vshrl.u32 %v9143_v29, 5  ;;  %vm13122_vm15 = vcmp.lt.s32.totalorder %v9159_v25, 0 }
  0x95   : > { %13108 = vst [vmem:[#allocation15_spill] sm:$0xff] %v9182_v5  ;;  %13109 = vst [vmem:[#allocation16_spill] sm:$0xff] %v9190_v58  ;;  %v2465_v42 = vmul.u32 48, %v2464_v38  ;;  %vm4753_vm1 = vcmp.lt.s32.totalorder %v9182_v5, 0  ;;  %v13123_v38 = vmov 0  ;;  %v9282_v29 = vadd.s32 48, %v9182_v5 }
  0x96   : > { %13106 = vst [vmem:[#allocation13_spill] sm:$0xff] %v9169_v10  ;;  %13110 = vst [vmem:[#allocation17_spill] sm:$0xff] %v9201_v59  ;;  %v9241_v15 = vmul.u32.u64.low 2863311531, %v9195_v6  ;;  %v9242_v47 = vmul.u32.u64.high 2863311531, %v9195_v6, %v9241_v15  ;;  %v3499_v58 = vmul.u32 48, %v3498_v41  ;;  %v8584_v41 = vld [vmem:[%s8655_s21 + $0x140] sm:$0xff]  }
  0x97   : > { %7975 = vmatmul.mubr.msk.bf16.gmra.mrb[64].mxu0 %vm12938_vm2, %v8570_v40  ;;  %8071 = vmatmul.mubr.msk.bf16.gmra.mrb[64].mxu1 %vm12938_vm2, %v8571_v44  ;;  %v9109_v40 = vmul.u32.u64.low 2863311531, %v9050_v3  ;;  %v9110_v12 = vmul.u32.u64.high 2863311531, %v9050_v3, %v9109_v40  ;;  %v8576_v44 = vld [vmem:[%s8655_s21 + $0x120] sm:$0xff]   ;;  %13138 = vst [vmem:[#allocation25_spill] sm:$0xff] %v9282_v29  ;;  %v8588_v29 = vld [vmem:[%s8655_s21 + $0x150] sm:$0xff]  }
  0x98   : > { %7978 = vmatprep.mubr.msk.bf16.mxu0 %vm12938_vm2, %v8572_v45  ;;  %8074 = vmatprep.mubr.msk.bf16.mxu1 %vm12938_vm2, %v8573_v49  ;;  %vm9082_vm2 = vmand %vm4749_vm10, %vm4557_vm9  ;;  %v13097_v45 = vmov 0  ;;  %v9126_v49 = vmul.u32.u64.low 2863311531, %v9056_v8  ;;  %v9127_v4 = vmul.u32.u64.high 2863311531, %v9056_v8, %v9126_v49  ;;  %vm13101_vm9 = vcmask 220160  }
  0x99   : > { %v13090_v20 = vsel %vm9082_vm2, 4294967295, %v13089_v20  ;;  %v13098_v45 = vsel %vm9118_vm8, 4294967295, %v13097_v45  ;;  %v9146_v49 = vadd.s32 856, %v8751_v55  ;;  %vm4464_vm10 = vcmp.ne.s32.totalorder %v9106_v33, 0  ;;  %vm13103_vm11 = vmmov %vm13101_vm9 }
  0x9a   : > { %13099 = vst [vmem:[#allocation9_spill] sm:$0xff] %v13098_v45  ;;  %vm13104_vm13 = vmmov %vm13101_vm9  ;;  %v3520_v50 = vshrl.u32 %v9110_v12, 5  ;;  %v2442_v9 = vshrl.u32 %v9127_v4, 5  ;;  %v13111_v12 = vmov 0  ;;  %v9216_v40 = vadd.s32 48, %v9169_v10 }
  0x9b   : > { %v9185_v57 = vmul.u32.u64.low 2863311531, %v9146_v49  ;;  %v9186_v51 = vmul.u32.u64.high 2863311531, %v9146_v49, %v9185_v57  ;;  %vm13116_vm8 = vcmp.lt.s32.totalorder %v9123_v48, 0  ;;  %v13117_v4 = vmov 0  ;;  %vm13120_vm2 = vmmov %vm13101_vm9 }
  0x9c   : > { %v8581_v57 = vld [vmem:[%s8655_s21 + $0x2b0] sm:$0xff]   ;;  %13114 = vst [vmem:[#allocation19_spill] sm:$0xff] %v9216_v40  ;;  %v3521_v34 = vmul.u32 48, %v3520_v50  ;;  %v2443_v15 = vmul.u32 48, %v2442_v9  ;;  %v13134_v9 = vmov 0 }
  0x9f   : > { %7979 = vmatmul.mubr.msk.bf16.gmra.mrb[68].mxu0 %vm13101_vm9, %v8574_v27  ;;  %8075 = vmatmul.mubr.msk.bf16.gmra.mrb[68].mxu1 %vm13103_vm11, %v8575_v39  ;;  %v9165_v27 = vadd.s32 48, %v9106_v33  ;;  %vm13115_vm11 = vcmp.ne.s32.totalorder %v9123_v48, 0  ;;  %v13140_v48 = vmov 0  ;;  %v9301_v33 = vadd.s32 880, %v8751_v55 }
  0xa0   : > { %7982 = vmatprep.mubr.msk.bf16.mxu0 %vm13104_vm13, %v8576_v44  ;;  %8078 = vmatprep.mubr.msk.bf16.mxu1 %vm13101_vm9, %v8577_v7  ;;  %v9177_v39 = vmul.u32.u64.low 2863311531, %v9139_v52  ;;  %v9178_v44 = vmul.u32.u64.high 2863311531, %v9139_v52, %v9177_v39  ;;  %v8578_v7 = vld [vmem:[%s8655_s21 + $0x128] sm:$0xff]   ;;  %vm9210_vm13 = vmand %vm4656_vm14, %vm4464_vm10  ;;  %vm4657_vm10 = vcmp.lt.s32.totalorder %v9173_v54, 0  ;;  %vm4561_vm14 = vcmp.ne.s32.totalorder %v9182_v5, 0 }
  0xa1   : > { %13105 = vst [vmem:[#allocation12_spill] sm:$0xff] %v9165_v27  ;;  %v8579_v39 = vld [vmem:[%s8655_s21 + $0x2a8] sm:$0xff]   ;;  %v13112_v12 = vsel %vm9210_vm13, 4294967295, %v13111_v12  ;;  %vm9223_vm7 = vmand %vm13116_vm8, %vm13115_vm11  ;;  %vm13121_vm9 = vcmp.ne.s32.totalorder %v9159_v25, 0  ;;  %v9312_v25 = vmul.u32.u64.low 2863311531, %v9245_v22  ;;  %v9313_v59 = vmul.u32.u64.high 2863311531, %v9245_v22, %v9312_v25 }
  0xa2   : > { %13113 = vst [vmem:[#allocation18_spill] sm:$0xff] %v13112_v12  ;;  %v13118_v4 = vsel %vm9223_vm7, 4294967295, %v13117_v4  ;;  %vm9236_vm5 = vmand %vm13122_vm15, %vm13121_vm9  ;;  %vm13129_vm15 = vcmp.lt.s32.totalorder %v9169_v10, 0  ;;  %v2475_v50 = vshrl.u32 %v9178_v44, 5  ;;  %v9279_v44 = vadd.s32 48, %v9173_v54  ;;  %v8587_v5 = vld [vmem:[%s8655_s21 + $0x2c8] sm:$0xff]  }
  0xa3   : > { %13119 = vst [vmem:[#allocation20_spill] sm:$0xff] %v13118_v4  ;;  %v13124_v38 = vsel %vm9236_vm5, 4294967295, %v13123_v38  ;;  %vm13126_vm8 = vmmov %vm13120_vm2  ;;  %v3531_v4 = vshrl.u32 %v9186_v51, 5  ;;  %v9318_v51 = vsub.s32 %v9056_v8, %v2443_v15  ;;  %v9335_v8 = vadd.s32 96, %v8751_v55 }
  0xa4   : > { %13125 = vst [vmem:[#allocation21_spill] sm:$0xff] %v13124_v38  ;;  %vm13127_vm11 = vmmov %vm13120_vm2  ;;  %v8583_v38 = vld [vmem:[%s8655_s21 + $0x2b8] sm:$0xff]   ;;  %v2476_v27 = vmul.u32 48, %v2475_v50  ;;  %v9338_v25 = vsub.s32 %v9094_v26, %v3499_v58  ;;  %v9341_v15 = vmul.u32.u64.low 2863311531, %v9301_v33  ;;  %v9342_v50 = vmul.u32.u64.high 2863311531, %v9301_v33, %v9341_v15 }
  0xa5   : > { %13137 = vst [vmem:[#allocation24_spill] sm:$0xff] %v9279_v44  ;;  %13144 = vst [vmem:[#allocation29_spill] sm:$0xff] %v9318_v51  ;;  %v3509_v15 = vshrl.u32 %v9313_v59, 5 }
  0xa6   : > { %13145 = vst [vmem:[#allocation30_spill] sm:$0xff] %v9338_v25  ;;  %v9359_v58 = vsub.s32 %v9139_v52, %v2476_v27  ;;  %v8586_v52 = vld [vmem:[%s8655_s21 + $0x148] sm:$0xff]   ;;  %vm13171_vm7 = vcmp.lt.s32.totalorder %v9338_v25, 0 }
  0xa7   : > { %7983 = vmatmul.mubr.msk.bf16.gmra.mrb[72].mxu0 %vm13120_vm2, %v8578_v7  ;;  %8079 = vmatmul.mubr.msk.bf16.gmra.mrb[72].mxu1 %vm13126_vm8, %v8579_v39  ;;  %vm13128_vm2 = vcmp.ne.s32.totalorder %v9169_v10, 0  ;;  %v13130_v7 = vmov 0  ;;  %v9263_v39 = vadd.s32 112, %v8751_v55  ;;  %v3564_v10 = vshrl.u32 %v9342_v50, 5 }
  0xa8   : > { %7986 = vmatprep.mubr.msk.bf16.mxu0 %vm13127_vm11, %v8580_v14  ;;  %vm9257_vm9 = vmand %vm13129_vm15, %vm13128_vm2  ;;  %8082 = vmatprep.mubr.msk.bf16.mxu1 %vm13126_vm8, %v8581_v57  ;;  %vm13133_vm11 = vcmp.ne.s32.totalorder %v9173_v54, 0  ;;  %v9285_v57 = vsub.s32 %v9042_v62, %v2465_v42  ;;  %v8582_v42 = vld [vmem:[%s8655_s21 + $0x138] sm:$0xff]   ;;  %v9309_v14 = vsub.s32 %v9050_v3, %v3521_v34  ;;  %v2453_v3 = vshrl.u32 %v9242_v47, 5  ;;  %13151 = vst [vmem:[#allocation33_spill] sm:$0xff] %v9359_v58 }
  0xa9   : > { %v13131_v7 = vsel %vm9257_vm9, 4294967295, %v13130_v7  ;;  %vm9274_vm2 = vmand %vm4657_vm10, %vm13133_vm11  ;;  %v9321_v12 = vmul.u32.u64.low 2863311531, %v9263_v39  ;;  %v9322_v45 = vmul.u32.u64.high 2863311531, %v9263_v39, %v9321_v12  ;;  %vm13164_vm9 = vcmp.lt.s32.totalorder %v9318_v51, 0 }
  0xaa   : > { %13132 = vst [vmem:[#allocation22_spill] sm:$0xff] %v13131_v7  ;;  %v13135_v9 = vsel %vm9274_vm2, 4294967295, %v13134_v9  ;;  %13139 = vst [vmem:[#allocation26_spill] sm:$0xff] %v9285_v57  ;;  %v3532_v12 = vmul.u32 48, %v3531_v4  ;;  %vm4662_vm15 = vcmp.lt.s32.totalorder %v9285_v57, 0  ;;  %v9347_v34 = vadd.s32 48, %v9285_v57 }
  0xab   : > { %13136 = vst [vmem:[#allocation23_spill] sm:$0xff] %v13135_v9  ;;  %vm9295_vm10 = vmand %vm4753_vm1, %vm4561_vm14  ;;  %v9355_v26 = vadd.s32 48, %v9309_v14  ;;  %v9363_v47 = vmul.u32.u64.low 2863311531, %v9335_v8  ;;  %v9364_v4 = vmul.u32.u64.high 2863311531, %v9335_v8, %v9363_v47  ;;  %v2454_v27 = vmul.u32 48, %v2453_v3 }
  0xac   : > { %v13141_v48 = vsel %vm9295_vm10, 4294967295, %v13140_v48  ;;  %13143 = vst [vmem:[#allocation28_spill] sm:$0xff] %v9309_v14  ;;  %vm13146_vm14 = vmmov %vm13126_vm8  ;;  %vm4758_vm10 = vcmp.lt.s32.totalorder %v9309_v14, 0  ;;  %v2508_v59 = vshrl.u32 %v9322_v45, 5  ;;  %v9402_v3 = vadd.s32 888, %v8751_v55 }
  0xad   : > { %13142 = vst [vmem:[#allocation27_spill] sm:$0xff] %v13141_v48  ;;  %13147 = vst [vmem:[#allocation31_spill] sm:$0xff] %v9347_v34  ;;  %v13156_v48 = vmov 0  ;;  %v13165_v45 = vmov 0  ;;  %v9428_v9 = vadd.s32 48, %v9359_v58  ;;  %v9446_v7 = vsub.s32 %v9195_v6, %v2454_v27 }
  0xae   : > { %vm13148_vm11 = vmmov %vm13126_vm8  ;;  %13150 = vst [vmem:[#allocation32_spill] sm:$0xff] %v9355_v26  ;;  %v3510_v21 = vmul.u32 48, %v3509_v15  ;;  %v2486_v32 = vshrl.u32 %v9364_v4, 5  ;;  %v13180_v50 = vmov 0  ;;  %v9464_v4 = vadd.s32 104, %v8751_v55 }
  0xaf   : > { %7987 = vmatmul.mubr.msk.bf16.gmra.mrb[76].mxu0 %vm13146_vm14, %v8582_v42  ;;  %8083 = vmatmul.mubr.msk.bf16.gmra.mrb[76].mxu1 %vm13148_vm11, %v8583_v38  ;;  %vm13149_vm1 = vmmov %vm13126_vm8  ;;  %v9367_v38 = vadd.s32 864, %v8751_v55  ;;  %v9370_v42 = vadd.s32 120, %v8751_v55  ;;  %vm13159_vm14 = vcmp.ne.s32.totalorder %v9309_v14, 0  ;;  %vm13163_vm11 = vcmp.ne.s32.totalorder %v9318_v51, 0  ;;  %13168 = vst [vmem:[#allocation39_spill] sm:$0xff] %v9428_v9 }
  0xb0   : > { %7990 = vmatprep.mubr.msk.bf16.mxu0 %vm13149_vm1, %v8584_v41  ;;  %vm13152_vm8 = vmmov %vm13149_vm1  ;;  %v9374_v41 = vadd.s32 48, %v9318_v51  ;;  %v9460_v6 = vmul.u32.u64.low 2863311531, %v9402_v3  ;;  %v9461_v27 = vmul.u32.u64.high 2863311531, %v9402_v3, %v9460_v6  ;;  %v9494_v15 = vadd.s32 872, %v8751_v55  ;;  %v8590_v51 = vld [vmem:[%s8655_s21 + $0x158] sm:$0xff]  }
  0xb1   : > { %8086 = vmatprep.mubr.msk.bf16.mxu1 %vm13152_vm8, %v8585_v43  ;;  %v9378_v43 = vsub.s32 %v9146_v49, %v3532_v12  ;;  %v9383_v47 = vmul.u32.u64.low 2863311531, %v9367_v38  ;;  %v9384_v62 = vmul.u32.u64.high 2863311531, %v9367_v38, %v9383_v47  ;;  %vm13155_vm8 = vcmp.ne.s32.totalorder %v9285_v57, 0  ;;  %v8589_v12 = vld [vmem:[%s8655_s21 + $0x2d0] sm:$0xff]   ;;  %vm9409_vm2 = vmand %vm4758_vm10, %vm13159_vm14 }
  0xb2   : > { %13153 = vst [vmem:[#allocation34_spill] sm:$0xff] %v9374_v41  ;;  %vm9392_vm1 = vmand %vm4662_vm15, %vm13155_vm8  ;;  %v9398_v49 = vadd.s32 48, %v9338_v25  ;;  %v13160_v47 = vmov 0  ;;  %v9416_v54 = vmul.u32.u64.low 2863311531, %v9370_v42  ;;  %v9417_v44 = vmul.u32.u64.high 2863311531, %v9370_v42, %v9416_v54 }
  0xb3   : > { %13154 = vst [vmem:[#allocation35_spill] sm:$0xff] %v9378_v43  ;;  %v13157_v48 = vsel %vm9392_vm1, 4294967295, %v13156_v48  ;;  %v13161_v47 = vsel %vm9409_vm2, 4294967295, %v13160_v47  ;;  %vm9423_vm5 = vmand %vm13164_vm9, %vm13163_vm11  ;;  %vm4567_vm10 = vcmp.ne.s32.totalorder %v9378_v43, 0  ;;  %vm4759_vm14 = vcmp.lt.s32.totalorder %v9378_v43, 0 }
  0xb4   : > { %13158 = vst [vmem:[#allocation36_spill] sm:$0xff] %v9398_v49  ;;  %13162 = vst [vmem:[#allocation37_spill] sm:$0xff] %v13161_v47  ;;  %v13166_v45 = vsel %vm9423_vm5, 4294967295, %v13165_v45  ;;  %vm13169_vm8 = vcmask 220160   ;;  %vm13170_vm15 = vcmp.ne.s32.totalorder %v9338_v25, 0  ;;  %v13172_v54 = vmov 0 }
  0xb5   : > { %13167 = vst [vmem:[#allocation38_spill] sm:$0xff] %v13166_v45  ;;  %vm9438_vm13 = vmand %vm13171_vm7, %vm13170_vm15  ;;  %v9443_v40 = vadd.s32 48, %v9378_v43  ;;  %vm13179_vm7 = vcmp.lt.s32.totalorder %v9359_v58, 0  ;;  %v9498_v41 = vsub.s32 %v9245_v22, %v3510_v21  ;;  %v2487_v45 = vmul.u32 48, %v2486_v32  ;;  %v8592_v47 = vld [vmem:[%s8655_s21 + $0x160] sm:$0xff]  }
  0xb6   : > { %v13173_v54 = vsel %vm9438_vm13, 4294967295, %v13172_v54  ;;  %vm13176_vm9 = vmmov %vm13169_vm8  ;;  %v9501_v14 = vmul.u32.u64.low 2863311531, %v9464_v4  ;;  %v9502_v26 = vmul.u32.u64.high 2863311531, %v9464_v4, %v9501_v14  ;;  %v8593_v22 = vld [vmem:[%s8655_s21 + $0x2e0] sm:$0xff]   ;;  %v9521_v32 = vadd.s32 48, %v9446_v7 }
  0xb7   : > { %7991 = vmatmul.mubr.msk.bf16.gmra.mrb[80].mxu0 %vm13169_vm8, %v8586_v52  ;;  %13174 = vst [vmem:[#allocation40_spill] sm:$0xff] %v13173_v54  ;;  %13175 = vst [vmem:[#allocation41_spill] sm:$0xff] %v9443_v40  ;;  %8087 = vmatmul.mubr.msk.bf16.gmra.mrb[80].mxu1 %vm13176_vm9, %v8587_v5  ;;  %v2509_v52 = vmul.u32 48, %v2508_v59  ;;  %v13183_v59 = vmov 0  ;;  %v2519_v5 = vshrl.u32 %v9417_v44, 5  ;;  %v9524_v6 = vadd.s32 144, %v8751_v55 }
  0xb8   : > { %vm13177_vm11 = vmmov %vm13169_vm8  ;;  %vm13178_vm8 = vcmp.ne.s32.totalorder %v9359_v58, 0  ;;  %8090 = vmatprep.mubr.msk.bf16.mxu1 %vm13176_vm9, %v8589_v12  ;;  %v3542_v12 = vshrl.u32 %v9384_v62, 5  ;;  %v8591_v62 = vld [vmem:[%s8655_s21 + $0x2d8] sm:$0xff]   ;;  %v9530_v44 = vmul.u32.u64.low 2863311531, %v9494_v15  ;;  %v9531_v43 = vmul.u32.u64.high 2863311531, %v9494_v15, %v9530_v44  ;;  %v8597_v40 = vld [vmem:[%s8655_s21 + $0x2f0] sm:$0xff]  }
  0xb9   : > { %7994 = vmatprep.mubr.msk.bf16.mxu0 %vm13177_vm11, %v8588_v29  ;;  %vm9455_vm15 = vmand %vm13179_vm7, %vm13178_vm8  ;;  %v3565_v29 = vmul.u32 48, %v3564_v10  ;;  %v9516_v21 = vsub.s32 %v9263_v39, %v2509_v52  ;;  %vm4565_vm7 = vcmp.ne.s32.totalorder %v9498_v41, 0  ;;  %v9537_v39 = vsub.s32 %v9335_v8, %v2487_v45 }
  0xba   : > { %v13181_v50 = vsel %vm9455_vm15, 4294967295, %v13180_v50  ;;  %vm9483_vm11 = vmand %vm4759_vm14, %vm4567_vm10  ;;  %v3543_v14 = vmul.u32 48, %v3542_v12  ;;  %v3575_v52 = vshrl.u32 %v9461_v27, 5  ;;  %v8594_v12 = vld [vmem:[%s8655_s21 + $0x168] sm:$0xff]   ;;  %v13205_v58 = vmov 0 }
  0xbb   : > { %13182 = vst [vmem:[#allocation42_spill] sm:$0xff] %v13181_v50  ;;  %v13184_v59 = vsel %vm9483_vm11, 4294967295, %v13183_v59  ;;  %13186 = vst [vmem:[#allocation44_spill] sm:$0xff] %v9516_v21  ;;  %v9527_v10 = vsub.s32 %v9301_v33, %v3565_v29  ;;  %v9543_v33 = vadd.s32 48, %v9498_v41  ;;  %v9552_v8 = vadd.s32 48, %v9516_v21 }
  0xbc   : > { %13185 = vst [vmem:[#allocation43_spill] sm:$0xff] %v13184_v59  ;;  %v2520_v59 = vmul.u32 48, %v2519_v5  ;;  %vm13188_vm8 = vmmov %vm13176_vm9  ;;  %v9555_v45 = vsub.s32 %v9367_v38, %v3543_v14  ;;  %v2497_v29 = vshrl.u32 %v9502_v26, 5  ;;  %v13197_v38 = vmov 0  ;;  %v8596_v26 = vld [vmem:[%s8655_s21 + $0x170] sm:$0xff]  }
  0xbd   : > { %13187 = vst [vmem:[#allocation45_spill] sm:$0xff] %v9527_v10  ;;  %13189 = vst [vmem:[#allocation46_spill] sm:$0xff] %v9537_v39  ;;  %v3576_v44 = vmul.u32 48, %v3575_v52  ;;  %v3553_v14 = vshrl.u32 %v9531_v43, 5  ;;  %v9609_v9 = vadd.s32 48, %v9537_v39  ;;  %v9614_v43 = vadd.s32 896, %v8751_v55 }
  0xbe   : > { %vm13190_vm14 = vmmov %vm13188_vm8  ;;  %13193 = vst [vmem:[#allocation47_spill] sm:$0xff] %v9555_v45  ;;  %v9564_v5 = vsub.s32 %v9370_v42, %v2520_v59  ;;  %v9581_v42 = vadd.s32 128, %v8751_v55  ;;  %v8595_v59 = vld [vmem:[%s8655_s21 + $0x2e8] sm:$0xff]   ;;  %vm13209_vm5 = vcmp.lt.s32.totalorder %v9527_v10, 0  ;;  %v2498_v50 = vmul.u32 48, %v2497_v29 }
  0xbf   : > { %7995 = vmatmul.mubr.msk.bf16.gmra.mrb[84].mxu0 %vm13188_vm8, %v8590_v51  ;;  %8091 = vmatmul.mubr.msk.bf16.gmra.mrb[84].mxu1 %vm13190_vm14, %v8591_v62  ;;  %vm13191_vm10 = vmmov %vm13188_vm8  ;;  %v9548_v51 = vadd.s32 912, %v8751_v55  ;;  %v9577_v62 = vadd.s32 48, %v9527_v10  ;;  %vm13200_vm14 = vcmp.lt.s32.totalorder %v9498_v41, 0  ;;  %13207 = vst [vmem:[#allocation50_spill] sm:$0xff] %v9609_v9  ;;  %vm13215_vm1 = vcmp.lt.s32.totalorder %v9537_v39, 0 }
  0xc0   : > { %7998 = vmatprep.mubr.msk.bf16.mxu0 %vm13191_vm10, %v8592_v47  ;;  %vm13192_vm9 = vmmov %vm13188_vm8  ;;  %v9558_v47 = vmul.u32.u64.low 2863311531, %v9524_v6  ;;  %v9559_v27 = vmul.u32.u64.high 2863311531, %v9524_v6, %v9558_v47  ;;  %13194 = vst [vmem:[#allocation48_spill] sm:$0xff] %v9564_v5  ;;  %vm13196_vm8 = vcmp.lt.s32.totalorder %v9446_v7, 0  ;;  %vm13204_vm10 = vcmp.lt.s32.totalorder %v9516_v21, 0 }
  0xc1   : > { %8094 = vmatprep.mubr.msk.bf16.mxu1 %vm13192_vm9, %v8593_v22  ;;  %vm13195_vm9 = vcmp.ne.s32.totalorder %v9446_v7, 0  ;;  %13199 = vst [vmem:[#allocation49_spill] sm:$0xff] %v9577_v62  ;;  %vm9589_vm15 = vmand %vm13200_vm14, %vm4565_vm7  ;;  %v13201_v22 = vmov 0  ;;  %v9596_v47 = vmul.u32.u64.low 2863311531, %v9548_v51  ;;  %v9597_v52 = vmul.u32.u64.high 2863311531, %v9548_v51, %v9596_v47 }
  0xc2   : > { %vm9572_vm11 = vmand %vm13196_vm8, %vm13195_vm9  ;;  %v13202_v22 = vsel %vm9589_vm15, 4294967295, %v13201_v22  ;;  %vm13203_vm9 = vcmp.ne.s32.totalorder %v9516_v21, 0  ;;  %vm13208_vm8 = vcmp.ne.s32.totalorder %v9527_v10, 0  ;;  %v13210_v47 = vmov 0  ;;  %v8598_v10 = vld [vmem:[%s8655_s21 + $0x178] sm:$0xff]  }
  0xc3   : > { %v13198_v38 = vsel %vm9572_vm11, 4294967295, %v13197_v38  ;;  %vm9604_vm13 = vmand %vm13204_vm10, %vm13203_vm9  ;;  %vm4475_vm10 = vcmp.ne.s32.totalorder %v9564_v5, 0  ;;  %vm4667_vm9 = vcmp.lt.s32.totalorder %v9564_v5, 0  ;;  %v2552_v25 = vshrl.u32 %v9559_v27, 5 }
  0xc4   : > { %v13206_v58 = vsel %vm9604_vm13, 4294967295, %v13205_v58  ;;  %vm9620_vm2 = vmand %vm13209_vm5, %vm13208_vm8  ;;  %vm13213_vm7 = vcmask 220160   ;;  %vm13214_vm14 = vcmp.ne.s32.totalorder %v9537_v39, 0  ;;  %v13216_v49 = vmov 0 }
  0xc5   : > { %v13211_v47 = vsel %vm9620_vm2, 4294967295, %v13210_v47  ;;  %vm9632_vm4 = vmand %vm13215_vm1, %vm13214_vm14  ;;  %v9637_v54 = vadd.s32 48, %v9555_v45  ;;  %v9640_v57 = vsub.s32 %v9402_v3, %v3576_v44  ;;  %vm13223_vm1 = vcmp.ne.s32.totalorder %v9555_v45, 0 }
  0xc6   : > { %13212 = vst [vmem:[#allocation51_spill] sm:$0xff] %v13211_v47  ;;  %v13217_v49 = vsel %vm9632_vm4, 4294967295, %v13216_v49  ;;  %v9643_v29 = vmul.u32.u64.low 2863311531, %v9581_v42  ;;  %v9644_v34 = vmul.u32.u64.high 2863311531, %v9581_v42, %v9643_v29  ;;  %vm13221_vm5 = vmmov %vm13213_vm7  ;;  %v9665_v44 = vadd.s32 48, %v9564_v5 }
  0xc7   : > { %7999 = vmatmul.mubr.msk.bf16.gmra.mrb[88].mxu0 %vm13213_vm7, %v8594_v12  ;;  %13218 = vst [vmem:[#allocation52_spill] sm:$0xff] %v13217_v49  ;;  %13219 = vst [vmem:[#allocation53_spill] sm:$0xff] %v9637_v54  ;;  %8095 = vmatmul.mubr.msk.bf16.gmra.mrb[88].mxu1 %vm13221_vm5, %v8595_v59  ;;  %vm13224_vm7 = vcmp.lt.s32.totalorder %v9555_v45, 0  ;;  %v13225_v12 = vmov 0  ;;  %v3554_v59 = vmul.u32 48, %v3553_v14  ;;  %v13229_v3 = vmov 0 }
  0xc8   : > { %13220 = vst [vmem:[#allocation54_spill] sm:$0xff] %v9640_v57  ;;  %vm13222_vm8 = vmmov %vm13221_vm5  ;;  %8098 = vmatprep.mubr.msk.bf16.mxu1 %vm13221_vm5, %v8597_v40  ;;  %v3608_v40 = vshrl.u32 %v9597_v52, 5  ;;  %v9686_v14 = vadd.s32 152, %v8751_v55  ;;  %v2553_v27 = vmul.u32 48, %v2552_v25  ;;  %v8599_v25 = vld [vmem:[%s8655_s21 + $0x2f8] sm:$0xff]   ;;  %v9716_v62 = vadd.s32 920, %v8751_v55 }
  0xc9   : > { %8002 = vmatprep.mubr.msk.bf16.mxu0 %vm13222_vm8, %v8596_v26  ;;  %vm9660_vm14 = vmand %vm13224_vm7, %vm13223_vm1  ;;  %13228 = vst [vmem:[#allocation56_spill] sm:$0xff] %v9665_v44  ;;  %v9689_v26 = vsub.s32 %v9464_v4, %v2498_v50  ;;  %v9692_v47 = vmul.u32.u64.low 2863311531, %v9614_v43  ;;  %v9693_v29 = vmul.u32.u64.high 2863311531, %v9614_v43, %v9692_v47  ;;  %v9712_v4 = vsub.s32 %v9494_v15, %v3554_v59 }
  0xca   : > { %v13226_v12 = vsel %vm9660_vm14, 4294967295, %v13225_v12  ;;  %vm9680_vm8 = vmand %vm4667_vm9, %vm4475_vm10  ;;  %vm4571_vm10 = vcmp.ne.s32.totalorder %v9640_v57, 0  ;;  %vm4763_vm9 = vcmp.lt.s32.totalorder %v9640_v57, 0  ;;  %v2530_v47 = vshrl.u32 %v9644_v34, 5 }
  0xcb   : > { %13227 = vst [vmem:[#allocation55_spill] sm:$0xff] %v13226_v12  ;;  %v13230_v3 = vsel %vm9680_vm8, 4294967295, %v13229_v3  ;;  %13232 = vst [vmem:[#allocation58_spill] sm:$0xff] %v9689_v26  ;;  %v9719_v52 = vadd.s32 48, %v9640_v57  ;;  %v3609_v45 = vmul.u32 48, %v3608_v40  ;;  %v13235_v39 = vmov 0 }
  0xcc   : > { %13231 = vst [vmem:[#allocation57_spill] sm:$0xff] %v13230_v3  ;;  %13233 = vst [vmem:[#allocation59_spill] sm:$0xff] %v9712_v4  ;;  %v9722_v54 = vmul.u32.u64.low 2863311531, %v9686_v14  ;;  %v9723_v12 = vmul.u32.u64.high 2863311531, %v9686_v14, %v9722_v54  ;;  %vm4665_vm5 = vcmp.lt.s32.totalorder %v9689_v26, 0  ;;  %v9732_v34 = vsub.s32 %v9524_v6, %v2553_v27 }
  0xcd   : > { %13234 = vst [vmem:[#allocation60_spill] sm:$0xff] %v9719_v52  ;;  %vm9725_vm1 = vmand %vm4763_vm9, %vm4571_vm10  ;;  %v9735_v15 = vadd.s32 136, %v8751_v55  ;;  %vm13239_vm8 = vcmask 220160   ;;  %v9739_v59 = vadd.s32 48, %v9689_v26  ;;  %v2531_v54 = vmul.u32 48, %v2530_v47 }
  0xce   : > { %v13236_v39 = vsel %vm9725_vm1, 4294967295, %v13235_v39  ;;  %13238 = vst [vmem:[#allocation62_spill] sm:$0xff] %v9732_v34  ;;  %v3586_v40 = vshrl.u32 %v9693_v29, 5  ;;  %v9743_v50 = vadd.s32 904, %v8751_v55  ;;  %vm13241_vm10 = vmmov %vm13239_vm8  ;;  %vm4569_vm9 = vcmp.ne.s32.totalorder %v9712_v4, 0 }
  0xcf   : > { %13237 = vst [vmem:[#allocation61_spill] sm:$0xff] %v13236_v39  ;;  %8003 = vmatmul.mubr.msk.bf16.gmra.mrb[92].mxu0 %vm13239_vm8, %v8598_v10  ;;  %13240 = vst [vmem:[#allocation63_spill] sm:$0xff] %v9739_v59  ;;  %8099 = vmatmul.mubr.msk.bf16.gmra.mrb[92].mxu1 %vm13241_vm10, %v8599_v25  ;;  %vm4761_vm7 = vcmp.lt.s32.totalorder %v9712_v4, 0  ;;  %v9749_v6 = vmul.u32.u64.low 2863311531, %v9716_v62  ;;  %v9750_v27 = vmul.u32.u64.high 2863311531, %v9716_v62, %v9749_v6  ;;  %vm13242_vm8 = vcmp.ne.s32.totalorder %v9689_v26, 0 }
  0xd0   : > { %vm9758_vm14 = vmand %vm4665_vm5, %vm13242_vm8  ;;  %v13243_v29 = vmov 0  ;;  %v9763_v25 = vadd.s32 48, %v9712_v4  ;;  %v9766_v47 = vsub.s32 %v9548_v51, %v3609_v45  ;;  %v9769_v5 = vadd.s32 176, %v8751_v55 }
  0xd1   : > { %v13244_v29 = vsel %vm9758_vm14, 4294967295, %v13243_v29  ;;  %vm4478_vm10 = vcmp.ne.s32.totalorder %v9732_v34, 0  ;;  %vm4670_vm4 = vcmp.lt.s32.totalorder %v9732_v34, 0  ;;  %v3587_v6 = vmul.u32 48, %v3586_v40  ;;  %vm9774_vm5 = vmand %vm4761_vm7, %vm4569_vm9 }
  0xd2   : > { %13245 = vst [vmem:[#allocation64_spill] sm:$0xff] %v13244_v29  ;;  %13246 = vst [vmem:[#allocation65_spill] sm:$0xff] %v9763_v25  ;;  %v2563_v10 = vshrl.u32 %v9723_v12, 5  ;;  %v13247_v57 = vmov 0  ;;  %v9779_v52 = vsub.s32 %v9581_v42, %v2531_v54  ;;  %v9786_v39 = vadd.s32 944, %v8751_v55 }
  0xd3   : > { %v13248_v57 = vsel %vm9774_vm5, 4294967295, %v13247_v57  ;;  %v9782_v51 = vmul.u32.u64.low 2863311531, %v9735_v15  ;;  %v9783_v45 = vmul.u32.u64.high 2863311531, %v9735_v15, %v9782_v51  ;;  %v9793_v12 = vadd.s32 48, %v9732_v34  ;;  %vm9801_vm7 = vmand %vm4670_vm4, %vm4478_vm10 }
  0xd4   : > { %13249 = vst [vmem:[#allocation66_spill] sm:$0xff] %v13248_v57  ;;  %13250 = vst [vmem:[#allocation67_spill] sm:$0xff] %v9779_v52  ;;  %v9796_v44 = vadd.s32 160, %v8751_v55  ;;  %v9799_v42 = vadd.s32 928, %v8751_v55  ;;  %v13252_v54 = vmov 0  ;;  %vm4574_vm9 = vcmp.ne.s32.totalorder %v9766_v47, 0 }
  0xd5   : > { %13251 = vst [vmem:[#allocation68_spill] sm:$0xff] %v9793_v12  ;;  %v13253_v54 = vsel %vm9801_vm7, 4294967295, %v13252_v54  ;;  %vm4766_vm8 = vcmp.lt.s32.totalorder %v9766_v47, 0  ;;  %v2564_v51 = vmul.u32 48, %v2563_v10  ;;  %v3619_v40 = vshrl.u32 %v9750_v27, 5 }
  0xd6   : > { %13254 = vst [vmem:[#allocation69_spill] sm:$0xff] %v13253_v54  ;;  %v9813_v59 = vsub.s32 %v9614_v43, %v3587_v6  ;;  %v9816_v29 = vmul.u32.u64.low 2863311531, %v9743_v50  ;;  %v9817_v3 = vmul.u32.u64.high 2863311531, %v9743_v50, %v9816_v29  ;;  %v9820_v9 = vadd.s32 48, %v9766_v47  ;;  %vm9831_vm5 = vmand %vm4766_vm8, %vm4574_vm9 }
  0xd7   : > { %vm4476_vm4 = vcmp.ne.s32.totalorder %v9779_v52, 0  ;;  %vm4668_vm10 = vcmp.lt.s32.totalorder %v9779_v52, 0  ;;  %v9825_v27 = vadd.s32 184, %v8751_v55  ;;  %v13256_v10 = vmov 0 }
  0xd8   : > { %v13257_v10 = vsel %vm9831_vm5, 4294967295, %v13256_v10  ;;  %v3620_v29 = vmul.u32 48, %v3619_v40  ;;  %v2541_v6 = vshrl.u32 %v9783_v45, 5  ;;  %v9837_v26 = vadd.s32 952, %v8751_v55  ;;  %vm9849_vm9 = vmand %vm4668_vm10, %vm4476_vm4 }
  0xd9   : > { %13255 = vst [vmem:[#allocation70_spill] sm:$0xff] %v9825_v27  ;;  %v9840_v4 = vadd.s32 48, %v9779_v52  ;;  %v9843_v25 = vsub.s32 %v9686_v14, %v2564_v51  ;;  %v9846_v57 = vmul.u32.u64.low 2863311531, %v9769_v5  ;;  %v9847_v54 = vmul.u32.u64.high 2863311531, %v9769_v5, %v9846_v57 }
  0xda   : > { %13258 = vst [vmem:[#allocation71_spill] sm:$0xff] %v9837_v26  ;;  %v13260_v43 = vmov 0  ;;  %vm4572_vm8 = vcmp.ne.s32.totalorder %v9813_v59, 0  ;;  %vm4764_vm7 = vcmp.lt.s32.totalorder %v9813_v59, 0  ;;  %v9856_v45 = vadd.s32 168, %v8751_v55 }
  0xdb   : > { %13259 = vst [vmem:[#allocation72_spill] sm:$0xff] %v9840_v4  ;;  %v13261_v43 = vsel %vm9849_vm9, 4294967295, %v13260_v43  ;;  %v9859_v40 = vadd.s32 936, %v8751_v55  ;;  %v2542_v57 = vmul.u32 48, %v2541_v6  ;;  %v3597_v51 = vshrl.u32 %v9817_v3, 5  ;;  %vm9883_vm4 = vmand %vm4764_vm7, %vm4572_vm8 }
  0xdc   : > { %13262 = vst [vmem:[#allocation73_spill] sm:$0xff] %v13261_v43  ;;  %13263 = vst [vmem:[#allocation74_spill] sm:$0xff] %v9856_v45  ;;  %v9867_v34 = vadd.s32 208, %v8751_v55  ;;  %v9870_v12 = vadd.s32 48, %v9813_v59  ;;  %v9873_v49 = vsub.s32 %v9716_v62, %v3620_v29  ;;  %v13266_v3 = vmov 0 }
  0xdd   : > { %13264 = vst [vmem:[#allocation75_spill] sm:$0xff] %v9859_v40  ;;  %v9876_v21 = vmul.u32.u64.low 2863311531, %v9786_v39  ;;  %v9877_v40 = vmul.u32.u64.high 2863311531, %v9786_v39, %v9876_v21  ;;  %v13267_v3 = vsel %vm9883_vm4, 4294967295, %v13266_v3  ;;  %vm4479_vm10 = vcmp.ne.s32.totalorder %v9843_v25, 0 }
  0xde   : > { %13265 = vst [vmem:[#allocation76_spill] sm:$0xff] %v9867_v34  ;;  %vm4671_vm5 = vcmp.lt.s32.totalorder %v9843_v25, 0  ;;  %v9890_v62 = vadd.s32 976, %v8751_v55  ;;  %v9893_v29 = vsub.s32 %v9735_v15, %v2542_v57  ;;  %v3598_v21 = vmul.u32 48, %v3597_v51 }
  0xdf   : > { %v2596_v14 = vshrl.u32 %v9847_v54, 5  ;;  %v9897_v34 = vadd.s32 192, %v8751_v55  ;;  %v9900_v6 = vadd.s32 48, %v9843_v25  ;;  %v9907_v43 = vadd.s32 960, %v8751_v55  ;;  %vm9913_vm7 = vmand %vm4671_vm5, %vm4479_vm10 }
  0xe0   : > { %13268 = vst [vmem:[#allocation77_spill] sm:$0xff] %v9890_v62  ;;  %v9903_v52 = vmul.u32.u64.low 2863311531, %v9796_v44  ;;  %v9904_v4 = vmul.u32.u64.high 2863311531, %v9796_v44, %v9903_v52  ;;  %v13271_v54 = vmov 0  ;;  %v9919_v57 = vadd.s32 216, %v8751_v55 }
  0xe1   : > { %13269 = vst [vmem:[#allocation78_spill] sm:$0xff] %v9897_v34  ;;  %13270 = vst [vmem:[#allocation79_spill] sm:$0xff] %v9907_v43  ;;  %v13272_v54 = vsel %vm9913_vm7, 4294967295, %v13271_v54  ;;  %v9922_v51 = vadd.s32 984, %v8751_v55  ;;  %vm4767_vm9 = vcmp.lt.s32.totalorder %v9873_v49, 0  ;;  %v9926_v52 = vsub.s32 %v9743_v50, %v3598_v21 }
  0xe2   : > { %13273 = vst [vmem:[#allocation80_spill] sm:$0xff] %v9919_v57  ;;  %v2597_v43 = vmul.u32 48, %v2596_v14  ;;  %v3652_v15 = vshrl.u32 %v9877_v40, 5  ;;  %v9932_v34 = vmul.u32.u64.low 2863311531, %v9799_v42  ;;  %v9933_v62 = vmul.u32.u64.high 2863311531, %v9799_v42, %v9932_v34 }
  0xe3   : > { %13274 = vst [vmem:[#allocation81_spill] sm:$0xff] %v9922_v51  ;;  %13275 = vst [vmem:[#allocation82_spill] sm:$0xff] %v9926_v52  ;;  %v9940_v57 = vadd.s32 48, %v9873_v49  ;;  %v13276_v50 = vsel %vm8890_vm6, %v8883_v60, %v8835_v36  ;;  %vm13279_vm5 = vcmp.ne.s32.totalorder %v9873_v49, 0  ;;  %v13280_v34 = vmov 0 }
  0xe4   : > { %vm9949_vm10 = vcmp.lt.s32.totalorder %v13276_v50, 32  ;;  %vm9955_vm14 = vmand %vm4767_vm9, %vm13279_vm5  ;;  %v9960_v14 = vadd.s32 48, %v9893_v29  ;;  %v9963_v21 = vsub.s32 %v9769_v5, %v2597_v43  ;;  %v3653_v63 = vmul.u32 48, %v3652_v15 }
  0xe5   : > { %v13281_v34 = vsel %vm9955_vm14, 4294967295, %v13280_v34  ;;  %v2574_v51 = vshrl.u32 %v9904_v4, 5  ;;  %v13283_v36 = vsel %vm8933_vm12, %v8896_v0, %v8848_v46  ;;  %v13286_v50 = vsel %vm8946_vm0, %v8925_v16, %v8862_v53 }
  0xe6   : > { %13282 = vst [vmem:[#allocation83_spill] sm:$0xff] %v9963_v21  ;;  %vm9971_vm6 = vcmp.lt.s32.totalorder %v13283_v36, 32  ;;  %vm9980_vm9 = vcmp.lt.s32.totalorder %v13286_v50, 32  ;;  %vm13289_vm5 = vcmp.ne.s32.totalorder %v9893_v29, 0  ;;  %vm13290_vm4 = vcmp.lt.s32.totalorder %v9893_v29, 0 }
  0xe7   : > { %vm9988_vm8 = vmand %vm13290_vm4, %vm13289_vm5  ;;  %v9993_v46 = vadd.s32 48, %v9926_v52  ;;  %v9996_v0 = vmul.u32.u64.low 2863311531, %v9825_v27  ;;  %v9997_v19 = vmul.u32.u64.high 2863311531, %v9825_v27, %v9996_v0  ;;  %v10000_v53 = vadd.s32 200, %v8751_v55 }
  0xe8   : > { %v13292_v17 = vsel %vm9988_vm8, 4294967295, %v13291_v17  ;;  %v13295_v16 = vsel %vm8959_vm3, %v8938_v18, %v8870_v56  ;;  %vm13298_vm0 = vnez %v13082_v28  ;;  %vm13302_vm5 = vcmp.ne.s32.totalorder %v9926_v52, 0 }
  0xe9   : > { %13293 = vst [vmem:[#allocation84_spill] sm:$0xff] %v9997_v19  ;;  %13294 = vst [vmem:[#allocation85_spill] sm:$0xff] %v10000_v53  ;;  %vm10007_vm12 = vcmp.lt.s32.totalorder %v13295_v16, 32  ;;  %v13299_v43 = vsel %vm13298_vm0, %v8980_v11, %v8899_v1  ;;  %vm13303_vm7 = vcmp.lt.s32.totalorder %v9926_v52, 0  ;;  %vm4482_vm3 = vcmp.ne.s32.totalorder %v9963_v21, 0  ;;  %v13414_v19 = vld [vmem:[#allocation29_spill] sm:$0xff] }
  0xea   : > { %vm10016_vm4 = vcmp.lt.s32.totalorder %v13299_v43, 32  ;;  %vm10024_vm1 = vmand %vm13303_vm7, %vm13302_vm5  ;;  %vm4674_vm2 = vcmp.lt.s32.totalorder %v9963_v21, 0  ;;  %v10031_v56 = vadd.s32 48, %v9963_v21  ;;  %v10034_v1 = vadd.s32 968, %v8751_v55  ;;  %v13346_v21 = vld [vmem:[#allocation18_spill] sm:$0xff] }
  0xeb   : > { %v13305_v23 = vsel %vm10024_vm1, 4294967295, %v13304_v23  ;;  %vm13308_vm13 = vnez %v13084_v35  ;;  %vm10049_vm5 = vmand %vm4674_vm2, %vm4482_vm3  ;;  %v13312_v36 = vmov 0  ;;  %v10054_v50 = vsub.s32 %v9786_v39, %v3653_v63 }
  0xec   : > { %13306 = vst [vmem:[#allocation86_spill] sm:$0xff] %v10031_v56  ;;  %13307 = vst [vmem:[#allocation87_spill] sm:$0xff] %v10034_v1  ;;  %v13309_v18 = vsel %vm13308_vm13, %v8983_v30, %v8902_v2  ;;  %v13313_v36 = vsel %vm10049_vm5, 4294967295, %v13312_v36  ;;  %v2575_v35 = vmul.u32 48, %v2574_v51  ;;  %v3630_v0 = vshrl.u32 %v9933_v62, 5  ;;  %v13333_v1 = vld [vmem:[#allocation5_spill] sm:$0xff] }
  0xed   : > { %vm10041_vm7 = vcmp.lt.s32.totalorder %v13309_v18, 32  ;;  %13314 = vst [vmem:[#allocation88_spill] sm:$0xff] %v13313_v36  ;;  %13315 = vst [vmem:[#allocation89_spill] sm:$0xff] %v10054_v50  ;;  %v10060_v2 = vld [vmem:[%s12936_s2] ss:$0 sm:$0xff]  ;;  %v10067_v16 = vadd.s32 240, %v8751_v55  ;;  %vm13319_vm13 = vnez %v13088_v13  ;;  %vm13325_vm3 = vnez %v13090_v20 }
  0xee   : > { %v10070_v39 = vadd.s32 1008, %v8751_v55  ;;  %v10073_v51 = vadd.s32 224, %v8751_v55  ;;  %v13320_v62 = vsel %vm13319_vm13, %v9039_v61, %v8964_v24  ;;  %v10093_v30 = vadd.s32 992, %v8751_v55  ;;  %v7912_v24 = vpop.f32.mrb[0].mxu0  ;;  %v8008_v20 = vpop.f32.mrb[0].mxu1  ;;  %v13355_v36 = vld [vmem:[#allocation16_spill] sm:$0xff] }
  0xef   : > { %13316 = vst [vmem:[#allocation90_spill] sm:$0xff] %v10067_v16  ;;  %vm10080_vm2 = vcmp.lt.s32.totalorder %v13320_v62, 32  ;;  %v10096_v13 = vadd.s32 248, %v8751_v55  ;;  %v13326_v61 = vsel %vm13325_vm3, %v9047_v31, %v9002_v37  ;;  %v1205_v11 = vadd.f32 %v7912_v24, %v10060_v2  ;;  %v13334_v24 = vld [vmem:[#allocation3_spill] sm:$0xff]  ;;  %v13341_v55 = vld [vmem:[#allocation6_spill] sm:$0xff] }
  0xf0   : > { %13317 = vst [vmem:[#allocation91_spill] sm:$0xff] %v10070_v39  ;;  %13318 = vst [vmem:[#allocation92_spill] sm:$0xff] %v10073_v51  ;;  %vm10103_vm13 = vcmp.lt.s32.totalorder %v13326_v61, 32  ;;  %v10110_v18 = vmul.u32.u64.low 2863311531, %v9837_v26  ;;  %v10111_v43 = vmul.u32.u64.high 2863311531, %v9837_v26, %v10110_v18  ;;  %v10117_v37 = vadd.s32 48, %v10054_v50 }
  0xf1   : > { %13323 = vst [vmem:[#allocation93_spill] sm:$0xff] %v10093_v30  ;;  %13324 = vst [vmem:[#allocation94_spill] sm:$0xff] %v10096_v13  ;;  %v1196_v13 = vpop.f32.mrb[1].mxu0  ;;  %v10120_v31 = vsub.s32 %v9796_v44, %v2575_v35  ;;  %v10122_v61 = vmul.u32 48, %v3630_v0  ;;  %v1589_v30 = vadd.f32 %v8008_v20, %v10060_v2  ;;  %v1580_v39 = vpop.f32.mrb[1].mxu1  ;;  %v13331_v18 = vld [vmem:[#allocation7_spill] sm:$0xff]  ;;  %vm13347_vm1 = vnez %v13346_v21 }
  0xf2   : > { %13329 = vst [vmem:[#allocation95_spill] sm:$0xff] %v10111_v43  ;;  %13330 = vst [vmem:[#allocation96_spill] sm:$0xff] %v10117_v37  ;;  %v1197_v51 = vadd.f32 %v10060_v2, %v1196_v13  ;;  %v7913_v16 = vpop.f32.mrb[2].mxu0  ;;  %vm13332_vm3 = vnez %v13331_v18  ;;  %v10136_v44 = vmul.u32.u64.low 2863311531, %v9856_v45  ;;  %v10137_v35 = vmul.u32.u64.high 2863311531, %v9856_v45, %v10136_v44  ;;  %v8009_v27 = vpop.f32.mrb[2].mxu1 }
  0xf3   : > { %v13335_v53 = vsel %vm13332_vm3, %v13333_v1, %v13334_v24  ;;  %v1965_v0 = vmax.f32 %v1205_v11, 0.0  ;;  %v1581_v20 = vadd.f32 %v10060_v2, %v1580_v39  ;;  %v1208_v13 = vadd.f32 %v7913_v16, %v10060_v2  ;;  %v1199_v43 = vpop.f32.mrb[3].mxu0  ;;  %v13339_v18 = vld [vmem:[#allocation9_spill] sm:$0xff]  ;;  %v13342_v1 = vld [vmem:[#allocation4_spill] sm:$0xff]  ;;  %v13356_v21 = vld [vmem:[#allocation10_spill] sm:$0xff] }
  0xf4   : > { %vm10131_vm5 = vcmp.lt.s32.totalorder %v13335_v53, 32  ;;  %13338 = vst [vmem:[#allocation7_spill] sm:$0xff] %v10137_v35  ;;  %vm13340_vm0 = vnez %v13339_v18  ;;  %v13348_v45 = vld [vmem:[#allocation12_spill] sm:$0xff]  ;;  %v2061_v35 = vmax.f32 %v1589_v30, 0.0  ;;  %v1963_v18 = vmax.f32 %v1197_v51, 0.0  ;;  %v13436_v26 = vld [vmem:[#allocation35_spill] sm:$0xff] }
  0xf5   : > { %v13343_v53 = vsel %vm13340_vm0, %v13341_v55, %v13342_v1  ;;  %v13349_v44 = vld [vmem:[#allocation8_spill] sm:$0xff]  ;;  %v1592_v56 = vadd.f32 %v8009_v27, %v10060_v2  ;;  %v1200_v55 = vadd.f32 %v10060_v2, %v1199_v43  ;;  %v1583_v1 = vpop.f32.mrb[3].mxu1  ;;  %v5998_v27 = vsel %vm9949_vm10, %v1965_v0, 0.0 }
  0xf6   : > { %vm10147_vm3 = vcmp.lt.s32.totalorder %v13343_v53, 32  ;;  %v13350_v11 = vsel %vm13347_vm1, %v13348_v45, %v13349_v44  ;;  %v13353_v53 = vld [vmem:[#allocation20_spill] sm:$0xff]  ;;  %v2059_v30 = vmax.f32 %v1581_v20, 0.0  ;;  %v1966_v51 = vmax.f32 %v1208_v13, 0.0  ;;  %v13360_v44 = vld [vmem:[#allocation21_spill] sm:$0xff]  ;;  %v13367_v20 = vld [vmem:[#allocation22_spill] sm:$0xff] }
  0xf7   : > { %vm10156_vm8 = vcmp.lt.s32.totalorder %v13350_v11, 32  ;;  %vm13354_vm0 = vnez %v13353_v53  ;;  %v1584_v43 = vadd.f32 %v10060_v2, %v1583_v1  ;;  %vm13361_vm1 = vnez %v13360_v44  ;;  %v13369_v13 = vld [vmem:[#allocation19_spill] sm:$0xff]  ;;  %v13370_v1 = vld [vmem:[#allocation13_spill] sm:$0xff]  ;;  %v13529_v45 = vld [vmem:[#allocation72_spill] sm:$0xff] }
  0xf8   : > { %v13357_v52 = vsel %vm13354_vm0, %v13355_v36, %v13356_v21  ;;  %v13362_v36 = vld [vmem:[#allocation17_spill] sm:$0xff]  ;;  %v7618_v21 = vpack.c.bf16 %v5998_v27, %v5998_v27  ;;  %v6094_v16 = vsel %vm9971_vm6, %v2061_v35, 0.0  ;;  %v5996_v40 = vsel %vm9980_vm9, %v1963_v18, 0.0  ;;  %v13378_v27 = vld [vmem:[#allocation23_spill] sm:$0xff] }
  0xf9   : > { %vm10168_vm14 = vcmp.lt.s32.totalorder %v13357_v52, 32  ;;  %v13363_v52 = vld [vmem:[#allocation11_spill] sm:$0xff]  ;;  %v2062_v0 = vmax.f32 %v1592_v56, 0.0  ;;  %vm13368_vm10 = vnez %v13367_v20  ;;  %vm13374_vm15 = vcmp.ne.s32.totalorder %v10054_v50, 0 }
  0xfa   : > { %v13364_v11 = vsel %vm13361_vm1, %v13362_v36, %v13363_v52  ;;  %v13371_v44 = vsel %vm13368_vm10, %v13369_v13, %v13370_v1  ;;  %vm13375_vm11 = vcmp.lt.s32.totalorder %v10054_v50, 0  ;;  %v13376_v60 = vmov 0  ;;  %v13380_v52 = vld [vmem:[#allocation24_spill] sm:$0xff] }
  0xfb   : > { %vm10185_vm0 = vcmp.lt.s32.totalorder %v13364_v11, 32  ;;  %vm10198_vm1 = vcmp.lt.s32.totalorder %v13371_v44, 32  ;;  %vm10206_vm6 = vmand %vm13375_vm11, %vm13374_vm15  ;;  %v7714_v5 = vpack.c.bf16 %v6094_v16, %v6094_v16  ;;  %v7616_v35 = vpack.c.bf16 %v5996_v40, %v5996_v40  ;;  %v13381_v11 = vld [vmem:[#allocation14_spill] sm:$0xff] }
  0xfc   : > { %v13377_v60 = vsel %vm10206_vm6, 4294967295, %v13376_v60  ;;  %v6092_v56 = vsel %vm10007_vm12, %v2059_v30, 0.0  ;;  %v5999_v18 = vsel %vm10016_vm4, %v1966_v51, 0.0  ;;  %vm13379_vm9 = vnez %v13378_v27  ;;  %v7916_v30 = vpop.f32.mrb[4].mxu0  ;;  %v8012_v27 = vpop.f32.mrb[4].mxu1 }
  0xfd   : > { %v13382_v20 = vsel %vm13379_vm9, %v13380_v52, %v13381_v11  ;;  %vm13385_vm15 = vcmask 519168   ;;  %v7712_v16 = vpack.c.bf16 %v6092_v56, %v6092_v56  ;;  %v7619_v40 = vpack.c.bf16 %v5999_v18, %v5999_v18  ;;  %v1212_v52 = vpop.f32.mrb[5].mxu0  ;;  %v13390_v56 = vld [vmem:[#allocation25_spill] sm:$0xff]  ;;  %v13391_v18 = vld [vmem:[#allocation15_spill] sm:$0xff] }
  0xfe   : > { %vm10219_vm10 = vcmp.lt.s32.totalorder %v13382_v20, 32  ;;  %6967 = vst.msk [vmem:[%s10175_s27 + $0x28] sm:$0xf] %vm13385_vm15, %v7618_v21  ;;  %v6095_v4 = vsel %vm10041_vm7, %v2062_v0, 0.0  ;;  %v1964_v15 = vmax.f32 %v1200_v55, 0.0  ;;  %vm13386_vm11 = vmmov %vm13385_vm15  ;;  %v2060_v1 = vmax.f32 %v1584_v43, 0.0 }
  0xff   : > { %7063 = vst.msk [vmem:[%s10175_s27 + $0x1a8] sm:$0xf] %vm13386_vm11, %v7714_v5  ;;  %vm13387_vm12 = vmmov %vm13386_vm11  ;;  %v7715_v51 = vpack.c.bf16 %v6095_v4, %v6095_v4  ;;  %v1221_v44 = vadd.f32 %v7916_v30, %v10060_v2  ;;  %v13388_v21 = vld [vmem:[#allocation27_spill] sm:$0xff]  ;;  %v1605_v0 = vadd.f32 %v8012_v27, %v10060_v2  ;;  %v1213_v5 = vadd.f32 %v10060_v2, %v1212_v52  ;;  %v7917_v20 = vpop.f32.mrb[6].mxu0  ;;  %v13399_v30 = vld [vmem:[#allocation26_spill] sm:$0xff] }
 0x100   : > { %6965 = vst.msk [vmem:[%s10175_s27 + $0x20] sm:$0xf] %vm13387_vm12, %v7616_v35  ;;  %vm13389_vm4 = vnez %v13388_v21  ;;  %vm13395_vm7 = vmmov %vm13386_vm11  ;;  %v5997_v43 = vsel %vm10080_vm2, %v1964_v15, 0.0  ;;  %v1596_v35 = vpop.f32.mrb[5].mxu1  ;;  %vm13397_vm11 = vnez %v13157_v48  ;;  %v13398_v4 = vld [vmem:[#allocation31_spill] sm:$0xff]  ;;  %v1215_v52 = vpop.f32.mrb[7].mxu0 }
 0x101   : > { %v13392_v11 = vsel %vm13389_vm4, %v13390_v56, %v13391_v18  ;;  %7061 = vst.msk [vmem:[%s10175_s27 + $0x1a0] sm:$0xf] %vm13395_vm7, %v7712_v16  ;;  %vm13396_vm15 = vmmov %vm13395_vm7  ;;  %v13400_v21 = vsel %vm13397_vm11, %v13398_v4, %v13399_v30  ;;  %v10263_v16 = vadd.s32 48, %v10120_v31  ;;  %v7617_v63 = vpack.c.bf16 %v5997_v43, %v5997_v43  ;;  %v8013_v27 = vpop.f32.mrb[6].mxu1  ;;  %v13404_v18 = vld [vmem:[#allocation37_spill] sm:$0xff]  ;;  %v13407_v4 = vld [vmem:[#allocation28_spill] sm:$0xff] }
 0x102   : > { %vm10237_vm9 = vcmp.lt.s32.totalorder %v13392_v11, 32  ;;  %6968 = vst.msk [vmem:[%s10175_s27 + $0x2c] sm:$0xf] %vm13396_vm15, %v7619_v40  ;;  %vm10258_vm12 = vcmp.lt.s32.totalorder %v13400_v21, 32  ;;  %vm13403_vm4 = vmmov %vm13395_vm7  ;;  %v6093_v40 = vsel %vm10103_vm13, %v2060_v1, 0.0  ;;  %v1969_v15 = vmax.f32 %v1221_v44, 0.0 }
 0x103   : > { %7064 = vst.msk [vmem:[%s10175_s27 + $0x1ac] sm:$0xf] %vm13403_vm4, %v7715_v51  ;;  %v1597_v48 = vadd.f32 %v10060_v2, %v1596_v35  ;;  %vm13405_vm2 = vnez %v13404_v18  ;;  %v13406_v11 = vld [vmem:[#allocation32_spill] sm:$0xff]  ;;  %v13409_v21 = vmov 0  ;;  %v7713_v51 = vpack.c.bf16 %v6093_v40, %v6093_v40  ;;  %v1599_v44 = vpop.f32.mrb[7].mxu1  ;;  %v13411_v55 = vld [vmem:[#allocation38_spill] sm:$0xff] }
 0x104   : > { %v13408_v30 = vsel %vm13405_vm2, %v13406_v11, %v13407_v4  ;;  %v2065_v43 = vmax.f32 %v1605_v0, 0.0  ;;  %v1967_v62 = vmax.f32 %v1213_v5, 0.0  ;;  %v1224_v1 = vadd.f32 %v7917_v20, %v10060_v2  ;;  %v13413_v35 = vld [vmem:[#allocation34_spill] sm:$0xff]  ;;  %v13418_v11 = vld [vmem:[#allocation40_spill] sm:$0xff] }
 0x105   : > { %vm10275_vm7 = vcmp.lt.s32.totalorder %v13408_v30, 32  ;;  %vm13412_vm13 = vnez %v13411_v55  ;;  %vm13419_vm11 = vnez %v13418_v11  ;;  %v13420_v4 = vld [vmem:[#allocation36_spill] sm:$0xff]  ;;  %v13421_v30 = vld [vmem:[#allocation30_spill] sm:$0xff]  ;;  %vm4480_vm2 = vcmp.ne.s32.totalorder %v10120_v31, 0  ;;  %v13429_v11 = vld [vmem:[#allocation33_spill] sm:$0xff] }
 0x106   : > { %v13410_v21 = vsel %vm10275_vm7, 4294967295, %v13409_v21  ;;  %v13415_v50 = vsel %vm13412_vm13, %v13413_v35, %v13414_v19  ;;  %v13422_v40 = vsel %vm13419_vm11, %v13420_v4, %v13421_v30  ;;  %vm13425_vm7 = vcmask 519168   ;;  %v13426_v20 = vld [vmem:[#allocation42_spill] sm:$0xff]  ;;  %v13428_v35 = vld [vmem:[#allocation39_spill] sm:$0xff] }
 0x107   : > { %vm10285_vm15 = vcmp.lt.s32.totalorder %v13415_v50, 32  ;;  %vm10294_vm4 = vcmp.lt.s32.totalorder %v13422_v40, 32  ;;  %6966 = vst.msk [vmem:[%s10175_s27 + $0x24] sm:$0xf] %vm13425_vm7, %v7617_v63  ;;  %v6002_v19 = vsel %vm10131_vm5, %v1969_v15, 0.0  ;;  %v2063_v50 = vmax.f32 %v1597_v48, 0.0 }
 0x108   : > { %v1608_v55 = vadd.f32 %v8013_v27, %v10060_v2  ;;  %v1216_v5 = vadd.f32 %v10060_v2, %v1215_v52  ;;  %vm13427_vm13 = vnez %v13426_v20  ;;  %v13433_v40 = vld [vmem:[#allocation43_spill] sm:$0xff]  ;;  %v13435_v63 = vld [vmem:[#allocation41_spill] sm:$0xff]  ;;  %vm13440_vm6 = vcmask 519168   ;;  %v13502_v30 = vld [vmem:[#allocation58_spill] sm:$0xff] }
 0x109   : > { %v13430_v4 = vsel %vm13427_vm13, %v13428_v35, %v13429_v11  ;;  %vm13434_vm7 = vnez %v13433_v40  ;;  %7062 = vst.msk [vmem:[%s10175_s27 + $0x1a4] sm:$0xf] %vm13440_vm6, %v7713_v51  ;;  %v7622_v48 = vpack.c.bf16 %v6002_v19, %v6002_v19  ;;  %v6098_v27 = vsel %vm10147_vm3, %v2065_v43, 0.0  ;;  %vm13441_vm13 = vmmov %vm13440_vm6  ;;  %v7920_v40 = vpop.f32.mrb[8].mxu0  ;;  %v13570_v15 = vld [vmem:[#allocation96_spill] sm:$0xff] }
 0x10a   : > { %vm10311_vm11 = vcmp.lt.s32.totalorder %v13430_v4, 32  ;;  %v13437_v37 = vsel %vm13434_vm7, %v13435_v63, %v13436_v26  ;;  %v6000_v52 = vsel %vm10156_vm8, %v1967_v62, 0.0  ;;  %v1970_v20 = vmax.f32 %v1224_v1, 0.0 }
 0x10b   : > { %vm10320_vm5 = vcmp.lt.s32.totalorder %v13437_v37, 32  ;;  %v7718_v35 = vpack.c.bf16 %v6098_v27, %v6098_v27  ;;  %v7620_v11 = vpack.c.bf16 %v6000_v52, %v6000_v52  ;;  %v6096_v37 = vsel %vm10168_vm14, %v2063_v50, 0.0  ;;  %6971 = vst.msk [vmem:[%s10175_s27 + $0x38] sm:$0xf] %vm13441_vm13, %v7622_v48  ;;  %vm13446_vm14 = vmmov %vm13440_vm6 }
 0x10c   : > { %v2066_v4 = vmax.f32 %v1608_v55, 0.0  ;;  %v7716_v51 = vpack.c.bf16 %v6096_v37, %v6096_v37  ;;  %v6003_v19 = vsel %vm10185_vm0, %v1970_v20, 0.0  ;;  %v1968_v24 = vmax.f32 %v1216_v5, 0.0  ;;  %vm13447_vm0 = vmmov %vm13440_vm6  ;;  %v13461_v37 = vld [vmem:[#allocation45_spill] sm:$0xff] }
 0x10d   : > { %v1600_v43 = vadd.f32 %v10060_v2, %v1599_v44  ;;  %vm13442_vm8 = vnez %v13198_v38  ;;  %7067 = vst.msk [vmem:[%s10175_s27 + $0x1b8] sm:$0xf] %vm13446_vm14, %v7718_v35  ;;  %v7623_v53 = vpack.c.bf16 %v6003_v19, %v6003_v19  ;;  %v1237_v1 = vadd.f32 %v7920_v40, %v10060_v2  ;;  %v8016_v44 = vpop.f32.mrb[8].mxu1  ;;  %v1228_v38 = vpop.f32.mrb[9].mxu0  ;;  %vm13452_vm13 = vmmov %vm13447_vm0  ;;  %v13458_v35 = vld [vmem:[#allocation51_spill] sm:$0xff]  ;;  %v13465_v19 = vld [vmem:[#allocation52_spill] sm:$0xff] }
 0x10e   : > { %v13443_v39 = vsel %vm13442_vm8, %v9521_v32, %v9446_v7  ;;  %6969 = vst.msk [vmem:[%s10175_s27 + $0x30] sm:$0xf] %vm13440_vm6, %v7620_v11  ;;  %v6099_v62 = vsel %vm10198_vm1, %v2066_v4, 0.0  ;;  %v10355_v7 = vsub.s32 %v9799_v42, %v10122_v61  ;;  %v6001_v50 = vsel %vm10219_vm10, %v1968_v24, 0.0  ;;  %v1612_v36 = vpop.f32.mrb[9].mxu1  ;;  %v7921_v63 = vpop.f32.mrb[10].mxu0 }
 0x10f   : > { %vm10342_vm3 = vcmp.lt.s32.totalorder %v13443_v39, 32  ;;  %7065 = vst.msk [vmem:[%s10175_s27 + $0x1b0] sm:$0xf] %vm13447_vm0, %v7716_v51  ;;  %v7719_v32 = vpack.c.bf16 %v6099_v62, %v6099_v62  ;;  %v2064_v55 = vmax.f32 %v1600_v43, 0.0  ;;  %v1621_v5 = vadd.f32 %v8016_v44, %v10060_v2  ;;  %v8017_v52 = vpop.f32.mrb[10].mxu1  ;;  %v1231_v20 = vpop.f32.mrb[11].mxu0 }
 0x110   : > { %vm13448_vm1 = vnez %v13202_v22  ;;  %6972 = vst.msk [vmem:[%s10175_s27 + $0x3c] sm:$0xf] %vm13452_vm13, %v7623_v53  ;;  %v7621_v61 = vpack.c.bf16 %v6001_v50, %v6001_v50  ;;  %v1973_v13 = vmax.f32 %v1237_v1, 0.0  ;;  %v1229_v48 = vadd.f32 %v10060_v2, %v1228_v38  ;;  %v13454_v22 = vld [vmem:[#allocation44_spill] sm:$0xff]  ;;  %v13460_v11 = vld [vmem:[#allocation49_spill] sm:$0xff]  ;;  %v13467_v24 = vld [vmem:[#allocation50_spill] sm:$0xff] }
 0x111   : > { %v13449_v26 = vsel %vm13448_vm1, %v9543_v33, %v9498_v41  ;;  %v1613_v27 = vadd.f32 %v10060_v2, %v1612_v36  ;;  %vm13453_vm10 = vnez %v13206_v58  ;;  %vm13459_vm14 = vnez %v13458_v35  ;;  %v13468_v58 = vld [vmem:[#allocation46_spill] sm:$0xff]  ;;  %7068 = vst.msk [vmem:[%s10175_s27 + $0x1bc] sm:$0xf] %vm13452_vm13, %v7719_v32  ;;  %v1615_v1 = vpop.f32.mrb[11].mxu1  ;;  %v13472_v44 = vld [vmem:[#allocation55_spill] sm:$0xff]  ;;  %v13474_v38 = vld [vmem:[#allocation53_spill] sm:$0xff] }
 0x112   : > { %vm10367_vm7 = vcmp.lt.s32.totalorder %v13449_v26, 32  ;;  %v13455_v41 = vsel %vm13453_vm10, %v9552_v8, %v13454_v22  ;;  %v13462_v4 = vsel %vm13459_vm14, %v13460_v11, %v13461_v37  ;;  %vm13466_vm0 = vnez %v13465_v19  ;;  %v13475_v50 = vld [vmem:[#allocation47_spill] sm:$0xff]  ;;  %v13483_v22 = vld [vmem:[#allocation48_spill] sm:$0xff]  ;;  %v13488_v19 = vld [vmem:[#allocation61_spill] sm:$0xff] }
 0x113   : > { %vm10380_vm8 = vcmp.lt.s32.totalorder %v13455_v41, 32  ;;  %vm10389_vm6 = vcmp.lt.s32.totalorder %v13462_v4, 32  ;;  %v13469_v43 = vsel %vm13466_vm0, %v13467_v24, %v13468_v58  ;;  %v6097_v40 = vsel %vm10237_vm9, %v2064_v55, 0.0  ;;  %vm13479_vm0 = vmmov %vm13452_vm13  ;;  %v13490_v24 = vld [vmem:[#allocation60_spill] sm:$0xff]  ;;  %v13491_v58 = vld [vmem:[#allocation54_spill] sm:$0xff] }
 0x114   : > { %vm10398_vm1 = vcmp.lt.s32.totalorder %v13469_v43, 32  ;;  %v2069_v39 = vmax.f32 %v1621_v5, 0.0  ;;  %v1240_v53 = vadd.f32 %v7921_v63, %v10060_v2  ;;  %v1624_v62 = vadd.f32 %v8017_v52, %v10060_v2  ;;  %6970 = vst.msk [vmem:[%s10175_s27 + $0x34] sm:$0xf] %vm13479_vm0, %v7621_v61  ;;  %v13480_v63 = vld [vmem:[#allocation57_spill] sm:$0xff]  ;;  %v13482_v52 = vld [vmem:[#allocation56_spill] sm:$0xff] }
 0x115   : > { %vm13473_vm10 = vnez %v13472_v44  ;;  %v7717_v28 = vpack.c.bf16 %v6097_v40, %v6097_v40  ;;  %v6006_v32 = vsel %vm10258_vm12, %v1973_v13, 0.0  ;;  %v1971_v55 = vmax.f32 %v1229_v48, 0.0 }
 0x116   : > { %v13476_v36 = vsel %vm13473_vm10, %v13474_v38, %v13475_v50  ;;  %v2067_v5 = vmax.f32 %v1613_v27, 0.0  ;;  %vm13481_vm9 = vnez %v13480_v63  ;;  %v7626_v11 = vpack.c.bf16 %v6006_v32, %v6006_v32  ;;  %v13499_v32 = vld [vmem:[#allocation64_spill] sm:$0xff] }
 0x117   : > { %vm10413_vm14 = vcmp.lt.s32.totalorder %v13476_v36, 32  ;;  %v13484_v41 = vsel %vm13481_vm9, %v13482_v52, %v13483_v22  ;;  %vm13487_vm10 = vnez %v13410_v21  ;;  %v1974_v37 = vmax.f32 %v1240_v53, 0.0  ;;  %7066 = vst.msk [vmem:[%s10175_s27 + $0x1b4] sm:$0xf] %vm13479_vm0, %v7717_v28  ;;  %v7924_v53 = vpop.f32.mrb[12].mxu0  ;;  %v8020_v36 = vpop.f32.mrb[12].mxu1 }
 0x118   : > { %vm10426_vm13 = vcmp.lt.s32.totalorder %v13484_v41, 32  ;;  %v6102_v61 = vsel %vm13487_vm10, %v2069_v39, 0.0  ;;  %v2070_v56 = vmax.f32 %v1624_v62, 0.0  ;;  %v6004_v48 = vsel %vm10285_vm15, %v1971_v55, 0.0  ;;  %v1244_v28 = vpop.f32.mrb[13].mxu0  ;;  %v13501_v55 = vld [vmem:[#allocation63_spill] sm:$0xff] }
 0x119   : > { %v7722_v13 = vpack.c.bf16 %v6102_v61, %v6102_v61  ;;  %v6100_v27 = vsel %vm10294_vm4, %v2067_v5, 0.0  ;;  %v1232_v4 = vadd.f32 %v10060_v2, %v1231_v20  ;;  %vm13489_vm12 = vnez %v13488_v19  ;;  %vm13498_vm4 = vmmov %vm13479_vm0  ;;  %v1628_v22 = vpop.f32.mrb[13].mxu1  ;;  %v7925_v41 = vpop.f32.mrb[14].mxu0  ;;  %v13510_v61 = vld [vmem:[#allocation65_spill] sm:$0xff] }
 0x11a   : > { %v13492_v21 = vsel %vm13489_vm12, %v13490_v24, %v13491_v58  ;;  %vm13495_vm10 = vcmp.lt.s32.totalorder %v10120_v31, 0  ;;  %6975 = vst.msk [vmem:[%s10175_s27 + $0x48] sm:$0xf] %vm13498_vm4, %v7626_v11  ;;  %v7624_v0 = vpack.c.bf16 %v6004_v48, %v6004_v48  ;;  %v7720_v20 = vpack.c.bf16 %v6100_v27, %v6100_v27  ;;  %vm13507_vm12 = vmmov %vm13479_vm0  ;;  %v13508_v11 = vld [vmem:[#allocation66_spill] sm:$0xff]  ;;  %v13515_v48 = vld [vmem:[#allocation69_spill] sm:$0xff] }
 0x11b   : > { %vm10444_vm9 = vcmp.lt.s32.totalorder %v13492_v21, 32  ;;  %vm10452_vm15 = vmand %vm13495_vm10, %vm4480_vm2  ;;  %v6007_v40 = vsel %vm10311_vm11, %v1974_v37, 0.0  ;;  %v6103_v39 = vsel %vm10320_vm5, %v2070_v56, 0.0  ;;  %7071 = vst.msk [vmem:[%s10175_s27 + $0x1c8] sm:$0xf] %vm13479_vm0, %v7722_v13  ;;  %v1972_v38 = vmax.f32 %v1232_v4, 0.0 }
 0x11c   : > { %v7627_v62 = vpack.c.bf16 %v6007_v40, %v6007_v40  ;;  %v7723_v44 = vpack.c.bf16 %v6103_v39, %v6103_v39  ;;  %v1616_v50 = vadd.f32 %v10060_v2, %v1615_v1  ;;  %vm13500_vm2 = vnez %v13499_v32  ;;  %vm13506_vm5 = vmmov %vm13479_vm0  ;;  %7069 = vst.msk [vmem:[%s10175_s27 + $0x1c0] sm:$0xf] %vm13507_vm12, %v7720_v20  ;;  %v13511_v37 = vld [vmem:[#allocation59_spill] sm:$0xff]  ;;  %v13517_v27 = vld [vmem:[#allocation68_spill] sm:$0xff]  ;;  %v8021_v39 = vpop.f32.mrb[14].mxu1 }
 0x11d   : > { %v13503_v5 = vsel %vm13500_vm2, %v13501_v55, %v13502_v30  ;;  %6973 = vst.msk [vmem:[%s10175_s27 + $0x40] sm:$0xf] %vm13506_vm5, %v7624_v0  ;;  %v1253_v63 = vadd.f32 %v7924_v53, %v10060_v2  ;;  %v1637_v52 = vadd.f32 %v8020_v36, %v10060_v2  ;;  %v1245_v1 = vadd.f32 %v10060_v2, %v1244_v28  ;;  %v13518_v4 = vld [vmem:[#allocation62_spill] sm:$0xff]  ;;  %vm13522_vm12 = vmmov %vm13506_vm5  ;;  %v1247_v53 = vpop.f32.mrb[15].mxu0 }
 0x11e   : > { %vm10470_vm11 = vcmp.lt.s32.totalorder %v13503_v5, 32  ;;  %vm13509_vm10 = vnez %v13508_v11  ;;  %vm13516_vm0 = vnez %v13515_v48  ;;  %v5248_v58 = vsel %vm10452_vm15, %v10263_v16, %v10120_v31  ;;  %6976 = vst.msk [vmem:[%s10175_s27 + $0x4c] sm:$0xf] %vm13506_vm5, %v7627_v62  ;;  %v1631_v5 = vpop.f32.mrb[15].mxu1 }
 0x11f   : > { %v13512_v56 = vsel %vm13509_vm10, %v13510_v61, %v13511_v37  ;;  %v13519_v19 = vsel %vm13516_vm0, %v13517_v27, %v13518_v4  ;;  %7072 = vst.msk [vmem:[%s10175_s27 + $0x1cc] sm:$0xf] %vm13522_vm12, %v7723_v44  ;;  %v6005_v21 = vsel %vm10342_vm3, %v1972_v38, 0.0  ;;  %v2068_v0 = vmax.f32 %v1616_v50, 0.0  ;;  %v13527_v44 = vld [vmem:[#allocation73_spill] sm:$0xff]  ;;  %v13530_v38 = vld [vmem:[#allocation67_spill] sm:$0xff] }
 0x120   : > { %vm10486_vm4 = vcmp.lt.s32.totalorder %v13512_v56, 32  ;;  %vm10495_vm2 = vcmp.lt.s32.totalorder %v13519_v19, 32  ;;  %v1629_v20 = vadd.f32 %v10060_v2, %v1628_v22  ;;  %v1256_v40 = vadd.f32 %v7925_v41, %v10060_v2  ;;  %v8024_v4 = vpop.f32.mrb[16].mxu1 }
 0x121   : > { %vm13523_vm10 = vnez %v13257_v10  ;;  %vm13528_vm5 = vnez %v13527_v44  ;;  %v7625_v32 = vpack.c.bf16 %v6005_v21, %v6005_v21  ;;  %v1977_v55 = vmax.f32 %v1253_v63, 0.0 }
 0x122   : > { %v13524_v36 = vsel %vm13523_vm10, %v9820_v9, %v9766_v47  ;;  %v13531_v50 = vsel %vm13528_vm5, %v13529_v45, %v13530_v38  ;;  %v2073_v30 = vmax.f32 %v1637_v52, 0.0  ;;  %v1975_v10 = vmax.f32 %v1245_v1, 0.0 }
 0x123   : > { %vm10516_vm0 = vcmp.lt.s32.totalorder %v13524_v36, 32  ;;  %vm10525_vm3 = vcmp.lt.s32.totalorder %v13531_v50, 32  ;;  %vm13534_vm12 = vnez %v13267_v3  ;;  %v6101_v22 = vsel %vm10367_vm7, %v2068_v0, 0.0  ;;  %v13564_v36 = vld [vmem:[#allocation83_spill] sm:$0xff] }
 0x124   : > { %v13535_v9 = vsel %vm13534_vm12, %v9870_v12, %v9813_v59  ;;  %v2071_v41 = vmax.f32 %v1629_v20, 0.0  ;;  %v1978_v11 = vmax.f32 %v1256_v40, 0.0  ;;  %v1640_v63 = vadd.f32 %v8021_v39, %v10060_v2 }
 0x125   : > { %vm10534_vm10 = vcmp.lt.s32.totalorder %v13535_v9, 32  ;;  %vm13538_vm5 = vcmask 519168   ;;  %v7721_v52 = vpack.c.bf16 %v6101_v22, %v6101_v22  ;;  %v6010_v59 = vsel %vm10380_vm8, %v1977_v55, 0.0 }
 0x126   : > { %6974 = vst.msk [vmem:[%s10175_s27 + $0x44] sm:$0xf] %vm13538_vm5, %v7625_v32  ;;  %v6106_v12 = vsel %vm10389_vm6, %v2073_v30, 0.0  ;;  %v6008_v3 = vsel %vm10398_vm1, %v1975_v10, 0.0  ;;  %vm13539_vm7 = vnez %v13272_v54  ;;  %v7630_v61 = vpack.c.bf16 %v6010_v59, %v6010_v59  ;;  %vm13543_vm8 = vmmov %vm13538_vm5 }
 0x127   : > { %v13540_v42 = vsel %vm13539_vm7, %v9900_v6, %v9843_v25  ;;  %v7726_v33 = vpack.c.bf16 %v6106_v12, %v6106_v12  ;;  %v7628_v37 = vpack.c.bf16 %v6008_v3, %v6008_v3  ;;  %v6104_v51 = vsel %vm10413_vm14, %v2071_v41, 0.0  ;;  %7070 = vst.msk [vmem:[%s10175_s27 + $0x1c4] sm:$0xf] %vm13543_vm8, %v7721_v52  ;;  %v7928_v6 = vpop.f32.mrb[16].mxu0  ;;  %vm13544_vm6 = vmmov %vm13538_vm5  ;;  %v13571_v12 = vld [vmem:[#allocation89_spill] sm:$0xff] }
 0x128   : > { %vm10554_vm12 = vcmp.lt.s32.totalorder %v13540_v42, 32  ;;  %v7724_v56 = vpack.c.bf16 %v6104_v51, %v6104_v51  ;;  %v6011_v8 = vsel %vm10426_vm13, %v1978_v11, 0.0  ;;  %v2074_v54 = vmax.f32 %v1640_v63, 0.0  ;;  %6979 = vst.msk [vmem:[%s10175_s27 + $0x58] sm:$0xf] %vm13544_vm6, %v7630_v61  ;;  %vm13545_vm1 = vmmov %vm13538_vm5  ;;  %v1260_v35 = vpop.f32.mrb[17].mxu0 }
 0x129   : > { %v1248_v25 = vadd.f32 %v10060_v2, %v1247_v53  ;;  %7075 = vst.msk [vmem:[%s10175_s27 + $0x1d8] sm:$0xf] %vm13545_vm1, %v7726_v33  ;;  %vm13546_vm5 = vmmov %vm13545_vm1  ;;  %v7631_v48 = vpack.c.bf16 %v6011_v8, %v6011_v8  ;;  %v1632_v26 = vadd.f32 %v10060_v2, %v1631_v5  ;;  %v1269_v27 = vadd.f32 %v7928_v6, %v10060_v2  ;;  %v7929_v39 = vpop.f32.mrb[18].mxu0  ;;  %v13563_v53 = vld [vmem:[#allocation86_spill] sm:$0xff] }
 0x12a   : > { %6977 = vst.msk [vmem:[%s10175_s27 + $0x50] sm:$0xf] %vm13546_vm5, %v7628_v37  ;;  %vm13547_vm14 = vnez %v13281_v34  ;;  %vm13551_vm7 = vnez %v13292_v17  ;;  %vm13555_vm6 = vnez %v13305_v23  ;;  %v13556_v34 = vld [vmem:[#allocation82_spill] sm:$0xff]  ;;  %vm4576_vm5 = vcmp.ne.s32.totalorder %v10355_v7, 0  ;;  %v1644_v23 = vpop.f32.mrb[17].mxu1  ;;  %v1263_v30 = vpop.f32.mrb[19].mxu0 }
 0x12b   : > { %v13548_v19 = vsel %vm13547_vm14, %v9940_v57, %v9873_v49  ;;  %v13552_v0 = vsel %vm13551_vm7, %v9960_v14, %v9893_v29  ;;  %v13557_v40 = vsel %vm13555_vm6, %v9993_v46, %v13556_v34  ;;  %vm13560_vm14 = vcmask 519168   ;;  %v13561_v46 = vld [vmem:[#allocation88_spill] sm:$0xff]  ;;  %v8025_v55 = vpop.f32.mrb[18].mxu1 }
 0x12c   : > { %vm10578_vm13 = vcmp.lt.s32.totalorder %v13548_v19, 32  ;;  %vm10587_vm8 = vcmp.lt.s32.totalorder %v13552_v0, 32  ;;  %vm10596_vm1 = vcmp.lt.s32.totalorder %v13557_v40, 32  ;;  %7073 = vst.msk [vmem:[%s10175_s27 + $0x1d0] sm:$0xf] %vm13560_vm14, %v7724_v56  ;;  %v6107_v29 = vsel %vm10444_vm9, %v2074_v54, 0.0  ;;  %vm13568_vm9 = vmmov %vm13560_vm14 }
 0x12d   : > { %v1976_v57 = vmax.f32 %v1248_v25, 0.0  ;;  %v1653_v14 = vadd.f32 %v8024_v4, %v10060_v2  ;;  %v1261_v17 = vadd.f32 %v10060_v2, %v1260_v35  ;;  %vm13562_vm7 = vnez %v13561_v46  ;;  %6980 = vst.msk [vmem:[%s10175_s27 + $0x5c] sm:$0xf] %vm13560_vm14, %v7631_v48  ;;  %v1647_v41 = vpop.f32.mrb[19].mxu1  ;;  %v7932_v56 = vpop.f32.mrb[20].mxu0  ;;  %v13589_v49 = vld [vmem:[#allocation84_spill] sm:$0xff] }
 0x12e   : > { %v13565_v44 = vsel %vm13562_vm7, %v13563_v53, %v13564_v36  ;;  %v7727_v43 = vpack.c.bf16 %v6107_v29, %v6107_v29  ;;  %v2072_v38 = vmax.f32 %v1632_v26, 0.0  ;;  %v1981_v50 = vmax.f32 %v1269_v27, 0.0  ;;  %v8028_v54 = vpop.f32.mrb[20].mxu1  ;;  %v1276_v25 = vpop.f32.mrb[21].mxu0 }
 0x12f   : > { %vm10612_vm6 = vcmp.lt.s32.totalorder %v13565_v44, 32  ;;  %v1645_v32 = vadd.f32 %v10060_v2, %v1644_v23  ;;  %v6009_v10 = vsel %vm10470_vm11, %v1976_v57, 0.0  ;;  %v2077_v5 = vmax.f32 %v1653_v14, 0.0  ;;  %v1660_v35 = vpop.f32.mrb[21].mxu1  ;;  %v7933_v19 = vpop.f32.mrb[22].mxu0 }
 0x130   : > { %v1979_v9 = vmax.f32 %v1261_v17, 0.0  ;;  %v1272_v22 = vadd.f32 %v7929_v39, %v10060_v2  ;;  %7076 = vst.msk [vmem:[%s10175_s27 + $0x1dc] sm:$0xf] %vm13568_vm9, %v7727_v43  ;;  %v7629_v11 = vpack.c.bf16 %v6009_v10, %v6009_v10  ;;  %v6105_v63 = vsel %vm10486_vm4, %v2072_v38, 0.0  ;;  %vm13577_vm4 = vmmov %vm13568_vm9  ;;  %v8029_v57 = vpop.f32.mrb[22].mxu1  ;;  %v1279_v14 = vpop.f32.mrb[23].mxu0 }
 0x131   : > { %v6014_v52 = vsel %vm10495_vm2, %v1981_v50, 0.0  ;;  %v2075_v59 = vmax.f32 %v1645_v32, 0.0  ;;  %vm13569_vm11 = vnez %v13377_v60  ;;  %vm10642_vm14 = vcmp.lt.s32.totalorder %v5248_v58, 32  ;;  %vm13578_vm15 = vmmov %vm13577_vm4  ;;  %v1663_v53 = vpop.f32.mrb[23].mxu1  ;;  %v13591_v10 = vld [vmem:[#allocation2_spill] sm:$0xff] }
 0x132   : > { %v13572_v3 = vsel %vm13569_vm11, %v13570_v15, %v13571_v12  ;;  %v7725_v24 = vpack.c.bf16 %v6105_v63, %v6105_v63  ;;  %v7634_v61 = vpack.c.bf16 %v6014_v52, %v6014_v52  ;;  %v6110_v60 = vsel %vm10516_vm0, %v2077_v5, 0.0  ;;  %6978 = vst.msk [vmem:[%s10175_s27 + $0x54] sm:$0xf] %vm13577_vm4, %v7629_v11  ;;  %vm13579_vm2 = vmmov %vm13577_vm4  ;;  %v7936_v63 = vpop.f32.mrb[24].mxu0 }
 0x133   : > { %vm10633_vm7 = vcmp.lt.s32.totalorder %v13572_v3, 32  ;;  %v6012_v33 = vsel %vm10525_vm3, %v1979_v9, 0.0  ;;  %v7730_v18 = vpack.c.bf16 %v6110_v60, %v6110_v60  ;;  %v6108_v31 = vsel %vm10534_vm10, %v2075_v59, 0.0  ;;  %vm13580_vm0 = vmmov %vm13579_vm2  ;;  %v10714_v3 = vpop.f32.mrb[24].mxu1 }
 0x134   : > { %v7632_v37 = vpack.c.bf16 %v6012_v33, %v6012_v33  ;;  %v1982_v16 = vmax.f32 %v1272_v22, 0.0  ;;  %7074 = vst.msk [vmem:[%s10175_s27 + $0x1d4] sm:$0xf] %vm13578_vm15, %v7725_v24  ;;  %v7728_v58 = vpack.c.bf16 %v6108_v31, %v6108_v31  ;;  %v1656_v62 = vadd.f32 %v8025_v55, %v10060_v2  ;;  %vm13581_vm3 = vmmov %vm13580_vm0  ;;  %v10716_v24 = vpop.f32.mrb[25].mxu0  ;;  %v10719_v33 = vpop.f32.mrb[25].mxu1 }
 0x135   : > { %6983 = vst.msk [vmem:[%s10175_s27 + $0x68] sm:$0xf] %vm13579_vm2, %v7634_v61  ;;  %v1264_v51 = vadd.f32 %v10060_v2, %v1263_v30  ;;  %v1648_v28 = vadd.f32 %v10060_v2, %v1647_v41  ;;  %v1285_v8 = vadd.f32 %v7932_v56, %v10060_v2  ;;  %vm4768_vm10 = vcmp.lt.s32.totalorder %v10355_v7, 0  ;;  %vm13582_vm9 = vmmov %vm13580_vm0  ;;  %v13593_v41 = vld [vmem:[#allocation95_spill] sm:$0xff]  ;;  %v13594_v61 = vld [vmem:[#allocation70_spill] sm:$0xff]  ;;  %v10738_v56 = vpop.f32.mrb[26].mxu1 }
 0x136   : > { %7079 = vst.msk [vmem:[%s10175_s27 + $0x1e8] sm:$0xf] %vm13580_vm0, %v7730_v18  ;;  %v6015_v47 = vsel %vm10554_vm12, %v1982_v16, 0.0  ;;  %v5152_v6 = vadd.s32 48, %v10355_v7  ;;  %v2078_v26 = vmax.f32 %v1656_v62, 0.0  ;;  %vm10674_vm11 = vmand %vm4768_vm10, %vm4576_vm5  ;;  %v1669_v34 = vadd.f32 %v8028_v54, %v10060_v2  ;;  %v10721_v18 = vpop.f32.mrb[26].mxu0 }
 0x137   : > { %6981 = vst.msk [vmem:[%s10175_s27 + $0x60] sm:$0xf] %vm13581_vm3, %v7632_v37  ;;  %v7635_v48 = vpack.c.bf16 %v6015_v47, %v6015_v47  ;;  %v1980_v27 = vmax.f32 %v1264_v51, 0.0  ;;  %v2076_v4 = vmax.f32 %v1648_v28, 0.0  ;;  %v1985_v0 = vmax.f32 %v1285_v8, 0.0  ;;  %vm13585_vm12 = vmmov %vm13580_vm0  ;;  %v13598_v16 = vld [vmem:[#allocation7_spill] sm:$0xff] }
 0x138   : > { %7077 = vst.msk [vmem:[%s10175_s27 + $0x1e0] sm:$0xf] %vm13582_vm9, %v7728_v58  ;;  %v1277_v40 = vadd.f32 %v10060_v2, %v1276_v25  ;;  %v1661_v29 = vadd.f32 %v10060_v2, %v1660_v35  ;;  %v6111_v17 = vsel %vm10578_vm13, %v2078_v26, 0.0  ;;  %v5344_v46 = vsel %vm10674_vm11, %v5152_v6, %v10355_v7  ;;  %vm13586_vm13 = vmmov %vm13580_vm0  ;;  %v13599_v62 = vld [vmem:[#allocation75_spill] sm:$0xff]  ;;  %v10740_v47 = vpop.f32.mrb[27].mxu0  ;;  %v10743_v6 = vpop.f32.mrb[27].mxu1 }
 0x139   : > { %6984 = vst.msk [vmem:[%s10175_s27 + $0x6c] sm:$0xf] %vm13585_vm12, %v7635_v48  ;;  %v6013_v23 = vsel %vm10587_vm8, %v1980_v27, 0.0  ;;  %v6109_v39 = vsel %vm10596_vm1, %v2076_v4, 0.0  ;;  %v7731_v36 = vpack.c.bf16 %v6111_v17, %v6111_v17  ;;  %v6018_v21 = vsel %vm10612_vm6, %v1985_v0, 0.0  ;;  %vm13587_vm8 = vmmov %vm13580_vm0  ;;  %v13600_v54 = vld [vmem:[#allocation71_spill] sm:$0xff] }
 0x13a   : > { %v7633_v44 = vpack.c.bf16 %v6013_v23, %v6013_v23  ;;  %v7729_v43 = vpack.c.bf16 %v6109_v39, %v6109_v39  ;;  %v7638_v38 = vpack.c.bf16 %v6018_v21, %v6018_v21  ;;  %v2081_v50 = vmax.f32 %v1669_v34, 0.0  ;;  %vm13588_vm1 = vmmov %vm13580_vm0  ;;  %v13601_v0 = vld [vmem:[#allocation74_spill] sm:$0xff]  ;;  %v10757_v39 = vpop.f32.mrb[28].mxu0 }
 0x13b   : > { %v1983_v32 = vmax.f32 %v1277_v40, 0.0  ;;  %v2079_v20 = vmax.f32 %v1661_v29, 0.0  ;;  %7080 = vst.msk [vmem:[%s10175_s27 + $0x1ec] sm:$0xf] %vm13586_vm13, %v7731_v36  ;;  %vm5536_vm5 = vcmp.lt.s32.totalorder %v5344_v46, 32  ;;  %v1288_v7 = vadd.f32 %v7933_v19, %v10060_v2  ;;  %vm13592_vm6 = vmmov %vm13580_vm0  ;;  %v10761_v36 = vpop.f32.mrb[29].mxu0 }
 0x13c   : > { %6982 = vst.msk [vmem:[%s10175_s27 + $0x64] sm:$0xf] %vm13587_vm8, %v7633_v44  ;;  %v13590_v55 = vshrl.u32 %v13589_v49, 5  ;;  %v10704_v5 = vadd.s32 1016, %v13591_v10  ;;  %v6114_v45 = vsel %vm10633_vm7, %v2081_v50, 0.0  ;;  %v3663_v11 = vshrl.u32 %v13593_v41, 5  ;;  %vm13595_vm7 = vmmov %vm13580_vm0 }
 0x13d   : > { %7078 = vst.msk [vmem:[%s10175_s27 + $0x1e4] sm:$0xf] %vm13588_vm1, %v7729_v43  ;;  %v6016_v9 = vsel %vm10642_vm14, %v1983_v32, 0.0  ;;  %v6112_v22 = vsel %vm5536_vm5, %v2079_v20, 0.0  ;;  %v7734_v52 = vpack.c.bf16 %v6114_v45, %v6114_v45  ;;  %v1672_v12 = vadd.f32 %v8029_v57, %v10060_v2  ;;  %vm13596_vm14 = vmmov %vm13580_vm0  ;;  %v10770_v20 = vpop.f32.mrb[30].mxu0 }
 0x13e   : > { %v2608_v30 = vmul.u32 48, %v13590_v55  ;;  %6987 = vst.msk [vmem:[%s10175_s27 + $0x78] sm:$0xf] %vm13592_vm6, %v7638_v38  ;;  %v7636_v59 = vpack.c.bf16 %v6016_v9, %v6016_v9  ;;  %v7732_v15 = vpack.c.bf16 %v6112_v22, %v6112_v22  ;;  %v1986_v42 = vmax.f32 %v1288_v7, 0.0  ;;  %vm13597_vm4 = vmmov %vm13580_vm0  ;;  %v13606_v55 = vld [vmem:[#allocation77_spill] sm:$0xff]  ;;  %v10783_v22 = vpop.f32.mrb[31].mxu0 }
 0x13f   : > { %v3664_v60 = vmul.u32 48, %v3663_v11  ;;  %v10724_v37 = vadd.s32 232, %v13591_v10  ;;  %7083 = vst.msk [vmem:[%s10175_s27 + $0x1f8] sm:$0xf] %vm13595_vm7, %v7734_v52  ;;  %v1280_v31 = vadd.f32 %v10060_v2, %v1279_v14  ;;  %v2585_v58 = vshrl.u32 %v13598_v16, 5  ;;  %v13602_v14 = vld [vmem:[#allocation76_spill] sm:$0xff]  ;;  %vm13605_vm5 = vmmov %vm13597_vm4 }
 0x140   : > { %v2609_v13 = vsub.s32 %v13594_v61, %v2608_v30  ;;  %6985 = vst.msk [vmem:[%s10175_s27 + $0x70] sm:$0xf] %vm13596_vm14, %v7636_v59  ;;  %v10735_v51 = vmul.u32.u64.low 2863311531, %v13599_v62  ;;  %v10736_v28 = vmul.u32.u64.high 2863311531, %v13599_v62, %v10735_v51  ;;  %v2082_v48 = vmax.f32 %v1672_v12, 0.0  ;;  %vm13607_vm6 = vmmov %vm13597_vm4  ;;  %v13608_v12 = vld [vmem:[#allocation78_spill] sm:$0xff] }
 0x141   : > { %7081 = vst.msk [vmem:[%s10175_s27 + $0x1f0] sm:$0xf] %vm13597_vm4, %v7732_v15  ;;  %v3665_v25 = vsub.s32 %v13600_v54, %v3664_v60  ;;  %v2586_v26 = vmul.u32 48, %v2585_v58  ;;  %v10746_v27 = vadd.f32 %v10060_v2, %v1663_v53  ;;  %v10749_v4 = vadd.s32 1000, %v13591_v10  ;;  %v10759_v53 = vpop.f32.mrb[28].mxu1  ;;  %v13609_v51 = vld [vmem:[#allocation79_spill] sm:$0xff] }
 0x142   : > { %vm4483_vm15 = vcmp.ne.s32.totalorder %v2609_v13, 0  ;;  %vm4675_vm2 = vcmp.lt.s32.totalorder %v2609_v13, 0  ;;  %v5059_v8 = vadd.s32 48, %v2609_v13  ;;  %v1984_v19 = vmax.f32 %v1280_v31, 0.0  ;;  %v10768_v32 = vpop.f32.mrb[29].mxu1  ;;  %v10815_v54 = vpop.f32.mrb[32].mxu0 }
 0x143   : > { %vm4867_vm0 = vmand %vm4675_vm2, %vm4483_vm15  ;;  %vm4579_vm3 = vcmp.ne.s32.totalorder %v3665_v25, 0  ;;  %vm4771_vm10 = vcmp.lt.s32.totalorder %v3665_v25, 0  ;;  %v5155_v1 = vadd.s32 48, %v3665_v25  ;;  %v2587_v34 = vsub.s32 %v13601_v0, %v2586_v26  ;;  %v10781_v9 = vpop.f32.mrb[30].mxu1 }
 0x144   : > { %v5251_v35 = vsel %vm4867_vm0, %v5059_v8, %v2609_v13  ;;  %vm4963_vm11 = vmand %vm4771_vm10, %vm4579_vm3  ;;  %v3641_v40 = vshrl.u32 %v10736_v28, 5  ;;  %v10754_v17 = vmul.u32.u64.low 2863311531, %v13602_v14  ;;  %v10755_v23 = vmul.u32.u64.high 2863311531, %v13602_v14, %v10754_v17 }
 0x145   : > { %vm5443_vm9 = vcmp.lt.s32.totalorder %v5251_v35, 32  ;;  %v5347_v57 = vsel %vm4963_vm11, %v5155_v1, %v3665_v25  ;;  %vm4481_vm13 = vcmp.ne.s32.totalorder %v2587_v34, 0  ;;  %vm4673_vm8 = vcmp.lt.s32.totalorder %v2587_v34, 0  ;;  %vm13610_vm2 = vmmov %vm13605_vm5  ;;  %v10823_v35 = vpop.f32.mrb[33].mxu0 }
 0x146   : > { %v6019_v29 = vsel %vm5443_vm9, %v1986_v42, 0.0  ;;  %vm5539_vm12 = vcmp.lt.s32.totalorder %v5347_v57, 32  ;;  %vm10763_vm1 = vmand %vm4673_vm8, %vm4481_vm13  ;;  %v5057_v21 = vadd.s32 48, %v2587_v34  ;;  %v2080_v38 = vmax.f32 %v10746_v27, 0.0 }
 0x147   : > { %v7639_v46 = vpack.c.bf16 %v6019_v29, %v6019_v29  ;;  %v6115_v44 = vsel %vm5539_vm12, %v2082_v48, 0.0  ;;  %v3642_v50 = vmul.u32 48, %v3641_v40  ;;  %v10775_v49 = vadd.f32 %v7936_v63, %v10060_v2  ;;  %v10793_v63 = vpop.f32.mrb[31].mxu1  ;;  %v10833_v40 = vpop.f32.mrb[34].mxu0  ;;  %vm13611_vm11 = vmmov %vm13610_vm2 }
 0x148   : > { %v7735_v7 = vpack.c.bf16 %v6115_v44, %v6115_v44  ;;  %v10778_v30 = vmul.u32.u64.low 2863311531, %v13606_v55  ;;  %v10779_v45 = vmul.u32.u64.high 2863311531, %v13606_v55, %v10778_v30  ;;  %v5249_v41 = vsel %vm10763_vm1, %v5057_v21, %v2587_v34  ;;  %v10821_v27 = vpop.f32.mrb[32].mxu1  ;;  %v10837_v17 = vpop.f32.mrb[35].mxu0 }
 0x149   : > { %6988 = vst.msk [vmem:[%s10175_s27 + $0x7c] sm:$0xf] %vm13605_vm5, %v7639_v46  ;;  %v3643_v11 = vsub.s32 %v13599_v62, %v3642_v50  ;;  %v2640_v52 = vshrl.u32 %v10755_v23, 5  ;;  %v10791_v59 = vadd.f32 %v10714_v3, %v10060_v2  ;;  %vm5441_vm7 = vcmp.lt.s32.totalorder %v5249_v41, 32  ;;  %v10831_v34 = vpop.f32.mrb[33].mxu1 }
 0x14a   : > { %7084 = vst.msk [vmem:[%s10175_s27 + $0x1fc] sm:$0xf] %vm13607_vm6, %v7735_v7  ;;  %v10799_v15 = vadd.f32 %v10060_v2, %v10716_v24  ;;  %v10802_v42 = vmul.u32.u64.low 2863311531, %v13608_v12  ;;  %v10803_v61 = vmul.u32.u64.high 2863311531, %v13608_v12, %v10802_v42  ;;  %v6017_v13 = vsel %vm5441_vm7, %v1984_v19, 0.0 }
 0x14b   : > { %vm4577_vm14 = vcmp.ne.s32.totalorder %v3643_v11, 0  ;;  %vm4769_vm4 = vcmp.lt.s32.totalorder %v3643_v11, 0  ;;  %v5153_v60 = vadd.s32 48, %v3643_v11  ;;  %v7637_v3 = vpack.c.bf16 %v6017_v13, %v6017_v13 }
 0x14c   : > { %vm4961_vm15 = vmand %vm4769_vm4, %vm4577_vm14  ;;  %v1989_v31 = vmax.f32 %v10775_v49, 0.0  ;;  %v2641_v16 = vmul.u32 48, %v2640_v52  ;;  %v3696_v58 = vshrl.u32 %v10779_v45, 5  ;;  %v10809_v24 = vadd.f32 %v10060_v2, %v10719_v33 }
 0x14d   : > { %v5345_v62 = vsel %vm4961_vm15, %v5153_v60, %v3643_v11  ;;  %v10812_v28 = vmul.u32.u64.low 2863311531, %v13609_v51  ;;  %v10813_v8 = vmul.u32.u64.high 2863311531, %v13609_v51, %v10812_v28  ;;  %6986 = vst.msk [vmem:[%s10175_s27 + $0x74] sm:$0xf] %vm13610_vm2, %v7637_v3  ;;  %v2618_v26 = vshrl.u32 %v10803_v61, 5  ;;  %vm13614_vm14 = vmmov %vm13610_vm2 }
 0x14e   : > { %vm5537_vm0 = vcmp.lt.s32.totalorder %v5345_v62, 32  ;;  %v2642_v25 = vsub.s32 %v13602_v14, %v2641_v16  ;;  %v3697_v48 = vmul.u32 48, %v3696_v58  ;;  %v2085_v1 = vmax.f32 %v10791_v59, 0.0  ;;  %v10835_v14 = vpop.f32.mrb[34].mxu1 }
 0x14f   : > { %v6113_v33 = vsel %vm5537_vm0, %v2080_v38, 0.0  ;;  %v1987_v19 = vmax.f32 %v10799_v15, 0.0  ;;  %v10829_v0 = vadd.f32 %v10721_v18, %v10060_v2  ;;  %v2619_v46 = vmul.u32 48, %v2618_v26  ;;  %v10842_v43 = vpop.f32.mrb[35].mxu1  ;;  %v13612_v38 = vld [vmem:[#allocation80_spill] sm:$0xff]  ;;  %v13613_v15 = vld [vmem:[#allocation81_spill] sm:$0xff] }
 0x150   : > { %v7733_v29 = vpack.c.bf16 %v6113_v33, %v6113_v33  ;;  %vm4486_vm3 = vcmp.ne.s32.totalorder %v2642_v25, 0  ;;  %vm4678_vm10 = vcmp.lt.s32.totalorder %v2642_v25, 0  ;;  %v5062_v57 = vadd.s32 48, %v2642_v25  ;;  %v10862_v60 = vpop.f32.mrb[36].mxu1 }
 0x151   : > { %vm4870_vm9 = vmand %vm4678_vm10, %vm4486_vm3  ;;  %v3698_v23 = vsub.s32 %v13606_v55, %v3697_v48  ;;  %v2083_v44 = vmax.f32 %v10809_v24, 0.0  ;;  %v3674_v18 = vshrl.u32 %v10813_v8, 5  ;;  %v10852_v49 = vadd.f32 %v10738_v56, %v10060_v2  ;;  %v10860_v56 = vpop.f32.mrb[36].mxu0  ;;  %v10871_v62 = vpop.f32.mrb[37].mxu1 }
 0x152   : > { %7082 = vst.msk [vmem:[%s10175_s27 + $0x1f4] sm:$0xf] %vm13611_vm11, %v7733_v29  ;;  %v5254_v21 = vsel %vm4870_vm9, %v5062_v57, %v2642_v25  ;;  %v10847_v50 = vmul.u32.u64.low 2863311531, %v13612_v38  ;;  %v10848_v7 = vmul.u32.u64.high 2863311531, %v13612_v38, %v10847_v50  ;;  %v2620_v45 = vsub.s32 %v13608_v12, %v2619_v46  ;;  %v10864_v3 = vpop.f32.mrb[37].mxu0  ;;  %v13615_v25 = vld [vmem:[#allocation85_spill] sm:$0xff]  ;;  %vm13616_vm3 = vmmov %vm13611_vm11 }
 0x153   : > { %vm5446_vm12 = vcmp.lt.s32.totalorder %v5254_v21, 32  ;;  %vm4582_vm13 = vcmp.ne.s32.totalorder %v3698_v23, 0  ;;  %vm4774_vm8 = vcmp.lt.s32.totalorder %v3698_v23, 0  ;;  %v5158_v55 = vadd.s32 48, %v3698_v23  ;;  %v10873_v24 = vpop.f32.mrb[38].mxu0  ;;  %v10879_v33 = vpop.f32.mrb[38].mxu1  ;;  %vm13618_vm11 = vmmov %vm13616_vm3 }
 0x154   : > { %v6022_v30 = vsel %vm5446_vm12, %v1989_v31, 0.0  ;;  %vm4966_vm1 = vmand %vm4774_vm8, %vm4582_vm13  ;;  %v3675_v41 = vmul.u32 48, %v3674_v18  ;;  %v1990_v11 = vmax.f32 %v10829_v0, 0.0  ;;  %vm4484_vm6 = vcmp.ne.s32.totalorder %v2620_v45, 0  ;;  %v10883_v29 = vpop.f32.mrb[39].mxu1 }
 0x155   : > { %v7642_v52 = vpack.c.bf16 %v6022_v30, %v6022_v30  ;;  %v5350_v59 = vsel %vm4966_vm1, %v5158_v55, %v3698_v23  ;;  %v10857_v42 = vmul.u32.u64.low 2863311531, %v13613_v15  ;;  %v10858_v61 = vmul.u32.u64.high 2863311531, %v13613_v15, %v10857_v42  ;;  %vm13620_vm1 = vmmov %vm13616_vm3 }
 0x156   : > { %vm5542_vm5 = vcmp.lt.s32.totalorder %v5350_v59, 32  ;;  %vm4676_vm7 = vcmp.lt.s32.totalorder %v2620_v45, 0  ;;  %v5060_v13 = vadd.s32 48, %v2620_v45  ;;  %v3676_v31 = vsub.s32 %v13609_v51, %v3675_v41  ;;  %v13619_v59 = vld [vmem:[#allocation90_spill] sm:$0xff] }
 0x157   : > { %6991 = vst.msk [vmem:[%s10175_s27 + $0x88] sm:$0xf] %vm13614_vm14, %v7642_v52  ;;  %v6118_v12 = vsel %vm5542_vm5, %v2085_v1, 0.0  ;;  %vm4868_vm4 = vmand %vm4676_vm7, %vm4484_vm6  ;;  %v2651_v16 = vshrl.u32 %v10848_v7, 5  ;;  %v2086_v58 = vmax.f32 %v10852_v49, 0.0  ;;  %v10881_v1 = vpop.f32.mrb[39].mxu0  ;;  %v10890_v18 = vadd.f32 %v10060_v2, %v10740_v47 }
 0x158   : > { %v7738_v28 = vpack.c.bf16 %v6118_v12, %v6118_v12  ;;  %v5252_v8 = vsel %vm4868_vm4, %v5060_v13, %v2620_v45  ;;  %v10876_v48 = vmul.u32.u64.low 2863311531, %v13615_v25  ;;  %v10877_v26 = vmul.u32.u64.high 2863311531, %v13615_v25, %v10876_v48  ;;  %v13617_v7 = vld [vmem:[#allocation87_spill] sm:$0xff]  ;;  %v10903_v2 = vld [vmem:[%s12936_s2] ss:$0 sm:$0xff]  ;;  %v10915_v12 = vpop.f32.mrb[40].mxu1 }
 0x159   : > { %vm5444_vm15 = vcmp.lt.s32.totalorder %v5252_v8, 32  ;;  %vm4580_vm2 = vcmp.ne.s32.totalorder %v3676_v31, 0  ;;  %vm4772_vm0 = vcmp.lt.s32.totalorder %v3676_v31, 0  ;;  %v5156_v51 = vadd.s32 48, %v3676_v31  ;;  %v10925_v48 = vpop.f32.mrb[41].mxu1 }
 0x15a   : > { %7087 = vst.msk [vmem:[%s10175_s27 + $0x208] sm:$0xf] %vm13616_vm3, %v7738_v28  ;;  %v6020_v57 = vsel %vm5444_vm15, %v1987_v19, 0.0  ;;  %vm4964_vm10 = vmand %vm4772_vm0, %vm4580_vm2  ;;  %v2652_v23 = vmul.u32 48, %v2651_v16  ;;  %v3707_v46 = vshrl.u32 %v10858_v61, 5  ;;  %v2629_v19 = vshrl.u32 %v10877_v26, 5 }
 0x15b   : > { %v7640_v21 = vpack.c.bf16 %v6020_v57, %v6020_v57  ;;  %v5348_v50 = vsel %vm4964_vm10, %v5156_v51, %v3676_v31  ;;  %v10893_v55 = vmul.u32.u64.low 2863311531, %v13617_v7  ;;  %v10894_v30 = vmul.u32.u64.high 2863311531, %v13617_v7, %v10893_v55  ;;  %vm13622_vm0 = vmmov %vm13620_vm1 }
 0x15c   : > { %vm5540_vm9 = vcmp.lt.s32.totalorder %v5348_v50, 32  ;;  %v2653_v45 = vsub.s32 %v13612_v38, %v2652_v23  ;;  %v3708_v41 = vmul.u32 48, %v3707_v46  ;;  %v10907_v47 = vadd.f32 %v10903_v2, %v10743_v6  ;;  %v10913_v38 = vpop.f32.mrb[40].mxu0  ;;  %v13621_v23 = vld [vmem:[#allocation91_spill] sm:$0xff] }
 0x15d   : > { %6989 = vst.msk [vmem:[%s10175_s27 + $0x80] sm:$0xf] %vm13618_vm11, %v7640_v21  ;;  %v6116_v52 = vsel %vm5540_vm9, %v2083_v44, 0.0  ;;  %v10910_v42 = vmul.u32.u64.low 2863311531, %v13619_v59  ;;  %v10911_v61 = vmul.u32.u64.high 2863311531, %v13619_v59, %v10910_v42  ;;  %v10917_v31 = vpop.f32.mrb[41].mxu0  ;;  %v10923_v8 = vadd.f32 %v10903_v2, %v10757_v39 }
 0x15e   : > { %v7736_v13 = vpack.c.bf16 %v6116_v52, %v6116_v52  ;;  %vm4487_vm12 = vcmp.ne.s32.totalorder %v2653_v45, 0  ;;  %vm4679_vm13 = vcmp.lt.s32.totalorder %v2653_v45, 0  ;;  %v5063_v44 = vadd.s32 48, %v2653_v45  ;;  %v10927_v26 = vpop.f32.mrb[42].mxu0 }
 0x15f   : > { %vm4871_vm8 = vmand %vm4679_vm13, %vm4487_vm12  ;;  %v3709_v16 = vsub.s32 %v13613_v15, %v3708_v41  ;;  %v2630_v6 = vmul.u32 48, %v2629_v19  ;;  %v3685_v28 = vshrl.u32 %v10894_v30, 5  ;;  %v1988_v57 = vmax.f32 %v10890_v18, 0.0  ;;  %v10936_v15 = vpop.f32.mrb[42].mxu1  ;;  %v10938_v50 = vpop.f32.mrb[43].mxu0 }
 0x160   : > { %7085 = vst.msk [vmem:[%s10175_s27 + $0x200] sm:$0xf] %vm13620_vm1, %v7736_v13  ;;  %v5255_v51 = vsel %vm4871_vm8, %v5063_v44, %v2653_v45  ;;  %v10933_v46 = vmul.u32.u64.low 2863311531, %v13621_v23  ;;  %v10934_v21 = vmul.u32.u64.high 2863311531, %v13621_v23, %v10933_v46  ;;  %v10940_v55 = vpop.f32.mrb[43].mxu1  ;;  %v2684_v41 = vshrl.u32 %v10911_v61, 5  ;;  %vm13623_vm12 = vmmov %vm13622_vm0 }
 0x161   : > { %vm5447_vm5 = vcmp.lt.s32.totalorder %v5255_v51, 32  ;;  %vm4583_vm6 = vcmp.ne.s32.totalorder %v3709_v16, 0  ;;  %vm4775_vm7 = vcmp.lt.s32.totalorder %v3709_v16, 0  ;;  %v5159_v39 = vadd.s32 48, %v3709_v16  ;;  %v10962_v49 = vpop.f32.mrb[44].mxu1 }
 0x162   : > { %v6023_v30 = vsel %vm5447_vm5, %v1990_v11, 0.0  ;;  %vm4967_vm14 = vmand %vm4775_vm7, %vm4583_vm6  ;;  %v2631_v18 = vsub.s32 %v13615_v25, %v2630_v6  ;;  %v3686_v45 = vmul.u32 48, %v3685_v28  ;;  %v2084_v42 = vmax.f32 %v10907_v47, 0.0 }
 0x163   : > { %v7643_v19 = vpack.c.bf16 %v6023_v30, %v6023_v30  ;;  %v5351_v52 = vsel %vm4967_vm14, %v5159_v39, %v3709_v16  ;;  %v1993_v13 = vmax.f32 %v10923_v8, 0.0  ;;  %v2685_v25 = vmul.u32 48, %v2684_v41  ;;  %v10954_v16 = vpop.f32.mrb[44].mxu0  ;;  %v13624_v30 = vld [vmem:[#allocation92_spill] sm:$0xff]  ;;  %v10977_v41 = vpop.f32.mrb[45].mxu1  ;;  %vm13625_vm6 = vmmov %vm13622_vm0 }
 0x164   : > { %vm5543_vm4 = vcmp.lt.s32.totalorder %v5351_v52, 32  ;;  %vm4485_vm15 = vcmp.ne.s32.totalorder %v2631_v18, 0  ;;  %vm4677_vm2 = vcmp.lt.s32.totalorder %v2631_v18, 0  ;;  %v5061_v44 = vadd.s32 48, %v2631_v18 }
 0x165   : > { %6992 = vst.msk [vmem:[%s10175_s27 + $0x8c] sm:$0xf] %vm13622_vm0, %v7643_v19  ;;  %v6119_v0 = vsel %vm5543_vm4, %v2086_v58, 0.0  ;;  %vm4869_vm3 = vmand %vm4677_vm2, %vm4485_vm15  ;;  %v3687_v11 = vsub.s32 %v13617_v7, %v3686_v45  ;;  %v3740_v61 = vshrl.u32 %v10934_v21, 5  ;;  %v1701_v28 = vadd.f32 %v10903_v2, %v10759_v53  ;;  %v10964_v58 = vpop.f32.mrb[45].mxu0  ;;  %v13626_v19 = vld [vmem:[#allocation93_spill] sm:$0xff] }
 0x166   : > { %v7739_v47 = vpack.c.bf16 %v6119_v0, %v6119_v0  ;;  %v5253_v6 = vsel %vm4869_vm3, %v5061_v44, %v2631_v18  ;;  %v10960_v8 = vadd.f32 %v10903_v2, %v10761_v36  ;;  %v2686_v46 = vsub.s32 %v13619_v59, %v2685_v25  ;;  %vm13627_vm2 = vmmov %vm13622_vm0 }
 0x167   : > { %vm5445_vm10 = vcmp.lt.s32.totalorder %v5253_v6, 32  ;;  %vm4581_vm9 = vcmp.ne.s32.totalorder %v3687_v11, 0  ;;  %vm4773_vm11 = vcmp.lt.s32.totalorder %v3687_v11, 0  ;;  %v5157_v7 = vadd.s32 48, %v3687_v11 }
 0x168   : > { %7088 = vst.msk [vmem:[%s10175_s27 + $0x20c] sm:$0xf] %vm13623_vm12, %v7739_v47  ;;  %v6021_v51 = vsel %vm5445_vm10, %v1988_v57, 0.0  ;;  %vm4965_vm13 = vmand %vm4773_vm11, %vm4581_vm9  ;;  %v3741_v53 = vmul.u32 48, %v3740_v61  ;;  %v10971_v36 = vadd.f32 %v10903_v2, %v10768_v32  ;;  %vm4490_vm1 = vcmp.ne.s32.totalorder %v2686_v46, 0  ;;  %v10987_v47 = vpop.f32.mrb[46].mxu0 }
 0x169   : > { %v7641_v21 = vpack.c.bf16 %v6021_v51, %v6021_v51  ;;  %v5349_v39 = vsel %vm4965_vm13, %v5157_v7, %v3687_v11  ;;  %v10974_v18 = vmul.u32.u64.low 2863311531, %v13624_v30  ;;  %v10975_v45 = vmul.u32.u64.high 2863311531, %v13624_v30, %v10974_v18  ;;  %vm13629_vm10 = vmmov %vm13627_vm2 }
 0x16a   : > { %vm5541_vm8 = vcmp.lt.s32.totalorder %v5349_v39, 32  ;;  %vm4682_vm5 = vcmp.lt.s32.totalorder %v2686_v46, 0  ;;  %v5066_v57 = vadd.s32 48, %v2686_v46  ;;  %v3742_v32 = vsub.s32 %v13621_v23, %v3741_v53  ;;  %v13628_v39 = vld [vmem:[#allocation94_spill] sm:$0xff]  ;;  %vm13630_vm9 = vmmov %vm13627_vm2 }
 0x16b   : > { %6990 = vst.msk [vmem:[%s10175_s27 + $0x84] sm:$0xf] %vm13625_vm6, %v7641_v21  ;;  %v6117_v59 = vsel %vm5541_vm8, %v2084_v42, 0.0  ;;  %vm4874_vm7 = vmand %vm4682_vm5, %vm4490_vm1  ;;  %v10983_v52 = vmul.u32.u64.low 2863311531, %v13626_v19  ;;  %v10984_v44 = vmul.u32.u64.high 2863311531, %v13626_v19, %v10983_v52  ;;  %v2089_v25 = vmax.f32 %v1701_v28, 0.0 }
 0x16c   : > { %v7737_v0 = vpack.c.bf16 %v6117_v59, %v6117_v59  ;;  %v5258_v11 = vsel %vm4874_vm7, %v5066_v57, %v2686_v46  ;;  %v1991_v61 = vmax.f32 %v10960_v8, 0.0  ;;  %vm4586_vm4 = vcmp.ne.s32.totalorder %v3742_v32, 0  ;;  %v11002_v21 = vpop.f32.mrb[46].mxu1 }
 0x16d   : > { %vm5450_vm14 = vcmp.lt.s32.totalorder %v5258_v11, 32  ;;  %vm4778_vm15 = vcmp.lt.s32.totalorder %v3742_v32, 0  ;;  %v5162_v6 = vadd.s32 48, %v3742_v32  ;;  %v2662_v23 = vshrl.u32 %v10975_v45, 5 }
 0x16e   : > { %7086 = vst.msk [vmem:[%s10175_s27 + $0x204] sm:$0xf] %vm13627_vm2, %v7737_v0  ;;  %v6026_v42 = vsel %vm5450_vm14, %v1993_v13, 0.0  ;;  %vm4970_vm0 = vmand %vm4778_vm15, %vm4586_vm4  ;;  %v2087_v7 = vmax.f32 %v10971_v36, 0.0  ;;  %v10995_v28 = vadd.f32 %v10903_v2, %v10770_v20  ;;  %v3718_v46 = vshrl.u32 %v10984_v44, 5 }
 0x16f   : > { %v7646_v8 = vpack.c.bf16 %v6026_v42, %v6026_v42  ;;  %v5354_v51 = vsel %vm4970_vm0, %v5162_v6, %v3742_v32  ;;  %v11000_v53 = vadd.f32 %v10903_v2, %v10781_v9  ;;  %v2663_v13 = vmul.u32 48, %v2662_v23  ;;  %v11029_v23 = vpop.f32.mrb[47].mxu0  ;;  %vm13631_vm15 = vmmov %vm13627_vm2 }
 0x170   : > { %vm5546_vm3 = vcmp.lt.s32.totalorder %v5354_v51, 32  ;;  %v11005_v18 = vmul.u32.u64.low 2863311531, %v13628_v39  ;;  %v11006_v36 = vmul.u32.u64.high 2863311531, %v13628_v39, %v11005_v18  ;;  %v3719_v45 = vmul.u32 48, %v3718_v46 }
 0x171   : > { %6995 = vst.msk [vmem:[%s10175_s27 + $0x98] sm:$0xf] %vm13629_vm10, %v7646_v8  ;;  %v6122_v20 = vsel %vm5546_vm3, %v2089_v25, 0.0  ;;  %v11011_v57 = vmul.u32.u64.low 2863311531, %v10704_v5  ;;  %v11012_v59 = vmul.u32.u64.high 2863311531, %v10704_v5, %v11011_v57  ;;  %v2664_v9 = vsub.s32 %v13624_v30, %v2663_v13  ;;  %vm13632_vm10 = vmmov %vm13630_vm9 }
 0x172   : > { %v7742_v32 = vpack.c.bf16 %v6122_v20, %v6122_v20  ;;  %v1994_v52 = vmax.f32 %v10995_v28, 0.0  ;;  %v11018_v44 = vadd.f32 %v10903_v2, %v10783_v22  ;;  %v3720_v0 = vsub.s32 %v13626_v19, %v3719_v45  ;;  %v11042_v57 = vpop.f32.mrb[47].mxu1 }
 0x173   : > { %v2090_v11 = vmax.f32 %v11000_v53, 0.0  ;;  %v11023_v25 = vmul.u32.u64.low 2863311531, %v10724_v37  ;;  %v11024_v6 = vmul.u32.u64.high 2863311531, %v10724_v37, %v11023_v25  ;;  %vm4488_vm11 = vcmp.ne.s32.totalorder %v2664_v9, 0 }
 0x174   : > { %7091 = vst.msk [vmem:[%s10175_s27 + $0x218] sm:$0xf] %vm13630_vm9, %v7742_v32  ;;  %vm4680_vm12 = vcmp.lt.s32.totalorder %v2664_v9, 0  ;;  %v5064_v42 = vadd.s32 48, %v2664_v9  ;;  %v2695_v30 = vshrl.u32 %v11006_v36, 5  ;;  %vm4584_vm8 = vcmp.ne.s32.totalorder %v3720_v0, 0 }
 0x175   : > { %vm4872_vm13 = vmand %vm4680_vm12, %vm4488_vm11  ;;  %vm4776_vm1 = vcmp.lt.s32.totalorder %v3720_v0, 0  ;;  %v5160_v22 = vadd.s32 48, %v3720_v0  ;;  %v3751_v19 = vshrl.u32 %v11012_v59, 5  ;;  %v1992_v51 = vmax.f32 %v11018_v44, 0.0 }
 0x176   : > { %v5256_v28 = vsel %vm4872_vm13, %v5064_v42, %v2664_v9  ;;  %vm4968_vm5 = vmand %vm4776_vm1, %vm4584_vm8  ;;  %v2696_v8 = vmul.u32 48, %v2695_v30  ;;  %v11035_v46 = vadd.f32 %v10903_v2, %v10793_v63  ;;  %v2673_v18 = vshrl.u32 %v11024_v6, 5 }
 0x177   : > { %vm5448_vm6 = vcmp.lt.s32.totalorder %v5256_v28, 32  ;;  %v5352_v53 = vsel %vm4968_vm5, %v5160_v22, %v3720_v0  ;;  %v3752_v13 = vmul.u32 48, %v3751_v19  ;;  %v11040_v45 = vadd.s32 272, %v13591_v10  ;;  %vm13633_vm5 = vmmov %vm13632_vm10 }
 0x178   : > { %v6024_v36 = vsel %vm5448_vm6, %v1991_v61, 0.0  ;;  %vm5544_vm7 = vcmp.lt.s32.totalorder %v5352_v53, 32  ;;  %v2697_v20 = vsub.s32 %v13628_v39, %v2696_v8  ;;  %v2674_v9 = vmul.u32 48, %v2673_v18 }
 0x179   : > { %v7644_v59 = vpack.c.bf16 %v6024_v36, %v6024_v36  ;;  %v6120_v32 = vsel %vm5544_vm7, %v2087_v7, 0.0  ;;  %v3753_v63 = vsub.s32 %v10704_v5, %v3752_v13  ;;  %v11056_v6 = vadd.f32 %v10903_v2, %v10815_v54  ;;  %vm13634_vm7 = vmmov %vm13633_vm5 }
 0x17a   : > { %v7740_v44 = vpack.c.bf16 %v6120_v32, %v6120_v32  ;;  %vm4491_vm14 = vcmp.ne.s32.totalorder %v2697_v20, 0  ;;  %vm4683_vm4 = vcmp.lt.s32.totalorder %v2697_v20, 0  ;;  %v5067_v0 = vadd.s32 48, %v2697_v20 }
 0x17b   : > { %6993 = vst.msk [vmem:[%s10175_s27 + $0x90] sm:$0xf] %vm13631_vm15, %v7644_v59  ;;  %vm4875_vm2 = vmand %vm4683_vm4, %vm4491_vm14  ;;  %vm4587_vm0 = vcmp.ne.s32.totalorder %v3753_v63, 0  ;;  %vm4779_vm3 = vcmp.lt.s32.totalorder %v3753_v63, 0  ;;  %v5163_v61 = vadd.s32 48, %v3753_v63  ;;  %v2675_v39 = vsub.s32 %v10724_v37, %v2674_v9  ;;  %v11084_v9 = vpop.f32.mrb[48].mxu0 }
 0x17c   : > { %7089 = vst.msk [vmem:[%s10175_s27 + $0x210] sm:$0xf] %vm13632_vm10, %v7740_v44  ;;  %v5259_v25 = vsel %vm4875_vm2, %v5067_v0, %v2697_v20  ;;  %vm4971_vm9 = vmand %vm4779_vm3, %vm4587_vm0  ;;  %v11051_v7 = vmul.u32.u64.low 2863311531, %v10749_v4  ;;  %v11052_v5 = vmul.u32.u64.high 2863311531, %v10749_v4, %v11051_v7  ;;  %v11060_v22 = vadd.f32 %v10903_v2, %v10821_v27  ;;  %v11086_v44 = vpop.f32.mrb[48].mxu1 }
 0x17d   : > { %vm5451_vm11 = vcmp.lt.s32.totalorder %v5259_v25, 32  ;;  %v5355_v42 = vsel %vm4971_vm9, %v5163_v61, %v3753_v63  ;;  %vm4489_vm12 = vcmp.ne.s32.totalorder %v2675_v39, 0  ;;  %vm4681_vm13 = vcmp.lt.s32.totalorder %v2675_v39, 0  ;;  %vm13635_vm14 = vmmov %vm13633_vm5 }
 0x17e   : > { %v6027_v30 = vsel %vm5451_vm11, %v1994_v52, 0.0  ;;  %vm5547_vm8 = vcmp.lt.s32.totalorder %v5355_v42, 32  ;;  %vm4873_vm1 = vmand %vm4681_vm13, %vm4489_vm12  ;;  %v5065_v37 = vadd.s32 48, %v2675_v39  ;;  %v3729_v18 = vshrl.u32 %v11052_v5, 5  ;;  %v11096_v5 = vpop.f32.mrb[49].mxu0 }
 0x17f   : > { %v7647_v19 = vpack.c.bf16 %v6027_v30, %v6027_v30  ;;  %v6123_v28 = vsel %vm5547_vm8, %v2090_v11, 0.0  ;;  %v11063_v8 = vmul.u32.u64.low 2863311531, %v11040_v45  ;;  %v11064_v54 = vmul.u32.u64.high 2863311531, %v11040_v45, %v11063_v8  ;;  %vm13636_vm8 = vmmov %vm13633_vm5 }
 0x180   : > { %v7743_v53 = vpack.c.bf16 %v6123_v28, %v6123_v28  ;;  %v5257_v13 = vsel %vm4873_vm1, %v5065_v37, %v2675_v39  ;;  %v2286_v52 = vadd.s32 1040, %v13591_v10  ;;  %v11072_v36 = vadd.f32 %v10903_v2, %v10823_v35 }
 0x181   : > { %6996 = vst.msk [vmem:[%s10175_s27 + $0x9c] sm:$0xf] %vm13633_vm5, %v7647_v19  ;;  %vm5449_vm6 = vcmp.lt.s32.totalorder %v5257_v13, 32  ;;  %v2188_v27 = vadd.s32 256, %v13591_v10  ;;  %v11077_v11 = vadd.f32 %v10903_v2, %v10831_v34  ;;  %v3730_v59 = vmul.u32 48, %v3729_v18  ;;  %v11104_v19 = vpop.f32.mrb[49].mxu1 }
 0x182   : > { %7092 = vst.msk [vmem:[%s10175_s27 + $0x21c] sm:$0xf] %vm13634_vm7, %v7743_v53  ;;  %v6025_v20 = vsel %vm5449_vm6, %v1992_v51, 0.0  ;;  %v11081_v32 = vmul.u32.u64.low 2863311531, %v2286_v52  ;;  %v11082_v63 = vmul.u32.u64.high 2863311531, %v2286_v52, %v11081_v32  ;;  %v2088_v0 = vmax.f32 %v11035_v46, 0.0 }
 0x183   : > { %v7645_v35 = vpack.c.bf16 %v6025_v20, %v6025_v20  ;;  %v1997_v61 = vmax.f32 %v11056_v6, 0.0  ;;  %v2728_v39 = vshrl.u32 %v11064_v54, 5  ;;  %v3731_v34 = vsub.s32 %v10749_v4, %v3730_v59 }
 0x184   : > { %v11092_v25 = vmul.u32.u64.low 2863311531, %v2188_v27  ;;  %v11093_v7 = vmul.u32.u64.high 2863311531, %v2188_v27, %v11092_v25  ;;  %v2284_v51 = vadd.s32 1024, %v13591_v10  ;;  %v2093_v30 = vmax.f32 %v11060_v22, 0.0 }
 0x185   : > { %6994 = vst.msk [vmem:[%s10175_s27 + $0x94] sm:$0xf] %vm13635_vm14, %v7645_v35  ;;  %v2729_v42 = vmul.u32 48, %v2728_v39  ;;  %v1995_v46 = vmax.f32 %v11072_v36, 0.0  ;;  %v2091_v6 = vmax.f32 %v11077_v11, 0.0  ;;  %vm4585_vm4 = vcmp.ne.s32.totalorder %v3731_v34, 0  ;;  %vm13637_vm14 = vmmov %vm13636_vm8 }
 0x186   : > { %vm4777_vm15 = vcmp.lt.s32.totalorder %v3731_v34, 0  ;;  %v5161_v37 = vadd.s32 48, %v3731_v34  ;;  %v3784_v4 = vshrl.u32 %v11082_v63, 5  ;;  %v11112_v22 = vadd.f32 %v10903_v2, %v10833_v40  ;;  %v11122_v35 = vpop.f32.mrb[50].mxu0 }
 0x187   : > { %vm4969_vm2 = vmand %vm4777_vm15, %vm4585_vm4  ;;  %v2730_v28 = vsub.s32 %v11040_v45, %v2729_v42  ;;  %v11107_v8 = vmul.u32.u64.low 2863311531, %v2284_v51  ;;  %v11108_v54 = vmul.u32.u64.high 2863311531, %v2284_v51, %v11107_v8  ;;  %v2706_v18 = vshrl.u32 %v11093_v7, 5 }
 0x188   : > { %v5353_v53 = vsel %vm4969_vm2, %v5161_v37, %v3731_v34  ;;  %v3785_v13 = vmul.u32 48, %v3784_v4  ;;  %v11116_v20 = vadd.s32 280, %v13591_v10  ;;  %v11120_v40 = vadd.f32 %v10903_v2, %v10835_v14 }
 0x189   : > { %vm5545_vm0 = vcmp.lt.s32.totalorder %v5353_v53, 32  ;;  %vm4494_vm3 = vcmp.ne.s32.totalorder %v2730_v28, 0  ;;  %vm4686_vm10 = vcmp.lt.s32.totalorder %v2730_v28, 0  ;;  %v5070_v59 = vadd.s32 48, %v2730_v28  ;;  %v11136_v53 = vpop.f32.mrb[50].mxu1 }
 0x18a   : > { %v6121_v45 = vsel %vm5545_vm0, %v2088_v0, 0.0  ;;  %vm4878_vm9 = vmand %vm4686_vm10, %vm4494_vm3  ;;  %v3786_v32 = vsub.s32 %v2286_v52, %v3785_v13  ;;  %v2707_v63 = vmul.u32 48, %v2706_v18  ;;  %v3762_v25 = vshrl.u32 %v11108_v54, 5 }
 0x18b   : > { %v7741_v39 = vpack.c.bf16 %v6121_v45, %v6121_v45  ;;  %v5262_v34 = vsel %vm4878_vm9, %v5070_v59, %v2730_v28  ;;  %v2287_v7 = vadd.s32 1048, %v13591_v10  ;;  %v11130_v37 = vadd.f32 %v10903_v2, %v10837_v17  ;;  %vm13638_vm3 = vmmov %vm13636_vm8 }
 0x18c   : > { %vm5454_vm11 = vcmp.lt.s32.totalorder %v5262_v34, 32  ;;  %vm4590_vm12 = vcmp.ne.s32.totalorder %v3786_v32, 0  ;;  %vm4782_vm13 = vcmp.lt.s32.totalorder %v3786_v32, 0  ;;  %v5166_v0 = vadd.s32 48, %v3786_v32  ;;  %v11148_v34 = vpop.f32.mrb[51].mxu0 }
 0x18d   : > { %7090 = vst.msk [vmem:[%s10175_s27 + $0x214] sm:$0xf] %vm13636_vm8, %v7741_v39  ;;  %v6030_v52 = vsel %vm5454_vm11, %v1997_v61, 0.0  ;;  %vm4974_vm1 = vmand %vm4782_vm13, %vm4590_vm12  ;;  %v2708_v42 = vsub.s32 %v2188_v27, %v2707_v63  ;;  %v3763_v14 = vmul.u32 48, %v3762_v25  ;;  %v11146_v63 = vadd.f32 %v10903_v2, %v10842_v43 }
 0x18e   : > { %v7650_v4 = vpack.c.bf16 %v6030_v52, %v6030_v52  ;;  %v5358_v28 = vsel %vm4974_vm1, %v5166_v0, %v3786_v32  ;;  %v11133_v8 = vmul.u32.u64.low 2863311531, %v11116_v20  ;;  %v11134_v54 = vmul.u32.u64.high 2863311531, %v11116_v20, %v11133_v8  ;;  %vm13639_vm11 = vmmov %vm13638_vm3 }
 0x18f   : > { %vm5550_vm5 = vcmp.lt.s32.totalorder %v5358_v28, 32  ;;  %vm4492_vm6 = vcmp.ne.s32.totalorder %v2708_v42, 0  ;;  %vm4684_vm7 = vcmp.lt.s32.totalorder %v2708_v42, 0  ;;  %v5068_v61 = vadd.s32 48, %v2708_v42  ;;  %vm13640_vm12 = vmmov %vm13638_vm3 }
 0x190   : > { %6999 = vst.msk [vmem:[%s10175_s27 + $0xa8] sm:$0xf] %vm13637_vm14, %v7650_v4  ;;  %v6126_v27 = vsel %vm5550_vm5, %v2093_v30, 0.0  ;;  %vm4876_vm4 = vmand %vm4684_vm7, %vm4492_vm6  ;;  %v3764_v13 = vsub.s32 %v2284_v51, %v3763_v14  ;;  %v11140_v17 = vmul.u32.u64.low 2863311531, %v2287_v7  ;;  %v11141_v18 = vmul.u32.u64.high 2863311531, %v2287_v7, %v11140_v17 }
 0x191   : > { %v7746_v59 = vpack.c.bf16 %v6126_v27, %v6126_v27  ;;  %v5260_v45 = vsel %vm4876_vm4, %v5068_v61, %v2708_v42  ;;  %v2189_v32 = vadd.s32 264, %v13591_v10  ;;  %v2739_v30 = vshrl.u32 %v11134_v54, 5 }
 0x192   : > { %vm5452_vm15 = vcmp.lt.s32.totalorder %v5260_v45, 32  ;;  %vm4588_vm2 = vcmp.ne.s32.totalorder %v3764_v13, 0  ;;  %vm4780_vm0 = vcmp.lt.s32.totalorder %v3764_v13, 0  ;;  %v5164_v39 = vadd.s32 48, %v3764_v13 }
 0x193   : > { %7095 = vst.msk [vmem:[%s10175_s27 + $0x228] sm:$0xf] %vm13638_vm3, %v7746_v59  ;;  %v6028_v51 = vsel %vm5452_vm15, %v1995_v46, 0.0  ;;  %vm4972_vm10 = vmand %vm4780_vm0, %vm4588_vm2  ;;  %v11155_v25 = vmul.u32.u64.low 2863311531, %v2189_v32  ;;  %v11156_v0 = vmul.u32.u64.high 2863311531, %v2189_v32, %v11155_v25  ;;  %v1998_v42 = vmax.f32 %v11112_v22, 0.0 }
 0x194   : > { %v7648_v43 = vpack.c.bf16 %v6028_v51, %v6028_v51  ;;  %v5356_v52 = vsel %vm4972_vm10, %v5164_v39, %v3764_v13  ;;  %v3795_v14 = vshrl.u32 %v11141_v18, 5  ;;  %v2740_v4 = vmul.u32 48, %v2739_v30  ;;  %v11168_v22 = vpop.f32.mrb[51].mxu1  ;;  %vm13641_vm10 = vmmov %vm13638_vm3 }
 0x195   : > { %vm5548_vm9 = vcmp.lt.s32.totalorder %v5356_v52, 32  ;;  %v2094_v28 = vmax.f32 %v11120_v40, 0.0  ;;  %v2285_v36 = vadd.s32 1032, %v13591_v10  ;;  %v1996_v54 = vmax.f32 %v11130_v37, 0.0 }
 0x196   : > { %6997 = vst.msk [vmem:[%s10175_s27 + $0xa0] sm:$0xf] %vm13639_vm11, %v7648_v43  ;;  %v6124_v46 = vsel %vm5548_vm9, %v2091_v6, 0.0  ;;  %v3796_v8 = vmul.u32 48, %v3795_v14  ;;  %v2092_v61 = vmax.f32 %v11146_v63, 0.0  ;;  %v2741_v13 = vsub.s32 %v11116_v20, %v2740_v4 }
 0x197   : > { %v7744_v27 = vpack.c.bf16 %v6124_v46, %v6124_v46  ;;  %v2717_v17 = vshrl.u32 %v11156_v0, 5  ;;  %v2194_v40 = vadd.s32 304, %v13591_v10  ;;  %v11178_v11 = vadd.f32 %v10903_v2, %v10860_v56 }
 0x198   : > { %v3797_v18 = vsub.s32 %v2287_v7, %v3796_v8  ;;  %v11173_v59 = vmul.u32.u64.low 2863311531, %v2285_v36  ;;  %v11174_v45 = vmul.u32.u64.high 2863311531, %v2285_v36, %v11173_v59  ;;  %vm4495_vm13 = vcmp.ne.s32.totalorder %v2741_v13, 0  ;;  %v11193_v8 = vpop.f32.mrb[52].mxu0 }
 0x199   : > { %7093 = vst.msk [vmem:[%s10175_s27 + $0x220] sm:$0xf] %vm13640_vm12, %v7744_v27  ;;  %vm4687_vm8 = vcmp.lt.s32.totalorder %v2741_v13, 0  ;;  %v5071_v6 = vadd.s32 48, %v2741_v13  ;;  %v2718_v37 = vmul.u32 48, %v2717_v17  ;;  %v11183_v39 = vadd.s32 1072, %v13591_v10 }
 0x19a   : > { %vm4879_vm1 = vmand %vm4687_vm8, %vm4495_vm13  ;;  %vm4591_vm5 = vcmp.ne.s32.totalorder %v3797_v18, 0  ;;  %vm4783_vm6 = vcmp.lt.s32.totalorder %v3797_v18, 0  ;;  %v5167_v20 = vadd.s32 48, %v3797_v18  ;;  %v3773_v0 = vshrl.u32 %v11174_v45, 5  ;;  %v11195_v27 = vpop.f32.mrb[52].mxu1 }
 0x19b   : > { %v5263_v7 = vsel %vm4879_vm1, %v5071_v6, %v2741_v13  ;;  %vm4975_vm7 = vmand %vm4783_vm6, %vm4591_vm5  ;;  %v2719_v51 = vsub.s32 %v2189_v32, %v2718_v37  ;;  %v11185_v30 = vmul.u32.u64.low 2863311531, %v2194_v40  ;;  %v11186_v25 = vmul.u32.u64.high 2863311531, %v2194_v40, %v11185_v30 }
 0x19c   : > { %vm5455_vm14 = vcmp.lt.s32.totalorder %v5263_v7, 32  ;;  %v5359_v56 = vsel %vm4975_vm7, %v5167_v20, %v3797_v18  ;;  %v11191_v43 = vadd.f32 %v10903_v2, %v10862_v60  ;;  %v3774_v46 = vmul.u32 48, %v3773_v0  ;;  %vm13642_vm8 = vmmov %vm13638_vm3 }
 0x19d   : > { %v6031_v52 = vsel %vm5455_vm14, %v1998_v42, 0.0  ;;  %vm5551_vm4 = vcmp.lt.s32.totalorder %v5359_v56, 32  ;;  %vm4493_vm15 = vcmp.ne.s32.totalorder %v2719_v51, 0  ;;  %vm4685_vm2 = vcmp.lt.s32.totalorder %v2719_v51, 0 }
 0x19e   : > { %v7651_v14 = vpack.c.bf16 %v6031_v52, %v6031_v52  ;;  %v6127_v4 = vsel %vm5551_vm4, %v2094_v28, 0.0  ;;  %vm4877_vm0 = vmand %vm4685_vm2, %vm4493_vm15  ;;  %v5069_v32 = vadd.s32 48, %v2719_v51  ;;  %v2772_v17 = vshrl.u32 %v11186_v25, 5 }
 0x19f   : > { %v7747_v13 = vpack.c.bf16 %v6127_v4, %v6127_v4  ;;  %v11199_v60 = vmul.u32.u64.low 2863311531, %v11183_v39  ;;  %v11200_v18 = vmul.u32.u64.high 2863311531, %v11183_v39, %v11199_v60  ;;  %v3775_v59 = vsub.s32 %v2285_v36, %v3774_v46  ;;  %v11231_v46 = vpop.f32.mrb[53].mxu1  ;;  %vm13643_vm4 = vmmov %vm13638_vm3 }
 0x1a0   : > { %7000 = vst.msk [vmem:[%s10175_s27 + $0xac] sm:$0xf] %vm13638_vm3, %v7651_v14  ;;  %v5261_v42 = vsel %vm4877_vm0, %v5069_v32, %v2719_v51  ;;  %v11206_v28 = vadd.f32 %v10903_v2, %v10864_v3  ;;  %v2192_v45 = vadd.s32 288, %v13591_v10  ;;  %v2001_v6 = vmax.f32 %v11178_v11, 0.0  ;;  %v11215_v51 = vpop.f32.mrb[53].mxu0 }
 0x1a1   : > { %7096 = vst.msk [vmem:[%s10175_s27 + $0x22c] sm:$0xf] %vm13641_vm10, %v7747_v13  ;;  %vm5453_vm9 = vcmp.lt.s32.totalorder %v5261_v42, 32  ;;  %v2773_v37 = vmul.u32 48, %v2772_v17  ;;  %v11213_v20 = vadd.s32 1056, %v13591_v10  ;;  %vm4589_vm11 = vcmp.ne.s32.totalorder %v3775_v59, 0 }
 0x1a2   : > { %v6029_v7 = vsel %vm5453_vm9, %v1996_v54, 0.0  ;;  %vm4781_vm12 = vcmp.lt.s32.totalorder %v3775_v59, 0  ;;  %v5165_v36 = vadd.s32 48, %v3775_v59  ;;  %v2097_v25 = vmax.f32 %v11191_v43, 0.0 }
 0x1a3   : > { %v7649_v3 = vpack.c.bf16 %v6029_v7, %v6029_v7  ;;  %vm4973_vm13 = vmand %vm4781_vm12, %vm4589_vm11  ;;  %v2774_v30 = vsub.s32 %v2194_v40, %v2773_v37  ;;  %v3828_v56 = vshrl.u32 %v11200_v18, 5  ;;  %v1999_v11 = vmax.f32 %v11206_v28, 0.0 }
 0x1a4   : > { %v5357_v0 = vsel %vm4973_vm13, %v5165_v36, %v3775_v59  ;;  %v11220_v52 = vmul.u32.u64.low 2863311531, %v2192_v45  ;;  %v11221_v14 = vmul.u32.u64.high 2863311531, %v2192_v45, %v11220_v52  ;;  %v11235_v60 = vadd.f32 %v10903_v2, %v10871_v62  ;;  %vm13644_vm13 = vmmov %vm13638_vm3 }
 0x1a5   : > { %6998 = vst.msk [vmem:[%s10175_s27 + $0xa4] sm:$0xf] %vm13642_vm8, %v7649_v3  ;;  %vm5549_vm1 = vcmp.lt.s32.totalorder %v5357_v0, 32  ;;  %vm4498_vm5 = vcmp.ne.s32.totalorder %v2774_v30, 0  ;;  %vm4690_vm6 = vcmp.lt.s32.totalorder %v2774_v30, 0  ;;  %v5074_v54 = vadd.s32 48, %v2774_v30 }
 0x1a6   : > { %v6125_v40 = vsel %vm5549_vm1, %v2092_v61, 0.0  ;;  %vm4882_vm7 = vmand %vm4690_vm6, %vm4498_vm5  ;;  %v3829_v43 = vmul.u32 48, %v3828_v56  ;;  %v11228_v4 = vmul.u32.u64.low 2863311531, %v11213_v20  ;;  %v11229_v32 = vmul.u32.u64.high 2863311531, %v11213_v20, %v11228_v4 }
 0x1a7   : > { %v7745_v13 = vpack.c.bf16 %v6125_v40, %v6125_v40  ;;  %v5266_v17 = vsel %vm4882_vm7, %v5074_v54, %v2774_v30  ;;  %v2195_v18 = vadd.s32 312, %v13591_v10  ;;  %v2750_v61 = vshrl.u32 %v11221_v14, 5  ;;  %v11267_v40 = vpop.f32.mrb[54].mxu1 }
 0x1a8   : > { %vm5458_vm14 = vcmp.lt.s32.totalorder %v5266_v17, 32  ;;  %v3830_v63 = vsub.s32 %v11183_v39, %v3829_v43  ;;  %v11242_v42 = vadd.f32 %v10903_v2, %v10873_v24  ;;  %v2291_v62 = vadd.s32 1080, %v13591_v10  ;;  %v11250_v39 = vpop.f32.mrb[54].mxu0 }
 0x1a9   : > { %7094 = vst.msk [vmem:[%s10175_s27 + $0x224] sm:$0xf] %vm13643_vm4, %v7745_v13  ;;  %v6034_v59 = vsel %vm5458_vm14, %v2001_v6, 0.0  ;;  %v11246_v37 = vmul.u32.u64.low 2863311531, %v2195_v18  ;;  %v11247_v7 = vmul.u32.u64.high 2863311531, %v2195_v18, %v11246_v37  ;;  %v2751_v30 = vmul.u32 48, %v2750_v61 }
 0x1aa   : > { %v7654_v36 = vpack.c.bf16 %v6034_v59, %v6034_v59  ;;  %vm4594_vm15 = vcmp.ne.s32.totalorder %v3830_v63, 0  ;;  %vm4786_vm2 = vcmp.lt.s32.totalorder %v3830_v63, 0  ;;  %v5170_v3 = vadd.s32 48, %v3830_v63 }
 0x1ab   : > { %vm4978_vm0 = vmand %vm4786_vm2, %vm4594_vm15  ;;  %v3806_v56 = vshrl.u32 %v11229_v32, 5  ;;  %v11255_v24 = vadd.f32 %v10903_v2, %v10879_v33  ;;  %v11259_v6 = vadd.f32 %v10903_v2, %v10881_v1  ;;  %v2193_v54 = vadd.s32 296, %v13591_v10 }
 0x1ac   : > { %7003 = vst.msk [vmem:[%s10175_s27 + $0xb8] sm:$0xf] %vm13638_vm3, %v7654_v36  ;;  %v5362_v0 = vsel %vm4978_vm0, %v5170_v3, %v3830_v63  ;;  %v11263_v52 = vmul.u32.u64.low 2863311531, %v2291_v62  ;;  %v11264_v14 = vmul.u32.u64.high 2863311531, %v2291_v62, %v11263_v52  ;;  %v2752_v43 = vsub.s32 %v2192_v45, %v2751_v30  ;;  %v11277_v3 = vpop.f32.mrb[55].mxu0  ;;  %vm13645_vm15 = vmmov %vm13638_vm3 }
 0x1ad   : > { %vm5554_vm10 = vcmp.lt.s32.totalorder %v5362_v0, 32  ;;  %v3807_v4 = vmul.u32 48, %v3806_v56  ;;  %v2783_v33 = vshrl.u32 %v11247_v7, 5  ;;  %v2095_v1 = vmax.f32 %v11235_v60, 0.0 }
 0x1ae   : > { %v6130_v32 = vsel %vm5554_vm10, %v2097_v25, 0.0  ;;  %v11271_v13 = vmul.u32.u64.low 2863311531, %v2193_v54  ;;  %v11272_v17 = vmul.u32.u64.high 2863311531, %v2193_v54, %v11271_v13  ;;  %vm4496_vm9 = vcmp.ne.s32.totalorder %v2752_v43, 0 }
 0x1af   : > { %v7750_v63 = vpack.c.bf16 %v6130_v32, %v6130_v32  ;;  %vm4688_vm11 = vcmp.lt.s32.totalorder %v2752_v43, 0  ;;  %v5072_v61 = vadd.s32 48, %v2752_v43  ;;  %v3808_v59 = vsub.s32 %v11213_v20, %v3807_v4 }
 0x1b0   : > { %vm4880_vm12 = vmand %vm4688_vm11, %vm4496_vm9  ;;  %v2002_v37 = vmax.f32 %v11242_v42, 0.0  ;;  %v2784_v45 = vmul.u32 48, %v2783_v33  ;;  %v3839_v36 = vshrl.u32 %v11264_v14, 5  ;;  %v2098_v60 = vmax.f32 %v11255_v24, 0.0  ;;  %v11286_v42 = vpop.f32.mrb[55].mxu1 }
 0x1b1   : > { %7099 = vst.msk [vmem:[%s10175_s27 + $0x238] sm:$0xf] %vm13644_vm13, %v7750_v63  ;;  %v5264_v25 = vsel %vm4880_vm12, %v5072_v61, %v2752_v43  ;;  %v2000_v7 = vmax.f32 %v11259_v6, 0.0  ;;  %v11284_v30 = vadd.s32 1064, %v13591_v10  ;;  %vm4592_vm1 = vcmp.ne.s32.totalorder %v3808_v59, 0  ;;  %vm13646_vm9 = vmmov %vm13644_vm13 }
 0x1b2   : > { %vm5456_vm8 = vcmp.lt.s32.totalorder %v5264_v25, 32  ;;  %vm4784_vm5 = vcmp.lt.s32.totalorder %v3808_v59, 0  ;;  %v5168_v20 = vadd.s32 48, %v3808_v59  ;;  %v2785_v0 = vsub.s32 %v2195_v18, %v2784_v45 }
 0x1b3   : > { %v6032_v56 = vsel %vm5456_vm8, %v1999_v11, 0.0  ;;  %vm4976_vm6 = vmand %vm4784_vm5, %vm4592_vm1  ;;  %v3840_v52 = vmul.u32 48, %v3839_v36  ;;  %v2761_v24 = vshrl.u32 %v11272_v17, 5  ;;  %v11293_v4 = vadd.f32 %v10903_v2, %v10883_v29 }
 0x1b4   : > { %v7652_v14 = vpack.c.bf16 %v6032_v56, %v6032_v56  ;;  %v5360_v43 = vsel %vm4976_vm6, %v5168_v20, %v3808_v59  ;;  %v2198_v33 = vadd.s32 336, %v13591_v10  ;;  %vm4499_vm14 = vcmp.ne.s32.totalorder %v2785_v0, 0  ;;  %vm13647_vm1 = vmmov %vm13646_vm9 }
 0x1b5   : > { %vm5552_vm7 = vcmp.lt.s32.totalorder %v5360_v43, 32  ;;  %vm4691_vm4 = vcmp.lt.s32.totalorder %v2785_v0, 0  ;;  %v5075_v32 = vadd.s32 48, %v2785_v0  ;;  %v3841_v11 = vsub.s32 %v2291_v62, %v3840_v52 }
 0x1b6   : > { %7001 = vst.msk [vmem:[%s10175_s27 + $0xb0] sm:$0xf] %vm13645_vm15, %v7652_v14  ;;  %v6128_v28 = vsel %vm5552_vm7, %v2095_v1, 0.0  ;;  %vm4883_vm2 = vmand %vm4691_vm4, %vm4499_vm14  ;;  %v2762_v18 = vmul.u32 48, %v2761_v24  ;;  %v11300_v13 = vadd.f32 %v10903_v2, %v10913_v38  ;;  %v11313_v20 = vadd.f32 %v10903_v2, %v10915_v12 }
 0x1b7   : > { %v7748_v17 = vpack.c.bf16 %v6128_v28, %v6128_v28  ;;  %v5267_v29 = vsel %vm4883_vm2, %v5075_v32, %v2785_v0  ;;  %v11303_v63 = vmul.u32.u64.low 2863311531, %v11284_v30  ;;  %v11304_v61 = vmul.u32.u64.high 2863311531, %v11284_v30, %v11303_v63  ;;  %vm13648_vm7 = vmmov %vm13647_vm1 }
 0x1b8   : > { %vm5459_vm0 = vcmp.lt.s32.totalorder %v5267_v29, 32  ;;  %vm4595_vm3 = vcmp.ne.s32.totalorder %v3841_v11, 0  ;;  %vm4787_vm10 = vcmp.lt.s32.totalorder %v3841_v11, 0  ;;  %v5171_v59 = vadd.s32 48, %v3841_v11  ;;  %vm13649_vm14 = vmmov %vm13647_vm1 }
 0x1b9   : > { %7097 = vst.msk [vmem:[%s10175_s27 + $0x230] sm:$0xf] %vm13646_vm9, %v7748_v17  ;;  %v6035_v1 = vsel %vm5459_vm0, %v2002_v37, 0.0  ;;  %vm4979_vm11 = vmand %vm4787_vm10, %vm4595_vm3  ;;  %v2763_v62 = vsub.s32 %v2193_v54, %v2762_v18  ;;  %v11308_v45 = vmul.u32.u64.low 2863311531, %v2198_v33  ;;  %v11309_v36 = vmul.u32.u64.high 2863311531, %v2198_v33, %v11308_v45  ;;  %v11328_v17 = vpop.f32.mrb[56].mxu1 }
 0x1ba   : > { %v7655_v38 = vpack.c.bf16 %v6035_v1, %v6035_v1  ;;  %v5363_v25 = vsel %vm4979_vm11, %v5171_v59, %v3841_v11  ;;  %v2294_v56 = vadd.s32 1104, %v13591_v10  ;;  %v3817_v54 = vshrl.u32 %v11304_v61, 5 }
 0x1bb   : > { %vm5555_vm12 = vcmp.lt.s32.totalorder %v5363_v25, 32  ;;  %vm4497_vm13 = vcmp.ne.s32.totalorder %v2763_v62, 0  ;;  %vm4689_vm8 = vcmp.lt.s32.totalorder %v2763_v62, 0  ;;  %v5073_v0 = vadd.s32 48, %v2763_v62 }
 0x1bc   : > { %7004 = vst.msk [vmem:[%s10175_s27 + $0xbc] sm:$0xf] %vm13647_vm1, %v7655_v38  ;;  %v6131_v37 = vsel %vm5555_vm12, %v2098_v60, 0.0  ;;  %vm4881_vm5 = vmand %vm4689_vm8, %vm4497_vm13  ;;  %v11319_v52 = vmul.u32.u64.low 2863311531, %v2294_v56  ;;  %v11320_v24 = vmul.u32.u64.high 2863311531, %v2294_v56, %v11319_v52  ;;  %v2096_v12 = vmax.f32 %v11293_v4, 0.0 }
 0x1bd   : > { %v7751_v14 = vpack.c.bf16 %v6131_v37, %v6131_v37  ;;  %v5265_v43 = vsel %vm4881_vm5, %v5073_v0, %v2763_v62  ;;  %v2816_v32 = vshrl.u32 %v11309_v36, 5  ;;  %v3818_v28 = vmul.u32 48, %v3817_v54  ;;  %v11326_v60 = vpop.f32.mrb[56].mxu0  ;;  %vm13650_vm5 = vmmov %vm13647_vm1 }
 0x1be   : > { %vm5457_vm6 = vcmp.lt.s32.totalorder %v5265_v43, 32  ;;  %v2005_v11 = vmax.f32 %v11300_v13, 0.0  ;;  %v2196_v18 = vadd.s32 320, %v13591_v10  ;;  %v2101_v4 = vmax.f32 %v11313_v20, 0.0  ;;  %v11339_v13 = vpop.f32.mrb[57].mxu0  ;;  %v11353_v20 = vpop.f32.mrb[57].mxu1 }
 0x1bf   : > { %7100 = vst.msk [vmem:[%s10175_s27 + $0x23c] sm:$0xf] %vm13648_vm7, %v7751_v14  ;;  %v6033_v29 = vsel %vm5457_vm6, %v2000_v7, 0.0  ;;  %v2817_v63 = vmul.u32 48, %v2816_v32  ;;  %v11337_v61 = vadd.f32 %v10903_v2, %v10917_v31  ;;  %v3819_v1 = vsub.s32 %v11284_v30, %v3818_v28 }
 0x1c0   : > { %v7653_v59 = vpack.c.bf16 %v6033_v29, %v6033_v29  ;;  %v3872_v62 = vshrl.u32 %v11320_v24, 5  ;;  %v2292_v45 = vadd.s32 1088, %v13591_v10  ;;  %v11349_v7 = vadd.f32 %v10903_v2, %v10925_v48 }
 0x1c1   : > { %v2818_v36 = vsub.s32 %v2198_v33, %v2817_v63  ;;  %v11344_v38 = vmul.u32.u64.low 2863311531, %v2196_v18  ;;  %v11345_v6 = vmul.u32.u64.high 2863311531, %v2196_v18, %v11344_v38  ;;  %vm4593_vm4 = vcmp.ne.s32.totalorder %v3819_v1, 0 }
 0x1c2   : > { %7002 = vst.msk [vmem:[%s10175_s27 + $0xb4] sm:$0xf] %vm13649_vm14, %v7653_v59  ;;  %vm4785_vm15 = vcmp.lt.s32.totalorder %v3819_v1, 0  ;;  %v5169_v31 = vadd.s32 48, %v3819_v1  ;;  %v3873_v25 = vmul.u32 48, %v3872_v62  ;;  %v11357_v33 = vadd.f32 %v10903_v2, %v10927_v26  ;;  %v11364_v2 = vpop.f32.mrb[58].mxu0 }
 0x1c3   : > { %vm4977_vm2 = vmand %vm4785_vm15, %vm4593_vm4  ;;  %vm4502_vm0 = vcmp.ne.s32.totalorder %v2818_v36, 0  ;;  %vm4694_vm3 = vcmp.lt.s32.totalorder %v2818_v36, 0  ;;  %v5078_v30 = vadd.s32 48, %v2818_v36  ;;  %v2794_v24 = vshrl.u32 %v11345_v6, 5 }
 0x1c4   : > { %v5361_v0 = vsel %vm4977_vm2, %v5169_v31, %v3819_v1  ;;  %vm4886_vm10 = vmand %vm4694_vm3, %vm4502_vm0  ;;  %v3874_v48 = vsub.s32 %v2294_v56, %v3873_v25  ;;  %v11359_v37 = vmul.u32.u64.low 2863311531, %v2292_v45  ;;  %v11360_v54 = vmul.u32.u64.high 2863311531, %v2292_v45, %v11359_v37  ;;  %v11380_v25 = vpop.f32.mrb[58].mxu1 }
 0x1c5   : > { %vm5553_vm9 = vcmp.lt.s32.totalorder %v5361_v0, 32  ;;  %v5270_v52 = vsel %vm4886_vm10, %v5078_v30, %v2818_v36  ;;  %v2199_v14 = vadd.s32 344, %v13591_v10  ;;  %v2795_v28 = vmul.u32 48, %v2794_v24  ;;  %vm13651_vm15 = vmmov %vm13647_vm1 }
 0x1c6   : > { %v6129_v43 = vsel %vm5553_vm9, %v2096_v12, 0.0  ;;  %vm5462_vm11 = vcmp.lt.s32.totalorder %v5270_v52, 32  ;;  %vm4598_vm12 = vcmp.ne.s32.totalorder %v3874_v48, 0  ;;  %vm4790_vm13 = vcmp.lt.s32.totalorder %v3874_v48, 0 }
 0x1c7   : > { %v7749_v26 = vpack.c.bf16 %v6129_v43, %v6129_v43  ;;  %v6038_v32 = vsel %vm5462_vm11, %v2005_v11, 0.0  ;;  %vm4982_vm8 = vmand %vm4790_vm13, %vm4598_vm12  ;;  %v5174_v56 = vadd.s32 48, %v3874_v48  ;;  %v3850_v63 = vshrl.u32 %v11360_v54, 5 }
 0x1c8   : > { %v7658_v29 = vpack.c.bf16 %v6038_v32, %v6038_v32  ;;  %v11367_v59 = vmul.u32.u64.low 2863311531, %v2199_v14  ;;  %v11368_v1 = vmul.u32.u64.high 2863311531, %v2199_v14, %v11367_v59  ;;  %v2003_v62 = vmax.f32 %v11337_v61, 0.0  ;;  %vm13652_vm11 = vmmov %vm13647_vm1 }
 0x1c9   : > { %7098 = vst.msk [vmem:[%s10175_s27 + $0x234] sm:$0xf] %vm13647_vm1, %v7749_v26  ;;  %v5366_v12 = vsel %vm4982_vm8, %v5174_v56, %v3874_v48  ;;  %v2796_v36 = vsub.s32 %v2196_v18, %v2795_v28  ;;  %v2295_v38 = vadd.s32 1112, %v13591_v10  ;;  %v2099_v11 = vmax.f32 %v11349_v7, 0.0  ;;  %v11387_v7 = vld [vmem:[%s12936_s2] ss:$0 sm:$0xff] }
 0x1ca   : > { %7007 = vst.msk [vmem:[%s10175_s27 + $0xc8] sm:$0xf] %vm13650_vm5, %v7658_v29  ;;  %vm5558_vm6 = vcmp.lt.s32.totalorder %v5366_v12, 32  ;;  %v3851_v6 = vmul.u32 48, %v3850_v63  ;;  %v11378_v31 = vadd.s32 328, %v13591_v10  ;;  %v2006_v48 = vmax.f32 %v11357_v33, 0.0 }
 0x1cb   : > { %v6134_v30 = vsel %vm5558_vm6, %v2101_v4, 0.0  ;;  %vm4500_vm7 = vcmp.ne.s32.totalorder %v2796_v36, 0  ;;  %vm4692_vm14 = vcmp.lt.s32.totalorder %v2796_v36, 0  ;;  %v5076_v0 = vadd.s32 48, %v2796_v36  ;;  %v11407_v63 = vpop.f32.mrb[59].mxu0 }
 0x1cc   : > { %v7754_v61 = vpack.c.bf16 %v6134_v30, %v6134_v30  ;;  %vm4884_vm4 = vmand %vm4692_vm14, %vm4500_vm7  ;;  %v3852_v18 = vsub.s32 %v2292_v45, %v3851_v6  ;;  %v2827_v37 = vshrl.u32 %v11368_v1, 5  ;;  %v11391_v52 = vadd.f32 %v11387_v7, %v10936_v15  ;;  %v11420_v30 = vpop.f32.mrb[59].mxu1 }
 0x1cd   : > { %v5268_v54 = vsel %vm4884_vm4, %v5076_v0, %v2796_v36  ;;  %v11393_v4 = vmul.u32.u64.low 2863311531, %v2295_v38  ;;  %v11394_v24 = vmul.u32.u64.high 2863311531, %v2295_v38, %v11393_v4  ;;  %v11404_v28 = vadd.f32 %v11387_v7, %v10938_v50  ;;  %vm13653_vm4 = vmmov %vm13647_vm1 }
 0x1ce   : > { %7103 = vst.msk [vmem:[%s10175_s27 + $0x248] sm:$0xf] %vm13651_vm15, %v7754_v61  ;;  %vm5460_vm2 = vcmp.lt.s32.totalorder %v5268_v54, 32  ;;  %vm4596_vm0 = vcmp.ne.s32.totalorder %v3852_v18, 0  ;;  %vm4788_vm3 = vcmp.lt.s32.totalorder %v3852_v18, 0  ;;  %v5172_v45 = vadd.s32 48, %v3852_v18 }
 0x1cf   : > { %v6036_v33 = vsel %vm5460_vm2, %v2003_v62, 0.0  ;;  %vm4980_vm10 = vmand %vm4788_vm3, %vm4596_vm0  ;;  %v2828_v43 = vmul.u32 48, %v2827_v37  ;;  %v11399_v26 = vmul.u32.u64.low 2863311531, %v11378_v31  ;;  %v11400_v32 = vmul.u32.u64.high 2863311531, %v11378_v31, %v11399_v26 }
 0x1d0   : > { %v7656_v56 = vpack.c.bf16 %v6036_v33, %v6036_v33  ;;  %v5364_v15 = vsel %vm4980_vm10, %v5172_v45, %v3852_v18  ;;  %v2293_v29 = vadd.s32 1096, %v13591_v10  ;;  %v2102_v1 = vmax.f32 %v11391_v52, 0.0 }
 0x1d1   : > { %vm5556_vm9 = vcmp.lt.s32.totalorder %v5364_v15, 32  ;;  %v2829_v59 = vsub.s32 %v2199_v14, %v2828_v43  ;;  %v3883_v12 = vshrl.u32 %v11394_v24, 5  ;;  %v11415_v36 = vadd.f32 %v11387_v7, %v10940_v55 }
 0x1d2   : > { %7005 = vst.msk [vmem:[%s10175_s27 + $0xc0] sm:$0xf] %vm13652_vm11, %v7656_v56  ;;  %v6132_v62 = vsel %vm5556_vm9, %v2099_v11, 0.0  ;;  %v11417_v50 = vmul.u32.u64.low 2863311531, %v2293_v29  ;;  %v11418_v6 = vmul.u32.u64.high 2863311531, %v2293_v29, %v11417_v50  ;;  %v2004_v18 = vmax.f32 %v11404_v28, 0.0 }
 0x1d3   : > { %v7752_v0 = vpack.c.bf16 %v6132_v62, %v6132_v62  ;;  %vm4503_vm12 = vcmp.ne.s32.totalorder %v2829_v59, 0  ;;  %vm4695_vm13 = vcmp.lt.s32.totalorder %v2829_v59, 0  ;;  %v5079_v14 = vadd.s32 48, %v2829_v59  ;;  %v11453_v50 = vpop.f32.mrb[60].mxu0 }
 0x1d4   : > { %vm4887_vm8 = vmand %vm4695_vm13, %vm4503_vm12  ;;  %v3884_v61 = vmul.u32 48, %v3883_v12  ;;  %v2805_v37 = vshrl.u32 %v11400_v32, 5  ;;  %v2202_v11 = vadd.s32 368, %v13591_v10  ;;  %v11429_v54 = vadd.f32 %v11387_v7, %v10954_v16 }
 0x1d5   : > { %7101 = vst.msk [vmem:[%s10175_s27 + $0x240] sm:$0xf] %vm13647_vm1, %v7752_v0  ;;  %v5271_v55 = vsel %vm4887_vm8, %v5079_v14, %v2829_v59  ;;  %v11433_v52 = vadd.f32 %v11387_v7, %v10962_v49  ;;  %v2298_v4 = vadd.s32 1136, %v13591_v10  ;;  %v3861_v33 = vshrl.u32 %v11418_v6, 5  ;;  %v11455_v6 = vpop.f32.mrb[60].mxu1  ;;  %vm13654_vm12 = vmmov %vm13647_vm1 }
 0x1d6   : > { %vm5463_vm5 = vcmp.lt.s32.totalorder %v5271_v55, 32  ;;  %v3885_v24 = vsub.s32 %v2295_v38, %v3884_v61  ;;  %v2806_v45 = vmul.u32 48, %v2805_v37  ;;  %v2100_v26 = vmax.f32 %v11415_v36, 0.0  ;;  %v11459_v55 = vpop.f32.mrb[61].mxu0 }
 0x1d7   : > { %v6039_v43 = vsel %vm5463_vm5, %v2006_v48, 0.0  ;;  %v11438_v32 = vmul.u32.u64.low 2863311531, %v2202_v11  ;;  %v11439_v56 = vmul.u32.u64.high 2863311531, %v2202_v11, %v11438_v32  ;;  %v3862_v28 = vmul.u32 48, %v3861_v33 }
 0x1d8   : > { %v7659_v16 = vpack.c.bf16 %v6039_v43, %v6039_v43  ;;  %vm4599_vm6 = vcmp.ne.s32.totalorder %v3885_v24, 0  ;;  %vm4791_vm7 = vcmp.lt.s32.totalorder %v3885_v24, 0  ;;  %v5175_v15 = vadd.s32 48, %v3885_v24 }
 0x1d9   : > { %vm4983_vm14 = vmand %vm4791_vm7, %vm4599_vm6  ;;  %v2807_v49 = vsub.s32 %v11378_v31, %v2806_v45  ;;  %v11442_v59 = vmul.u32.u64.low 2863311531, %v2298_v4  ;;  %v11443_v12 = vmul.u32.u64.high 2863311531, %v2298_v4, %v11442_v59  ;;  %v2009_v48 = vmax.f32 %v11429_v54, 0.0 }
 0x1da   : > { %7008 = vst.msk [vmem:[%s10175_s27 + $0xcc] sm:$0xf] %vm13653_vm4, %v7659_v16  ;;  %v5367_v38 = vsel %vm4983_vm14, %v5175_v15, %v3885_v24  ;;  %v2105_v62 = vmax.f32 %v11433_v52, 0.0  ;;  %v11451_v36 = vadd.f32 %v11387_v7, %v10964_v58  ;;  %v3863_v14 = vsub.s32 %v2293_v29, %v3862_v28 }
 0x1db   : > { %vm5559_vm15 = vcmp.lt.s32.totalorder %v5367_v38, 32  ;;  %vm4501_vm2 = vcmp.ne.s32.totalorder %v2807_v49, 0  ;;  %vm4693_vm0 = vcmp.lt.s32.totalorder %v2807_v49, 0  ;;  %v5077_v31 = vadd.s32 48, %v2807_v49 }
 0x1dc   : > { %v6135_v0 = vsel %vm5559_vm15, %v2102_v1, 0.0  ;;  %vm4885_vm3 = vmand %vm4693_vm0, %vm4501_vm2  ;;  %v2860_v61 = vshrl.u32 %v11439_v56, 5  ;;  %v2200_v37 = vadd.s32 352, %v13591_v10  ;;  %v3916_v45 = vshrl.u32 %v11443_v12, 5 }
 0x1dd   : > { %v7755_v58 = vpack.c.bf16 %v6135_v0, %v6135_v0  ;;  %v5269_v24 = vsel %vm4885_vm3, %v5077_v31, %v2807_v49  ;;  %v2296_v33 = vadd.s32 1120, %v13591_v10  ;;  %vm4597_vm9 = vcmp.ne.s32.totalorder %v3863_v14, 0  ;;  %v11473_v31 = vpop.f32.mrb[61].mxu1  ;;  %vm13655_vm15 = vmmov %vm13647_vm1 }
 0x1de   : > { %vm5461_vm10 = vcmp.lt.s32.totalorder %v5269_v24, 32  ;;  %vm4789_vm11 = vcmp.lt.s32.totalorder %v3863_v14, 0  ;;  %v5173_v43 = vadd.s32 48, %v3863_v14  ;;  %v2861_v1 = vmul.u32 48, %v2860_v61  ;;  %v11482_v24 = vpop.f32.mrb[62].mxu0 }
 0x1df   : > { %7104 = vst.msk [vmem:[%s10175_s27 + $0x24c] sm:$0xf] %vm13654_vm12, %v7755_v58  ;;  %v6037_v29 = vsel %vm5461_vm10, %v2004_v18, 0.0  ;;  %vm4981_vm13 = vmand %vm4789_vm11, %vm4597_vm9  ;;  %v3917_v32 = vmul.u32 48, %v3916_v45  ;;  %v2007_v56 = vmax.f32 %v11451_v36, 0.0  ;;  %v11471_v38 = vadd.f32 %v11387_v7, %v10977_v41 }
 0x1e0   : > { %v7657_v16 = vpack.c.bf16 %v6037_v29, %v6037_v29  ;;  %v5365_v15 = vsel %vm4981_vm13, %v5173_v43, %v3863_v14  ;;  %v11466_v49 = vmul.u32.u64.low 2863311531, %v2200_v37  ;;  %v11467_v28 = vmul.u32.u64.high 2863311531, %v2200_v37, %v11466_v49  ;;  %vm13656_vm10 = vmmov %vm13647_vm1 }
 0x1e1   : > { %vm5557_vm8 = vcmp.lt.s32.totalorder %v5365_v15, 32  ;;  %v2862_v59 = vsub.s32 %v2202_v11, %v2861_v1  ;;  %v3918_v12 = vsub.s32 %v2298_v4, %v3917_v32  ;;  %v2203_v14 = vadd.s32 376, %v13591_v10  ;;  %vm13657_vm12 = vmmov %vm13647_vm1 }
 0x1e2   : > { %7006 = vst.msk [vmem:[%s10175_s27 + $0xc4] sm:$0xf] %vm13647_vm1, %v7657_v16  ;;  %v6133_v18 = vsel %vm5557_vm8, %v2100_v26, 0.0  ;;  %v11477_v0 = vmul.u32.u64.low 2863311531, %v2296_v33  ;;  %v11478_v61 = vmul.u32.u64.high 2863311531, %v2296_v33, %v11477_v0  ;;  %v2838_v4 = vshrl.u32 %v11467_v28, 5 }
 0x1e3   : > { %v7753_v58 = vpack.c.bf16 %v6133_v18, %v6133_v18  ;;  %vm4506_vm5 = vcmp.ne.s32.totalorder %v2862_v59, 0  ;;  %vm4698_vm6 = vcmp.lt.s32.totalorder %v2862_v59, 0  ;;  %v5082_v11 = vadd.s32 48, %v2862_v59 }
 0x1e4   : > { %vm4890_vm7 = vmand %vm4698_vm6, %vm4506_vm5  ;;  %vm4602_vm14 = vcmp.ne.s32.totalorder %v3918_v12, 0  ;;  %vm4794_vm4 = vcmp.lt.s32.totalorder %v3918_v12, 0  ;;  %v5178_v41 = vadd.s32 48, %v3918_v12  ;;  %v2103_v45 = vmax.f32 %v11471_v38, 0.0 }
 0x1e5   : > { %7102 = vst.msk [vmem:[%s10175_s27 + $0x244] sm:$0xf] %vm13655_vm15, %v7753_v58  ;;  %v5274_v26 = vsel %vm4890_vm7, %v5082_v11, %v2862_v59  ;;  %vm4986_vm2 = vmand %vm4794_vm4, %vm4602_vm14  ;;  %v11487_v43 = vmul.u32.u64.low 2863311531, %v2203_v14  ;;  %v11488_v29 = vmul.u32.u64.high 2863311531, %v2203_v14, %v11487_v43  ;;  %v2839_v32 = vmul.u32 48, %v2838_v4  ;;  %v11496_v59 = vpop.f32.mrb[62].mxu1 }
 0x1e6   : > { %vm5466_vm0 = vcmp.lt.s32.totalorder %v5274_v26, 32  ;;  %v5370_v1 = vsel %vm4986_vm2, %v5178_v41, %v3918_v12  ;;  %v3894_v16 = vshrl.u32 %v11478_v61, 5  ;;  %v1384_v49 = vadd.f32 %v11387_v7, %v10987_v47  ;;  %v11515_v43 = vpop.f32.mrb[63].mxu0  ;;  %vm13658_vm2 = vmmov %vm13656_vm10 }
 0x1e7   : > { %v6042_v15 = vsel %vm5466_vm0, %v2009_v48, 0.0  ;;  %vm5562_vm3 = vcmp.lt.s32.totalorder %v5370_v1, 32  ;;  %v2299_v28 = vadd.s32 1144, %v13591_v10  ;;  %v2840_v12 = vsub.s32 %v2200_v37, %v2839_v32  ;;  %vm13659_vm0 = vmmov %vm13658_vm2 }
 0x1e8   : > { %v7662_v38 = vpack.c.bf16 %v6042_v15, %v6042_v15  ;;  %v6138_v18 = vsel %vm5562_vm3, %v2105_v62, 0.0  ;;  %v3895_v0 = vmul.u32 48, %v3894_v16  ;;  %v2871_v61 = vshrl.u32 %v11488_v29, 5 }
 0x1e9   : > { %v7758_v58 = vpack.c.bf16 %v6138_v18, %v6138_v18  ;;  %v11501_v54 = vmul.u32.u64.low 2863311531, %v2299_v28  ;;  %v11502_v48 = vmul.u32.u64.high 2863311531, %v2299_v28, %v11501_v54  ;;  %vm4504_vm9 = vcmp.ne.s32.totalorder %v2840_v12, 0 }
 0x1ea   : > { %7011 = vst.msk [vmem:[%s10175_s27 + $0xd8] sm:$0xf] %vm13656_vm10, %v7662_v38  ;;  %vm4696_vm11 = vcmp.lt.s32.totalorder %v2840_v12, 0  ;;  %v5080_v47 = vadd.s32 48, %v2840_v12  ;;  %v3896_v11 = vsub.s32 %v2296_v33, %v3895_v0  ;;  %v2872_v41 = vmul.u32 48, %v2871_v61  ;;  %v11527_v0 = vpop.f32.mrb[63].mxu1 }
 0x1eb   : > { %7107 = vst.msk [vmem:[%s10175_s27 + $0x258] sm:$0xf] %vm13657_vm12, %v7758_v58  ;;  %vm4888_vm13 = vmand %vm4696_vm11, %vm4504_vm9  ;;  %v1768_v52 = vadd.f32 %v11387_v7, %v11002_v21  ;;  %v11512_v62 = vadd.f32 %v11387_v7, %v11029_v23  ;;  %v2201_v37 = vadd.s32 360, %v13591_v10  ;;  %v3927_v29 = vshrl.u32 %v11502_v48, 5 }
 0x1ec   : > { %v5272_v4 = vsel %vm4888_vm13, %v5080_v47, %v2840_v12  ;;  %vm4600_vm8 = vcmp.ne.s32.totalorder %v3896_v11, 0  ;;  %vm4792_vm1 = vcmp.lt.s32.totalorder %v3896_v11, 0  ;;  %v5176_v26 = vadd.s32 48, %v3896_v11  ;;  %vm13660_vm12 = vmmov %vm13659_vm0 }
 0x1ed   : > { %vm5464_vm5 = vcmp.lt.s32.totalorder %v5272_v4, 32  ;;  %vm4984_vm6 = vmand %vm4792_vm1, %vm4600_vm8  ;;  %v2873_v33 = vsub.s32 %v2203_v14, %v2872_v41  ;;  %v11520_v21 = vadd.f32 %v11387_v7, %v11042_v57  ;;  %v2010_v38 = vmax.f32 %v1384_v49, 0.0 }
 0x1ee   : > { %v6040_v23 = vsel %vm5464_vm5, %v2007_v56, 0.0  ;;  %v5368_v1 = vsel %vm4984_vm6, %v5176_v26, %v3896_v11  ;;  %v11524_v32 = vmul.u32.u64.low 2863311531, %v2201_v37  ;;  %v11525_v16 = vmul.u32.u64.high 2863311531, %v2201_v37, %v11524_v32  ;;  %vm13661_vm6 = vmmov %vm13659_vm0 }
 0x1ef   : > { %v7660_v15 = vpack.c.bf16 %v6040_v23, %v6040_v23  ;;  %vm5560_vm7 = vcmp.lt.s32.totalorder %v5368_v1, 32  ;;  %vm4507_vm14 = vcmp.ne.s32.totalorder %v2873_v33, 0  ;;  %vm4699_vm4 = vcmp.lt.s32.totalorder %v2873_v33, 0 }
 0x1f0   : > { %v6136_v14 = vsel %vm5560_vm7, %v2103_v45, 0.0  ;;  %vm4891_vm15 = vmand %vm4699_vm4, %vm4507_vm14  ;;  %v5083_v18 = vadd.s32 48, %v2873_v33  ;;  %v3928_v12 = vmul.u32 48, %v3927_v29  ;;  %v2106_v36 = vmax.f32 %v1768_v52, 0.0 }
 0x1f1   : > { %7009 = vst.msk [vmem:[%s10175_s27 + $0xd0] sm:$0xf] %vm13658_vm2, %v7660_v15  ;;  %v7756_v57 = vpack.c.bf16 %v6136_v14, %v6136_v14  ;;  %v2297_v56 = vadd.s32 1128, %v13591_v10  ;;  %v2206_v58 = vadd.s32 400, %v13591_v10  ;;  %v2008_v48 = vmax.f32 %v11512_v62, 0.0  ;;  %vm13662_vm2 = vmmov %vm13659_vm0 }
 0x1f2   : > { %v5275_v61 = vsel %vm4891_vm15, %v5083_v18, %v2873_v33  ;;  %v3929_v54 = vsub.s32 %v2299_v28, %v3928_v12  ;;  %v2849_v45 = vshrl.u32 %v11525_v16, 5  ;;  %v2104_v49 = vmax.f32 %v11520_v21, 0.0 }
 0x1f3   : > { %7105 = vst.msk [vmem:[%s10175_s27 + $0x250] sm:$0xf] %vm13659_vm0, %v7756_v57  ;;  %vm5467_vm3 = vcmp.lt.s32.totalorder %v5275_v61, 32  ;;  %v11538_v47 = vmul.u32.u64.low 2863311531, %v2297_v56  ;;  %v11539_v11 = vmul.u32.u64.high 2863311531, %v2297_v56, %v11538_v47  ;;  %v11546_v29 = vadd.f32 %v11387_v7, %v11084_v9 }
 0x1f4   : > { %v6043_v41 = vsel %vm5467_vm3, %v2010_v38, 0.0  ;;  %vm4603_vm10 = vcmp.ne.s32.totalorder %v3929_v54, 0  ;;  %vm4795_vm9 = vcmp.lt.s32.totalorder %v3929_v54, 0  ;;  %v5179_v52 = vadd.s32 48, %v3929_v54 }
 0x1f5   : > { %v7663_v4 = vpack.c.bf16 %v6043_v41, %v6043_v41  ;;  %vm4987_vm11 = vmand %vm4795_vm9, %vm4603_vm10  ;;  %v2850_v28 = vmul.u32 48, %v2849_v45  ;;  %v11541_v26 = vmul.u32.u64.low 2863311531, %v2206_v58  ;;  %v11542_v62 = vmul.u32.u64.high 2863311531, %v2206_v58, %v11541_v26  ;;  %v11573_v45 = vpop.f32.mrb[64].mxu1 }
 0x1f6   : > { %v5371_v33 = vsel %vm4987_vm11, %v5179_v52, %v3929_v54  ;;  %v11550_v23 = vadd.f32 %v11387_v7, %v11086_v44  ;;  %v2302_v1 = vadd.s32 1168, %v13591_v10  ;;  %v3905_v16 = vshrl.u32 %v11539_v11, 5 }
 0x1f7   : > { %7012 = vst.msk [vmem:[%s10175_s27 + $0xdc] sm:$0xf] %vm13660_vm12, %v7663_v4  ;;  %vm5563_vm13 = vcmp.lt.s32.totalorder %v5371_v33, 32  ;;  %v2851_v32 = vsub.s32 %v2201_v37, %v2850_v28  ;;  %v11557_v15 = vadd.s32 384, %v13591_v10  ;;  %v11564_v44 = vadd.f32 %v11387_v7, %v11096_v5 }
 0x1f8   : > { %v6139_v14 = vsel %vm5563_vm13, %v2106_v36, 0.0  ;;  %v11559_v38 = vmul.u32.u64.low 2863311531, %v2302_v1  ;;  %v11560_v9 = vmul.u32.u64.high 2863311531, %v2302_v1, %v11559_v38  ;;  %v3906_v37 = vmul.u32 48, %v3905_v16  ;;  %v11571_v36 = vpop.f32.mrb[64].mxu0 }
 0x1f9   : > { %v7759_v18 = vpack.c.bf16 %v6139_v14, %v6139_v14  ;;  %vm4505_vm8 = vcmp.ne.s32.totalorder %v2851_v32, 0  ;;  %vm4697_vm1 = vcmp.lt.s32.totalorder %v2851_v32, 0  ;;  %v5081_v12 = vadd.s32 48, %v2851_v32  ;;  %v11581_v26 = vpop.f32.mrb[65].mxu0 }
 0x1fa   : > { %vm4889_vm5 = vmand %vm4697_vm1, %vm4505_vm8  ;;  %v2904_v57 = vshrl.u32 %v11542_v62, 5  ;;  %v11568_v61 = vmul.u32.u64.low 2863311531, %v11557_v15  ;;  %v11569_v54 = vmul.u32.u64.high 2863311531, %v11557_v15, %v11568_v61  ;;  %v2013_v47 = vmax.f32 %v11546_v29, 0.0 }
 0x1fb   : > { %7108 = vst.msk [vmem:[%s10175_s27 + $0x25c] sm:$0xf] %vm13661_vm6, %v7759_v18  ;;  %v5273_v5 = vsel %vm4889_vm5, %v5081_v12, %v2851_v32  ;;  %v2109_v11 = vmax.f32 %v11550_v23, 0.0  ;;  %v2300_v41 = vadd.s32 1152, %v13591_v10  ;;  %v3907_v52 = vsub.s32 %v2297_v56, %v3906_v37  ;;  %v11587_v23 = vpop.f32.mrb[65].mxu1  ;;  %vm13663_vm8 = vmmov %vm13662_vm2 }
 0x1fc   : > { %vm5465_vm7 = vcmp.lt.s32.totalorder %v5273_v5, 32  ;;  %v2905_v4 = vmul.u32 48, %v2904_v57  ;;  %v3960_v28 = vshrl.u32 %v11560_v9, 5  ;;  %v2011_v33 = vmax.f32 %v11564_v44, 0.0 }
 0x1fd   : > { %v6041_v62 = vsel %vm5465_vm7, %v2008_v48, 0.0  ;;  %v11584_v16 = vmul.u32.u64.low 2863311531, %v2300_v41  ;;  %v11585_v14 = vmul.u32.u64.high 2863311531, %v2300_v41, %v11584_v16  ;;  %vm4601_vm14 = vcmp.ne.s32.totalorder %v3907_v52, 0 }
 0x1fe   : > { %v7661_v32 = vpack.c.bf16 %v6041_v62, %v6041_v62  ;;  %vm4793_vm4 = vcmp.lt.s32.totalorder %v3907_v52, 0  ;;  %v5177_v29 = vadd.s32 48, %v3907_v52  ;;  %v2906_v56 = vsub.s32 %v2206_v58, %v2905_v4 }
 0x1ff   : > { %vm4985_vm15 = vmand %vm4793_vm4, %vm4601_vm14  ;;  %v3961_v38 = vmul.u32 48, %v3960_v28  ;;  %v2882_v18 = vshrl.u32 %v11569_v54, 5  ;;  %v11592_v9 = vadd.f32 %v11387_v7, %v11104_v19  ;;  %v11598_v12 = vadd.f32 %v11387_v7, %v11122_v35  ;;  %v11607_v35 = vpop.f32.mrb[66].mxu0 }
 0x200   : > { %7010 = vst.msk [vmem:[%s10175_s27 + $0xd4] sm:$0xf] %vm13662_vm2, %v7661_v32  ;;  %v5369_v48 = vsel %vm4985_vm15, %v5177_v29, %v3907_v52  ;;  %v2207_v37 = vadd.s32 408, %v13591_v10  ;;  %v11602_v57 = vadd.s32 1176, %v13591_v10  ;;  %vm4510_vm3 = vcmp.ne.s32.totalorder %v2906_v56, 0  ;;  %vm13664_vm14 = vmmov %vm13662_vm2 }
 0x201   : > { %vm5561_vm0 = vcmp.lt.s32.totalorder %v5369_v48, 32  ;;  %vm4702_vm10 = vcmp.lt.s32.totalorder %v2906_v56, 0  ;;  %v5086_v58 = vadd.s32 48, %v2906_v56  ;;  %v3962_v61 = vsub.s32 %v2302_v1, %v3961_v38 }
 0x202   : > { %v6137_v19 = vsel %vm5561_vm0, %v2104_v49, 0.0  ;;  %vm4894_vm9 = vmand %vm4702_vm10, %vm4510_vm3  ;;  %v2883_v54 = vmul.u32 48, %v2882_v18  ;;  %v3938_v5 = vshrl.u32 %v11585_v14, 5  ;;  %v11617_v14 = vadd.f32 %v11387_v7, %v11136_v53  ;;  %v11623_v18 = vpop.f32.mrb[66].mxu1 }
 0x203   : > { %v7757_v52 = vpack.c.bf16 %v6137_v19, %v6137_v19  ;;  %v5278_v4 = vsel %vm4894_vm9, %v5086_v58, %v2906_v56  ;;  %v11609_v28 = vmul.u32.u64.low 2863311531, %v2207_v37  ;;  %v11610_v62 = vmul.u32.u64.high 2863311531, %v2207_v37, %v11609_v28  ;;  %vm13665_vm3 = vmmov %vm13663_vm8 }
 0x204   : > { %vm5470_vm11 = vcmp.lt.s32.totalorder %v5278_v4, 32  ;;  %vm4606_vm12 = vcmp.ne.s32.totalorder %v3962_v61, 0  ;;  %vm4798_vm13 = vcmp.lt.s32.totalorder %v3962_v61, 0  ;;  %v5182_v16 = vadd.s32 48, %v3962_v61  ;;  %v11631_v4 = vpop.f32.mrb[67].mxu0 }
 0x205   : > { %7106 = vst.msk [vmem:[%s10175_s27 + $0x254] sm:$0xf] %vm13663_vm8, %v7757_v52  ;;  %v6046_v21 = vsel %vm5470_vm11, %v2013_v47, 0.0  ;;  %vm4990_vm1 = vmand %vm4798_vm13, %vm4606_vm12  ;;  %v2884_v49 = vsub.s32 %v11557_v15, %v2883_v54  ;;  %v3939_v1 = vmul.u32 48, %v3938_v5  ;;  %v2107_v53 = vmax.f32 %v11592_v9, 0.0 }
 0x206   : > { %v7666_v32 = vpack.c.bf16 %v6046_v21, %v6046_v21  ;;  %v5374_v29 = vsel %vm4990_vm1, %v5182_v16, %v3962_v61  ;;  %v11620_v56 = vmul.u32.u64.low 2863311531, %v11602_v57  ;;  %v11621_v38 = vmul.u32.u64.high 2863311531, %v11602_v57, %v11620_v56  ;;  %vm13666_vm11 = vmmov %vm13665_vm3 }
 0x207   : > { %vm5566_vm5 = vcmp.lt.s32.totalorder %v5374_v29, 32  ;;  %vm4508_vm6 = vcmp.ne.s32.totalorder %v2884_v49, 0  ;;  %vm4700_vm7 = vcmp.lt.s32.totalorder %v2884_v49, 0  ;;  %v5084_v47 = vadd.s32 48, %v2884_v49  ;;  %v11654_v56 = vpop.f32.mrb[67].mxu1  ;;  %vm13667_vm1 = vmmov %vm13665_vm3 }
 0x208   : > { %7015 = vst.msk [vmem:[%s10175_s27 + $0xe8] sm:$0xf] %vm13664_vm14, %v7666_v32  ;;  %v6142_v15 = vsel %vm5566_vm5, %v2109_v11, 0.0  ;;  %vm4892_vm4 = vmand %vm4700_vm7, %vm4508_vm6  ;;  %v3940_v48 = vsub.s32 %v2300_v41, %v3939_v1  ;;  %v2915_v58 = vshrl.u32 %v11610_v62, 5  ;;  %v2014_v54 = vmax.f32 %v11598_v12, 0.0 }
 0x209   : > { %v7762_v19 = vpack.c.bf16 %v6142_v15, %v6142_v15  ;;  %v5276_v61 = vsel %vm4892_vm4, %v5084_v47, %v2884_v49  ;;  %v2205_v5 = vadd.s32 392, %v13591_v10  ;;  %v2110_v9 = vmax.f32 %v11617_v14, 0.0 }
 0x20a   : > { %vm5468_vm15 = vcmp.lt.s32.totalorder %v5276_v61, 32  ;;  %vm4604_vm2 = vcmp.ne.s32.totalorder %v3940_v48, 0  ;;  %vm4796_vm0 = vcmp.lt.s32.totalorder %v3940_v48, 0  ;;  %v5180_v52 = vadd.s32 48, %v3940_v48 }
 0x20b   : > { %7111 = vst.msk [vmem:[%s10175_s27 + $0x268] sm:$0xf] %vm13665_vm3, %v7762_v19  ;;  %v6044_v11 = vsel %vm5468_vm15, %v2011_v33, 0.0  ;;  %vm4988_vm10 = vmand %vm4796_vm0, %vm4604_vm2  ;;  %v2916_v41 = vmul.u32 48, %v2915_v58  ;;  %v3971_v12 = vshrl.u32 %v11621_v38, 5  ;;  %v11644_v32 = vadd.f32 %v11387_v7, %v11148_v34 }
 0x20c   : > { %v7664_v28 = vpack.c.bf16 %v6044_v11, %v6044_v11  ;;  %v5372_v62 = vsel %vm4988_vm10, %v5180_v52, %v3940_v48  ;;  %v11639_v16 = vmul.u32.u64.low 2863311531, %v2205_v5  ;;  %v11640_v21 = vmul.u32.u64.high 2863311531, %v2205_v5, %v11639_v16  ;;  %vm13668_vm15 = vmmov %vm13667_vm1 }
 0x20d   : > { %vm5564_vm9 = vcmp.lt.s32.totalorder %v5372_v62, 32  ;;  %v2917_v49 = vsub.s32 %v2207_v37, %v2916_v41  ;;  %v3972_v1 = vmul.u32 48, %v3971_v12  ;;  %v11650_v33 = vadd.f32 %v11387_v7, %v11168_v22  ;;  %vm13669_vm10 = vmmov %vm13667_vm1 }
 0x20e   : > { %7013 = vst.msk [vmem:[%s10175_s27 + $0xe0] sm:$0xf] %vm13666_vm11, %v7664_v28  ;;  %v6140_v44 = vsel %vm5564_vm9, %v2107_v53, 0.0  ;;  %v2301_v14 = vadd.s32 1160, %v13591_v10  ;;  %v2210_v29 = vadd.s32 432, %v13591_v10  ;;  %v2893_v47 = vshrl.u32 %v11640_v21, 5 }
 0x20f   : > { %v7760_v37 = vpack.c.bf16 %v6140_v44, %v6140_v44  ;;  %vm4511_vm12 = vcmp.ne.s32.totalorder %v2917_v49, 0  ;;  %vm4703_vm13 = vcmp.lt.s32.totalorder %v2917_v49, 0  ;;  %v5087_v38 = vadd.s32 48, %v2917_v49 }
 0x210   : > { %vm4895_vm8 = vmand %vm4703_vm13, %vm4511_vm12  ;;  %v3973_v34 = vsub.s32 %v11602_v57, %v3972_v1  ;;  %v11658_v15 = vmul.u32.u64.low 2863311531, %v2301_v14  ;;  %v11659_v53 = vmul.u32.u64.high 2863311531, %v2301_v14, %v11658_v15  ;;  %v2012_v48 = vmax.f32 %v11644_v32, 0.0 }
 0x211   : > { %7109 = vst.msk [vmem:[%s10175_s27 + $0x260] sm:$0xf] %vm13667_vm1, %v7760_v37  ;;  %v5279_v22 = vsel %vm4895_vm8, %v5087_v38, %v2917_v49  ;;  %v11664_v58 = vmul.u32.u64.low 2863311531, %v2210_v29  ;;  %v11665_v19 = vmul.u32.u64.high 2863311531, %v2210_v29, %v11664_v58  ;;  %v2894_v57 = vmul.u32 48, %v2893_v47  ;;  %v11687_v37 = vpop.f32.mrb[68].mxu0 }
 0x212   : > { %vm5471_vm5 = vcmp.lt.s32.totalorder %v5279_v22, 32  ;;  %vm4607_vm6 = vcmp.ne.s32.totalorder %v3973_v34, 0  ;;  %vm4799_vm7 = vcmp.lt.s32.totalorder %v3973_v34, 0  ;;  %v5183_v61 = vadd.s32 48, %v3973_v34 }
 0x213   : > { %v6047_v52 = vsel %vm5471_vm5, %v2014_v54, 0.0  ;;  %vm4991_vm14 = vmand %vm4799_vm7, %vm4607_vm6  ;;  %v11669_v11 = vadd.f32 %v11387_v7, %v11193_v8  ;;  %v2306_v41 = vadd.s32 1200, %v13591_v10  ;;  %v3949_v62 = vshrl.u32 %v11659_v53, 5 }
 0x214   : > { %v7667_v12 = vpack.c.bf16 %v6047_v52, %v6047_v52  ;;  %v5375_v28 = vsel %vm4991_vm14, %v5183_v61, %v3973_v34  ;;  %v11675_v16 = vadd.f32 %v11387_v7, %v11195_v27  ;;  %v2895_v21 = vsub.s32 %v2205_v5, %v2894_v57  ;;  %v11689_v27 = vpop.f32.mrb[68].mxu1  ;;  %vm13670_vm6 = vmmov %vm13669_vm10 }
 0x215   : > { %vm5567_vm4 = vcmp.lt.s32.totalorder %v5375_v28, 32  ;;  %v2948_v54 = vshrl.u32 %v11665_v19, 5  ;;  %v11680_v49 = vadd.f32 %v11387_v7, %v11215_v51  ;;  %v3950_v1 = vmul.u32 48, %v3949_v62 }
 0x216   : > { %7016 = vst.msk [vmem:[%s10175_s27 + $0xec] sm:$0xf] %vm13668_vm15, %v7667_v12  ;;  %v6143_v8 = vsel %vm5567_vm4, %v2110_v9, 0.0  ;;  %v11684_v32 = vmul.u32.u64.low 2863311531, %v2306_v41  ;;  %v11685_v44 = vmul.u32.u64.high 2863311531, %v2306_v41, %v11684_v32  ;;  %vm4509_vm2 = vcmp.ne.s32.totalorder %v2895_v21, 0  ;;  %vm13671_vm4 = vmmov %vm13670_vm6 }
 0x217   : > { %v7763_v38 = vpack.c.bf16 %v6143_v8, %v6143_v8  ;;  %vm4701_vm0 = vcmp.lt.s32.totalorder %v2895_v21, 0  ;;  %v5085_v5 = vadd.s32 48, %v2895_v21  ;;  %v2108_v51 = vmax.f32 %v11650_v33, 0.0  ;;  %v11700_v33 = vpop.f32.mrb[69].mxu0  ;;  %v11713_v8 = vpop.f32.mrb[69].mxu1 }
 0x218   : > { %vm4893_vm3 = vmand %vm4701_vm0, %vm4509_vm2  ;;  %v3951_v34 = vsub.s32 %v2301_v14, %v3950_v1  ;;  %v2949_v47 = vmul.u32 48, %v2948_v54  ;;  %v2208_v15 = vadd.s32 416, %v13591_v10  ;;  %v2017_v53 = vmax.f32 %v11669_v11, 0.0 }
 0x219   : > { %7112 = vst.msk [vmem:[%s10175_s27 + $0x26c] sm:$0xf] %vm13669_vm10, %v7763_v38  ;;  %v5277_v9 = vsel %vm4893_vm3, %v5085_v5, %v2895_v21  ;;  %v2113_v22 = vmax.f32 %v11675_v16, 0.0  ;;  %v11698_v58 = vadd.s32 1184, %v13591_v10  ;;  %v4004_v52 = vshrl.u32 %v11685_v44, 5  ;;  %vm13672_vm3 = vmmov %vm13671_vm4 }
 0x21a   : > { %vm5469_vm9 = vcmp.lt.s32.totalorder %v5277_v9, 32  ;;  %vm4605_vm11 = vcmp.ne.s32.totalorder %v3951_v34, 0  ;;  %vm4797_vm12 = vcmp.lt.s32.totalorder %v3951_v34, 0  ;;  %v5181_v19 = vadd.s32 48, %v3951_v34 }
 0x21b   : > { %v6045_v14 = vsel %vm5469_vm9, %v2012_v48, 0.0  ;;  %vm4989_vm13 = vmand %vm4797_vm12, %vm4605_vm11  ;;  %v2950_v61 = vsub.s32 %v2210_v29, %v2949_v47  ;;  %v2015_v57 = vmax.f32 %v11680_v49, 0.0  ;;  %v4005_v48 = vmul.u32 48, %v4004_v52 }
 0x21c   : > { %v7665_v11 = vpack.c.bf16 %v6045_v14, %v6045_v14  ;;  %v5373_v12 = vsel %vm4989_vm13, %v5181_v19, %v3951_v34  ;;  %v11704_v28 = vmul.u32.u64.low 2863311531, %v2208_v15  ;;  %v11705_v62 = vmul.u32.u64.high 2863311531, %v2208_v15, %v11704_v28  ;;  %vm13673_vm13 = vmmov %vm13672_vm3 }
 0x21d   : > { %vm5565_vm8 = vcmp.lt.s32.totalorder %v5373_v12, 32  ;;  %vm4514_vm1 = vcmp.ne.s32.totalorder %v2950_v61, 0  ;;  %vm4706_vm5 = vcmp.lt.s32.totalorder %v2950_v61, 0  ;;  %v5090_v16 = vadd.s32 48, %v2950_v61 }
 0x21e   : > { %7014 = vst.msk [vmem:[%s10175_s27 + $0xe4] sm:$0xf] %vm13670_vm6, %v7665_v11  ;;  %v6141_v21 = vsel %vm5565_vm8, %v2108_v51, 0.0  ;;  %vm4898_vm7 = vmand %vm4706_vm5, %vm4514_vm1  ;;  %v11710_v29 = vmul.u32.u64.low 2863311531, %v11698_v58  ;;  %v11711_v54 = vmul.u32.u64.high 2863311531, %v11698_v58, %v11710_v29  ;;  %v11717_v44 = vadd.f32 %v11387_v7, %v11231_v46 }
 0x21f   : > { %v7761_v1 = vpack.c.bf16 %v6141_v21, %v6141_v21  ;;  %v5282_v32 = vsel %vm4898_vm7, %v5090_v16, %v2950_v61  ;;  %v2211_v38 = vadd.s32 440, %v13591_v10  ;;  %v4006_v5 = vsub.s32 %v2306_v41, %v4005_v48  ;;  %v11731_v41 = vpop.f32.mrb[70].mxu0  ;;  %v11748_v21 = vpop.f32.mrb[70].mxu1 }
 0x220   : > { %vm5474_vm14 = vcmp.lt.s32.totalorder %v5282_v32, 32  ;;  %v2926_v51 = vshrl.u32 %v11705_v62, 5  ;;  %v11723_v34 = vadd.f32 %v11387_v7, %v11250_v39  ;;  %v2307_v46 = vadd.s32 1208, %v13591_v10 }
 0x221   : > { %7110 = vst.msk [vmem:[%s10175_s27 + $0x264] sm:$0xf] %vm13671_vm4, %v7761_v1  ;;  %v6050_v47 = vsel %vm5474_vm14, %v2017_v53, 0.0  ;;  %v11727_v9 = vmul.u32.u64.low 2863311531, %v2211_v38  ;;  %v11728_v19 = vmul.u32.u64.high 2863311531, %v2211_v38, %v11727_v9  ;;  %vm4610_vm15 = vcmp.ne.s32.totalorder %v4006_v5, 0 }
 0x222   : > { %v7670_v14 = vpack.c.bf16 %v6050_v47, %v6050_v47  ;;  %vm4802_vm2 = vcmp.lt.s32.totalorder %v4006_v5, 0  ;;  %v5186_v61 = vadd.s32 48, %v4006_v5  ;;  %v2927_v52 = vmul.u32 48, %v2926_v51 }
 0x223   : > { %vm4994_vm0 = vmand %vm4802_vm2, %vm4610_vm15  ;;  %v3982_v11 = vshrl.u32 %v11711_v54, 5  ;;  %v11736_v39 = vadd.f32 %v11387_v7, %v11267_v40  ;;  %v11740_v53 = vadd.f32 %v11387_v7, %v11277_v3  ;;  %v2209_v16 = vadd.s32 424, %v13591_v10 }
 0x224   : > { %7019 = vst.msk [vmem:[%s10175_s27 + $0xf8] sm:$0xf] %vm13672_vm3, %v7670_v14  ;;  %v5378_v12 = vsel %vm4994_vm0, %v5186_v61, %v4006_v5  ;;  %v11744_v28 = vmul.u32.u64.low 2863311531, %v2307_v46  ;;  %v11745_v62 = vmul.u32.u64.high 2863311531, %v2307_v46, %v11744_v28  ;;  %v2928_v48 = vsub.s32 %v2208_v15, %v2927_v52  ;;  %v11758_v61 = vpop.f32.mrb[71].mxu0  ;;  %vm13674_vm15 = vmmov %vm13672_vm3 }
 0x225   : > { %vm5570_vm10 = vcmp.lt.s32.totalorder %v5378_v12, 32  ;;  %v3983_v29 = vmul.u32 48, %v3982_v11  ;;  %v2959_v40 = vshrl.u32 %v11728_v19, 5  ;;  %v2111_v3 = vmax.f32 %v11717_v44, 0.0 }
 0x226   : > { %v6146_v54 = vsel %vm5570_vm10, %v2113_v22, 0.0  ;;  %v11752_v1 = vmul.u32.u64.low 2863311531, %v2209_v16  ;;  %v11753_v32 = vmul.u32.u64.high 2863311531, %v2209_v16, %v11752_v1  ;;  %vm4512_vm9 = vcmp.ne.s32.totalorder %v2928_v48, 0 }
 0x227   : > { %v7766_v5 = vpack.c.bf16 %v6146_v54, %v6146_v54  ;;  %vm4704_vm11 = vcmp.lt.s32.totalorder %v2928_v48, 0  ;;  %v5088_v51 = vadd.s32 48, %v2928_v48  ;;  %v3984_v47 = vsub.s32 %v11698_v58, %v3983_v29 }
 0x228   : > { %vm4896_vm12 = vmand %vm4704_vm11, %vm4512_vm9  ;;  %v2018_v9 = vmax.f32 %v11723_v34, 0.0  ;;  %v2960_v15 = vmul.u32 48, %v2959_v40  ;;  %v4015_v14 = vshrl.u32 %v11745_v62, 5  ;;  %v2114_v44 = vmax.f32 %v11736_v39, 0.0  ;;  %v11767_v34 = vpop.f32.mrb[71].mxu1 }
 0x229   : > { %7115 = vst.msk [vmem:[%s10175_s27 + $0x278] sm:$0xf] %vm13673_vm13, %v7766_v5  ;;  %v5280_v22 = vsel %vm4896_vm12, %v5088_v51, %v2928_v48  ;;  %v2016_v19 = vmax.f32 %v11740_v53, 0.0  ;;  %v11765_v52 = vadd.s32 1192, %v13591_v10  ;;  %vm4608_vm1 = vcmp.ne.s32.totalorder %v3984_v47, 0  ;;  %vm13675_vm9 = vmmov %vm13673_vm13 }
 0x22a   : > { %vm5472_vm8 = vcmp.lt.s32.totalorder %v5280_v22, 32  ;;  %vm4800_vm5 = vcmp.lt.s32.totalorder %v3984_v47, 0  ;;  %v5184_v58 = vadd.s32 48, %v3984_v47  ;;  %v2961_v12 = vsub.s32 %v2211_v38, %v2960_v15 }
 0x22b   : > { %v6048_v11 = vsel %vm5472_vm8, %v2015_v57, 0.0  ;;  %vm4992_vm6 = vmand %vm4800_vm5, %vm4608_vm1  ;;  %v4016_v28 = vmul.u32 48, %v4015_v14  ;;  %v2937_v39 = vshrl.u32 %v11753_v32, 5  ;;  %v11774_v29 = vadd.f32 %v11387_v7, %v11286_v42 }
 0x22c   : > { %v7668_v62 = vpack.c.bf16 %v6048_v11, %v6048_v11  ;;  %v5376_v48 = vsel %vm4992_vm6, %v5184_v58, %v3984_v47  ;;  %v2214_v40 = vadd.s32 464, %v13591_v10  ;;  %vm4515_vm14 = vcmp.ne.s32.totalorder %v2961_v12, 0  ;;  %vm13676_vm1 = vmmov %vm13675_vm9 }
 0x22d   : > { %vm5568_vm7 = vcmp.lt.s32.totalorder %v5376_v48, 32  ;;  %vm4707_vm4 = vcmp.lt.s32.totalorder %v2961_v12, 0  ;;  %v5091_v54 = vadd.s32 48, %v2961_v12  ;;  %v4017_v57 = vsub.s32 %v2307_v46, %v4016_v28 }
 0x22e   : > { %7017 = vst.msk [vmem:[%s10175_s27 + $0xf0] sm:$0xf] %vm13674_vm15, %v7668_v62  ;;  %v6144_v49 = vsel %vm5568_vm7, %v2111_v3, 0.0  ;;  %vm4899_vm2 = vmand %vm4707_vm4, %vm4515_vm14  ;;  %v2938_v38 = vmul.u32 48, %v2937_v39  ;;  %v11781_v1 = vadd.f32 %v11387_v7, %v11326_v60  ;;  %v11794_v58 = vadd.f32 %v11387_v7, %v11328_v17 }
 0x22f   : > { %v7764_v32 = vpack.c.bf16 %v6144_v49, %v6144_v49  ;;  %v5283_v42 = vsel %vm4899_vm2, %v5091_v54, %v2961_v12  ;;  %v11784_v5 = vmul.u32.u64.low 2863311531, %v11765_v52  ;;  %v11785_v51 = vmul.u32.u64.high 2863311531, %v11765_v52, %v11784_v5  ;;  %vm13677_vm7 = vmmov %vm13676_vm1 }
 0x230   : > { %vm5475_vm0 = vcmp.lt.s32.totalorder %v5283_v42, 32  ;;  %vm4611_vm3 = vcmp.ne.s32.totalorder %v4017_v57, 0  ;;  %vm4803_vm10 = vcmp.lt.s32.totalorder %v4017_v57, 0  ;;  %v5187_v47 = vadd.s32 48, %v4017_v57  ;;  %vm13678_vm14 = vmmov %vm13676_vm1 }
 0x231   : > { %7113 = vst.msk [vmem:[%s10175_s27 + $0x270] sm:$0xf] %vm13675_vm9, %v7764_v32  ;;  %v6051_v3 = vsel %vm5475_vm0, %v2018_v9, 0.0  ;;  %vm4995_vm11 = vmand %vm4803_vm10, %vm4611_vm3  ;;  %v2939_v46 = vsub.s32 %v2209_v16, %v2938_v38  ;;  %v11789_v15 = vmul.u32.u64.low 2863311531, %v2214_v40  ;;  %v11790_v14 = vmul.u32.u64.high 2863311531, %v2214_v40, %v11789_v15  ;;  %v11807_v32 = vpop.f32.mrb[72].mxu0 }
 0x232   : > { %v7671_v60 = vpack.c.bf16 %v6051_v3, %v6051_v3  ;;  %v5379_v22 = vsel %vm4995_vm11, %v5187_v47, %v4017_v57  ;;  %v2310_v11 = vadd.s32 1232, %v13591_v10  ;;  %v3993_v16 = vshrl.u32 %v11785_v51, 5 }
 0x233   : > { %vm5571_vm12 = vcmp.lt.s32.totalorder %v5379_v22, 32  ;;  %vm4513_vm13 = vcmp.ne.s32.totalorder %v2939_v46, 0  ;;  %vm4705_vm8 = vcmp.lt.s32.totalorder %v2939_v46, 0  ;;  %v5089_v12 = vadd.s32 48, %v2939_v46 }
 0x234   : > { %7020 = vst.msk [vmem:[%s10175_s27 + $0xfc] sm:$0xf] %vm13676_vm1, %v7671_v60  ;;  %v6147_v9 = vsel %vm5571_vm12, %v2114_v44, 0.0  ;;  %vm4897_vm5 = vmand %vm4705_vm8, %vm4513_vm13  ;;  %v11800_v28 = vmul.u32.u64.low 2863311531, %v2310_v11  ;;  %v11801_v39 = vmul.u32.u64.high 2863311531, %v2310_v11, %v11800_v28  ;;  %v2112_v17 = vmax.f32 %v11774_v29, 0.0 }
 0x235   : > { %v7767_v62 = vpack.c.bf16 %v6147_v9, %v6147_v9  ;;  %v5281_v48 = vsel %vm4897_vm5, %v5089_v12, %v2939_v46  ;;  %v2992_v54 = vshrl.u32 %v11790_v14, 5  ;;  %v3994_v49 = vmul.u32 48, %v3993_v16  ;;  %v11809_v44 = vpop.f32.mrb[72].mxu1  ;;  %vm13679_vm5 = vmmov %vm13676_vm1 }
 0x236   : > { %vm5473_vm6 = vcmp.lt.s32.totalorder %v5281_v48, 32  ;;  %v2021_v57 = vmax.f32 %v11781_v1, 0.0  ;;  %v2212_v38 = vadd.s32 448, %v13591_v10  ;;  %v2117_v29 = vmax.f32 %v11794_v58, 0.0  ;;  %v11820_v1 = vpop.f32.mrb[73].mxu0  ;;  %v11839_v22 = vpop.f32.mrb[73].mxu1 }
 0x237   : > { %7116 = vst.msk [vmem:[%s10175_s27 + $0x27c] sm:$0xf] %vm13677_vm7, %v7767_v62  ;;  %v6049_v42 = vsel %vm5473_vm6, %v2016_v19, 0.0  ;;  %v2993_v5 = vmul.u32 48, %v2992_v54  ;;  %v11818_v51 = vadd.f32 %v11387_v7, %v11339_v13  ;;  %v3995_v3 = vsub.s32 %v11765_v52, %v3994_v49  ;;  %v11831_v19 = vld [vmem:[%s12936_s2] ss:$0 sm:$0xff] }
 0x238   : > { %v7669_v47 = vpack.c.bf16 %v6049_v42, %v6049_v42  ;;  %v4048_v46 = vshrl.u32 %v11801_v39, 5  ;;  %v2308_v15 = vadd.s32 1216, %v13591_v10  ;;  %v11835_v13 = vadd.f32 %v11831_v19, %v11353_v20 }
 0x239   : > { %v2994_v14 = vsub.s32 %v2214_v40, %v2993_v5  ;;  %v11825_v60 = vmul.u32.u64.low 2863311531, %v2212_v38  ;;  %v11826_v53 = vmul.u32.u64.high 2863311531, %v2212_v38, %v11825_v60  ;;  %vm4609_vm4 = vcmp.ne.s32.totalorder %v3995_v3, 0 }
 0x23a   : > { %7018 = vst.msk [vmem:[%s10175_s27 + $0xf4] sm:$0xf] %vm13678_vm14, %v7669_v47  ;;  %vm4801_vm15 = vcmp.lt.s32.totalorder %v3995_v3, 0  ;;  %v5185_v7 = vadd.s32 48, %v3995_v3  ;;  %v4049_v52 = vmul.u32 48, %v4048_v46  ;;  %v11843_v58 = vadd.f32 %v11831_v19, %v11364_v2  ;;  %v11850_v2 = vpop.f32.mrb[74].mxu0 }
 0x23b   : > { %vm4993_vm2 = vmand %vm4801_vm15, %vm4609_vm4  ;;  %vm4518_vm0 = vcmp.ne.s32.totalorder %v2994_v14, 0  ;;  %vm4710_vm3 = vcmp.lt.s32.totalorder %v2994_v14, 0  ;;  %v5094_v40 = vadd.s32 48, %v2994_v14  ;;  %v2970_v39 = vshrl.u32 %v11826_v53, 5 }
 0x23c   : > { %v5377_v12 = vsel %vm4993_vm2, %v5185_v7, %v3995_v3  ;;  %vm4902_vm10 = vmand %vm4710_vm3, %vm4518_vm0  ;;  %v4050_v20 = vsub.s32 %v2310_v11, %v4049_v52  ;;  %v11845_v9 = vmul.u32.u64.low 2863311531, %v2308_v15  ;;  %v11846_v16 = vmul.u32.u64.high 2863311531, %v2308_v15, %v11845_v9 }
 0x23d   : > { %vm5569_vm9 = vcmp.lt.s32.totalorder %v5377_v12, 32  ;;  %v5286_v28 = vsel %vm4902_vm10, %v5094_v40, %v2994_v14  ;;  %v2215_v62 = vadd.s32 472, %v13591_v10  ;;  %v2971_v42 = vmul.u32 48, %v2970_v39  ;;  %v11866_v40 = vpop.f32.mrb[74].mxu1  ;;  %vm13680_vm15 = vmmov %vm13676_vm1 }
 0x23e   : > { %v6145_v48 = vsel %vm5569_vm9, %v2112_v17, 0.0  ;;  %vm5478_vm11 = vcmp.lt.s32.totalorder %v5286_v28, 32  ;;  %vm4614_vm12 = vcmp.ne.s32.totalorder %v4050_v20, 0  ;;  %vm4806_vm13 = vcmp.lt.s32.totalorder %v4050_v20, 0 }
 0x23f   : > { %v7765_v54 = vpack.c.bf16 %v6145_v48, %v6145_v48  ;;  %v6054_v49 = vsel %vm5478_vm11, %v2021_v57, 0.0  ;;  %vm4998_vm8 = vmand %vm4806_vm13, %vm4614_vm12  ;;  %v5190_v11 = vadd.s32 48, %v4050_v20  ;;  %v4026_v47 = vshrl.u32 %v11846_v16, 5 }
 0x240   : > { %v7674_v5 = vpack.c.bf16 %v6054_v49, %v6054_v49  ;;  %v11853_v3 = vmul.u32.u64.low 2863311531, %v2215_v62  ;;  %v11854_v46 = vmul.u32.u64.high 2863311531, %v2215_v62, %v11853_v3  ;;  %v2019_v14 = vmax.f32 %v11818_v51, 0.0  ;;  %vm13681_vm11 = vmmov %vm13676_vm1 }
 0x241   : > { %7114 = vst.msk [vmem:[%s10175_s27 + $0x274] sm:$0xf] %vm13676_vm1, %v7765_v54  ;;  %v5382_v17 = vsel %vm4998_vm8, %v5190_v11, %v4050_v20  ;;  %v2972_v60 = vsub.s32 %v2212_v38, %v2971_v42  ;;  %v2311_v53 = vadd.s32 1240, %v13591_v10  ;;  %v2115_v57 = vmax.f32 %v11835_v13, 0.0 }
 0x242   : > { %7023 = vst.msk [vmem:[%s10175_s27 + $0x108] sm:$0xf] %vm13679_vm5, %v7674_v5  ;;  %vm5574_vm6 = vcmp.lt.s32.totalorder %v5382_v17, 32  ;;  %v4027_v7 = vmul.u32 48, %v4026_v47  ;;  %v11864_v52 = vadd.s32 456, %v13591_v10  ;;  %v2022_v9 = vmax.f32 %v11843_v58, 0.0 }
 0x243   : > { %v6150_v12 = vsel %vm5574_vm6, %v2117_v29, 0.0  ;;  %vm4516_vm7 = vcmp.ne.s32.totalorder %v2972_v60, 0  ;;  %vm4708_vm14 = vcmp.lt.s32.totalorder %v2972_v60, 0  ;;  %v5092_v20 = vadd.s32 48, %v2972_v60  ;;  %v11888_v47 = vpop.f32.mrb[75].mxu0 }
 0x244   : > { %v7770_v51 = vpack.c.bf16 %v6150_v12, %v6150_v12  ;;  %vm4900_vm4 = vmand %vm4708_vm14, %vm4516_vm7  ;;  %v4028_v38 = vsub.s32 %v2308_v15, %v4027_v7  ;;  %v3003_v16 = vshrl.u32 %v11854_v46, 5  ;;  %v11872_v13 = vadd.f32 %v11831_v19, %v11380_v25  ;;  %v11901_v12 = vpop.f32.mrb[75].mxu1 }
 0x245   : > { %v5284_v28 = vsel %vm4900_vm4, %v5092_v20, %v2972_v60  ;;  %v11874_v39 = vmul.u32.u64.low 2863311531, %v2311_v53  ;;  %v11875_v48 = vmul.u32.u64.high 2863311531, %v2311_v53, %v11874_v39  ;;  %v11885_v42 = vadd.f32 %v11831_v19, %v11407_v63  ;;  %vm13682_vm4 = vmmov %vm13676_vm1 }
 0x246   : > { %7119 = vst.msk [vmem:[%s10175_s27 + $0x288] sm:$0xf] %vm13680_vm15, %v7770_v51  ;;  %vm5476_vm2 = vcmp.lt.s32.totalorder %v5284_v28, 32  ;;  %vm4612_vm0 = vcmp.ne.s32.totalorder %v4028_v38, 0  ;;  %vm4804_vm3 = vcmp.lt.s32.totalorder %v4028_v38, 0  ;;  %v5188_v29 = vadd.s32 48, %v4028_v38 }
 0x247   : > { %v6052_v15 = vsel %vm5476_vm2, %v2019_v14, 0.0  ;;  %vm4996_vm10 = vmand %vm4804_vm3, %vm4612_vm0  ;;  %v3004_v58 = vmul.u32 48, %v3003_v16  ;;  %v11880_v54 = vmul.u32.u64.low 2863311531, %v11864_v52  ;;  %v11881_v49 = vmul.u32.u64.high 2863311531, %v11864_v52, %v11880_v54 }
 0x248   : > { %v7672_v11 = vpack.c.bf16 %v6052_v15, %v6052_v15  ;;  %v5380_v25 = vsel %vm4996_vm10, %v5188_v29, %v4028_v38  ;;  %v2309_v5 = vadd.s32 1224, %v13591_v10  ;;  %v2118_v46 = vmax.f32 %v11872_v13, 0.0 }
 0x249   : > { %vm5572_vm9 = vcmp.lt.s32.totalorder %v5380_v25, 32  ;;  %v3005_v3 = vsub.s32 %v2215_v62, %v3004_v58  ;;  %v4059_v17 = vshrl.u32 %v11875_v48, 5  ;;  %v11896_v60 = vadd.f32 %v11831_v19, %v11420_v30 }
 0x24a   : > { %7021 = vst.msk [vmem:[%s10175_s27 + $0x100] sm:$0xf] %vm13681_vm11, %v7672_v11  ;;  %v6148_v14 = vsel %vm5572_vm9, %v2115_v57, 0.0  ;;  %v11898_v63 = vmul.u32.u64.low 2863311531, %v2309_v5  ;;  %v11899_v7 = vmul.u32.u64.high 2863311531, %v2309_v5, %v11898_v63  ;;  %v2020_v38 = vmax.f32 %v11885_v42, 0.0 }
 0x24b   : > { %v7768_v20 = vpack.c.bf16 %v6148_v14, %v6148_v14  ;;  %vm4519_vm12 = vcmp.ne.s32.totalorder %v3005_v3, 0  ;;  %vm4711_vm13 = vcmp.lt.s32.totalorder %v3005_v3, 0  ;;  %v5095_v62 = vadd.s32 48, %v3005_v3  ;;  %v11934_v63 = vpop.f32.mrb[76].mxu0 }
 0x24c   : > { %vm4903_vm8 = vmand %vm4711_vm13, %vm4519_vm12  ;;  %v4060_v51 = vmul.u32 48, %v4059_v17  ;;  %v2981_v16 = vshrl.u32 %v11881_v49, 5  ;;  %v2218_v57 = vadd.s32 496, %v13591_v10  ;;  %v11910_v28 = vadd.f32 %v11831_v19, %v11453_v50 }
 0x24d   : > { %7117 = vst.msk [vmem:[%s10175_s27 + $0x280] sm:$0xf] %vm13676_vm1, %v7768_v20  ;;  %v5287_v30 = vsel %vm4903_vm8, %v5095_v62, %v3005_v3  ;;  %v11914_v13 = vadd.f32 %v11831_v19, %v11455_v6  ;;  %v2314_v39 = vadd.s32 1264, %v13591_v10  ;;  %v4037_v15 = vshrl.u32 %v11899_v7, 5  ;;  %v11936_v7 = vpop.f32.mrb[76].mxu1  ;;  %vm13683_vm12 = vmmov %vm13676_vm1 }
 0x24e   : > { %vm5479_vm5 = vcmp.lt.s32.totalorder %v5287_v30, 32  ;;  %v4061_v48 = vsub.s32 %v2311_v53, %v4060_v51  ;;  %v2982_v29 = vmul.u32 48, %v2981_v16  ;;  %v2116_v54 = vmax.f32 %v11896_v60, 0.0  ;;  %v11940_v30 = vpop.f32.mrb[77].mxu0 }
 0x24f   : > { %v6055_v58 = vsel %vm5479_vm5, %v2022_v9, 0.0  ;;  %v11919_v49 = vmul.u32.u64.low 2863311531, %v2218_v57  ;;  %v11920_v11 = vmul.u32.u64.high 2863311531, %v2218_v57, %v11919_v49  ;;  %v4038_v42 = vmul.u32 48, %v4037_v15 }
 0x250   : > { %v7675_v50 = vpack.c.bf16 %v6055_v58, %v6055_v58  ;;  %vm4615_vm6 = vcmp.ne.s32.totalorder %v4061_v48, 0  ;;  %vm4807_vm7 = vcmp.lt.s32.totalorder %v4061_v48, 0  ;;  %v5191_v25 = vadd.s32 48, %v4061_v48 }
 0x251   : > { %vm4999_vm14 = vmand %vm4807_vm7, %vm4615_vm6  ;;  %v2983_v6 = vsub.s32 %v11864_v52, %v2982_v29  ;;  %v11923_v3 = vmul.u32.u64.low 2863311531, %v2314_v39  ;;  %v11924_v17 = vmul.u32.u64.high 2863311531, %v2314_v39, %v11923_v3  ;;  %v2025_v9 = vmax.f32 %v11910_v28, 0.0 }
 0x252   : > { %7024 = vst.msk [vmem:[%s10175_s27 + $0x10c] sm:$0xf] %vm13682_vm4, %v7675_v50  ;;  %v5383_v53 = vsel %vm4999_vm14, %v5191_v25, %v4061_v48  ;;  %v2121_v14 = vmax.f32 %v11914_v13, 0.0  ;;  %v11932_v60 = vadd.f32 %v11831_v19, %v11459_v55  ;;  %v4039_v62 = vsub.s32 %v2309_v5, %v4038_v42 }
 0x253   : > { %vm5575_vm15 = vcmp.lt.s32.totalorder %v5383_v53, 32  ;;  %vm4517_vm2 = vcmp.ne.s32.totalorder %v2983_v6, 0  ;;  %vm4709_vm0 = vcmp.lt.s32.totalorder %v2983_v6, 0  ;;  %v5093_v52 = vadd.s32 48, %v2983_v6 }
 0x254   : > { %v6151_v20 = vsel %vm5575_vm15, %v2118_v46, 0.0  ;;  %vm4901_vm3 = vmand %vm4709_vm0, %vm4517_vm2  ;;  %v3036_v51 = vshrl.u32 %v11920_v11, 5  ;;  %v2216_v16 = vadd.s32 480, %v13591_v10  ;;  %v4092_v29 = vshrl.u32 %v11924_v17, 5 }
 0x255   : > { %v7771_v55 = vpack.c.bf16 %v6151_v20, %v6151_v20  ;;  %v5285_v48 = vsel %vm4901_vm3, %v5093_v52, %v2983_v6  ;;  %v2312_v15 = vadd.s32 1248, %v13591_v10  ;;  %vm4613_vm9 = vcmp.ne.s32.totalorder %v4039_v62, 0  ;;  %v11954_v52 = vpop.f32.mrb[77].mxu1  ;;  %vm13684_vm15 = vmmov %vm13676_vm1 }
 0x256   : > { %vm5477_vm10 = vcmp.lt.s32.totalorder %v5285_v48, 32  ;;  %vm4805_vm11 = vcmp.lt.s32.totalorder %v4039_v62, 0  ;;  %v5189_v58 = vadd.s32 48, %v4039_v62  ;;  %v3037_v46 = vmul.u32 48, %v3036_v51  ;;  %v11963_v48 = vpop.f32.mrb[78].mxu0 }
 0x257   : > { %7120 = vst.msk [vmem:[%s10175_s27 + $0x28c] sm:$0xf] %vm13683_vm12, %v7771_v55  ;;  %v6053_v5 = vsel %vm5477_vm10, %v2020_v38, 0.0  ;;  %vm4997_vm13 = vmand %vm4805_vm11, %vm4613_vm9  ;;  %v4093_v49 = vmul.u32 48, %v4092_v29  ;;  %v2023_v11 = vmax.f32 %v11932_v60, 0.0  ;;  %v11952_v53 = vadd.f32 %v11831_v19, %v11473_v31 }
 0x258   : > { %v7673_v50 = vpack.c.bf16 %v6053_v5, %v6053_v5  ;;  %v5381_v25 = vsel %vm4997_vm13, %v5189_v58, %v4039_v62  ;;  %v11947_v6 = vmul.u32.u64.low 2863311531, %v2216_v16  ;;  %v11948_v42 = vmul.u32.u64.high 2863311531, %v2216_v16, %v11947_v6  ;;  %vm13685_vm10 = vmmov %vm13676_vm1 }
 0x259   : > { %vm5573_vm8 = vcmp.lt.s32.totalorder %v5381_v25, 32  ;;  %v3038_v3 = vsub.s32 %v2218_v57, %v3037_v46  ;;  %v4094_v17 = vsub.s32 %v2314_v39, %v4093_v49  ;;  %v2219_v62 = vadd.s32 504, %v13591_v10  ;;  %vm13686_vm12 = vmmov %vm13676_vm1 }
 0x25a   : > { %7022 = vst.msk [vmem:[%s10175_s27 + $0x104] sm:$0xf] %vm13676_vm1, %v7673_v50  ;;  %v6149_v38 = vsel %vm5573_vm8, %v2116_v54, 0.0  ;;  %v11958_v20 = vmul.u32.u64.low 2863311531, %v2312_v15  ;;  %v11959_v51 = vmul.u32.u64.high 2863311531, %v2312_v15, %v11958_v20  ;;  %v3014_v39 = vshrl.u32 %v11948_v42, 5 }
 0x25b   : > { %v7769_v55 = vpack.c.bf16 %v6149_v38, %v6149_v38  ;;  %vm4522_vm5 = vcmp.ne.s32.totalorder %v3038_v3, 0  ;;  %vm4714_vm6 = vcmp.lt.s32.totalorder %v3038_v3, 0  ;;  %v5098_v57 = vadd.s32 48, %v3038_v3 }
 0x25c   : > { %vm4906_vm7 = vmand %vm4714_vm6, %vm4522_vm5  ;;  %vm4618_vm14 = vcmp.ne.s32.totalorder %v4094_v17, 0  ;;  %vm4810_vm4 = vcmp.lt.s32.totalorder %v4094_v17, 0  ;;  %v5194_v31 = vadd.s32 48, %v4094_v17  ;;  %v2119_v29 = vmax.f32 %v11952_v53, 0.0 }
 0x25d   : > { %7118 = vst.msk [vmem:[%s10175_s27 + $0x284] sm:$0xf] %vm13684_vm15, %v7769_v55  ;;  %v5290_v54 = vsel %vm4906_vm7, %v5098_v57, %v3038_v3  ;;  %vm5002_vm2 = vmand %vm4810_vm4, %vm4618_vm14  ;;  %v11968_v58 = vmul.u32.u64.low 2863311531, %v2219_v62  ;;  %v11969_v5 = vmul.u32.u64.high 2863311531, %v2219_v62, %v11968_v58  ;;  %v3015_v49 = vmul.u32 48, %v3014_v39  ;;  %v11977_v3 = vpop.f32.mrb[78].mxu1 }
 0x25e   : > { %vm5482_vm0 = vcmp.lt.s32.totalorder %v5290_v54, 32  ;;  %v5386_v46 = vsel %vm5002_vm2, %v5194_v31, %v4094_v17  ;;  %v4070_v50 = vshrl.u32 %v11959_v51, 5  ;;  %v1448_v6 = vadd.f32 %v11831_v19, %v11482_v24  ;;  %v11996_v58 = vpop.f32.mrb[79].mxu0  ;;  %vm13687_vm2 = vmmov %vm13685_vm10 }
 0x25f   : > { %v6058_v25 = vsel %vm5482_vm0, %v2025_v9, 0.0  ;;  %vm5578_vm3 = vcmp.lt.s32.totalorder %v5386_v46, 32  ;;  %v2315_v42 = vadd.s32 1272, %v13591_v10  ;;  %v3016_v17 = vsub.s32 %v2216_v16, %v3015_v49  ;;  %vm13688_vm0 = vmmov %vm13687_vm2 }
 0x260   : > { %v7678_v53 = vpack.c.bf16 %v6058_v25, %v6058_v25  ;;  %v6154_v38 = vsel %vm5578_vm3, %v2121_v14, 0.0  ;;  %v4071_v20 = vmul.u32 48, %v4070_v50  ;;  %v3047_v51 = vshrl.u32 %v11969_v5, 5 }
 0x261   : > { %v7774_v55 = vpack.c.bf16 %v6154_v38, %v6154_v38  ;;  %v11982_v28 = vmul.u32.u64.low 2863311531, %v2315_v42  ;;  %v11983_v9 = vmul.u32.u64.high 2863311531, %v2315_v42, %v11982_v28  ;;  %vm4520_vm9 = vcmp.ne.s32.totalorder %v3016_v17, 0 }
 0x262   : > { %7027 = vst.msk [vmem:[%s10175_s27 + $0x118] sm:$0xf] %vm13685_vm10, %v7678_v53  ;;  %vm4712_vm11 = vcmp.lt.s32.totalorder %v3016_v17, 0  ;;  %v5096_v24 = vadd.s32 48, %v3016_v17  ;;  %v4072_v57 = vsub.s32 %v2312_v15, %v4071_v20  ;;  %v3048_v31 = vmul.u32 48, %v3047_v51  ;;  %v12008_v20 = vpop.f32.mrb[79].mxu1 }
 0x263   : > { %7123 = vst.msk [vmem:[%s10175_s27 + $0x298] sm:$0xf] %vm13686_vm12, %v7774_v55  ;;  %vm4904_vm13 = vmand %vm4712_vm11, %vm4520_vm9  ;;  %v1832_v13 = vadd.f32 %v11831_v19, %v11496_v59  ;;  %v11993_v14 = vadd.f32 %v11831_v19, %v11515_v43  ;;  %v2217_v16 = vadd.s32 488, %v13591_v10  ;;  %v4103_v5 = vshrl.u32 %v11983_v9, 5 }
 0x264   : > { %v5288_v39 = vsel %vm4904_vm13, %v5096_v24, %v3016_v17  ;;  %vm4616_vm8 = vcmp.ne.s32.totalorder %v4072_v57, 0  ;;  %vm4808_vm1 = vcmp.lt.s32.totalorder %v4072_v57, 0  ;;  %v5192_v54 = vadd.s32 48, %v4072_v57  ;;  %vm13689_vm12 = vmmov %vm13688_vm0 }
 0x265   : > { %vm5480_vm5 = vcmp.lt.s32.totalorder %v5288_v39, 32  ;;  %vm5000_vm6 = vmand %vm4808_vm1, %vm4616_vm8  ;;  %v3049_v15 = vsub.s32 %v2219_v62, %v3048_v31  ;;  %v12001_v59 = vadd.f32 %v11831_v19, %v11527_v0  ;;  %v2026_v53 = vmax.f32 %v1448_v6, 0.0 }
 0x266   : > { %v6056_v43 = vsel %vm5480_vm5, %v2023_v11, 0.0  ;;  %v5384_v46 = vsel %vm5000_vm6, %v5192_v54, %v4072_v57  ;;  %v12005_v49 = vmul.u32.u64.low 2863311531, %v2217_v16  ;;  %v12006_v50 = vmul.u32.u64.high 2863311531, %v2217_v16, %v12005_v49  ;;  %vm13690_vm6 = vmmov %vm13688_vm0 }
 0x267   : > { %v7676_v25 = vpack.c.bf16 %v6056_v43, %v6056_v43  ;;  %vm5576_vm7 = vcmp.lt.s32.totalorder %v5384_v46, 32  ;;  %vm4523_vm14 = vcmp.ne.s32.totalorder %v3049_v15, 0  ;;  %vm4715_vm4 = vcmp.lt.s32.totalorder %v3049_v15, 0 }
 0x268   : > { %v6152_v62 = vsel %vm5576_vm7, %v2119_v29, 0.0  ;;  %vm4907_vm15 = vmand %vm4715_vm4, %vm4523_vm14  ;;  %v5099_v38 = vadd.s32 48, %v3049_v15  ;;  %v4104_v17 = vmul.u32 48, %v4103_v5  ;;  %v2122_v60 = vmax.f32 %v1832_v13, 0.0 }
 0x269   : > { %7025 = vst.msk [vmem:[%s10175_s27 + $0x110] sm:$0xf] %vm13687_vm2, %v7676_v25  ;;  %v7772_v0 = vpack.c.bf16 %v6152_v62, %v6152_v62  ;;  %v2313_v11 = vadd.s32 1256, %v13591_v10  ;;  %v2222_v55 = vadd.s32 528, %v13591_v10  ;;  %v2024_v9 = vmax.f32 %v11993_v14, 0.0  ;;  %vm13691_vm2 = vmmov %vm13688_vm0 }
 0x26a   : > { %v5291_v51 = vsel %vm4907_vm15, %v5099_v38, %v3049_v15  ;;  %v4105_v28 = vsub.s32 %v2315_v42, %v4104_v17  ;;  %v3025_v29 = vshrl.u32 %v12006_v50, 5  ;;  %v2120_v6 = vmax.f32 %v12001_v59, 0.0 }
 0x26b   : > { %7121 = vst.msk [vmem:[%s10175_s27 + $0x290] sm:$0xf] %vm13688_vm0, %v7772_v0  ;;  %vm5483_vm3 = vcmp.lt.s32.totalorder %v5291_v51, 32  ;;  %v12019_v24 = vmul.u32.u64.low 2863311531, %v2313_v11  ;;  %v12020_v57 = vmul.u32.u64.high 2863311531, %v2313_v11, %v12019_v24  ;;  %v12027_v5 = vadd.f32 %v11831_v19, %v11571_v36 }
 0x26c   : > { %v6059_v31 = vsel %vm5483_vm3, %v2026_v53, 0.0  ;;  %vm4619_vm10 = vcmp.ne.s32.totalorder %v4105_v28, 0  ;;  %vm4811_vm9 = vcmp.lt.s32.totalorder %v4105_v28, 0  ;;  %v5195_v13 = vadd.s32 48, %v4105_v28 }
 0x26d   : > { %v7679_v39 = vpack.c.bf16 %v6059_v31, %v6059_v31  ;;  %vm5003_vm11 = vmand %vm4811_vm9, %vm4619_vm10  ;;  %v3026_v42 = vmul.u32 48, %v3025_v29  ;;  %v12022_v54 = vmul.u32.u64.low 2863311531, %v2222_v55  ;;  %v12023_v14 = vmul.u32.u64.high 2863311531, %v2222_v55, %v12022_v54  ;;  %v12054_v29 = vpop.f32.mrb[80].mxu1 }
 0x26e   : > { %v5387_v15 = vsel %vm5003_vm11, %v5195_v13, %v4105_v28  ;;  %v12031_v43 = vadd.f32 %v11831_v19, %v11573_v45  ;;  %v2318_v46 = vadd.s32 1296, %v13591_v10  ;;  %v4081_v50 = vshrl.u32 %v12020_v57, 5 }
 0x26f   : > { %7028 = vst.msk [vmem:[%s10175_s27 + $0x11c] sm:$0xf] %vm13689_vm12, %v7679_v39  ;;  %vm5579_vm13 = vcmp.lt.s32.totalorder %v5387_v15, 32  ;;  %v3027_v49 = vsub.s32 %v2217_v16, %v3026_v42  ;;  %v12038_v25 = vadd.s32 512, %v13591_v10  ;;  %v12045_v45 = vadd.f32 %v11831_v19, %v11581_v26 }
 0x270   : > { %v6155_v62 = vsel %vm5579_vm13, %v2122_v60, 0.0  ;;  %v12040_v53 = vmul.u32.u64.low 2863311531, %v2318_v46  ;;  %v12041_v36 = vmul.u32.u64.high 2863311531, %v2318_v46, %v12040_v53  ;;  %v4082_v16 = vmul.u32 48, %v4081_v50  ;;  %v12052_v60 = vpop.f32.mrb[80].mxu0 }
 0x271   : > { %v7775_v38 = vpack.c.bf16 %v6155_v62, %v6155_v62  ;;  %vm4521_vm8 = vcmp.ne.s32.totalorder %v3027_v49, 0  ;;  %vm4713_vm1 = vcmp.lt.s32.totalorder %v3027_v49, 0  ;;  %v5097_v17 = vadd.s32 48, %v3027_v49  ;;  %v12062_v54 = vpop.f32.mrb[81].mxu0 }
 0x272   : > { %vm4905_vm5 = vmand %vm4713_vm1, %vm4521_vm8  ;;  %v3080_v0 = vshrl.u32 %v12023_v14, 5  ;;  %v12049_v51 = vmul.u32.u64.low 2863311531, %v12038_v25  ;;  %v12050_v28 = vmul.u32.u64.high 2863311531, %v12038_v25, %v12049_v51  ;;  %v2029_v24 = vmax.f32 %v12027_v5, 0.0 }
 0x273   : > { %7124 = vst.msk [vmem:[%s10175_s27 + $0x29c] sm:$0xf] %vm13690_vm6, %v7775_v38  ;;  %v5289_v26 = vsel %vm4905_vm5, %v5097_v17, %v3027_v49  ;;  %v2125_v57 = vmax.f32 %v12031_v43, 0.0  ;;  %v2316_v31 = vadd.s32 1280, %v13591_v10  ;;  %v4083_v13 = vsub.s32 %v2313_v11, %v4082_v16  ;;  %v12068_v43 = vpop.f32.mrb[81].mxu1  ;;  %vm13692_vm8 = vmmov %vm13691_vm2 }
 0x274   : > { %vm5481_vm7 = vcmp.lt.s32.totalorder %v5289_v26, 32  ;;  %v3081_v39 = vmul.u32 48, %v3080_v0  ;;  %v4136_v42 = vshrl.u32 %v12041_v36, 5  ;;  %v2027_v15 = vmax.f32 %v12045_v45, 0.0 }
 0x275   : > { %v6057_v14 = vsel %vm5481_vm7, %v2024_v9, 0.0  ;;  %v12065_v50 = vmul.u32.u64.low 2863311531, %v2316_v31  ;;  %v12066_v62 = vmul.u32.u64.high 2863311531, %v2316_v31, %v12065_v50  ;;  %vm4617_vm14 = vcmp.ne.s32.totalorder %v4083_v13, 0 }
 0x276   : > { %v7677_v49 = vpack.c.bf16 %v6057_v14, %v6057_v14  ;;  %vm4809_vm4 = vcmp.lt.s32.totalorder %v4083_v13, 0  ;;  %v5193_v5 = vadd.s32 48, %v4083_v13  ;;  %v3082_v11 = vsub.s32 %v2222_v55, %v3081_v39 }
 0x277   : > { %vm5001_vm15 = vmand %vm4809_vm4, %vm4617_vm14  ;;  %v4137_v53 = vmul.u32 48, %v4136_v42  ;;  %v3058_v38 = vshrl.u32 %v12050_v28, 5  ;;  %v12073_v36 = vadd.f32 %v11831_v19, %v11587_v23  ;;  %v12079_v17 = vadd.f32 %v11831_v19, %v11607_v35  ;;  %v12088_v35 = vpop.f32.mrb[82].mxu0 }
 0x278   : > { %7026 = vst.msk [vmem:[%s10175_s27 + $0x114] sm:$0xf] %vm13691_vm2, %v7677_v49  ;;  %v5385_v9 = vsel %vm5001_vm15, %v5193_v5, %v4083_v13  ;;  %v2223_v16 = vadd.s32 536, %v13591_v10  ;;  %v12083_v0 = vadd.s32 1304, %v13591_v10  ;;  %vm4526_vm3 = vcmp.ne.s32.totalorder %v3082_v11, 0  ;;  %vm13693_vm14 = vmmov %vm13691_vm2 }
 0x279   : > { %vm5577_vm0 = vcmp.lt.s32.totalorder %v5385_v9, 32  ;;  %vm4718_vm10 = vcmp.lt.s32.totalorder %v3082_v11, 0  ;;  %v5102_v55 = vadd.s32 48, %v3082_v11  ;;  %v4138_v51 = vsub.s32 %v2318_v46, %v4137_v53 }
 0x27a   : > { %v6153_v23 = vsel %vm5577_vm0, %v2120_v6, 0.0  ;;  %vm4910_vm9 = vmand %vm4718_vm10, %vm4526_vm3  ;;  %v3059_v28 = vmul.u32 48, %v3058_v38  ;;  %v4114_v26 = vshrl.u32 %v12066_v62, 5  ;;  %v12098_v62 = vadd.f32 %v11831_v19, %v11623_v18  ;;  %v12104_v38 = vpop.f32.mrb[82].mxu1 }
 0x27b   : > { %v7773_v13 = vpack.c.bf16 %v6153_v23, %v6153_v23  ;;  %v5294_v39 = vsel %vm4910_vm9, %v5102_v55, %v3082_v11  ;;  %v12090_v42 = vmul.u32.u64.low 2863311531, %v2223_v16  ;;  %v12091_v14 = vmul.u32.u64.high 2863311531, %v2223_v16, %v12090_v42  ;;  %vm13694_vm3 = vmmov %vm13692_vm8 }
 0x27c   : > { %vm5486_vm11 = vcmp.lt.s32.totalorder %v5294_v39, 32  ;;  %vm4622_vm12 = vcmp.ne.s32.totalorder %v4138_v51, 0  ;;  %vm4814_vm13 = vcmp.lt.s32.totalorder %v4138_v51, 0  ;;  %v5198_v50 = vadd.s32 48, %v4138_v51  ;;  %v12112_v39 = vpop.f32.mrb[83].mxu0 }
 0x27d   : > { %7122 = vst.msk [vmem:[%s10175_s27 + $0x294] sm:$0xf] %vm13692_vm8, %v7773_v13  ;;  %v6062_v59 = vsel %vm5486_vm11, %v2029_v24, 0.0  ;;  %vm5006_vm1 = vmand %vm4814_vm13, %vm4622_vm12  ;;  %v3060_v6 = vsub.s32 %v12038_v25, %v3059_v28  ;;  %v4115_v46 = vmul.u32 48, %v4114_v26  ;;  %v2123_v18 = vmax.f32 %v12073_v36, 0.0 }
 0x27e   : > { %v7682_v49 = vpack.c.bf16 %v6062_v59, %v6062_v59  ;;  %v5390_v5 = vsel %vm5006_vm1, %v5198_v50, %v4138_v51  ;;  %v12101_v11 = vmul.u32.u64.low 2863311531, %v12083_v0  ;;  %v12102_v53 = vmul.u32.u64.high 2863311531, %v12083_v0, %v12101_v11  ;;  %vm13695_vm11 = vmmov %vm13694_vm3 }
 0x27f   : > { %vm5582_vm5 = vcmp.lt.s32.totalorder %v5390_v5, 32  ;;  %vm4524_vm6 = vcmp.ne.s32.totalorder %v3060_v6, 0  ;;  %vm4716_vm7 = vcmp.lt.s32.totalorder %v3060_v6, 0  ;;  %v5100_v24 = vadd.s32 48, %v3060_v6  ;;  %v12135_v11 = vpop.f32.mrb[83].mxu1  ;;  %vm13696_vm1 = vmmov %vm13694_vm3 }
 0x280   : > { %7031 = vst.msk [vmem:[%s10175_s27 + $0x128] sm:$0xf] %vm13693_vm14, %v7682_v49  ;;  %v6158_v25 = vsel %vm5582_vm5, %v2125_v57, 0.0  ;;  %vm4908_vm4 = vmand %vm4716_vm7, %vm4524_vm6  ;;  %v4116_v9 = vsub.s32 %v2316_v31, %v4115_v46  ;;  %v3091_v55 = vshrl.u32 %v12091_v14, 5  ;;  %v2030_v28 = vmax.f32 %v12079_v17, 0.0 }
 0x281   : > { %v7778_v23 = vpack.c.bf16 %v6158_v25, %v6158_v25  ;;  %v5292_v51 = vsel %vm4908_vm4, %v5100_v24, %v3060_v6  ;;  %v2221_v26 = vadd.s32 520, %v13591_v10  ;;  %v2126_v36 = vmax.f32 %v12098_v62, 0.0 }
 0x282   : > { %vm5484_vm15 = vcmp.lt.s32.totalorder %v5292_v51, 32  ;;  %vm4620_vm2 = vcmp.ne.s32.totalorder %v4116_v9, 0  ;;  %vm4812_vm0 = vcmp.lt.s32.totalorder %v4116_v9, 0  ;;  %v5196_v13 = vadd.s32 48, %v4116_v9 }
 0x283   : > { %7127 = vst.msk [vmem:[%s10175_s27 + $0x2a8] sm:$0xf] %vm13694_vm3, %v7778_v23  ;;  %v6060_v57 = vsel %vm5484_vm15, %v2027_v15, 0.0  ;;  %vm5004_vm10 = vmand %vm4812_vm0, %vm4620_vm2  ;;  %v3092_v31 = vmul.u32 48, %v3091_v55  ;;  %v4147_v17 = vshrl.u32 %v12102_v53, 5  ;;  %v12125_v49 = vadd.f32 %v11831_v19, %v11631_v4 }
 0x284   : > { %v7680_v42 = vpack.c.bf16 %v6060_v57, %v6060_v57  ;;  %v5388_v14 = vsel %vm5004_vm10, %v5196_v13, %v4116_v9  ;;  %v12120_v50 = vmul.u32.u64.low 2863311531, %v2221_v26  ;;  %v12121_v59 = vmul.u32.u64.high 2863311531, %v2221_v26, %v12120_v50  ;;  %vm13697_vm15 = vmmov %vm13696_vm1 }
 0x285   : > { %vm5580_vm9 = vcmp.lt.s32.totalorder %v5388_v14, 32  ;;  %v3093_v6 = vsub.s32 %v2223_v16, %v3092_v31  ;;  %v4148_v46 = vmul.u32 48, %v4147_v17  ;;  %v12131_v15 = vadd.f32 %v11831_v19, %v11654_v56  ;;  %vm13698_vm10 = vmmov %vm13696_vm1 }
 0x286   : > { %7029 = vst.msk [vmem:[%s10175_s27 + $0x120] sm:$0xf] %vm13695_vm11, %v7680_v42  ;;  %v6156_v45 = vsel %vm5580_vm9, %v2123_v18, 0.0  ;;  %v2317_v62 = vadd.s32 1288, %v13591_v10  ;;  %v2226_v5 = vadd.s32 560, %v13591_v10  ;;  %v3069_v24 = vshrl.u32 %v12121_v59, 5 }
 0x287   : > { %v7776_v16 = vpack.c.bf16 %v6156_v45, %v6156_v45  ;;  %vm4527_vm12 = vcmp.ne.s32.totalorder %v3093_v6, 0  ;;  %vm4719_vm13 = vcmp.lt.s32.totalorder %v3093_v6, 0  ;;  %v5103_v53 = vadd.s32 48, %v3093_v6 }
 0x288   : > { %vm4911_vm8 = vmand %vm4719_vm13, %vm4527_vm12  ;;  %v4149_v4 = vsub.s32 %v12083_v0, %v4148_v46  ;;  %v12139_v25 = vmul.u32.u64.low 2863311531, %v2317_v62  ;;  %v12140_v18 = vmul.u32.u64.high 2863311531, %v2317_v62, %v12139_v25  ;;  %v2028_v9 = vmax.f32 %v12125_v49, 0.0 }
 0x289   : > { %7125 = vst.msk [vmem:[%s10175_s27 + $0x2a0] sm:$0xf] %vm13696_vm1, %v7776_v16  ;;  %v5295_v56 = vsel %vm4911_vm8, %v5103_v53, %v3093_v6  ;;  %v12145_v55 = vmul.u32.u64.low 2863311531, %v2226_v5  ;;  %v12146_v23 = vmul.u32.u64.high 2863311531, %v2226_v5, %v12145_v55  ;;  %v3070_v0 = vmul.u32 48, %v3069_v24  ;;  %v12168_v16 = vpop.f32.mrb[84].mxu0 }
 0x28a   : > { %vm5487_vm5 = vcmp.lt.s32.totalorder %v5295_v56, 32  ;;  %vm4623_vm6 = vcmp.ne.s32.totalorder %v4149_v4, 0  ;;  %vm4815_vm7 = vcmp.lt.s32.totalorder %v4149_v4, 0  ;;  %v5199_v51 = vadd.s32 48, %v4149_v4 }
 0x28b   : > { %v6063_v13 = vsel %vm5487_vm5, %v2030_v28, 0.0  ;;  %vm5007_vm14 = vmand %vm4815_vm7, %vm4623_vm6  ;;  %v12150_v57 = vadd.f32 %v11831_v19, %v11687_v37  ;;  %v2322_v31 = vadd.s32 1328, %v13591_v10  ;;  %v4125_v14 = vshrl.u32 %v12140_v18, 5 }
 0x28c   : > { %v7683_v17 = vpack.c.bf16 %v6063_v13, %v6063_v13  ;;  %v5391_v42 = vsel %vm5007_vm14, %v5199_v51, %v4149_v4  ;;  %v12156_v50 = vadd.f32 %v11831_v19, %v11689_v27  ;;  %v3071_v59 = vsub.s32 %v2221_v26, %v3070_v0  ;;  %v12170_v27 = vpop.f32.mrb[84].mxu1  ;;  %vm13699_vm6 = vmmov %vm13698_vm10 }
 0x28d   : > { %vm5583_vm4 = vcmp.lt.s32.totalorder %v5391_v42, 32  ;;  %v3124_v28 = vshrl.u32 %v12146_v23, 5  ;;  %v12161_v6 = vadd.f32 %v11831_v19, %v11700_v33  ;;  %v4126_v46 = vmul.u32 48, %v4125_v14 }
 0x28e   : > { %7032 = vst.msk [vmem:[%s10175_s27 + $0x12c] sm:$0xf] %vm13697_vm15, %v7683_v17  ;;  %v6159_v37 = vsel %vm5583_vm4, %v2126_v36, 0.0  ;;  %v12165_v49 = vmul.u32.u64.low 2863311531, %v2322_v31  ;;  %v12166_v45 = vmul.u32.u64.high 2863311531, %v2322_v31, %v12165_v49  ;;  %vm4525_vm2 = vcmp.ne.s32.totalorder %v3071_v59, 0  ;;  %vm13700_vm4 = vmmov %vm13699_vm6 }
 0x28f   : > { %v7779_v53 = vpack.c.bf16 %v6159_v37, %v6159_v37  ;;  %vm4717_vm0 = vcmp.lt.s32.totalorder %v3071_v59, 0  ;;  %v5101_v26 = vadd.s32 48, %v3071_v59  ;;  %v2124_v33 = vmax.f32 %v12131_v15, 0.0  ;;  %v12181_v15 = vpop.f32.mrb[85].mxu0  ;;  %v12194_v37 = vpop.f32.mrb[85].mxu1 }
 0x290   : > { %vm4909_vm3 = vmand %vm4717_vm0, %vm4525_vm2  ;;  %v4127_v4 = vsub.s32 %v2317_v62, %v4126_v46  ;;  %v3125_v24 = vmul.u32 48, %v3124_v28  ;;  %v2224_v25 = vadd.s32 544, %v13591_v10  ;;  %v2033_v18 = vmax.f32 %v12150_v57, 0.0 }
 0x291   : > { %7128 = vst.msk [vmem:[%s10175_s27 + $0x2ac] sm:$0xf] %vm13698_vm10, %v7779_v53  ;;  %v5293_v36 = vsel %vm4909_vm3, %v5101_v26, %v3071_v59  ;;  %v2129_v56 = vmax.f32 %v12156_v50, 0.0  ;;  %v12179_v55 = vadd.s32 1312, %v13591_v10  ;;  %v4180_v13 = vshrl.u32 %v12166_v45, 5  ;;  %vm13701_vm3 = vmmov %vm13700_vm4 }
 0x292   : > { %vm5485_vm9 = vcmp.lt.s32.totalorder %v5293_v36, 32  ;;  %vm4621_vm11 = vcmp.ne.s32.totalorder %v4127_v4, 0  ;;  %vm4813_vm12 = vcmp.lt.s32.totalorder %v4127_v4, 0  ;;  %v5197_v23 = vadd.s32 48, %v4127_v4 }
 0x293   : > { %v6061_v62 = vsel %vm5485_vm9, %v2028_v9, 0.0  ;;  %vm5005_vm13 = vmand %vm4813_vm12, %vm4621_vm11  ;;  %v3126_v51 = vsub.s32 %v2226_v5, %v3125_v24  ;;  %v2031_v0 = vmax.f32 %v12161_v6, 0.0  ;;  %v4181_v9 = vmul.u32 48, %v4180_v13 }
 0x294   : > { %v7681_v57 = vpack.c.bf16 %v6061_v62, %v6061_v62  ;;  %v5389_v17 = vsel %vm5005_vm13, %v5197_v23, %v4127_v4  ;;  %v12185_v42 = vmul.u32.u64.low 2863311531, %v2224_v25  ;;  %v12186_v14 = vmul.u32.u64.high 2863311531, %v2224_v25, %v12185_v42  ;;  %vm13702_vm13 = vmmov %vm13701_vm3 }
 0x295   : > { %vm5581_vm8 = vcmp.lt.s32.totalorder %v5389_v17, 32  ;;  %vm4530_vm1 = vcmp.ne.s32.totalorder %v3126_v51, 0  ;;  %vm4722_vm5 = vcmp.lt.s32.totalorder %v3126_v51, 0  ;;  %v5106_v50 = vadd.s32 48, %v3126_v51 }
 0x296   : > { %7030 = vst.msk [vmem:[%s10175_s27 + $0x124] sm:$0xf] %vm13699_vm6, %v7681_v57  ;;  %v6157_v59 = vsel %vm5581_vm8, %v2124_v33, 0.0  ;;  %vm4914_vm7 = vmand %vm4722_vm5, %vm4530_vm1  ;;  %v12191_v5 = vmul.u32.u64.low 2863311531, %v12179_v55  ;;  %v12192_v28 = vmul.u32.u64.high 2863311531, %v12179_v55, %v12191_v5  ;;  %v12198_v45 = vadd.f32 %v11831_v19, %v11713_v8 }
 0x297   : > { %v7777_v46 = vpack.c.bf16 %v6157_v59, %v6157_v59  ;;  %v5298_v49 = vsel %vm4914_vm7, %v5106_v50, %v3126_v51  ;;  %v2227_v53 = vadd.s32 568, %v13591_v10  ;;  %v4182_v26 = vsub.s32 %v2322_v31, %v4181_v9  ;;  %v12214_v51 = vpop.f32.mrb[86].mxu0  ;;  %v12232_v59 = vpop.f32.mrb[86].mxu1 }
 0x298   : > { %vm5490_vm14 = vcmp.lt.s32.totalorder %v5298_v49, 32  ;;  %v3102_v33 = vshrl.u32 %v12186_v14, 5  ;;  %v12204_v4 = vadd.f32 %v11831_v19, %v11731_v41  ;;  %v12212_v8 = vadd.s32 1336, %v13591_v10 }
 0x299   : > { %7126 = vst.msk [vmem:[%s10175_s27 + $0x2a4] sm:$0xf] %vm13700_vm4, %v7777_v46  ;;  %v6066_v24 = vsel %vm5490_vm14, %v2033_v18, 0.0  ;;  %v12208_v36 = vmul.u32.u64.low 2863311531, %v2227_v53  ;;  %v12209_v23 = vmul.u32.u64.high 2863311531, %v2227_v53, %v12208_v36  ;;  %vm4626_vm15 = vcmp.ne.s32.totalorder %v4182_v26, 0 }
 0x29a   : > { %v7686_v62 = vpack.c.bf16 %v6066_v24, %v6066_v24  ;;  %vm4818_vm2 = vcmp.lt.s32.totalorder %v4182_v26, 0  ;;  %v5202_v31 = vadd.s32 48, %v4182_v26  ;;  %v3103_v13 = vmul.u32 48, %v3102_v33 }
 0x29b   : > { %vm5010_vm0 = vmand %vm4818_vm2, %vm4626_vm15  ;;  %v4158_v41 = vshrl.u32 %v12192_v28, 5  ;;  %v12219_v57 = vadd.f32 %v11831_v19, %v11748_v21  ;;  %v12223_v18 = vadd.f32 %v11831_v19, %v11758_v61  ;;  %v2225_v50 = vadd.s32 552, %v13591_v10 }
 0x29c   : > { %7035 = vst.msk [vmem:[%s10175_s27 + $0x138] sm:$0xf] %vm13701_vm3, %v7686_v62  ;;  %v5394_v17 = vsel %vm5010_vm0, %v5202_v31, %v4182_v26  ;;  %v12228_v42 = vmul.u32.u64.low 2863311531, %v12212_v8  ;;  %v12229_v14 = vmul.u32.u64.high 2863311531, %v12212_v8, %v12228_v42  ;;  %v3104_v9 = vsub.s32 %v2224_v25, %v3103_v13  ;;  %v12242_v62 = vpop.f32.mrb[87].mxu0  ;;  %vm13703_vm15 = vmmov %vm13701_vm3 }
 0x29d   : > { %vm5586_vm10 = vcmp.lt.s32.totalorder %v5394_v17, 32  ;;  %v4159_v21 = vmul.u32 48, %v4158_v41  ;;  %v3135_v5 = vshrl.u32 %v12209_v23, 5  ;;  %v2127_v61 = vmax.f32 %v12198_v45, 0.0 }
 0x29e   : > { %v6162_v28 = vsel %vm5586_vm10, %v2129_v56, 0.0  ;;  %v12236_v19 = vmul.u32.u64.low 2863311531, %v2225_v50  ;;  %v12237_v46 = vmul.u32.u64.high 2863311531, %v2225_v50, %v12236_v19  ;;  %vm4528_vm9 = vcmp.ne.s32.totalorder %v3104_v9, 0 }
 0x29f   : > { %v7782_v49 = vpack.c.bf16 %v6162_v28, %v6162_v28  ;;  %vm4720_vm11 = vcmp.lt.s32.totalorder %v3104_v9, 0  ;;  %v5104_v26 = vadd.s32 48, %v3104_v9  ;;  %v4160_v33 = vsub.s32 %v12179_v55, %v4159_v21 }
 0x2a0   : > { %vm4912_vm12 = vmand %vm4720_vm11, %vm4528_vm9  ;;  %v2034_v24 = vmax.f32 %v12204_v4, 0.0  ;;  %v3136_v25 = vmul.u32 48, %v3135_v5  ;;  %v4191_v36 = vshrl.u32 %v12229_v14, 5  ;;  %v2130_v45 = vmax.f32 %v12219_v57, 0.0  ;;  %v12251_v4 = vpop.f32.mrb[87].mxu1 }
 0x2a1   : > { %7131 = vst.msk [vmem:[%s10175_s27 + $0x2b8] sm:$0xf] %vm13702_vm13, %v7782_v49  ;;  %v5296_v56 = vsel %vm4912_vm12, %v5104_v26, %v3104_v9  ;;  %v2032_v23 = vmax.f32 %v12223_v18, 0.0  ;;  %v12249_v31 = vadd.s32 1320, %v13591_v10  ;;  %vm4624_vm1 = vcmp.ne.s32.totalorder %v4160_v33, 0  ;;  %vm13704_vm9 = vmmov %vm13702_vm13 }
 0x2a2   : > { %vm5488_vm8 = vcmp.lt.s32.totalorder %v5296_v56, 32  ;;  %vm4816_vm5 = vcmp.lt.s32.totalorder %v4160_v33, 0  ;;  %v5200_v55 = vadd.s32 48, %v4160_v33  ;;  %v3137_v41 = vsub.s32 %v2227_v53, %v3136_v25  ;;  %v12259_v9 = vld [vmem:[%s12936_s2] ss:$0 sm:$0xff] }
 0x2a3   : > { %v6064_v13 = vsel %vm5488_vm8, %v2031_v0, 0.0  ;;  %vm5008_vm6 = vmand %vm4816_vm5, %vm4624_vm1  ;;  %v4192_v17 = vmul.u32 48, %v4191_v36  ;;  %v3113_v57 = vshrl.u32 %v12237_v46, 5  ;;  %v12263_v21 = vadd.f32 %v12259_v9, %v11767_v34 }
 0x2a4   : > { %v7684_v42 = vpack.c.bf16 %v6064_v13, %v6064_v13  ;;  %v5392_v14 = vsel %vm5008_vm6, %v5200_v55, %v4160_v33  ;;  %v2230_v5 = vadd.s32 592, %v13591_v10  ;;  %vm4531_vm14 = vcmp.ne.s32.totalorder %v3137_v41, 0  ;;  %vm13705_vm1 = vmmov %vm13704_vm9 }
 0x2a5   : > { %vm5584_vm7 = vcmp.lt.s32.totalorder %v5392_v14, 32  ;;  %vm4723_vm4 = vcmp.lt.s32.totalorder %v3137_v41, 0  ;;  %v5107_v6 = vadd.s32 48, %v3137_v41  ;;  %v4193_v53 = vsub.s32 %v12212_v8, %v4192_v17 }
 0x2a6   : > { %7033 = vst.msk [vmem:[%s10175_s27 + $0x130] sm:$0xf] %vm13703_vm15, %v7684_v42  ;;  %v6160_v0 = vsel %vm5584_vm7, %v2127_v61, 0.0  ;;  %vm4915_vm2 = vmand %vm4723_vm4, %vm4531_vm14  ;;  %v3114_v28 = vmul.u32 48, %v3113_v57  ;;  %v12271_v19 = vadd.f32 %v12259_v9, %v11807_v32  ;;  %v12284_v55 = vadd.f32 %v12259_v9, %v11809_v44 }
 0x2a7   : > { %v7780_v34 = vpack.c.bf16 %v6160_v0, %v6160_v0  ;;  %v5299_v46 = vsel %vm4915_vm2, %v5107_v6, %v3137_v41  ;;  %v12274_v49 = vmul.u32.u64.low 2863311531, %v12249_v31  ;;  %v12275_v26 = vmul.u32.u64.high 2863311531, %v12249_v31, %v12274_v49  ;;  %vm13706_vm7 = vmmov %vm13705_vm1 }
 0x2a8   : > { %vm5491_vm0 = vcmp.lt.s32.totalorder %v5299_v46, 32  ;;  %vm4627_vm3 = vcmp.ne.s32.totalorder %v4193_v53, 0  ;;  %vm4819_vm10 = vcmp.lt.s32.totalorder %v4193_v53, 0  ;;  %v5203_v33 = vadd.s32 48, %v4193_v53  ;;  %vm13707_vm14 = vmmov %vm13705_vm1 }
 0x2a9   : > { %7129 = vst.msk [vmem:[%s10175_s27 + $0x2b0] sm:$0xf] %vm13704_vm9, %v7780_v34  ;;  %v6067_v61 = vsel %vm5491_vm0, %v2034_v24, 0.0  ;;  %vm5011_vm11 = vmand %vm4819_vm10, %vm4627_vm3  ;;  %v3115_v8 = vsub.s32 %v2225_v50, %v3114_v28  ;;  %v12279_v25 = vmul.u32.u64.low 2863311531, %v2230_v5  ;;  %v12280_v36 = vmul.u32.u64.high 2863311531, %v2230_v5, %v12279_v25  ;;  %v12299_v34 = vpop.f32.mrb[88].mxu1 }
 0x2aa   : > { %v7687_v32 = vpack.c.bf16 %v6067_v61, %v6067_v61  ;;  %v5395_v56 = vsel %vm5011_vm11, %v5203_v33, %v4193_v53  ;;  %v2326_v13 = vadd.s32 1360, %v13591_v10  ;;  %v4169_v50 = vshrl.u32 %v12275_v26, 5 }
 0x2ab   : > { %vm5587_vm12 = vcmp.lt.s32.totalorder %v5395_v56, 32  ;;  %vm4529_vm13 = vcmp.ne.s32.totalorder %v3115_v8, 0  ;;  %vm4721_vm8 = vcmp.lt.s32.totalorder %v3115_v8, 0  ;;  %v5105_v41 = vadd.s32 48, %v3115_v8 }
 0x2ac   : > { %7036 = vst.msk [vmem:[%s10175_s27 + $0x13c] sm:$0xf] %vm13705_vm1, %v7687_v32  ;;  %v6163_v24 = vsel %vm5587_vm12, %v2130_v45, 0.0  ;;  %vm4913_vm5 = vmand %vm4721_vm8, %vm4529_vm13  ;;  %v12290_v17 = vmul.u32.u64.low 2863311531, %v2326_v13  ;;  %v12291_v57 = vmul.u32.u64.high 2863311531, %v2326_v13, %v12290_v17  ;;  %v2128_v44 = vmax.f32 %v12263_v21, 0.0 }
 0x2ad   : > { %v7783_v42 = vpack.c.bf16 %v6163_v24, %v6163_v24  ;;  %v5297_v14 = vsel %vm4913_vm5, %v5105_v41, %v3115_v8  ;;  %v3168_v6 = vshrl.u32 %v12280_v36, 5  ;;  %v4170_v0 = vmul.u32 48, %v4169_v50  ;;  %v12297_v45 = vpop.f32.mrb[88].mxu0  ;;  %vm13708_vm5 = vmmov %vm13705_vm1 }
 0x2ae   : > { %vm5489_vm6 = vcmp.lt.s32.totalorder %v5297_v14, 32  ;;  %v2037_v53 = vmax.f32 %v12271_v19, 0.0  ;;  %v2228_v28 = vadd.s32 576, %v13591_v10  ;;  %v2133_v21 = vmax.f32 %v12284_v55, 0.0  ;;  %v12310_v19 = vpop.f32.mrb[89].mxu0  ;;  %v12324_v55 = vpop.f32.mrb[89].mxu1 }
 0x2af   : > { %7132 = vst.msk [vmem:[%s10175_s27 + $0x2bc] sm:$0xf] %vm13706_vm7, %v7783_v42  ;;  %v6065_v46 = vsel %vm5489_vm6, %v2032_v23, 0.0  ;;  %v3169_v49 = vmul.u32 48, %v3168_v6  ;;  %v12308_v26 = vadd.f32 %v12259_v9, %v11820_v1  ;;  %v4171_v61 = vsub.s32 %v12249_v31, %v4170_v0 }
 0x2b0   : > { %v7685_v33 = vpack.c.bf16 %v6065_v46, %v6065_v46  ;;  %v4224_v8 = vshrl.u32 %v12291_v57, 5  ;;  %v2324_v25 = vadd.s32 1344, %v13591_v10  ;;  %v12320_v23 = vadd.f32 %v12259_v9, %v11839_v22 }
 0x2b1   : > { %v3170_v36 = vsub.s32 %v2230_v5, %v3169_v49  ;;  %v12315_v32 = vmul.u32.u64.low 2863311531, %v2228_v28  ;;  %v12316_v18 = vmul.u32.u64.high 2863311531, %v2228_v28, %v12315_v32  ;;  %vm4625_vm4 = vcmp.ne.s32.totalorder %v4171_v61, 0 }
 0x2b2   : > { %7034 = vst.msk [vmem:[%s10175_s27 + $0x134] sm:$0xf] %vm13707_vm14, %v7685_v33  ;;  %vm4817_vm15 = vcmp.lt.s32.totalorder %v4171_v61, 0  ;;  %v5201_v1 = vadd.s32 48, %v4171_v61  ;;  %v4225_v56 = vmul.u32 48, %v4224_v8  ;;  %v12328_v5 = vadd.f32 %v12259_v9, %v11850_v2  ;;  %v12335_v2 = vpop.f32.mrb[90].mxu0 }
 0x2b3   : > { %vm5009_vm2 = vmand %vm4817_vm15, %vm4625_vm4  ;;  %vm4534_vm0 = vcmp.ne.s32.totalorder %v3170_v36, 0  ;;  %vm4726_vm3 = vcmp.lt.s32.totalorder %v3170_v36, 0  ;;  %v5110_v31 = vadd.s32 48, %v3170_v36  ;;  %v3146_v57 = vshrl.u32 %v12316_v18, 5 }
 0x2b4   : > { %v5393_v41 = vsel %vm5009_vm2, %v5201_v1, %v4171_v61  ;;  %vm4918_vm10 = vmand %vm4726_vm3, %vm4534_vm0  ;;  %v4226_v22 = vsub.s32 %v2326_v13, %v4225_v56  ;;  %v12330_v24 = vmul.u32.u64.low 2863311531, %v2324_v25  ;;  %v12331_v50 = vmul.u32.u64.high 2863311531, %v2324_v25, %v12330_v24 }
 0x2b5   : > { %vm5585_vm9 = vcmp.lt.s32.totalorder %v5393_v41, 32  ;;  %v5302_v17 = vsel %vm4918_vm10, %v5110_v31, %v3170_v36  ;;  %v2231_v42 = vadd.s32 600, %v13591_v10  ;;  %v3147_v46 = vmul.u32 48, %v3146_v57  ;;  %v12351_v31 = vpop.f32.mrb[90].mxu1  ;;  %vm13709_vm15 = vmmov %vm13705_vm1 }
 0x2b6   : > { %v6161_v14 = vsel %vm5585_vm9, %v2128_v44, 0.0  ;;  %vm5494_vm11 = vcmp.lt.s32.totalorder %v5302_v17, 32  ;;  %vm4630_vm12 = vcmp.ne.s32.totalorder %v4226_v22, 0  ;;  %vm4822_vm13 = vcmp.lt.s32.totalorder %v4226_v22, 0 }
 0x2b7   : > { %v7781_v6 = vpack.c.bf16 %v6161_v14, %v6161_v14  ;;  %v6070_v0 = vsel %vm5494_vm11, %v2037_v53, 0.0  ;;  %vm5014_vm8 = vmand %vm4822_vm13, %vm4630_vm12  ;;  %v5206_v13 = vadd.s32 48, %v4226_v22  ;;  %v4202_v33 = vshrl.u32 %v12331_v50, 5 }
 0x2b8   : > { %v7690_v49 = vpack.c.bf16 %v6070_v0, %v6070_v0  ;;  %v12338_v61 = vmul.u32.u64.low 2863311531, %v2231_v42  ;;  %v12339_v8 = vmul.u32.u64.high 2863311531, %v2231_v42, %v12338_v61  ;;  %v2035_v36 = vmax.f32 %v12308_v26, 0.0  ;;  %vm13710_vm11 = vmmov %vm13705_vm1 }
 0x2b9   : > { %7130 = vst.msk [vmem:[%s10175_s27 + $0x2b4] sm:$0xf] %vm13705_vm1, %v7781_v6  ;;  %v5398_v44 = vsel %vm5014_vm8, %v5206_v13, %v4226_v22  ;;  %v3148_v32 = vsub.s32 %v2228_v28, %v3147_v46  ;;  %v2327_v18 = vadd.s32 1368, %v13591_v10  ;;  %v2131_v53 = vmax.f32 %v12320_v23, 0.0 }
 0x2ba   : > { %7039 = vst.msk [vmem:[%s10175_s27 + $0x148] sm:$0xf] %vm13708_vm5, %v7690_v49  ;;  %vm5590_vm6 = vcmp.lt.s32.totalorder %v5398_v44, 32  ;;  %v4203_v1 = vmul.u32 48, %v4202_v33  ;;  %v12349_v56 = vadd.s32 584, %v13591_v10  ;;  %v2038_v24 = vmax.f32 %v12328_v5, 0.0 }
 0x2bb   : > { %v6166_v41 = vsel %vm5590_vm6, %v2133_v21, 0.0  ;;  %vm4532_vm7 = vcmp.ne.s32.totalorder %v3148_v32, 0  ;;  %vm4724_vm14 = vcmp.lt.s32.totalorder %v3148_v32, 0  ;;  %v5108_v22 = vadd.s32 48, %v3148_v32  ;;  %v12373_v33 = vpop.f32.mrb[91].mxu0 }
 0x2bc   : > { %v7786_v26 = vpack.c.bf16 %v6166_v41, %v6166_v41  ;;  %vm4916_vm4 = vmand %vm4724_vm14, %vm4532_vm7  ;;  %v4204_v28 = vsub.s32 %v2324_v25, %v4203_v1  ;;  %v3179_v50 = vshrl.u32 %v12339_v8, 5  ;;  %v12357_v23 = vadd.f32 %v12259_v9, %v11866_v40  ;;  %v12386_v41 = vpop.f32.mrb[91].mxu1 }
 0x2bd   : > { %v5300_v17 = vsel %vm4916_vm4, %v5108_v22, %v3148_v32  ;;  %v12359_v57 = vmul.u32.u64.low 2863311531, %v2327_v18  ;;  %v12360_v14 = vmul.u32.u64.high 2863311531, %v2327_v18, %v12359_v57  ;;  %v12370_v46 = vadd.f32 %v12259_v9, %v11888_v47  ;;  %vm13711_vm4 = vmmov %vm13705_vm1 }
 0x2be   : > { %7135 = vst.msk [vmem:[%s10175_s27 + $0x2c8] sm:$0xf] %vm13709_vm15, %v7786_v26  ;;  %vm5492_vm2 = vcmp.lt.s32.totalorder %v5300_v17, 32  ;;  %vm4628_vm0 = vcmp.ne.s32.totalorder %v4204_v28, 0  ;;  %vm4820_vm3 = vcmp.lt.s32.totalorder %v4204_v28, 0  ;;  %v5204_v21 = vadd.s32 48, %v4204_v28 }
 0x2bf   : > { %v6068_v25 = vsel %vm5492_vm2, %v2035_v36, 0.0  ;;  %vm5012_vm10 = vmand %vm4820_vm3, %vm4628_vm0  ;;  %v3180_v5 = vmul.u32 48, %v3179_v50  ;;  %v12365_v6 = vmul.u32.u64.low 2863311531, %v12349_v56  ;;  %v12366_v0 = vmul.u32.u64.high 2863311531, %v12349_v56, %v12365_v6 }
 0x2c0   : > { %v7688_v13 = vpack.c.bf16 %v6068_v25, %v6068_v25  ;;  %v5396_v40 = vsel %vm5012_vm10, %v5204_v21, %v4204_v28  ;;  %v2325_v49 = vadd.s32 1352, %v13591_v10  ;;  %v2134_v8 = vmax.f32 %v12357_v23, 0.0 }
 0x2c1   : > { %vm5588_vm9 = vcmp.lt.s32.totalorder %v5396_v40, 32  ;;  %v3181_v61 = vsub.s32 %v2231_v42, %v3180_v5  ;;  %v4235_v44 = vshrl.u32 %v12360_v14, 5  ;;  %v12381_v32 = vadd.f32 %v12259_v9, %v11901_v12 }
 0x2c2   : > { %7037 = vst.msk [vmem:[%s10175_s27 + $0x140] sm:$0xf] %vm13710_vm11, %v7688_v13  ;;  %v6164_v36 = vsel %vm5588_vm9, %v2131_v53, 0.0  ;;  %v12383_v47 = vmul.u32.u64.low 2863311531, %v2325_v49  ;;  %v12384_v1 = vmul.u32.u64.high 2863311531, %v2325_v49, %v12383_v47  ;;  %v2036_v28 = vmax.f32 %v12370_v46, 0.0 }
 0x2c3   : > { %v7784_v22 = vpack.c.bf16 %v6164_v36, %v6164_v36  ;;  %vm4535_vm12 = vcmp.ne.s32.totalorder %v3181_v61, 0  ;;  %vm4727_vm13 = vcmp.lt.s32.totalorder %v3181_v61, 0  ;;  %v5111_v42 = vadd.s32 48, %v3181_v61  ;;  %v12419_v47 = vpop.f32.mrb[92].mxu0 }
 0x2c4   : > { %vm4919_vm8 = vmand %vm4727_vm13, %vm4535_vm12  ;;  %v4236_v26 = vmul.u32 48, %v4235_v44  ;;  %v3157_v50 = vshrl.u32 %v12366_v0, 5  ;;  %v2234_v53 = vadd.s32 624, %v13591_v10  ;;  %v12395_v17 = vadd.f32 %v12259_v9, %v11934_v63 }
 0x2c5   : > { %7133 = vst.msk [vmem:[%s10175_s27 + $0x2c0] sm:$0xf] %vm13705_vm1, %v7784_v22  ;;  %v5303_v12 = vsel %vm4919_vm8, %v5111_v42, %v3181_v61  ;;  %v12399_v23 = vadd.f32 %v12259_v9, %v11936_v7  ;;  %v2330_v57 = vadd.s32 1392, %v13591_v10  ;;  %v4213_v25 = vshrl.u32 %v12384_v1, 5  ;;  %v12421_v1 = vpop.f32.mrb[92].mxu1  ;;  %vm13712_vm12 = vmmov %vm13705_vm1 }
 0x2c6   : > { %vm5495_vm5 = vcmp.lt.s32.totalorder %v5303_v12, 32  ;;  %v4237_v14 = vsub.s32 %v2327_v18, %v4236_v26  ;;  %v3158_v21 = vmul.u32 48, %v3157_v50  ;;  %v2132_v6 = vmax.f32 %v12381_v32, 0.0  ;;  %v12425_v12 = vpop.f32.mrb[93].mxu0 }
 0x2c7   : > { %v6071_v5 = vsel %vm5495_vm5, %v2038_v24, 0.0  ;;  %v12404_v0 = vmul.u32.u64.low 2863311531, %v2234_v53  ;;  %v12405_v13 = vmul.u32.u64.high 2863311531, %v2234_v53, %v12404_v0  ;;  %v4214_v46 = vmul.u32 48, %v4213_v25 }
 0x2c8   : > { %v7691_v63 = vpack.c.bf16 %v6071_v5, %v6071_v5  ;;  %vm4631_vm6 = vcmp.ne.s32.totalorder %v4237_v14, 0  ;;  %vm4823_vm7 = vcmp.lt.s32.totalorder %v4237_v14, 0  ;;  %v5207_v40 = vadd.s32 48, %v4237_v14 }
 0x2c9   : > { %vm5015_vm14 = vmand %vm4823_vm7, %vm4631_vm6  ;;  %v3159_v7 = vsub.s32 %v12349_v56, %v3158_v21  ;;  %v12408_v61 = vmul.u32.u64.low 2863311531, %v2330_v57  ;;  %v12409_v44 = vmul.u32.u64.high 2863311531, %v2330_v57, %v12408_v61  ;;  %v2041_v24 = vmax.f32 %v12395_v17, 0.0 }
 0x2ca   : > { %7040 = vst.msk [vmem:[%s10175_s27 + $0x14c] sm:$0xf] %vm13711_vm4, %v7691_v63  ;;  %v5399_v18 = vsel %vm5015_vm14, %v5207_v40, %v4237_v14  ;;  %v2137_v36 = vmax.f32 %v12399_v23, 0.0  ;;  %v12417_v32 = vadd.f32 %v12259_v9, %v11940_v30  ;;  %v4215_v42 = vsub.s32 %v2325_v49, %v4214_v46 }
 0x2cb   : > { %vm5591_vm15 = vcmp.lt.s32.totalorder %v5399_v18, 32  ;;  %vm4533_vm2 = vcmp.ne.s32.totalorder %v3159_v7, 0  ;;  %vm4725_vm0 = vcmp.lt.s32.totalorder %v3159_v7, 0  ;;  %v5109_v56 = vadd.s32 48, %v3159_v7 }
 0x2cc   : > { %v6167_v22 = vsel %vm5591_vm15, %v2134_v8, 0.0  ;;  %vm4917_vm3 = vmand %vm4725_vm0, %vm4533_vm2  ;;  %v3212_v26 = vshrl.u32 %v12405_v13, 5  ;;  %v2232_v50 = vadd.s32 608, %v13591_v10  ;;  %v4268_v21 = vshrl.u32 %v12409_v44, 5 }
 0x2cd   : > { %v7787_v30 = vpack.c.bf16 %v6167_v22, %v6167_v22  ;;  %v5301_v14 = vsel %vm4917_vm3, %v5109_v56, %v3159_v7  ;;  %v2328_v25 = vadd.s32 1376, %v13591_v10  ;;  %vm4629_vm9 = vcmp.ne.s32.totalorder %v4215_v42, 0  ;;  %v12439_v56 = vpop.f32.mrb[93].mxu1  ;;  %vm13713_vm15 = vmmov %vm13705_vm1 }
 0x2ce   : > { %vm5493_vm10 = vcmp.lt.s32.totalorder %v5301_v14, 32  ;;  %vm4821_vm11 = vcmp.lt.s32.totalorder %v4215_v42, 0  ;;  %v5205_v5 = vadd.s32 48, %v4215_v42  ;;  %v3213_v8 = vmul.u32 48, %v3212_v26  ;;  %v12448_v14 = vpop.f32.mrb[94].mxu0 }
 0x2cf   : > { %7136 = vst.msk [vmem:[%s10175_s27 + $0x2cc] sm:$0xf] %vm13712_vm12, %v7787_v30  ;;  %v6069_v49 = vsel %vm5493_vm10, %v2036_v28, 0.0  ;;  %vm5013_vm13 = vmand %vm4821_vm11, %vm4629_vm9  ;;  %v4269_v0 = vmul.u32 48, %v4268_v21  ;;  %v2039_v13 = vmax.f32 %v12417_v32, 0.0  ;;  %v12437_v18 = vadd.f32 %v12259_v9, %v11954_v52 }
 0x2d0   : > { %v7689_v63 = vpack.c.bf16 %v6069_v49, %v6069_v49  ;;  %v5397_v40 = vsel %vm5013_vm13, %v5205_v5, %v4215_v42  ;;  %v12432_v7 = vmul.u32.u64.low 2863311531, %v2232_v50  ;;  %v12433_v46 = vmul.u32.u64.high 2863311531, %v2232_v50, %v12432_v7  ;;  %vm13714_vm10 = vmmov %vm13705_vm1 }
 0x2d1   : > { %vm5589_vm8 = vcmp.lt.s32.totalorder %v5397_v40, 32  ;;  %v3214_v61 = vsub.s32 %v2234_v53, %v3213_v8  ;;  %v4270_v44 = vsub.s32 %v2330_v57, %v4269_v0  ;;  %v2235_v42 = vadd.s32 632, %v13591_v10  ;;  %vm13715_vm12 = vmmov %vm13705_vm1 }
 0x2d2   : > { %7038 = vst.msk [vmem:[%s10175_s27 + $0x144] sm:$0xf] %vm13705_vm1, %v7689_v63  ;;  %v6165_v28 = vsel %vm5589_vm8, %v2132_v6, 0.0  ;;  %v12443_v22 = vmul.u32.u64.low 2863311531, %v2328_v25  ;;  %v12444_v26 = vmul.u32.u64.high 2863311531, %v2328_v25, %v12443_v22  ;;  %v3190_v57 = vshrl.u32 %v12433_v46, 5 }
 0x2d3   : > { %v7785_v30 = vpack.c.bf16 %v6165_v28, %v6165_v28  ;;  %vm4538_vm5 = vcmp.ne.s32.totalorder %v3214_v61, 0  ;;  %vm4730_vm6 = vcmp.lt.s32.totalorder %v3214_v61, 0  ;;  %v5114_v53 = vadd.s32 48, %v3214_v61 }
 0x2d4   : > { %vm4922_vm7 = vmand %vm4730_vm6, %vm4538_vm5  ;;  %vm4634_vm14 = vcmp.ne.s32.totalorder %v4270_v44, 0  ;;  %vm4826_vm4 = vcmp.lt.s32.totalorder %v4270_v44, 0  ;;  %v5210_v52 = vadd.s32 48, %v4270_v44  ;;  %v2135_v21 = vmax.f32 %v12437_v18, 0.0 }
 0x2d5   : > { %7134 = vst.msk [vmem:[%s10175_s27 + $0x2c4] sm:$0xf] %vm13713_vm15, %v7785_v30  ;;  %v5306_v6 = vsel %vm4922_vm7, %v5114_v53, %v3214_v61  ;;  %vm5018_vm2 = vmand %vm4826_vm4, %vm4634_vm14  ;;  %v12453_v5 = vmul.u32.u64.low 2863311531, %v2235_v42  ;;  %v12454_v49 = vmul.u32.u64.high 2863311531, %v2235_v42, %v12453_v5  ;;  %v3191_v0 = vmul.u32 48, %v3190_v57  ;;  %v12462_v61 = vpop.f32.mrb[94].mxu1 }
 0x2d6   : > { %vm5498_vm0 = vcmp.lt.s32.totalorder %v5306_v6, 32  ;;  %v5402_v8 = vsel %vm5018_vm2, %v5210_v52, %v4270_v44  ;;  %v4246_v63 = vshrl.u32 %v12444_v26, 5  ;;  %v1512_v7 = vadd.f32 %v12259_v9, %v11963_v48  ;;  %v12481_v5 = vpop.f32.mrb[95].mxu0  ;;  %vm13716_vm2 = vmmov %vm13714_vm10 }
 0x2d7   : > { %v6074_v40 = vsel %vm5498_vm0, %v2041_v24, 0.0  ;;  %vm5594_vm3 = vcmp.lt.s32.totalorder %v5402_v8, 32  ;;  %v2331_v46 = vadd.s32 1400, %v13591_v10  ;;  %v3192_v44 = vsub.s32 %v2232_v50, %v3191_v0  ;;  %vm13717_vm0 = vmmov %vm13716_vm2 }
 0x2d8   : > { %v7694_v18 = vpack.c.bf16 %v6074_v40, %v6074_v40  ;;  %v6170_v28 = vsel %vm5594_vm3, %v2137_v36, 0.0  ;;  %v4247_v22 = vmul.u32 48, %v4246_v63  ;;  %v3223_v26 = vshrl.u32 %v12454_v49, 5 }
 0x2d9   : > { %v7790_v30 = vpack.c.bf16 %v6170_v28, %v6170_v28  ;;  %v12467_v17 = vmul.u32.u64.low 2863311531, %v2331_v46  ;;  %v12468_v24 = vmul.u32.u64.high 2863311531, %v2331_v46, %v12467_v17  ;;  %vm4536_vm9 = vcmp.ne.s32.totalorder %v3192_v44, 0 }
 0x2da   : > { %7043 = vst.msk [vmem:[%s10175_s27 + $0x158] sm:$0xf] %vm13714_vm10, %v7694_v18  ;;  %vm4728_vm11 = vcmp.lt.s32.totalorder %v3192_v44, 0  ;;  %v5112_v48 = vadd.s32 48, %v3192_v44  ;;  %v4248_v53 = vsub.s32 %v2328_v25, %v4247_v22  ;;  %v3224_v52 = vmul.u32 48, %v3223_v26  ;;  %v12493_v22 = vpop.f32.mrb[95].mxu1 }
 0x2db   : > { %7139 = vst.msk [vmem:[%s10175_s27 + $0x2d8] sm:$0xf] %vm13715_vm12, %v7790_v30  ;;  %vm4920_vm13 = vmand %vm4728_vm11, %vm4536_vm9  ;;  %v1896_v23 = vadd.f32 %v12259_v9, %v11977_v3  ;;  %v12478_v36 = vadd.f32 %v12259_v9, %v11996_v58  ;;  %v2233_v50 = vadd.s32 616, %v13591_v10  ;;  %v4279_v49 = vshrl.u32 %v12468_v24, 5 }
 0x2dc   : > { %v5304_v57 = vsel %vm4920_vm13, %v5112_v48, %v3192_v44  ;;  %vm4632_vm8 = vcmp.ne.s32.totalorder %v4248_v53, 0  ;;  %vm4824_vm1 = vcmp.lt.s32.totalorder %v4248_v53, 0  ;;  %v5208_v6 = vadd.s32 48, %v4248_v53  ;;  %vm13718_vm12 = vmmov %vm13717_vm0 }
 0x2dd   : > { %vm5496_vm5 = vcmp.lt.s32.totalorder %v5304_v57, 32  ;;  %vm5016_vm6 = vmand %vm4824_vm1, %vm4632_vm8  ;;  %v3225_v25 = vsub.s32 %v2235_v42, %v3224_v52  ;;  %v12486_v3 = vadd.f32 %v12259_v9, %v12008_v20  ;;  %v2042_v18 = vmax.f32 %v1512_v7, 0.0 }
 0x2de   : > { %v6072_v58 = vsel %vm5496_vm5, %v2039_v13, 0.0  ;;  %v5400_v8 = vsel %vm5016_vm6, %v5208_v6, %v4248_v53  ;;  %v12490_v0 = vmul.u32.u64.low 2863311531, %v2233_v50  ;;  %v12491_v63 = vmul.u32.u64.high 2863311531, %v2233_v50, %v12490_v0  ;;  %vm13719_vm6 = vmmov %vm13717_vm0 }
 0x2df   : > { %v7692_v40 = vpack.c.bf16 %v6072_v58, %v6072_v58  ;;  %vm5592_vm7 = vcmp.lt.s32.totalorder %v5400_v8, 32  ;;  %vm4539_vm14 = vcmp.ne.s32.totalorder %v3225_v25, 0  ;;  %vm4731_vm4 = vcmp.lt.s32.totalorder %v3225_v25, 0 }
 0x2e0   : > { %v6168_v42 = vsel %vm5592_vm7, %v2135_v21, 0.0  ;;  %vm4923_vm15 = vmand %vm4731_vm4, %vm4539_vm14  ;;  %v5115_v28 = vadd.s32 48, %v3225_v25  ;;  %v4280_v44 = vmul.u32 48, %v4279_v49  ;;  %v2138_v32 = vmax.f32 %v1896_v23, 0.0 }
 0x2e1   : > { %7041 = vst.msk [vmem:[%s10175_s27 + $0x150] sm:$0xf] %vm13716_vm2, %v7692_v40  ;;  %v7788_v20 = vpack.c.bf16 %v6168_v42, %v6168_v42  ;;  %v2329_v13 = vadd.s32 1384, %v13591_v10  ;;  %v2238_v30 = vadd.s32 656, %v13591_v10  ;;  %v2040_v24 = vmax.f32 %v12478_v36, 0.0  ;;  %vm13720_vm2 = vmmov %vm13717_vm0 }
 0x2e2   : > { %v5307_v26 = vsel %vm4923_vm15, %v5115_v28, %v3225_v25  ;;  %v4281_v17 = vsub.s32 %v2331_v46, %v4280_v44  ;;  %v3201_v21 = vshrl.u32 %v12491_v63, 5  ;;  %v2136_v7 = vmax.f32 %v12486_v3, 0.0 }
 0x2e3   : > { %7137 = vst.msk [vmem:[%s10175_s27 + $0x2d0] sm:$0xf] %vm13717_vm0, %v7788_v20  ;;  %vm5499_vm3 = vcmp.lt.s32.totalorder %v5307_v26, 32  ;;  %v12504_v48 = vmul.u32.u64.low 2863311531, %v2329_v13  ;;  %v12505_v53 = vmul.u32.u64.high 2863311531, %v2329_v13, %v12504_v48  ;;  %v12512_v49 = vadd.f32 %v12259_v9, %v12052_v60 }
 0x2e4   : > { %v6075_v52 = vsel %vm5499_vm3, %v2042_v18, 0.0  ;;  %vm4635_vm10 = vcmp.ne.s32.totalorder %v4281_v17, 0  ;;  %vm4827_vm9 = vcmp.lt.s32.totalorder %v4281_v17, 0  ;;  %v5211_v23 = vadd.s32 48, %v4281_v17 }
 0x2e5   : > { %v7695_v57 = vpack.c.bf16 %v6075_v52, %v6075_v52  ;;  %vm5019_vm11 = vmand %vm4827_vm9, %vm4635_vm10  ;;  %v3202_v46 = vmul.u32 48, %v3201_v21  ;;  %v12507_v6 = vmul.u32.u64.low 2863311531, %v2238_v30  ;;  %v12508_v36 = vmul.u32.u64.high 2863311531, %v2238_v30, %v12507_v6 }
 0x2e6   : > { %v5403_v25 = vsel %vm5019_vm11, %v5211_v23, %v4281_v17  ;;  %v12516_v58 = vadd.f32 %v12259_v9, %v12054_v29  ;;  %v2334_v8 = vadd.s32 1424, %v13591_v10  ;;  %v4257_v63 = vshrl.u32 %v12505_v53, 5 }
 0x2e7   : > { %7044 = vst.msk [vmem:[%s10175_s27 + $0x15c] sm:$0xf] %vm13718_vm12, %v7695_v57  ;;  %vm5595_vm13 = vcmp.lt.s32.totalorder %v5403_v25, 32  ;;  %v3203_v0 = vsub.s32 %v2233_v50, %v3202_v46  ;;  %v2236_v40 = vadd.s32 640, %v13591_v10  ;;  %v12528_v60 = vadd.f32 %v12259_v9, %v12062_v54 }
 0x2e8   : > { %v6171_v42 = vsel %vm5595_vm13, %v2138_v32, 0.0  ;;  %v12523_v18 = vmul.u32.u64.low 2863311531, %v2334_v8  ;;  %v12524_v28 = vmul.u32.u64.high 2863311531, %v2334_v8, %v12523_v18  ;;  %v4258_v20 = vmul.u32 48, %v4257_v63 }
 0x2e9   : > { %v7791_v29 = vpack.c.bf16 %v6171_v42, %v6171_v42  ;;  %vm4537_vm8 = vcmp.ne.s32.totalorder %v3203_v0, 0  ;;  %vm4729_vm1 = vcmp.lt.s32.totalorder %v3203_v0, 0  ;;  %v5113_v44 = vadd.s32 48, %v3203_v0 }
 0x2ea   : > { %vm4921_vm5 = vmand %vm4729_vm1, %vm4537_vm8  ;;  %v3256_v50 = vshrl.u32 %v12508_v36, 5  ;;  %v12531_v26 = vmul.u32.u64.low 2863311531, %v2236_v40  ;;  %v12532_v17 = vmul.u32.u64.high 2863311531, %v2236_v40, %v12531_v26  ;;  %v2045_v21 = vmax.f32 %v12512_v49, 0.0 }
 0x2eb   : > { %7140 = vst.msk [vmem:[%s10175_s27 + $0x2dc] sm:$0xf] %vm13719_vm6, %v7791_v29  ;;  %v5305_v32 = vsel %vm4921_vm5, %v5113_v44, %v3203_v0  ;;  %v2141_v48 = vmax.f32 %v12516_v58, 0.0  ;;  %v2332_v54 = vadd.s32 1408, %v13591_v10  ;;  %v4259_v53 = vsub.s32 %v2329_v13, %v4258_v20  ;;  %vm13721_vm8 = vmmov %vm13720_vm2 }
 0x2ec   : > { %vm5497_vm7 = vcmp.lt.s32.totalorder %v5305_v32, 32  ;;  %v3257_v52 = vmul.u32 48, %v3256_v50  ;;  %v4312_v23 = vshrl.u32 %v12524_v28, 5  ;;  %v2043_v46 = vmax.f32 %v12528_v60, 0.0 }
 0x2ed   : > { %v6073_v57 = vsel %vm5497_vm7, %v2040_v24, 0.0  ;;  %v12541_v6 = vmul.u32.u64.low 2863311531, %v2332_v54  ;;  %v12542_v36 = vmul.u32.u64.high 2863311531, %v2332_v54, %v12541_v6  ;;  %vm4633_vm14 = vcmp.ne.s32.totalorder %v4259_v53, 0 }
 0x2ee   : > { %v7693_v25 = vpack.c.bf16 %v6073_v57, %v6073_v57  ;;  %vm4825_vm4 = vcmp.lt.s32.totalorder %v4259_v53, 0  ;;  %v5209_v49 = vadd.s32 48, %v4259_v53  ;;  %v3258_v58 = vsub.s32 %v2238_v30, %v3257_v52 }
 0x2ef   : > { %vm5017_vm15 = vmand %vm4825_vm4, %vm4633_vm14  ;;  %v4313_v0 = vmul.u32 48, %v4312_v23  ;;  %v3234_v63 = vshrl.u32 %v12532_v17, 5  ;;  %v12547_v13 = vadd.f32 %v12259_v9, %v12068_v43  ;;  %v12553_v42 = vadd.f32 %v12259_v9, %v12088_v35 }
 0x2f0   : > { %7042 = vst.msk [vmem:[%s10175_s27 + $0x154] sm:$0xf] %vm13720_vm2, %v7693_v25  ;;  %v5401_v24 = vsel %vm5017_vm15, %v5209_v49, %v4259_v53  ;;  %v2239_v18 = vadd.s32 664, %v13591_v10  ;;  %v12557_v28 = vadd.s32 1432, %v13591_v10  ;;  %vm4542_vm3 = vcmp.ne.s32.totalorder %v3258_v58, 0  ;;  %vm13722_vm14 = vmmov %vm13720_vm2 }
 0x2f1   : > { %vm5593_vm0 = vcmp.lt.s32.totalorder %v5401_v24, 32  ;;  %vm4734_vm10 = vcmp.lt.s32.totalorder %v3258_v58, 0  ;;  %v5118_v30 = vadd.s32 48, %v3258_v58  ;;  %v4314_v29 = vsub.s32 %v2334_v8, %v4313_v0 }
 0x2f2   : > { %v6169_v43 = vsel %vm5593_vm0, %v2136_v7, 0.0  ;;  %vm4926_vm9 = vmand %vm4734_vm10, %vm4542_vm3  ;;  %v3235_v44 = vmul.u32 48, %v3234_v63  ;;  %v4290_v20 = vshrl.u32 %v12542_v36, 5  ;;  %v12569_v8 = vadd.f32 %v12259_v9, %v12104_v38 }
 0x2f3   : > { %v7789_v35 = vpack.c.bf16 %v6169_v43, %v6169_v43  ;;  %v5310_v50 = vsel %vm4926_vm9, %v5118_v30, %v3258_v58  ;;  %v12562_v26 = vmul.u32.u64.low 2863311531, %v2239_v18  ;;  %v12563_v17 = vmul.u32.u64.high 2863311531, %v2239_v18, %v12562_v26  ;;  %vm13723_vm3 = vmmov %vm13721_vm8 }
 0x2f4   : > { %vm5502_vm11 = vcmp.lt.s32.totalorder %v5310_v50, 32  ;;  %vm4638_vm12 = vcmp.ne.s32.totalorder %v4314_v29, 0  ;;  %vm4830_vm13 = vcmp.lt.s32.totalorder %v4314_v29, 0  ;;  %v5214_v32 = vadd.s32 48, %v4314_v29 }
 0x2f5   : > { %7138 = vst.msk [vmem:[%s10175_s27 + $0x2d4] sm:$0xf] %vm13721_vm8, %v7789_v35  ;;  %v6078_v53 = vsel %vm5502_vm11, %v2045_v21, 0.0  ;;  %vm5022_vm1 = vmand %vm4830_vm13, %vm4638_vm12  ;;  %v3236_v3 = vsub.s32 %v2236_v40, %v3235_v44  ;;  %v4291_v7 = vmul.u32 48, %v4290_v20  ;;  %v2139_v40 = vmax.f32 %v12547_v13, 0.0 }
 0x2f6   : > { %v7698_v52 = vpack.c.bf16 %v6078_v53, %v6078_v53  ;;  %v5406_v23 = vsel %vm5022_vm1, %v5214_v32, %v4314_v29  ;;  %v12572_v57 = vmul.u32.u64.low 2863311531, %v12557_v28  ;;  %v12573_v6 = vmul.u32.u64.high 2863311531, %v12557_v28, %v12572_v57  ;;  %vm13724_vm11 = vmmov %vm13723_vm3 }
 0x2f7   : > { %vm5598_vm5 = vcmp.lt.s32.totalorder %v5406_v23, 32  ;;  %vm4540_vm6 = vcmp.ne.s32.totalorder %v3236_v3, 0  ;;  %vm4732_vm7 = vcmp.lt.s32.totalorder %v3236_v3, 0  ;;  %v5116_v36 = vadd.s32 48, %v3236_v3  ;;  %vm13725_vm1 = vmmov %vm13723_vm3 }
 0x2f8   : > { %7047 = vst.msk [vmem:[%s10175_s27 + $0x168] sm:$0xf] %vm13722_vm14, %v7698_v52  ;;  %v6174_v21 = vsel %vm5598_vm5, %v2141_v48, 0.0  ;;  %vm4924_vm4 = vmand %vm4732_vm7, %vm4540_vm6  ;;  %v4292_v25 = vsub.s32 %v2332_v54, %v4291_v7  ;;  %v3267_v38 = vshrl.u32 %v12563_v17, 5  ;;  %v2046_v0 = vmax.f32 %v12553_v42, 0.0 }
 0x2f9   : > { %v7794_v49 = vpack.c.bf16 %v6174_v21, %v6174_v21  ;;  %v5308_v58 = vsel %vm4924_vm4, %v5116_v36, %v3236_v3  ;;  %v2237_v63 = vadd.s32 648, %v13591_v10  ;;  %v2142_v13 = vmax.f32 %v12569_v8, 0.0 }
 0x2fa   : > { %vm5500_vm15 = vcmp.lt.s32.totalorder %v5308_v58, 32  ;;  %vm4636_vm2 = vcmp.ne.s32.totalorder %v4292_v25, 0  ;;  %vm4828_vm0 = vcmp.lt.s32.totalorder %v4292_v25, 0  ;;  %v5212_v24 = vadd.s32 48, %v4292_v25 }
 0x2fb   : > { %7143 = vst.msk [vmem:[%s10175_s27 + $0x2e8] sm:$0xf] %vm13723_vm3, %v7794_v49  ;;  %v6076_v48 = vsel %vm5500_vm15, %v2043_v46, 0.0  ;;  %vm5020_vm10 = vmand %vm4828_vm0, %vm4636_vm2  ;;  %v3268_v54 = vmul.u32 48, %v3267_v38  ;;  %v4323_v30 = vshrl.u32 %v12573_v6, 5  ;;  %v1520_v50 = vadd.f32 %v12259_v9, %v12112_v39 }
 0x2fc   : > { %v7696_v43 = vpack.c.bf16 %v6076_v48, %v6076_v48  ;;  %v5404_v42 = vsel %vm5020_vm10, %v5212_v24, %v4292_v25  ;;  %v12587_v29 = vmul.u32.u64.low 2863311531, %v2237_v63  ;;  %v12588_v44 = vmul.u32.u64.high 2863311531, %v2237_v63, %v12587_v29  ;;  %vm13726_vm15 = vmmov %vm13725_vm1 }
 0x2fd   : > { %vm5596_vm9 = vcmp.lt.s32.totalorder %v5404_v42, 32  ;;  %v3269_v20 = vsub.s32 %v2239_v18, %v3268_v54  ;;  %v4324_v35 = vmul.u32 48, %v4323_v30  ;;  %v12596_v46 = vadd.f32 %v12259_v9, %v12135_v11  ;;  %vm13727_vm10 = vmmov %vm13725_vm1 }
 0x2fe   : > { %7045 = vst.msk [vmem:[%s10175_s27 + $0x160] sm:$0xf] %vm13724_vm11, %v7696_v43  ;;  %v6172_v60 = vsel %vm5596_vm9, %v2139_v40, 0.0  ;;  %v2333_v26 = vadd.s32 1416, %v13591_v10  ;;  %v2242_v17 = vadd.s32 688, %v13591_v10  ;;  %v3245_v39 = vshrl.u32 %v12588_v44, 5 }
 0x2ff   : > { %v7792_v32 = vpack.c.bf16 %v6172_v60, %v6172_v60  ;;  %vm4543_vm12 = vcmp.ne.s32.totalorder %v3269_v20, 0  ;;  %vm4735_vm13 = vcmp.lt.s32.totalorder %v3269_v20, 0  ;;  %v5119_v18 = vadd.s32 48, %v3269_v20 }
 0x300   : > { %vm4927_vm8 = vmand %vm4735_vm13, %vm4543_vm12  ;;  %v4325_v53 = vsub.s32 %v12557_v28, %v4324_v35  ;;  %v12602_v3 = vmul.u32.u64.low 2863311531, %v2333_v26  ;;  %v12603_v7 = vmul.u32.u64.high 2863311531, %v2333_v26, %v12602_v3  ;;  %v2044_v8 = vmax.f32 %v1520_v50, 0.0 }
 0x301   : > { %7141 = vst.msk [vmem:[%s10175_s27 + $0x2e0] sm:$0xf] %vm13725_vm1, %v7792_v32  ;;  %v5311_v11 = vsel %vm4927_vm8, %v5119_v18, %v3269_v20  ;;  %v12607_v52 = vmul.u32.u64.low 2863311531, %v2242_v17  ;;  %v12608_v23 = vmul.u32.u64.high 2863311531, %v2242_v17, %v12607_v52  ;;  %v3246_v28 = vmul.u32 48, %v3245_v39 }
 0x302   : > { %vm5503_vm5 = vcmp.lt.s32.totalorder %v5311_v11, 32  ;;  %vm4639_vm6 = vcmp.ne.s32.totalorder %v4325_v53, 0  ;;  %vm4831_vm7 = vcmp.lt.s32.totalorder %v4325_v53, 0  ;;  %v5215_v57 = vadd.s32 48, %v4325_v53 }
 0x303   : > { %v6079_v6 = vsel %vm5503_vm5, %v2046_v0, 0.0  ;;  %vm5023_vm14 = vmand %vm4831_vm7, %vm4639_vm6  ;;  %v12612_v36 = vadd.f32 %v12259_v9, %v12168_v16  ;;  %v2338_v21 = vadd.s32 1456, %v13591_v10  ;;  %v4301_v38 = vshrl.u32 %v12603_v7, 5 }
 0x304   : > { %v7699_v40 = vpack.c.bf16 %v6079_v6, %v6079_v6  ;;  %v5407_v25 = vsel %vm5023_vm14, %v5215_v57, %v4325_v53  ;;  %v12618_v49 = vadd.f32 %v12259_v9, %v12170_v27  ;;  %v3247_v58 = vsub.s32 %v2237_v63, %v3246_v28  ;;  %vm13728_vm6 = vmmov %vm13727_vm10 }
 0x305   : > { %vm5599_vm4 = vcmp.lt.s32.totalorder %v5407_v25, 32  ;;  %v3300_v0 = vshrl.u32 %v12608_v23, 5  ;;  %v12623_v24 = vadd.f32 %v12259_v9, %v12181_v15  ;;  %v4302_v48 = vmul.u32 48, %v4301_v38 }
 0x306   : > { %7048 = vst.msk [vmem:[%s10175_s27 + $0x16c] sm:$0xf] %vm13726_vm15, %v7699_v40  ;;  %v6175_v16 = vsel %vm5599_vm4, %v2142_v13, 0.0  ;;  %v12627_v54 = vmul.u32.u64.low 2863311531, %v2338_v21  ;;  %v12628_v30 = vmul.u32.u64.high 2863311531, %v2338_v21, %v12627_v54  ;;  %vm4541_vm2 = vcmp.ne.s32.totalorder %v3247_v58, 0  ;;  %vm13729_vm4 = vmmov %vm13728_vm6 }
 0x307   : > { %v7795_v43 = vpack.c.bf16 %v6175_v16, %v6175_v16  ;;  %vm4733_vm0 = vcmp.lt.s32.totalorder %v3247_v58, 0  ;;  %v5117_v27 = vadd.s32 48, %v3247_v58  ;;  %v2140_v63 = vmax.f32 %v12596_v46, 0.0 }
 0x308   : > { %vm4925_vm3 = vmand %vm4733_vm0, %vm4541_vm2  ;;  %v4303_v42 = vsub.s32 %v2333_v26, %v4302_v48  ;;  %v3301_v29 = vmul.u32 48, %v3300_v0  ;;  %v2240_v44 = vadd.s32 672, %v13591_v10  ;;  %v2049_v13 = vmax.f32 %v12612_v36, 0.0 }
 0x309   : > { %7144 = vst.msk [vmem:[%s10175_s27 + $0x2ec] sm:$0xf] %vm13727_vm10, %v7795_v43  ;;  %v5309_v15 = vsel %vm4925_vm3, %v5117_v27, %v3247_v58  ;;  %v2145_v20 = vmax.f32 %v12618_v49, 0.0  ;;  %v12637_v35 = vadd.s32 1440, %v13591_v10  ;;  %v4356_v26 = vshrl.u32 %v12628_v30, 5  ;;  %vm13730_vm3 = vmmov %vm13729_vm4 }
 0x30a   : > { %vm5501_vm9 = vcmp.lt.s32.totalorder %v5309_v15, 32  ;;  %vm4637_vm11 = vcmp.ne.s32.totalorder %v4303_v42, 0  ;;  %vm4829_vm12 = vcmp.lt.s32.totalorder %v4303_v42, 0  ;;  %v5213_v50 = vadd.s32 48, %v4303_v42 }
 0x30b   : > { %v6077_v60 = vsel %vm5501_vm9, %v2044_v8, 0.0  ;;  %vm5021_vm13 = vmand %vm4829_vm12, %vm4637_vm11  ;;  %v3302_v46 = vsub.s32 %v2242_v17, %v3301_v29  ;;  %v2047_v32 = vmax.f32 %v12623_v24, 0.0  ;;  %v4357_v8 = vmul.u32 48, %v4356_v26 }
 0x30c   : > { %v7697_v18 = vpack.c.bf16 %v6077_v60, %v6077_v60  ;;  %v5405_v53 = vsel %vm5021_vm13, %v5213_v50, %v4303_v42  ;;  %v12641_v39 = vmul.u32.u64.low 2863311531, %v2240_v44  ;;  %v12642_v3 = vmul.u32.u64.high 2863311531, %v2240_v44, %v12641_v39  ;;  %vm13731_vm13 = vmmov %vm13730_vm3 }
 0x30d   : > { %vm5597_vm8 = vcmp.lt.s32.totalorder %v5405_v53, 32  ;;  %vm4546_vm1 = vcmp.ne.s32.totalorder %v3302_v46, 0  ;;  %vm4738_vm5 = vcmp.lt.s32.totalorder %v3302_v46, 0  ;;  %v5122_v7 = vadd.s32 48, %v3302_v46 }
 0x30e   : > { %7046 = vst.msk [vmem:[%s10175_s27 + $0x164] sm:$0xf] %vm13728_vm6, %v7697_v18  ;;  %v6173_v11 = vsel %vm5597_vm8, %v2140_v63, 0.0  ;;  %vm4930_vm7 = vmand %vm4738_vm5, %vm4546_vm1  ;;  %v12647_v17 = vmul.u32.u64.low 2863311531, %v12637_v35  ;;  %v12648_v52 = vmul.u32.u64.high 2863311531, %v12637_v35, %v12647_v17  ;;  %v12652_v6 = vadd.f32 %v12259_v9, %v12194_v37 }
 0x30f   : > { %v7793_v23 = vpack.c.bf16 %v6173_v11, %v6173_v11  ;;  %v5314_v57 = vsel %vm4930_vm7, %v5122_v7, %v3302_v46  ;;  %v2243_v28 = vadd.s32 696, %v13591_v10  ;;  %v4358_v36 = vsub.s32 %v2338_v21, %v4357_v8 }
 0x310   : > { %vm5506_vm14 = vcmp.lt.s32.totalorder %v5314_v57, 32  ;;  %v3278_v40 = vshrl.u32 %v12642_v3, 5  ;;  %v12658_v25 = vadd.f32 %v12259_v9, %v12214_v51  ;;  %v2339_v37 = vadd.s32 1464, %v13591_v10  ;;  %v12670_v51 = vld [vmem:[%s12936_s2] ss:$0 sm:$0xff] }
 0x311   : > { %7142 = vst.msk [vmem:[%s10175_s27 + $0x2e4] sm:$0xf] %vm13729_vm4, %v7793_v23  ;;  %v6082_v38 = vsel %vm5506_vm14, %v2049_v13, 0.0  ;;  %v12662_v49 = vmul.u32.u64.low 2863311531, %v2243_v28  ;;  %v12663_v58 = vmul.u32.u64.high 2863311531, %v2243_v28, %v12662_v49  ;;  %vm4642_vm15 = vcmp.ne.s32.totalorder %v4358_v36, 0 }
 0x312   : > { %v7702_v0 = vpack.c.bf16 %v6082_v38, %v6082_v38  ;;  %vm4834_vm2 = vcmp.lt.s32.totalorder %v4358_v36, 0  ;;  %v5218_v16 = vadd.s32 48, %v4358_v36  ;;  %v3279_v21 = vmul.u32 48, %v3278_v40 }
 0x313   : > { %vm5026_vm0 = vmand %vm4834_vm2, %vm4642_vm15  ;;  %v4334_v48 = vshrl.u32 %v12648_v52, 5  ;;  %v12674_v9 = vadd.f32 %v12670_v51, %v12232_v59  ;;  %v12678_v54 = vadd.f32 %v12670_v51, %v12242_v62  ;;  %v2241_v63 = vadd.s32 680, %v13591_v10 }
 0x314   : > { %7051 = vst.msk [vmem:[%s10175_s27 + $0x178] sm:$0xf] %vm13730_vm3, %v7702_v0  ;;  %v5410_v30 = vsel %vm5026_vm0, %v5218_v16, %v4358_v36  ;;  %v12682_v43 = vmul.u32.u64.low 2863311531, %v2339_v37  ;;  %v12683_v27 = vmul.u32.u64.high 2863311531, %v2339_v37, %v12682_v43  ;;  %v3280_v42 = vsub.s32 %v2240_v44, %v3279_v21  ;;  %vm13732_vm15 = vmmov %vm13730_vm3 }
 0x315   : > { %vm5602_vm10 = vcmp.lt.s32.totalorder %v5410_v30, 32  ;;  %v4335_v29 = vmul.u32 48, %v4334_v48  ;;  %v3311_v15 = vshrl.u32 %v12663_v58, 5  ;;  %v2143_v13 = vmax.f32 %v12652_v6, 0.0 }
 0x316   : > { %v6178_v59 = vsel %vm5602_vm10, %v2145_v20, 0.0  ;;  %v12688_v50 = vmul.u32.u64.low 2863311531, %v2241_v63  ;;  %v12689_v62 = vmul.u32.u64.high 2863311531, %v2241_v63, %v12688_v50  ;;  %vm4544_vm9 = vcmp.ne.s32.totalorder %v3280_v42, 0 }
 0x317   : > { %v7798_v60 = vpack.c.bf16 %v6178_v59, %v6178_v59  ;;  %vm4736_vm11 = vcmp.lt.s32.totalorder %v3280_v42, 0  ;;  %v5120_v46 = vadd.s32 48, %v3280_v42  ;;  %v4336_v26 = vsub.s32 %v12637_v35, %v4335_v29 }
 0x318   : > { %vm4928_vm12 = vmand %vm4736_vm11, %vm4544_vm9  ;;  %v2050_v18 = vmax.f32 %v12658_v25, 0.0  ;;  %v3312_v53 = vmul.u32 48, %v3311_v15  ;;  %v4367_v44 = vshrl.u32 %v12683_v27, 5  ;;  %v2146_v39 = vmax.f32 %v12674_v9, 0.0 }
 0x319   : > { %7147 = vst.msk [vmem:[%s10175_s27 + $0x2f8] sm:$0xf] %vm13731_vm13, %v7798_v60  ;;  %v5312_v20 = vsel %vm4928_vm12, %v5120_v46, %v3280_v42  ;;  %v2048_v3 = vmax.f32 %v12678_v54, 0.0  ;;  %v12699_v7 = vadd.s32 1448, %v13591_v10  ;;  %vm4640_vm1 = vcmp.ne.s32.totalorder %v4336_v26, 0  ;;  %vm13733_vm9 = vmmov %vm13731_vm13 }
 0x31a   : > { %vm5504_vm8 = vcmp.lt.s32.totalorder %v5312_v20, 32  ;;  %vm4832_vm5 = vcmp.lt.s32.totalorder %v4336_v26, 0  ;;  %v5216_v35 = vadd.s32 48, %v4336_v26  ;;  %v3313_v8 = vsub.s32 %v2243_v28, %v3312_v53 }
 0x31b   : > { %v6080_v11 = vsel %vm5504_vm8, %v2047_v32, 0.0  ;;  %vm5024_vm6 = vmand %vm4832_vm5, %vm4640_vm1  ;;  %v4368_v17 = vmul.u32 48, %v4367_v44  ;;  %v3289_v52 = vshrl.u32 %v12689_v62, 5  ;;  %v12706_v6 = vadd.f32 %v12670_v51, %v12251_v4 }
 0x31c   : > { %v7700_v23 = vpack.c.bf16 %v6080_v11, %v6080_v11  ;;  %v5408_v57 = vsel %vm5024_vm6, %v5216_v35, %v4336_v26  ;;  %v2246_v36 = vadd.s32 720, %v13591_v10  ;;  %vm4547_vm14 = vcmp.ne.s32.totalorder %v3313_v8, 0  ;;  %vm13734_vm1 = vmmov %vm13733_vm9 }
 0x31d   : > { %vm5600_vm7 = vcmp.lt.s32.totalorder %v5408_v57, 32  ;;  %vm4739_vm4 = vcmp.lt.s32.totalorder %v3313_v8, 0  ;;  %v5123_v40 = vadd.s32 48, %v3313_v8  ;;  %v4369_v32 = vsub.s32 %v2339_v37, %v4368_v17 }
 0x31e   : > { %7049 = vst.msk [vmem:[%s10175_s27 + $0x170] sm:$0xf] %vm13732_vm15, %v7700_v23  ;;  %v6176_v24 = vsel %vm5600_vm7, %v2143_v13, 0.0  ;;  %vm4931_vm2 = vmand %vm4739_vm4, %vm4547_vm14  ;;  %v3290_v28 = vmul.u32 48, %v3289_v52  ;;  %v12713_v25 = vadd.f32 %v12670_v51, %v12297_v45  ;;  %v12726_v54 = vadd.f32 %v12670_v51, %v12299_v34 }
 0x31f   : > { %v7796_v38 = vpack.c.bf16 %v6176_v24, %v6176_v24  ;;  %v5315_v4 = vsel %vm4931_vm2, %v5123_v40, %v3313_v8  ;;  %v12716_v49 = vmul.u32.u64.low 2863311531, %v12699_v7  ;;  %v12717_v58 = vmul.u32.u64.high 2863311531, %v12699_v7, %v12716_v49  ;;  %vm13735_vm7 = vmmov %vm13734_vm1 }
 0x320   : > { %vm5507_vm0 = vcmp.lt.s32.totalorder %v5315_v4, 32  ;;  %vm4643_vm3 = vcmp.ne.s32.totalorder %v4369_v32, 0  ;;  %vm4835_vm10 = vcmp.lt.s32.totalorder %v4369_v32, 0  ;;  %v5219_v0 = vadd.s32 48, %v4369_v32  ;;  %vm13736_vm14 = vmmov %vm13734_vm1 }
 0x321   : > { %7145 = vst.msk [vmem:[%s10175_s27 + $0x2f0] sm:$0xf] %vm13733_vm9, %v7796_v38  ;;  %v6083_v16 = vsel %vm5507_vm0, %v2050_v18, 0.0  ;;  %vm5027_vm11 = vmand %vm4835_vm10, %vm4643_vm3  ;;  %v3291_v37 = vsub.s32 %v2241_v63, %v3290_v28  ;;  %v12721_v21 = vmul.u32.u64.low 2863311531, %v2246_v36  ;;  %v12722_v48 = vmul.u32.u64.high 2863311531, %v2246_v36, %v12721_v21 }
 0x322   : > { %v7703_v45 = vpack.c.bf16 %v6083_v16, %v6083_v16  ;;  %v5411_v9 = vsel %vm5027_vm11, %v5219_v0, %v4369_v32  ;;  %v2342_v30 = vadd.s32 1488, %v13591_v10  ;;  %v4345_v63 = vshrl.u32 %v12717_v58, 5 }
 0x323   : > { %vm5603_vm12 = vcmp.lt.s32.totalorder %v5411_v9, 32  ;;  %vm4545_vm13 = vcmp.ne.s32.totalorder %v3291_v37, 0  ;;  %vm4737_vm8 = vcmp.lt.s32.totalorder %v3291_v37, 0  ;;  %v5121_v43 = vadd.s32 48, %v3291_v37 }
 0x324   : > { %7052 = vst.msk [vmem:[%s10175_s27 + $0x17c] sm:$0xf] %vm13734_vm1, %v7703_v45  ;;  %v6179_v27 = vsel %vm5603_vm12, %v2146_v39, 0.0  ;;  %vm4929_vm5 = vmand %vm4737_vm8, %vm4545_vm13  ;;  %v12732_v42 = vmul.u32.u64.low 2863311531, %v2342_v30  ;;  %v12733_v29 = vmul.u32.u64.high 2863311531, %v2342_v30, %v12732_v42  ;;  %v3344_v34 = vshrl.u32 %v12722_v48, 5 }
 0x325   : > { %v7799_v15 = vpack.c.bf16 %v6179_v27, %v6179_v27  ;;  %v5313_v59 = vsel %vm4929_vm5, %v5121_v43, %v3291_v37  ;;  %v2144_v13 = vmax.f32 %v12706_v6, 0.0  ;;  %v4346_v50 = vmul.u32 48, %v4345_v63  ;;  %vm13737_vm5 = vmmov %vm13734_vm1 }
 0x326   : > { %vm5505_vm6 = vcmp.lt.s32.totalorder %v5313_v59, 32  ;;  %v2244_v62 = vadd.s32 704, %v13591_v10  ;;  %v2053_v46 = vmax.f32 %v12713_v25, 0.0  ;;  %v3345_v26 = vmul.u32 48, %v3344_v34 }
 0x327   : > { %7148 = vst.msk [vmem:[%s10175_s27 + $0x2fc] sm:$0xf] %vm13735_vm7, %v7799_v15  ;;  %v6081_v60 = vsel %vm5505_vm6, %v2048_v3, 0.0  ;;  %v2149_v18 = vmax.f32 %v12726_v54, 0.0  ;;  %v4347_v44 = vsub.s32 %v12699_v7, %v4346_v50  ;;  %v4400_v20 = vshrl.u32 %v12733_v29, 5 }
 0x328   : > { %v7701_v53 = vpack.c.bf16 %v6081_v60, %v6081_v60  ;;  %v2340_v39 = vadd.s32 1472, %v13591_v10  ;;  %v3346_v35 = vsub.s32 %v2246_v36, %v3345_v26  ;;  %v1549_v11 = vadd.f32 %v12670_v51, %v12310_v19 }
 0x329   : > { %v12747_v8 = vmul.u32.u64.low 2863311531, %v2244_v62  ;;  %v12748_v17 = vmul.u32.u64.high 2863311531, %v2244_v62, %v12747_v8  ;;  %vm4641_vm4 = vcmp.ne.s32.totalorder %v4347_v44, 0  ;;  %vm4833_vm15 = vcmp.lt.s32.totalorder %v4347_v44, 0 }
 0x32a   : > { %7050 = vst.msk [vmem:[%s10175_s27 + $0x174] sm:$0xf] %vm13736_vm14, %v7701_v53  ;;  %v5217_v3 = vadd.s32 48, %v4347_v44  ;;  %v4401_v52 = vmul.u32 48, %v4400_v20  ;;  %vm5025_vm2 = vmand %vm4833_vm15, %vm4641_vm4  ;;  %vm4550_vm0 = vcmp.ne.s32.totalorder %v3346_v35, 0  ;;  %vm4742_vm3 = vcmp.lt.s32.totalorder %v3346_v35, 0 }
 0x32b   : > { %v5126_v7 = vadd.s32 48, %v3346_v35  ;;  %v12754_v23 = vadd.f32 %v12670_v51, %v12324_v55  ;;  %vm4934_vm10 = vmand %vm4742_vm3, %vm4550_vm0  ;;  %v12756_v6 = vmul.u32.u64.low 2863311531, %v2340_v39  ;;  %v12757_v36 = vmul.u32.u64.high 2863311531, %v2340_v39, %v12756_v6 }
 0x32c   : > { %v5409_v57 = vsel %vm5025_vm2, %v5217_v3, %v4347_v44  ;;  %v4402_v19 = vsub.s32 %v2342_v30, %v4401_v52  ;;  %v3322_v24 = vshrl.u32 %v12748_v17, 5  ;;  %v2247_v32 = vadd.s32 728, %v13591_v10  ;;  %vm13738_vm15 = vmmov %vm13734_vm1 }
 0x32d   : > { %vm5601_vm9 = vcmp.lt.s32.totalorder %v5409_v57, 32  ;;  %v5318_v40 = vsel %vm4934_vm10, %v5126_v7, %v3346_v35  ;;  %v4378_v58 = vshrl.u32 %v12757_v36, 5  ;;  %v2343_v48 = vadd.s32 1496, %v13591_v10 }
 0x32e   : > { %v6177_v28 = vsel %vm5601_vm9, %v2144_v13, 0.0  ;;  %vm5510_vm11 = vcmp.lt.s32.totalorder %v5318_v40, 32  ;;  %vm4646_vm12 = vcmp.ne.s32.totalorder %v4402_v19, 0  ;;  %vm4838_vm13 = vcmp.lt.s32.totalorder %v4402_v19, 0 }
 0x32f   : > { %v7797_v55 = vpack.c.bf16 %v6177_v28, %v6177_v28  ;;  %v6086_v25 = vsel %vm5510_vm11, %v2053_v46, 0.0  ;;  %vm5030_vm8 = vmand %vm4838_vm13, %vm4646_vm12  ;;  %v5222_v38 = vadd.s32 48, %v4402_v19  ;;  %v3323_v4 = vmul.u32 48, %v3322_v24 }
 0x330   : > { %v7706_v49 = vpack.c.bf16 %v6086_v25, %v6086_v25  ;;  %v12762_v0 = vmul.u32.u64.low 2863311531, %v2247_v32  ;;  %v12763_v16 = vmul.u32.u64.high 2863311531, %v2247_v32, %v12762_v0  ;;  %v2051_v45 = vmax.f32 %v1549_v11, 0.0  ;;  %vm13739_vm11 = vmmov %vm13734_vm1 }
 0x331   : > { %7146 = vst.msk [vmem:[%s10175_s27 + $0x2f4] sm:$0xf] %vm13734_vm1, %v7797_v55  ;;  %v5414_v37 = vsel %vm5030_vm8, %v5222_v38, %v4402_v19  ;;  %v3324_v21 = vsub.s32 %v2244_v62, %v3323_v4  ;;  %v4379_v9 = vmul.u32 48, %v4378_v58  ;;  %v12771_v54 = vadd.s32 712, %v13591_v10 }
 0x332   : > { %7055 = vst.msk [vmem:[%s10175_s27 + $0x188] sm:$0xf] %vm13737_vm5, %v7706_v49  ;;  %vm5606_vm6 = vcmp.lt.s32.totalorder %v5414_v37, 32  ;;  %v2147_v63 = vmax.f32 %v12754_v23, 0.0  ;;  %v3355_v29 = vshrl.u32 %v12763_v16, 5  ;;  %v1560_v59 = vadd.f32 %v12670_v51, %v12335_v2 }
 0x333   : > { %v6182_v30 = vsel %vm5606_vm6, %v2149_v18, 0.0  ;;  %vm4548_vm7 = vcmp.ne.s32.totalorder %v3324_v21, 0  ;;  %vm4740_vm14 = vcmp.lt.s32.totalorder %v3324_v21, 0  ;;  %v5124_v43 = vadd.s32 48, %v3324_v21 }
 0x334   : > { %v7802_v27 = vpack.c.bf16 %v6182_v30, %v6182_v30  ;;  %vm4932_vm4 = vmand %vm4740_vm14, %vm4548_vm7  ;;  %v4380_v42 = vsub.s32 %v2340_v39, %v4379_v9  ;;  %v12777_v34 = vmul.u32.u64.low 2863311531, %v2343_v48  ;;  %v12778_v13 = vmul.u32.u64.high 2863311531, %v2343_v48, %v12777_v34 }
 0x335   : > { %v5316_v15 = vsel %vm4932_vm4, %v5124_v43, %v3324_v21  ;;  %v3356_v60 = vmul.u32 48, %v3355_v29  ;;  %v12783_v46 = vmul.u32.u64.low 2863311531, %v12771_v54  ;;  %v12784_v26 = vmul.u32.u64.high 2863311531, %v12771_v54, %v12783_v46  ;;  %vm13740_vm4 = vmmov %vm13734_vm1 }
 0x336   : > { %7151 = vst.msk [vmem:[%s10175_s27 + $0x308] sm:$0xf] %vm13738_vm15, %v7802_v27  ;;  %vm5508_vm2 = vcmp.lt.s32.totalorder %v5316_v15, 32  ;;  %vm4644_vm0 = vcmp.ne.s32.totalorder %v4380_v42, 0  ;;  %vm4836_vm3 = vcmp.lt.s32.totalorder %v4380_v42, 0  ;;  %v5220_v50 = vadd.s32 48, %v4380_v42 }
 0x337   : > { %v6084_v62 = vsel %vm5508_vm2, %v2051_v45, 0.0  ;;  %vm5028_vm10 = vmand %vm4836_vm3, %vm4644_vm0  ;;  %v1944_v2 = vadd.f32 %v12670_v51, %v12351_v31  ;;  %v2341_v44 = vadd.s32 1480, %v13591_v10  ;;  %v2054_v20 = vmax.f32 %v1560_v59, 0.0 }
 0x338   : > { %v7704_v18 = vpack.c.bf16 %v6084_v62, %v6084_v62  ;;  %v5412_v53 = vsel %vm5028_vm10, %v5220_v50, %v4380_v42  ;;  %v3357_v39 = vsub.s32 %v2247_v32, %v3356_v60  ;;  %v4411_v35 = vshrl.u32 %v12778_v13, 5 }
 0x339   : > { %vm5604_vm9 = vcmp.lt.s32.totalorder %v5412_v53, 32  ;;  %v1552_v8 = vadd.f32 %v12670_v51, %v12373_v33  ;;  %v12794_v17 = vmul.u32.u64.low 2863311531, %v2341_v44  ;;  %v12795_v3 = vmul.u32.u64.high 2863311531, %v2341_v44, %v12794_v17 }
 0x33a   : > { %7053 = vst.msk [vmem:[%s10175_s27 + $0x180] sm:$0xf] %vm13739_vm11, %v7704_v18  ;;  %v6180_v11 = vsel %vm5604_vm9, %v2147_v63, 0.0  ;;  %vm4551_vm12 = vcmp.ne.s32.totalorder %v3357_v39, 0  ;;  %vm4743_vm13 = vcmp.lt.s32.totalorder %v3357_v39, 0  ;;  %v5127_v31 = vadd.s32 48, %v3357_v39 }
 0x33b   : > { %v7800_v52 = vpack.c.bf16 %v6180_v11, %v6180_v11  ;;  %vm4935_vm8 = vmand %vm4743_vm13, %vm4551_vm12  ;;  %v2150_v7 = vmax.f32 %v1944_v2, 0.0  ;;  %v4412_v23 = vmul.u32 48, %v4411_v35  ;;  %v3333_v57 = vshrl.u32 %v12784_v26, 5 }
 0x33c   : > { %v2250_v19 = vadd.s32 752, %v13591_v10  ;;  %v5319_v6 = vsel %vm4935_vm8, %v5127_v31, %v3357_v39  ;;  %v1936_v33 = vadd.f32 %v12670_v51, %v12386_v41  ;;  %v12805_v36 = vadd.f32 %v12670_v51, %v12419_v47  ;;  %vm13741_vm12 = vmmov %vm13734_vm1 }
 0x33d   : > { %7149 = vst.msk [vmem:[%s10175_s27 + $0x300] sm:$0xf] %vm13734_vm1, %v7800_v52  ;;  %v2346_v40 = vadd.s32 1520, %v13591_v10  ;;  %vm5511_vm5 = vcmp.lt.s32.totalorder %v5319_v6, 32  ;;  %v4413_v24 = vsub.s32 %v2343_v48, %v4412_v23  ;;  %v3334_v32 = vmul.u32 48, %v3333_v57 }
 0x33e   : > { %v4389_v28 = vshrl.u32 %v12795_v3, 5  ;;  %v6087_v55 = vsel %vm5511_vm5, %v2054_v20, 0.0  ;;  %v2052_v25 = vmax.f32 %v1552_v8, 0.0  ;;  %v2148_v21 = vmax.f32 %v1936_v33, 0.0 }
 0x33f   : > { %v12809_v38 = vmul.u32.u64.low 2863311531, %v2250_v19  ;;  %v12810_v4 = vmul.u32.u64.high 2863311531, %v2250_v19, %v12809_v38  ;;  %v7707_v49 = vpack.c.bf16 %v6087_v55, %v6087_v55  ;;  %vm4647_vm6 = vcmp.ne.s32.totalorder %v4413_v24, 0 }
 0x340   : > { %vm4839_vm7 = vcmp.lt.s32.totalorder %v4413_v24, 0  ;;  %v5223_v41 = vadd.s32 48, %v4413_v24  ;;  %v3335_v47 = vsub.s32 %v12771_v54, %v3334_v32  ;;  %v4390_v58 = vmul.u32 48, %v4389_v28 }
 0x341   : > { %vm5031_vm14 = vmand %vm4839_vm7, %vm4647_vm6  ;;  %v12813_v0 = vmul.u32.u64.low 2863311531, %v2346_v40  ;;  %v12814_v16 = vmul.u32.u64.high 2863311531, %v2346_v40, %v12813_v0  ;;  %7056 = vst.msk [vmem:[%s10175_s27 + $0x18c] sm:$0xf] %vm13740_vm4, %v7707_v49  ;;  %v2057_v48 = vmax.f32 %v12805_v36, 0.0  ;;  %v12821_v45 = vadd.f32 %v12670_v51, %v12421_v1 }
 0x342   : > { %v5415_v37 = vsel %vm5031_vm14, %v5223_v41, %v4413_v24  ;;  %vm4549_vm2 = vcmp.ne.s32.totalorder %v3335_v47, 0  ;;  %vm4741_vm0 = vcmp.lt.s32.totalorder %v3335_v47, 0  ;;  %v5125_v9 = vadd.s32 48, %v3335_v47 }
 0x343   : > { %vm5607_vm15 = vcmp.lt.s32.totalorder %v5415_v37, 32  ;;  %vm4933_vm3 = vmand %vm4741_vm0, %vm4549_vm2  ;;  %v4391_v30 = vsub.s32 %v2341_v44, %v4390_v58  ;;  %v3388_v43 = vshrl.u32 %v12810_v4, 5  ;;  %v2248_v27 = vadd.s32 736, %v13591_v10 }
 0x344   : > { %v6183_v54 = vsel %vm5607_vm15, %v2150_v7, 0.0  ;;  %v5317_v42 = vsel %vm4933_vm3, %v5125_v9, %v3335_v47  ;;  %v4444_v29 = vshrl.u32 %v12814_v16, 5  ;;  %v2344_v15 = vadd.s32 1504, %v13591_v10  ;;  %vm13742_vm15 = vmmov %vm13734_vm1 }
 0x345   : > { %v7803_v63 = vpack.c.bf16 %v6183_v54, %v6183_v54  ;;  %vm5509_vm10 = vcmp.lt.s32.totalorder %v5317_v42, 32  ;;  %vm4645_vm9 = vcmp.ne.s32.totalorder %v4391_v30, 0  ;;  %vm4837_vm11 = vcmp.lt.s32.totalorder %v4391_v30, 0 }
 0x346   : > { %v5221_v1 = vadd.s32 48, %v4391_v30  ;;  %v6085_v59 = vsel %vm5509_vm10, %v2052_v25, 0.0  ;;  %vm5029_vm13 = vmand %vm4837_vm11, %vm4645_vm9  ;;  %v3389_v34 = vmul.u32 48, %v3388_v43  ;;  %v4445_v13 = vmul.u32 48, %v4444_v29 }
 0x347   : > { %7152 = vst.msk [vmem:[%s10175_s27 + $0x30c] sm:$0xf] %vm13741_vm12, %v7803_v63  ;;  %v12831_v50 = vadd.f32 %v12670_v51, %v12425_v12  ;;  %v7705_v62 = vpack.c.bf16 %v6085_v59, %v6085_v59  ;;  %v12833_v46 = vmul.u32.u64.low 2863311531, %v2248_v27  ;;  %v12834_v26 = vmul.u32.u64.high 2863311531, %v2248_v27, %v12833_v46  ;;  %vm13743_vm10 = vmmov %vm13734_vm1 }
 0x348   : > { %v5413_v60 = vsel %vm5029_vm13, %v5221_v1, %v4391_v30  ;;  %v3390_v18 = vsub.s32 %v2250_v19, %v3389_v34  ;;  %v2153_v53 = vmax.f32 %v12821_v45, 0.0  ;;  %v4446_v2 = vsub.s32 %v2346_v40, %v4445_v13  ;;  %vm13744_vm12 = vmmov %vm13734_vm1 }
 0x349   : > { %vm5605_vm8 = vcmp.lt.s32.totalorder %v5413_v60, 32  ;;  %7054 = vst.msk [vmem:[%s10175_s27 + $0x184] sm:$0xf] %vm13734_vm1, %v7705_v62  ;;  %v12839_v20 = vmul.u32.u64.low 2863311531, %v2344_v15  ;;  %v12840_v39 = vmul.u32.u64.high 2863311531, %v2344_v15, %v12839_v20  ;;  %v2251_v12 = vadd.s32 760, %v13591_v10 }
 0x34a   : > { %v6181_v44 = vsel %vm5605_vm8, %v2148_v21, 0.0  ;;  %vm4554_vm5 = vcmp.ne.s32.totalorder %v3390_v18, 0  ;;  %vm4746_vm6 = vcmp.lt.s32.totalorder %v3390_v18, 0  ;;  %v5130_v11 = vadd.s32 48, %v3390_v18 }
 0x34b   : > { %v7801_v35 = vpack.c.bf16 %v6181_v44, %v6181_v44  ;;  %vm4938_vm7 = vmand %vm4746_vm6, %vm4554_vm5  ;;  %vm4650_vm14 = vcmp.ne.s32.totalorder %v4446_v2, 0  ;;  %vm4842_vm4 = vcmp.lt.s32.totalorder %v4446_v2, 0  ;;  %v5226_v8 = vadd.s32 48, %v4446_v2 }
 0x34c   : > { %v3366_v17 = vshrl.u32 %v12834_v26, 5  ;;  %v5322_v3 = vsel %vm4938_vm7, %v5130_v11, %v3390_v18  ;;  %vm5034_vm2 = vmand %vm4842_vm4, %vm4650_vm14  ;;  %v2055_v52 = vmax.f32 %v12831_v50, 0.0  ;;  %v4422_v19 = vshrl.u32 %v12840_v39, 5 }
 0x34d   : > { %7150 = vst.msk [vmem:[%s10175_s27 + $0x304] sm:$0xf] %vm13742_vm15, %v7801_v35  ;;  %v12847_v31 = vmul.u32.u64.low 2863311531, %v2251_v12  ;;  %v12848_v7 = vmul.u32.u64.high 2863311531, %v2251_v12, %v12847_v31  ;;  %vm5514_vm0 = vcmp.lt.s32.totalorder %v5322_v3, 32  ;;  %v5418_v23 = vsel %vm5034_vm2, %v5226_v8, %v4446_v2  ;;  %vm13747_vm2 = vmmov %vm13743_vm10 }
 0x34e   : > { %v3367_v57 = vmul.u32 48, %v3366_v17  ;;  %v6090_v6 = vsel %vm5514_vm0, %v2057_v48, 0.0  ;;  %vm5610_vm3 = vcmp.lt.s32.totalorder %v5418_v23, 32  ;;  %v1949_v33 = vadd.f32 %v12670_v51, %v12439_v56  ;;  %vm13748_vm0 = vmmov %vm13747_vm2 }
 0x34f   : > { %v2347_v36 = vadd.s32 1528, %v13591_v10  ;;  %v7710_v40 = vpack.c.bf16 %v6090_v6, %v6090_v6  ;;  %v6186_v24 = vsel %vm5610_vm3, %v2153_v53, 0.0  ;;  %v4423_v28 = vmul.u32 48, %v4422_v19  ;;  %vm13749_vm3 = vmmov %vm13748_vm0 }
 0x350   : > { %v3368_v32 = vsub.s32 %v2248_v27, %v3367_v57  ;;  %v7806_v55 = vpack.c.bf16 %v6186_v24, %v6186_v24  ;;  %v3399_v25 = vshrl.u32 %v12848_v7, 5  ;;  %v2151_v56 = vmax.f32 %v1949_v33, 0.0 }
 0x351   : > { %v12855_v38 = vmul.u32.u64.low 2863311531, %v2347_v36  ;;  %v12856_v4 = vmul.u32.u64.high 2863311531, %v2347_v36, %v12855_v38  ;;  %7059 = vst.msk [vmem:[%s10175_s27 + $0x198] sm:$0xf] %vm13743_vm10, %v7710_v40  ;;  %v4424_v41 = vsub.s32 %v2344_v15, %v4423_v28  ;;  %v1576_v47 = vadd.f32 %v12670_v51, %v12448_v14  ;;  %vm13750_vm10 = vmmov %vm13748_vm0 }
 0x352   : > { %vm4552_vm9 = vcmp.ne.s32.totalorder %v3368_v32, 0  ;;  %vm4744_vm11 = vcmp.lt.s32.totalorder %v3368_v32, 0  ;;  %v5128_v49 = vadd.s32 48, %v3368_v32  ;;  %7155 = vst.msk [vmem:[%s10175_s27 + $0x318] sm:$0xf] %vm13744_vm12, %v7806_v55  ;;  %v3400_v58 = vmul.u32 48, %v3399_v25  ;;  %vm13753_vm12 = vmmov %vm13748_vm0 }
 0x353   : > { %vm4936_vm13 = vmand %vm4744_vm11, %vm4552_vm9  ;;  %v2249_v0 = vadd.s32 744, %v13591_v10  ;;  %vm4648_vm8 = vcmp.ne.s32.totalorder %v4424_v41, 0  ;;  %vm4840_vm1 = vcmp.lt.s32.totalorder %v4424_v41, 0  ;;  %v5224_v37 = vadd.s32 48, %v4424_v41 }
 0x354   : > { %v5320_v16 = vsel %vm4936_vm13, %v5128_v49, %v3368_v32  ;;  %vm5032_vm6 = vmand %vm4840_vm1, %vm4648_vm8  ;;  %v3401_v21 = vsub.s32 %v2251_v12, %v3400_v58  ;;  %v1960_v48 = vadd.f32 %v12670_v51, %v12462_v61  ;;  %v4455_v45 = vshrl.u32 %v12856_v4, 5 }
 0x355   : > { %vm5512_vm5 = vcmp.lt.s32.totalorder %v5320_v16, 32  ;;  %v5416_v54 = vsel %vm5032_vm6, %v5224_v37, %v4424_v41  ;;  %v12868_v30 = vmul.u32.u64.low 2863311531, %v2249_v0  ;;  %v12869_v14 = vmul.u32.u64.high 2863311531, %v2249_v0, %v12868_v30  ;;  %vm13751_vm9 = vmmov %vm13748_vm0 }
 0x356   : > { %v6088_v9 = vsel %vm5512_vm5, %v2055_v52, 0.0  ;;  %vm5608_vm7 = vcmp.lt.s32.totalorder %v5416_v54, 32  ;;  %vm4555_vm14 = vcmp.ne.s32.totalorder %v3401_v21, 0  ;;  %vm4747_vm4 = vcmp.lt.s32.totalorder %v3401_v21, 0  ;;  %vm13752_vm11 = vmmov %vm13748_vm0 }
 0x357   : > { %v7708_v43 = vpack.c.bf16 %v6088_v9, %v6088_v9  ;;  %v6184_v27 = vsel %vm5608_vm7, %v2151_v56, 0.0  ;;  %v2058_v63 = vmax.f32 %v1576_v47, 0.0  ;;  %vm12871_vm15 = vmand %vm4747_vm4, %vm4555_vm14  ;;  %v5131_v42 = vadd.s32 48, %v3401_v21 }
 0x358   : > { %v4456_v29 = vmul.u32 48, %v4455_v45  ;;  %v7804_v15 = vpack.c.bf16 %v6184_v27, %v6184_v27  ;;  %v2345_v1 = vadd.s32 1512, %v13591_v10  ;;  %v2154_v34 = vmax.f32 %v1960_v48, 0.0  ;;  %vm13754_vm13 = vmmov %vm13748_vm0 }
 0x359   : > { %7057 = vst.msk [vmem:[%s10175_s27 + $0x190] sm:$0xf] %vm13747_vm2, %v7708_v43  ;;  %v5323_v59 = vsel %vm12871_vm15, %v5131_v42, %v3401_v21  ;;  %v3377_v50 = vshrl.u32 %v12869_v14, 5  ;;  %v8614_v62 = vmov 0   ;;  %vm13755_vm8 = vmmov %vm13748_vm0  ;;  %v1568_v10 = vadd.f32 %v12670_v51, %v12481_v5 }
 0x35a   : > { %v4457_v13 = vsub.s32 %v2347_v36, %v4456_v29  ;;  %6189 = vst.msk [vmem:[%s10175_s27] sm:$0xf] %vm13748_vm0, %v8614_v62  ;;  %vm13756_vm1 = vmmov %vm13748_vm0  ;;  %v12917_v60 = vmul.u32.u64.low 2863311531, %v2345_v1  ;;  %v12918_v46 = vmul.u32.u64.high 2863311531, %v2345_v1, %v12917_v60  ;;  %v1952_v35 = vadd.f32 %v12670_v51, %v12493_v22 }
 0x35b   : > { %6190 = vst.msk [vmem:[%s10175_s27 + $0x4] sm:$0xf] %vm13749_vm3, %v8614_v62  ;;  %vm13757_vm5 = vmmov %vm13748_vm0  ;;  %vm5515_vm3 = vcmp.lt.s32.totalorder %v5323_v59, 32  ;;  %v3378_v2 = vmul.u32 48, %v3377_v50  ;;  %v2056_v5 = vmax.f32 %v1568_v10, 0.0 }
 0x35c   : > { %6191 = vst.msk [vmem:[%s10175_s27 + $0x8] sm:$0xf] %vm13750_vm10, %v8614_v62  ;;  %vm13758_vm6 = vmmov %vm13748_vm0  ;;  %v6091_v26 = vsel %vm5515_vm3, %v2058_v63, 0.0  ;;  %vm4651_vm10 = vcmp.ne.s32.totalorder %v4457_v13, 0  ;;  %v5227_v18 = vadd.s32 48, %v4457_v13  ;;  %v4433_v39 = vshrl.u32 %v12918_v46, 5 }
 0x35d   : > { %6192 = vst.msk [vmem:[%s10175_s27 + $0xc] sm:$0xf] %vm13751_vm9, %v8614_v62  ;;  %vm13759_vm7 = vmmov %vm13748_vm0  ;;  %vm4843_vm9 = vcmp.lt.s32.totalorder %v4457_v13, 0  ;;  %v7711_v53 = vpack.c.bf16 %v6091_v26, %v6091_v26  ;;  %v3379_v20 = vsub.s32 %v2249_v0, %v3378_v2  ;;  %v2152_v7 = vmax.f32 %v1952_v35, 0.0 }
 0x35e   : > { %6193 = vst.msk [vmem:[%s10175_s27 + $0x10] sm:$0xf] %vm13752_vm11, %v8614_v62  ;;  %vm13760_vm14 = vmmov %vm13748_vm0  ;;  %v4434_v17 = vmul.u32 48, %v4433_v39 }
 0x35f   : > { %6194 = vst.msk [vmem:[%s10175_s27 + $0x14] sm:$0xf] %vm13753_vm12, %v8614_v62  ;;  %vm13761_vm4 = vmmov %vm13748_vm0  ;;  %v5129_v8 = vadd.s32 48, %v3379_v20 }
 0x360   : > { %6195 = vst.msk [vmem:[%s10175_s27 + $0x18] sm:$0xf] %vm13754_vm13, %v8614_v62  ;;  %vm13762_vm15 = vmmov %vm13748_vm0  ;;  %v4435_v52 = vsub.s32 %v2345_v1, %v4434_v17 }
 0x361   : > { %6196 = vst.msk [vmem:[%s10175_s27 + $0x1c] sm:$0xf] %vm13755_vm8, %v8614_v62  ;;  %vm13763_vm2 = vmmov %vm13748_vm0  ;;  %vm4553_vm8 = vcmp.ne.s32.totalorder %v3379_v20, 0 }
 0x362   : > { %7157 = vst.msk [vmem:[%s10175_s27 + $0x320] sm:$0xf] %vm13756_vm1, %v8614_v62  ;;  %vm5035_vm11 = vmand %vm4843_vm9, %vm4651_vm10  ;;  %vm4745_vm1 = vcmp.lt.s32.totalorder %v3379_v20, 0  ;;  %v5225_v57 = vadd.s32 48, %v4435_v52 }
 0x363   : > { %7158 = vst.msk [vmem:[%s10175_s27 + $0x324] sm:$0xf] %vm13757_vm5, %v8614_v62  ;;  %v5419_v44 = vsel %vm5035_vm11, %v5227_v18, %v4457_v13  ;;  %vm13764_vm12 = vmmov %vm13748_vm0 }
 0x364   : > { %7159 = vst.msk [vmem:[%s10175_s27 + $0x328] sm:$0xf] %vm13758_vm6, %v8614_v62  ;;  %vm5611_vm13 = vcmp.lt.s32.totalorder %v5419_v44, 32  ;;  %vm4937_vm5 = vmand %vm4745_vm1, %vm4553_vm8 }
 0x365   : > { %7160 = vst.msk [vmem:[%s10175_s27 + $0x32c] sm:$0xf] %vm13759_vm7, %v8614_v62  ;;  %v6187_v12 = vsel %vm5611_vm13, %v2154_v34, 0.0  ;;  %vm13765_vm6 = vmmov %vm13748_vm0  ;;  %v5321_v3 = vsel %vm4937_vm5, %v5129_v8, %v3379_v20 }
 0x366   : > { %7161 = vst.msk [vmem:[%s10175_s27 + $0x330] sm:$0xf] %vm13760_vm14, %v8614_v62  ;;  %v7807_v11 = vpack.c.bf16 %v6187_v12, %v6187_v12  ;;  %vm5513_vm7 = vcmp.lt.s32.totalorder %v5321_v3, 32  ;;  %vm4649_vm14 = vcmp.ne.s32.totalorder %v4435_v52, 0 }
 0x367   : > { %7162 = vst.msk [vmem:[%s10175_s27 + $0x334] sm:$0xf] %vm13761_vm4, %v8614_v62  ;;  %v6089_v31 = vsel %vm5513_vm7, %v2056_v5, 0.0  ;;  %vm4841_vm4 = vcmp.lt.s32.totalorder %v4435_v52, 0 }
 0x368   : > { %7163 = vst.msk [vmem:[%s10175_s27 + $0x338] sm:$0xf] %vm13762_vm15, %v8614_v62  ;;  %v7709_v23 = vpack.c.bf16 %v6089_v31, %v6089_v31  ;;  %vm5033_vm15 = vmand %vm4841_vm4, %vm4649_vm14 }
 0x369   : > { %7164 = vst.msk [vmem:[%s10175_s27 + $0x33c] sm:$0xf] %vm13763_vm2, %v8614_v62  ;;  %vm13766_vm2 = vmmov %vm13748_vm0  ;;  %v5417_v22 = vsel %vm5033_vm15, %v5225_v57, %v4435_v52 }
 0x36a   : > { %7153 = vst.msk [vmem:[%s10175_s27 + $0x310] sm:$0xf] %vm13748_vm0, %v7804_v15  ;;  %vm5609_vm0 = vcmp.lt.s32.totalorder %v5417_v22, 32  ;;  %vm13767_vm3 = vmmov %vm13766_vm2 }
 0x36b   : > { %7060 = vst.msk [vmem:[%s10175_s27 + $0x19c] sm:$0xf] %vm13764_vm12, %v7711_v53  ;;  %v6185_v51 = vsel %vm5609_vm0, %v2152_v7, 0.0 }
 0x36c   : > { %7156 = vst.msk [vmem:[%s10175_s27 + $0x31c] sm:$0xf] %vm13765_vm6, %v7807_v11  ;;  %v7805_v19 = vpack.c.bf16 %v6185_v51, %v6185_v51 }
 0x36d   : > { %7058 = vst.msk [vmem:[%s10175_s27 + $0x194] sm:$0xf] %vm13766_vm2, %v7709_v23 }
 0x36e   : > { %7154 = vst.msk [vmem:[%s10175_s27 + $0x314] sm:$0xf] %vm13767_vm3, %v7805_v19 }
 0x36f PF: > { %s13_s12 = sadd.s32 1, %s8611_s12  }
 0x370   : > { %p10_p4 = scmp.ge.s32.totalorder %s13_s12, 4  }
 0x372   :  { %12 = sbr.rel (!%p10_p4) target bundleno = 1 (0x1), region = 62 }

</bundles_post_ra>
